<compile_context>
chip_gen: v6e
topology: v6e:2x2x1
jax: 0.10.0
libtpu: 0.0.40
codegen_flags: <defaults>
</compile_context>

<pallas_src>
import math
import jax
import jax.numpy as jnp
from jax import lax
from jax.experimental import pallas as pl
from jax.experimental.pallas import tpu as pltpu


def _num_tensorcores():
    """2 TensorCores per chip on v7x, 1 on v5e/v6e (safe fallback: 1)."""
    try:
        kind = jax.devices()[0].device_kind.lower()
        if "v7" in kind or "7x" in kind:
            return 2
    except Exception:
        pass
    return 1


def prob_attention(queries, keys, values, attn_mask=None, *, factor=5, scale=None,
                   index_sample=None, mask_flag=True, output_attention=False):
    """Pallas implementation of ProbAttention.forward (mask_flag=True path).

    queries/keys/values: (B, L, H, D) float32.  attn_mask is ignored (the ProbMask is
    built internally, as in the PyTorch module).  Returns (context, None) with context
    shaped (B, H, L_Q, D).  NOTE: attention_dropout is declared in the PyTorch __init__
    but never applied in forward(), so it is a no-op here too.
    """
    assert mask_flag and not output_attention
    B, L_Q, H, D = queries.shape
    _, L_K, _, _ = keys.shape
    # Masked path invariant (module asserts L_Q == L_V): also guarantees the padded
    # top-k sentinel index (== L_Q) never matches a query row and never masks a key col.
    assert L_Q == L_K, "mask_flag path requires L_Q == L_K (== L_V)"

    # Mirrors torch .view(B, H, L, -1) on contiguous (B, L, H, D) tensors.
    q = jnp.reshape(queries, (B, H, L_Q, D)).astype(jnp.float32)
    k = jnp.reshape(keys, (B, H, L_K, D)).astype(jnp.float32)
    v = jnp.reshape(values, (B, H, L_K, D)).astype(jnp.float32)

    U_part = int(factor * math.ceil(math.log(L_K)))   # sample_k
    u_top = int(factor * math.ceil(math.log(L_Q)))    # n_top
    assert U_part <= L_K and u_top <= L_Q, "module has no clamp; pick larger L"
    scale_val = float(scale) if scale is not None else 1.0 / math.sqrt(D)

    if index_sample is None:
        index_sample = jax.random.randint(jax.random.PRNGKey(0), (L_Q, U_part), 0, L_K)

    BH = B * H
    n_tc = _num_tensorcores()
    Hblk = BH // n_tc if (n_tc > 1 and BH % n_tc == 0) else BH   # heads per grid step
    G = BH // Hblk
    C = Hblk * D                              # head-concatenated lane width
    u_pad = ((u_top + 7) // 8) * 8            # sublane-aligned n_top
    HU = Hblk * u_pad

    q_bh = q.reshape(BH, L_Q, D)
    k_bh = k.reshape(BH, L_K, D)
    # Lane-dense head-concatenated V slab: (G, L_K, C).  Pure XLA layout plumbing.
    v_cat = (v.reshape(G, Hblk, L_K, D).transpose(0, 2, 1, 3).reshape(G, L_K, C))

    # Sample-count matrix (shared across batch/heads) via scatter-add:
    # cnt[l, j] = #times key j was drawn for query l (duplicates count, as in torch).
    cnt = jnp.zeros((L_Q, L_K), jnp.float32).at[
        jnp.arange(L_Q)[:, None], index_sample].add(1.0)

    # Per-(head, top-k-slot) column-ownership mask; row index = h*u_pad + u.
    hcols = (jnp.arange(C)[None, :] // D ==
             jnp.arange(Hblk)[:, None]).astype(jnp.float32)        # (Hblk, C)
    hcolsu = jnp.repeat(hcols, u_pad, axis=0)                      # (HU, C)

    def _kernel(cnt_ref, hcu_ref, q_ref, k_ref, v_ref, out_ref):
        qq = q_ref[...]                                   # (Hblk, L_Q, D)
        kk = k_ref[...]                                   # (Hblk, L_K, D)
        vcat = v_ref[0]                                   # (L_K, C)
        c = cnt_ref[...]                                  # (L_Q, L_K)
        hcu = hcu_ref[...]                                # (HU, C)

        # ---- sparsity measure M (MXU QK^T; duplicates counted via cnt weights) ----
        qk = jnp.einsum('hqd,hkd->hqk', qq, kk,
                        preferred_element_type=jnp.float32)        # (Hblk, L_Q, L_K)
        mx = jnp.max(jnp.where(c > 0.0, qk, -jnp.inf), axis=-1)    # max over sampled keys
        # TODO(synk): at large L move this weighted sum onto the MXU (cnt @ K trick).
        sm = jnp.sum(qk * c, axis=-1)                              # duplicate-weighted sum
        M = mx - sm * (1.0 / float(L_K))                           # (Hblk, L_Q)

        # ---- in-kernel top-k: u_top unrolled rounds of row argmax + mask ----------
        lpos2 = lax.broadcasted_iota(jnp.int32, (Hblk, L_Q), 1)
        upos = lax.broadcasted_iota(jnp.int32, (Hblk, u_pad), 1)

        def topk_body(u, carry):
            m_work, idx_acc = carry
            amax = jnp.max(m_work, axis=-1, keepdims=True)
            pos = jnp.min(jnp.where(m_work == amax, lpos2, L_Q),
                          axis=-1, keepdims=True)                  # (Hblk, 1) int32
            idx_acc = jnp.where(upos == u, pos, idx_acc)
            m_work = jnp.where(lpos2 == pos, -jnp.inf, m_work)
            return m_work, idx_acc

        idx0 = jnp.full((Hblk, u_pad), L_Q, dtype=jnp.int32)       # sentinel for pads
        _, idx = lax.fori_loop(0, u_top, topk_body, (M, idx0), unroll=True)

        # ---- one-hot row selection of qk -> scores, ProbMask, softmax -------------
        lpos3 = lax.broadcasted_iota(jnp.int32, (Hblk, u_pad, L_Q), 2)
        oh = (lpos3 == idx[..., None]).astype(jnp.float32)         # (Hblk, u_pad, L_Q)
        scores = jnp.einsum('hul,hlk->huk', oh, qk,
                            preferred_element_type=jnp.float32) * scale_val
        kpos = lax.broadcasted_iota(jnp.int32, (Hblk, u_pad, L_K), 2)
        scores = jnp.where(kpos > idx[..., None], -jnp.inf, scores)
        mrow = jnp.max(scores, axis=-1, keepdims=True)
        pexp = jnp.exp(scores - mrow)
        denom = jnp.sum(pexp, axis=-1, keepdims=True)
        attn = pexp * pl.reciprocal(denom, approx=True)            # EUP reciprocal

        # ---- attn @ V_cat with head-ownership mask; head axis contracted in one go -
        attn2 = attn.reshape(HU, L_K)                              # leading-dim merge
        oh2 = oh.reshape(HU, L_Q)
        out_full = jnp.dot(attn2, vcat,
                           preferred_element_type=jnp.float32) * hcu          # (HU, C)
        sel_cat = jnp.einsum('ul,uc->lc', oh2, out_full,
                             preferred_element_type=jnp.float32)              # (L_Q, C)
        rowsel = jnp.einsum('ul,uc->lc', oh2, hcu,
                            preferred_element_type=jnp.float32)               # (L_Q, C)

        # ---- cumsum context: single tri @ V_cat matmul -----------------------------
        tri = (lax.broadcasted_iota(jnp.int32, (L_Q, L_K), 1) <=
               lax.broadcasted_iota(jnp.int32, (L_Q, L_K), 0)).astype(jnp.float32)
        ctx_cat = jnp.dot(tri, vcat, preferred_element_type=jnp.float32)      # (L_Q, C)

        out_ref[0] = jnp.where(rowsel > 0.5, sel_cat, ctx_cat).astype(out_ref.dtype)

    # Rough per-step working-set estimate (bytes); raise scoped VMEM only when needed
    # (v5e default is 16 MiB — matters at larger L, no-op at these shapes).
    vmem_est = 4 * (2 * (L_Q * L_K + HU * C + Hblk * L_Q * D + Hblk * L_K * D
                         + L_K * C + L_Q * C)
                    + Hblk * L_Q * L_K
                    + 4 * Hblk * u_pad * L_K
                    + 2 * HU * C + 4 * L_Q * C)
    vmem_limit = int(min(2 * vmem_est, 100 * 2**20)) if vmem_est > 12 * 2**20 else None

    ctx_cat_out = pl.pallas_call(
        _kernel,
        out_shape=jax.ShapeDtypeStruct((G, L_Q, C), jnp.float32),
        grid=(G,),
        in_specs=[pl.BlockSpec((L_Q, L_K), lambda g: (0, 0)),           # cnt (resident)
                  pl.BlockSpec((HU, C), lambda g: (0, 0)),              # hcolsu (resident)
                  pl.BlockSpec((Hblk, L_Q, D), lambda g: (g, 0, 0)),    # Q
                  pl.BlockSpec((Hblk, L_K, D), lambda g: (g, 0, 0)),    # K
                  pl.BlockSpec((1, L_K, C), lambda g: (g, 0, 0))],      # V (head-concat)
        out_specs=pl.BlockSpec((1, L_Q, C), lambda g: (g, 0, 0)),       # lane-dense slab
        compiler_params=pltpu.CompilerParams(
            dimension_semantics=("parallel",), vmem_limit_bytes=vmem_limit),
    )(cnt, hcolsu, q_bh, k_bh, v_cat)

    context = (ctx_cat_out.reshape(G, L_Q, Hblk, D)
               .transpose(0, 2, 1, 3)
               .reshape(B, H, L_Q, D))
    return context, None


def prob_attention_ref(queries, keys, values, index_sample, *, factor=5, scale=None):
    """Pure-JAX reference mirroring the PyTorch forward (mask_flag=True)."""
    B, L_Q, H, D = queries.shape
    _, L_K, _, _ = keys.shape
    q = queries.reshape(B, H, L_Q, D)
    k = keys.reshape(B, H, L_K, D)
    v = values.reshape(B, H, L_K, D)
    u_top = int(factor * math.ceil(math.log(L_Q)))
    K_sample = k[:, :, index_sample, :]                        # (B,H,L_Q,S,D)
    QKs = jnp.einsum('bhld,bhlsd->bhls', q, K_sample)
    M = QKs.max(-1) - QKs.sum(-1) / L_K
    _, idx = lax.top_k(M, u_top)
    Qr = jnp.take_along_axis(q, idx[..., None], axis=2)
    sc = scale if scale is not None else 1.0 / math.sqrt(D)
    scores = jnp.einsum('bhud,bhkd->bhuk', Qr, k) * sc
    mask = jnp.arange(L_K)[None, None, None, :] > idx[..., None]
    scores = jnp.where(mask, -jnp.inf, scores)
    attn = jax.nn.softmax(scores, axis=-1)
    ctx_u = jnp.einsum('bhuk,bhkd->bhud', attn, v)
    ctx = jnp.cumsum(v, axis=2)
    bi = jnp.arange(B)[:, None, None]
    hi = jnp.arange(H)[None, :, None]
    ctx = ctx.at[bi, hi, idx, :].set(ctx_u)
    return ctx


if __name__ == "__main__":
    B, L, H, D = 2, 64, 4, 32           # L_Q = L_K = 64 (mask_flag requires L_Q == L_V)
    factor = 5
    key = jax.random.PRNGKey(0)
    kq, kk_, kv, ksamp = jax.random.split(key, 4)
    queries = jax.random.normal(kq, (B, L, H, D), dtype=jnp.float32)
    keys_t = jax.random.normal(kk_, (B, L, H, D), dtype=jnp.float32)
    values = jax.random.normal(kv, (B, L, H, D), dtype=jnp.float32)

    S = int(factor * math.ceil(math.log(L)))
    index_sample = jax.random.randint(ksamp, (L, S), 0, L)   # torch.randint(L_K, (L_Q, sample_k))

    context, attn = prob_attention(queries, keys_t, values, None,
                                   factor=factor, index_sample=index_sample)
    context = jax.block_until_ready(context)

    ref = jax.block_until_ready(
        prob_attention_ref(queries, keys_t, values, index_sample, factor=factor))

    assert context.shape == (B, H, L, D)
    assert attn is None
    err = float(jnp.max(jnp.abs(context - ref)))
    assert jnp.allclose(context, ref, rtol=2e-3, atol=2e-3), err
    print("KERNEL_OK")
</pallas_src>

<mosaic_0001>
module attributes {stable_mosaic.version = 11 : i64} {
  func.func @_kernel(%arg0: i32, %arg1: memref<64x64xf32, #tpu.memory_space<vmem>>, %arg2: memref<256x256xf32, #tpu.memory_space<vmem>>, %arg3: memref<8x64x32xf32, #tpu.memory_space<vmem>>, %arg4: memref<8x64x32xf32, #tpu.memory_space<vmem>>, %arg5: memref<1x64x256xf32, #tpu.memory_space<vmem>>, %arg6: memref<1x64x256xf32, #tpu.memory_space<vmem>>) attributes {dimension_semantics = [#tpu.dimension_semantics<parallel>], iteration_bounds = array<i64: 1>, scalar_prefetch = 0 : i64, scratch_operands = 0 : i64, tpu.core_type = #tpu.core_type<tc>, window_params = [{pipeline_mode = #tpu.pipeline_mode<synchronous>, transform_indices = @transform_0, window_bounds = array<i64: 64, 64>}, {pipeline_mode = #tpu.pipeline_mode<synchronous>, transform_indices = @transform_1, window_bounds = array<i64: 256, 256>}, {transform_indices = @transform_2, window_bounds = array<i64: 8, 64, 32>}, {transform_indices = @transform_3, window_bounds = array<i64: 8, 64, 32>}, {transform_indices = @transform_4, window_bounds = array<i64: 1, 64, 256>}, {transform_indices = @transform_5, window_bounds = array<i64: 1, 64, 256>}]} {
    %c0 = arith.constant 0 : index
    %c0_0 = arith.constant 0 : index
    %c0_1 = arith.constant 0 : index
    %0 = vector.load %arg3[%c0, %c0_0, %c0_1] : memref<8x64x32xf32, #tpu.memory_space<vmem>>, vector<8x64x32xf32>
    %c0_2 = arith.constant 0 : index
    %c0_3 = arith.constant 0 : index
    %c0_4 = arith.constant 0 : index
    %1 = vector.load %arg4[%c0_2, %c0_3, %c0_4] : memref<8x64x32xf32, #tpu.memory_space<vmem>>, vector<8x64x32xf32>
    %c0_5 = arith.constant 0 : index
    %c0_6 = arith.constant 0 : index
    %c0_7 = arith.constant 0 : index
    %2 = vector.load %arg5[%c0_5, %c0_6, %c0_7] : memref<1x64x256xf32, #tpu.memory_space<vmem>>, vector<1x64x256xf32>
    %3 = vector.shape_cast %2 : vector<1x64x256xf32> to vector<64x256xf32>
    %c0_8 = arith.constant 0 : index
    %c0_9 = arith.constant 0 : index
    %4 = vector.load %arg1[%c0_8, %c0_9] : memref<64x64xf32, #tpu.memory_space<vmem>>, vector<64x64xf32>
    %c0_10 = arith.constant 0 : index
    %c0_11 = arith.constant 0 : index
    %5 = vector.load %arg2[%c0_10, %c0_11] : memref<256x256xf32, #tpu.memory_space<vmem>>, vector<256x256xf32>
    "tpu.trace_start"() <{level = 10 : i32, message = "hqd,hkd->hqk"}> : () -> ()
    %cst = arith.constant dense<0.000000e+00> : vector<8x64x64xf32>
    %6 = tpu.matmul %0, %1, %cst {dimension_numbers = #tpu.dot_dimension_numbers<[2], [2], [1], [1], [0, 0, 0, 1, 1, 1], [0], [0]>} : vector<8x64x32xf32>, vector<8x64x32xf32>, vector<8x64x64xf32> -> vector<8x64x64xf32>
    %cst_12 = arith.constant 0.000000e+00 : f32
    "tpu.trace_stop"() : () -> ()
    %7 = vector.broadcast %cst_12 : f32 to vector<64x64xf32>
    %8 = arith.cmpf ogt, %4, %7 : vector<64x64xf32>
    %cst_13 = arith.constant 0xFF800000 : f32
    %9 = vector.shape_cast %8 : vector<64x64xi1> to vector<1x64x64xi1>
    %10 = vector.broadcast %9 : vector<1x64x64xi1> to vector<8x64x64xi1>
    %11 = vector.broadcast %cst_13 : f32 to vector<8x64x64xf32>
    %12 = arith.select %10, %6, %11 : vector<8x64x64xi1>, vector<8x64x64xf32>
    %cst_14 = arith.constant dense<0xFF800000> : vector<8x64xf32>
    %13 = vector.multi_reduction <maximumf>, %12, %cst_14 [2] : vector<8x64x64xf32> to vector<8x64xf32>
    %14 = vector.shape_cast %4 : vector<64x64xf32> to vector<1x64x64xf32>
    %15 = vector.broadcast %14 : vector<1x64x64xf32> to vector<8x64x64xf32>
    %16 = arith.mulf %6, %15 : vector<8x64x64xf32>
    %cst_15 = arith.constant dense<0.000000e+00> : vector<8x64xf32>
    %17 = vector.multi_reduction <add>, %16, %cst_15 [2] : vector<8x64x64xf32> to vector<8x64xf32>
    %cst_16 = arith.constant 1.562500e-02 : f32
    %18 = vector.broadcast %cst_16 : f32 to vector<8x64xf32>
    %19 = arith.mulf %17, %18 : vector<8x64xf32>
    %20 = arith.subf %13, %19 : vector<8x64xf32>
    %21 = tpu.iota {dimensions = array<i32: 1>} : vector<8x64xi32>
    %22 = tpu.iota {dimensions = array<i32: 1>} : vector<8x32xi32>
    %c64_i32 = arith.constant 64 : i32
    %23 = vector.broadcast %c64_i32 : i32 to vector<8x32xi32>
    %c0_i32 = arith.constant 0 : i32
    %cst_17 = arith.constant dense<0xFF800000> : vector<8xf32>
    %24 = vector.multi_reduction <maximumf>, %20, %cst_17 [1] : vector<8x64xf32> to vector<8xf32>
    %25 = vector.shape_cast %24 : vector<8xf32> to vector<8x1xf32>
    %26 = vector.broadcast %25 : vector<8x1xf32> to vector<8x64xf32>
    %27 = arith.cmpf oeq, %20, %26 : vector<8x64xf32>
    %c64_i32_18 = arith.constant 64 : i32
    %28 = vector.broadcast %c64_i32_18 : i32 to vector<8x64xi32>
    %29 = arith.select %27, %21, %28 : vector<8x64xi1>, vector<8x64xi32>
    %cst_19 = arith.constant dense<2147483647> : vector<8xi32>
    %30 = vector.multi_reduction <minsi>, %29, %cst_19 [1] : vector<8x64xi32> to vector<8xi32>
    %31 = vector.shape_cast %30 : vector<8xi32> to vector<8x1xi32>
    %32 = vector.broadcast %c0_i32 : i32 to vector<8x32xi32>
    %33 = arith.cmpi eq, %22, %32 : vector<8x32xi32>
    %34 = vector.shape_cast %31 : vector<8x1xi32> to vector<8x1xi32>
    %35 = vector.broadcast %34 : vector<8x1xi32> to vector<8x32xi32>
    %36 = arith.select %33, %35, %23 : vector<8x32xi1>, vector<8x32xi32>
    %37 = vector.broadcast %31 : vector<8x1xi32> to vector<8x64xi32>
    %38 = arith.cmpi eq, %21, %37 : vector<8x64xi32>
    %cst_20 = arith.constant 0xFF800000 : f32
    %39 = vector.broadcast %cst_20 : f32 to vector<8x64xf32>
    %40 = arith.select %38, %39, %20 : vector<8x64xi1>, vector<8x64xf32>
    %c1_i32 = arith.constant 1 : i32
    %cst_21 = arith.constant dense<0xFF800000> : vector<8xf32>
    %41 = vector.multi_reduction <maximumf>, %40, %cst_21 [1] : vector<8x64xf32> to vector<8xf32>
    %42 = vector.shape_cast %41 : vector<8xf32> to vector<8x1xf32>
    %43 = vector.broadcast %42 : vector<8x1xf32> to vector<8x64xf32>
    %44 = arith.cmpf oeq, %40, %43 : vector<8x64xf32>
    %c64_i32_22 = arith.constant 64 : i32
    %45 = vector.broadcast %c64_i32_22 : i32 to vector<8x64xi32>
    %46 = arith.select %44, %21, %45 : vector<8x64xi1>, vector<8x64xi32>
    %cst_23 = arith.constant dense<2147483647> : vector<8xi32>
    %47 = vector.multi_reduction <minsi>, %46, %cst_23 [1] : vector<8x64xi32> to vector<8xi32>
    %48 = vector.shape_cast %47 : vector<8xi32> to vector<8x1xi32>
    %49 = vector.broadcast %c1_i32 : i32 to vector<8x32xi32>
    %50 = arith.cmpi eq, %22, %49 : vector<8x32xi32>
    %51 = vector.shape_cast %48 : vector<8x1xi32> to vector<8x1xi32>
    %52 = vector.broadcast %51 : vector<8x1xi32> to vector<8x32xi32>
    %53 = arith.select %50, %52, %36 : vector<8x32xi1>, vector<8x32xi32>
    %54 = vector.broadcast %48 : vector<8x1xi32> to vector<8x64xi32>
    %55 = arith.cmpi eq, %21, %54 : vector<8x64xi32>
    %cst_24 = arith.constant 0xFF800000 : f32
    %56 = vector.broadcast %cst_24 : f32 to vector<8x64xf32>
    %57 = arith.select %55, %56, %40 : vector<8x64xi1>, vector<8x64xf32>
    %c2_i32 = arith.constant 2 : i32
    %cst_25 = arith.constant dense<0xFF800000> : vector<8xf32>
    %58 = vector.multi_reduction <maximumf>, %57, %cst_25 [1] : vector<8x64xf32> to vector<8xf32>
    %59 = vector.shape_cast %58 : vector<8xf32> to vector<8x1xf32>
    %60 = vector.broadcast %59 : vector<8x1xf32> to vector<8x64xf32>
    %61 = arith.cmpf oeq, %57, %60 : vector<8x64xf32>
    %c64_i32_26 = arith.constant 64 : i32
    %62 = vector.broadcast %c64_i32_26 : i32 to vector<8x64xi32>
    %63 = arith.select %61, %21, %62 : vector<8x64xi1>, vector<8x64xi32>
    %cst_27 = arith.constant dense<2147483647> : vector<8xi32>
    %64 = vector.multi_reduction <minsi>, %63, %cst_27 [1] : vector<8x64xi32> to vector<8xi32>
    %65 = vector.shape_cast %64 : vector<8xi32> to vector<8x1xi32>
    %66 = vector.broadcast %c2_i32 : i32 to vector<8x32xi32>
    %67 = arith.cmpi eq, %22, %66 : vector<8x32xi32>
    %68 = vector.shape_cast %65 : vector<8x1xi32> to vector<8x1xi32>
    %69 = vector.broadcast %68 : vector<8x1xi32> to vector<8x32xi32>
    %70 = arith.select %67, %69, %53 : vector<8x32xi1>, vector<8x32xi32>
    %71 = vector.broadcast %65 : vector<8x1xi32> to vector<8x64xi32>
    %72 = arith.cmpi eq, %21, %71 : vector<8x64xi32>
    %cst_28 = arith.constant 0xFF800000 : f32
    %73 = vector.broadcast %cst_28 : f32 to vector<8x64xf32>
    %74 = arith.select %72, %73, %57 : vector<8x64xi1>, vector<8x64xf32>
    %c3_i32 = arith.constant 3 : i32
    %cst_29 = arith.constant dense<0xFF800000> : vector<8xf32>
    %75 = vector.multi_reduction <maximumf>, %74, %cst_29 [1] : vector<8x64xf32> to vector<8xf32>
    %76 = vector.shape_cast %75 : vector<8xf32> to vector<8x1xf32>
    %77 = vector.broadcast %76 : vector<8x1xf32> to vector<8x64xf32>
    %78 = arith.cmpf oeq, %74, %77 : vector<8x64xf32>
    %c64_i32_30 = arith.constant 64 : i32
    %79 = vector.broadcast %c64_i32_30 : i32 to vector<8x64xi32>
    %80 = arith.select %78, %21, %79 : vector<8x64xi1>, vector<8x64xi32>
    %cst_31 = arith.constant dense<2147483647> : vector<8xi32>
    %81 = vector.multi_reduction <minsi>, %80, %cst_31 [1] : vector<8x64xi32> to vector<8xi32>
    %82 = vector.shape_cast %81 : vector<8xi32> to vector<8x1xi32>
    %83 = vector.broadcast %c3_i32 : i32 to vector<8x32xi32>
    %84 = arith.cmpi eq, %22, %83 : vector<8x32xi32>
    %85 = vector.shape_cast %82 : vector<8x1xi32> to vector<8x1xi32>
    %86 = vector.broadcast %85 : vector<8x1xi32> to vector<8x32xi32>
    %87 = arith.select %84, %86, %70 : vector<8x32xi1>, vector<8x32xi32>
    %88 = vector.broadcast %82 : vector<8x1xi32> to vector<8x64xi32>
    %89 = arith.cmpi eq, %21, %88 : vector<8x64xi32>
    %cst_32 = arith.constant 0xFF800000 : f32
    %90 = vector.broadcast %cst_32 : f32 to vector<8x64xf32>
    %91 = arith.select %89, %90, %74 : vector<8x64xi1>, vector<8x64xf32>
    %c4_i32 = arith.constant 4 : i32
    %cst_33 = arith.constant dense<0xFF800000> : vector<8xf32>
    %92 = vector.multi_reduction <maximumf>, %91, %cst_33 [1] : vector<8x64xf32> to vector<8xf32>
    %93 = vector.shape_cast %92 : vector<8xf32> to vector<8x1xf32>
    %94 = vector.broadcast %93 : vector<8x1xf32> to vector<8x64xf32>
    %95 = arith.cmpf oeq, %91, %94 : vector<8x64xf32>
    %c64_i32_34 = arith.constant 64 : i32
    %96 = vector.broadcast %c64_i32_34 : i32 to vector<8x64xi32>
    %97 = arith.select %95, %21, %96 : vector<8x64xi1>, vector<8x64xi32>
    %cst_35 = arith.constant dense<2147483647> : vector<8xi32>
    %98 = vector.multi_reduction <minsi>, %97, %cst_35 [1] : vector<8x64xi32> to vector<8xi32>
    %99 = vector.shape_cast %98 : vector<8xi32> to vector<8x1xi32>
    %100 = vector.broadcast %c4_i32 : i32 to vector<8x32xi32>
    %101 = arith.cmpi eq, %22, %100 : vector<8x32xi32>
    %102 = vector.shape_cast %99 : vector<8x1xi32> to vector<8x1xi32>
    %103 = vector.broadcast %102 : vector<8x1xi32> to vector<8x32xi32>
    %104 = arith.select %101, %103, %87 : vector<8x32xi1>, vector<8x32xi32>
    %105 = vector.broadcast %99 : vector<8x1xi32> to vector<8x64xi32>
    %106 = arith.cmpi eq, %21, %105 : vector<8x64xi32>
    %cst_36 = arith.constant 0xFF800000 : f32
    %107 = vector.broadcast %cst_36 : f32 to vector<8x64xf32>
    %108 = arith.select %106, %107, %91 : vector<8x64xi1>, vector<8x64xf32>
    %c5_i32 = arith.constant 5 : i32
    %cst_37 = arith.constant dense<0xFF800000> : vector<8xf32>
    %109 = vector.multi_reduction <maximumf>, %108, %cst_37 [1] : vector<8x64xf32> to vector<8xf32>
    %110 = vector.shape_cast %109 : vector<8xf32> to vector<8x1xf32>
    %111 = vector.broadcast %110 : vector<8x1xf32> to vector<8x64xf32>
    %112 = arith.cmpf oeq, %108, %111 : vector<8x64xf32>
    %c64_i32_38 = arith.constant 64 : i32
    %113 = vector.broadcast %c64_i32_38 : i32 to vector<8x64xi32>
    %114 = arith.select %112, %21, %113 : vector<8x64xi1>, vector<8x64xi32>
    %cst_39 = arith.constant dense<2147483647> : vector<8xi32>
    %115 = vector.multi_reduction <minsi>, %114, %cst_39 [1] : vector<8x64xi32> to vector<8xi32>
    %116 = vector.shape_cast %115 : vector<8xi32> to vector<8x1xi32>
    %117 = vector.broadcast %c5_i32 : i32 to vector<8x32xi32>
    %118 = arith.cmpi eq, %22, %117 : vector<8x32xi32>
    %119 = vector.shape_cast %116 : vector<8x1xi32> to vector<8x1xi32>
    %120 = vector.broadcast %119 : vector<8x1xi32> to vector<8x32xi32>
    %121 = arith.select %118, %120, %104 : vector<8x32xi1>, vector<8x32xi32>
    %122 = vector.broadcast %116 : vector<8x1xi32> to vector<8x64xi32>
    %123 = arith.cmpi eq, %21, %122 : vector<8x64xi32>
    %cst_40 = arith.constant 0xFF800000 : f32
    %124 = vector.broadcast %cst_40 : f32 to vector<8x64xf32>
    %125 = arith.select %123, %124, %108 : vector<8x64xi1>, vector<8x64xf32>
    %c6_i32 = arith.constant 6 : i32
    %cst_41 = arith.constant dense<0xFF800000> : vector<8xf32>
    %126 = vector.multi_reduction <maximumf>, %125, %cst_41 [1] : vector<8x64xf32> to vector<8xf32>
    %127 = vector.shape_cast %126 : vector<8xf32> to vector<8x1xf32>
    %128 = vector.broadcast %127 : vector<8x1xf32> to vector<8x64xf32>
    %129 = arith.cmpf oeq, %125, %128 : vector<8x64xf32>
    %c64_i32_42 = arith.constant 64 : i32
    %130 = vector.broadcast %c64_i32_42 : i32 to vector<8x64xi32>
    %131 = arith.select %129, %21, %130 : vector<8x64xi1>, vector<8x64xi32>
    %cst_43 = arith.constant dense<2147483647> : vector<8xi32>
    %132 = vector.multi_reduction <minsi>, %131, %cst_43 [1] : vector<8x64xi32> to vector<8xi32>
    %133 = vector.shape_cast %132 : vector<8xi32> to vector<8x1xi32>
    %134 = vector.broadcast %c6_i32 : i32 to vector<8x32xi32>
    %135 = arith.cmpi eq, %22, %134 : vector<8x32xi32>
    %136 = vector.shape_cast %133 : vector<8x1xi32> to vector<8x1xi32>
    %137 = vector.broadcast %136 : vector<8x1xi32> to vector<8x32xi32>
    %138 = arith.select %135, %137, %121 : vector<8x32xi1>, vector<8x32xi32>
    %139 = vector.broadcast %133 : vector<8x1xi32> to vector<8x64xi32>
    %140 = arith.cmpi eq, %21, %139 : vector<8x64xi32>
    %cst_44 = arith.constant 0xFF800000 : f32
    %141 = vector.broadcast %cst_44 : f32 to vector<8x64xf32>
    %142 = arith.select %140, %141, %125 : vector<8x64xi1>, vector<8x64xf32>
    %c7_i32 = arith.constant 7 : i32
    %cst_45 = arith.constant dense<0xFF800000> : vector<8xf32>
    %143 = vector.multi_reduction <maximumf>, %142, %cst_45 [1] : vector<8x64xf32> to vector<8xf32>
    %144 = vector.shape_cast %143 : vector<8xf32> to vector<8x1xf32>
    %145 = vector.broadcast %144 : vector<8x1xf32> to vector<8x64xf32>
    %146 = arith.cmpf oeq, %142, %145 : vector<8x64xf32>
    %c64_i32_46 = arith.constant 64 : i32
    %147 = vector.broadcast %c64_i32_46 : i32 to vector<8x64xi32>
    %148 = arith.select %146, %21, %147 : vector<8x64xi1>, vector<8x64xi32>
    %cst_47 = arith.constant dense<2147483647> : vector<8xi32>
    %149 = vector.multi_reduction <minsi>, %148, %cst_47 [1] : vector<8x64xi32> to vector<8xi32>
    %150 = vector.shape_cast %149 : vector<8xi32> to vector<8x1xi32>
    %151 = vector.broadcast %c7_i32 : i32 to vector<8x32xi32>
    %152 = arith.cmpi eq, %22, %151 : vector<8x32xi32>
    %153 = vector.shape_cast %150 : vector<8x1xi32> to vector<8x1xi32>
    %154 = vector.broadcast %153 : vector<8x1xi32> to vector<8x32xi32>
    %155 = arith.select %152, %154, %138 : vector<8x32xi1>, vector<8x32xi32>
    %156 = vector.broadcast %150 : vector<8x1xi32> to vector<8x64xi32>
    %157 = arith.cmpi eq, %21, %156 : vector<8x64xi32>
    %cst_48 = arith.constant 0xFF800000 : f32
    %158 = vector.broadcast %cst_48 : f32 to vector<8x64xf32>
    %159 = arith.select %157, %158, %142 : vector<8x64xi1>, vector<8x64xf32>
    %c8_i32 = arith.constant 8 : i32
    %cst_49 = arith.constant dense<0xFF800000> : vector<8xf32>
    %160 = vector.multi_reduction <maximumf>, %159, %cst_49 [1] : vector<8x64xf32> to vector<8xf32>
    %161 = vector.shape_cast %160 : vector<8xf32> to vector<8x1xf32>
    %162 = vector.broadcast %161 : vector<8x1xf32> to vector<8x64xf32>
    %163 = arith.cmpf oeq, %159, %162 : vector<8x64xf32>
    %c64_i32_50 = arith.constant 64 : i32
    %164 = vector.broadcast %c64_i32_50 : i32 to vector<8x64xi32>
    %165 = arith.select %163, %21, %164 : vector<8x64xi1>, vector<8x64xi32>
    %cst_51 = arith.constant dense<2147483647> : vector<8xi32>
    %166 = vector.multi_reduction <minsi>, %165, %cst_51 [1] : vector<8x64xi32> to vector<8xi32>
    %167 = vector.shape_cast %166 : vector<8xi32> to vector<8x1xi32>
    %168 = vector.broadcast %c8_i32 : i32 to vector<8x32xi32>
    %169 = arith.cmpi eq, %22, %168 : vector<8x32xi32>
    %170 = vector.shape_cast %167 : vector<8x1xi32> to vector<8x1xi32>
    %171 = vector.broadcast %170 : vector<8x1xi32> to vector<8x32xi32>
    %172 = arith.select %169, %171, %155 : vector<8x32xi1>, vector<8x32xi32>
    %173 = vector.broadcast %167 : vector<8x1xi32> to vector<8x64xi32>
    %174 = arith.cmpi eq, %21, %173 : vector<8x64xi32>
    %cst_52 = arith.constant 0xFF800000 : f32
    %175 = vector.broadcast %cst_52 : f32 to vector<8x64xf32>
    %176 = arith.select %174, %175, %159 : vector<8x64xi1>, vector<8x64xf32>
    %c9_i32 = arith.constant 9 : i32
    %cst_53 = arith.constant dense<0xFF800000> : vector<8xf32>
    %177 = vector.multi_reduction <maximumf>, %176, %cst_53 [1] : vector<8x64xf32> to vector<8xf32>
    %178 = vector.shape_cast %177 : vector<8xf32> to vector<8x1xf32>
    %179 = vector.broadcast %178 : vector<8x1xf32> to vector<8x64xf32>
    %180 = arith.cmpf oeq, %176, %179 : vector<8x64xf32>
    %c64_i32_54 = arith.constant 64 : i32
    %181 = vector.broadcast %c64_i32_54 : i32 to vector<8x64xi32>
    %182 = arith.select %180, %21, %181 : vector<8x64xi1>, vector<8x64xi32>
    %cst_55 = arith.constant dense<2147483647> : vector<8xi32>
    %183 = vector.multi_reduction <minsi>, %182, %cst_55 [1] : vector<8x64xi32> to vector<8xi32>
    %184 = vector.shape_cast %183 : vector<8xi32> to vector<8x1xi32>
    %185 = vector.broadcast %c9_i32 : i32 to vector<8x32xi32>
    %186 = arith.cmpi eq, %22, %185 : vector<8x32xi32>
    %187 = vector.shape_cast %184 : vector<8x1xi32> to vector<8x1xi32>
    %188 = vector.broadcast %187 : vector<8x1xi32> to vector<8x32xi32>
    %189 = arith.select %186, %188, %172 : vector<8x32xi1>, vector<8x32xi32>
    %190 = vector.broadcast %184 : vector<8x1xi32> to vector<8x64xi32>
    %191 = arith.cmpi eq, %21, %190 : vector<8x64xi32>
    %cst_56 = arith.constant 0xFF800000 : f32
    %192 = vector.broadcast %cst_56 : f32 to vector<8x64xf32>
    %193 = arith.select %191, %192, %176 : vector<8x64xi1>, vector<8x64xf32>
    %c10_i32 = arith.constant 10 : i32
    %cst_57 = arith.constant dense<0xFF800000> : vector<8xf32>
    %194 = vector.multi_reduction <maximumf>, %193, %cst_57 [1] : vector<8x64xf32> to vector<8xf32>
    %195 = vector.shape_cast %194 : vector<8xf32> to vector<8x1xf32>
    %196 = vector.broadcast %195 : vector<8x1xf32> to vector<8x64xf32>
    %197 = arith.cmpf oeq, %193, %196 : vector<8x64xf32>
    %c64_i32_58 = arith.constant 64 : i32
    %198 = vector.broadcast %c64_i32_58 : i32 to vector<8x64xi32>
    %199 = arith.select %197, %21, %198 : vector<8x64xi1>, vector<8x64xi32>
    %cst_59 = arith.constant dense<2147483647> : vector<8xi32>
    %200 = vector.multi_reduction <minsi>, %199, %cst_59 [1] : vector<8x64xi32> to vector<8xi32>
    %201 = vector.shape_cast %200 : vector<8xi32> to vector<8x1xi32>
    %202 = vector.broadcast %c10_i32 : i32 to vector<8x32xi32>
    %203 = arith.cmpi eq, %22, %202 : vector<8x32xi32>
    %204 = vector.shape_cast %201 : vector<8x1xi32> to vector<8x1xi32>
    %205 = vector.broadcast %204 : vector<8x1xi32> to vector<8x32xi32>
    %206 = arith.select %203, %205, %189 : vector<8x32xi1>, vector<8x32xi32>
    %207 = vector.broadcast %201 : vector<8x1xi32> to vector<8x64xi32>
    %208 = arith.cmpi eq, %21, %207 : vector<8x64xi32>
    %cst_60 = arith.constant 0xFF800000 : f32
    %209 = vector.broadcast %cst_60 : f32 to vector<8x64xf32>
    %210 = arith.select %208, %209, %193 : vector<8x64xi1>, vector<8x64xf32>
    %c11_i32 = arith.constant 11 : i32
    %cst_61 = arith.constant dense<0xFF800000> : vector<8xf32>
    %211 = vector.multi_reduction <maximumf>, %210, %cst_61 [1] : vector<8x64xf32> to vector<8xf32>
    %212 = vector.shape_cast %211 : vector<8xf32> to vector<8x1xf32>
    %213 = vector.broadcast %212 : vector<8x1xf32> to vector<8x64xf32>
    %214 = arith.cmpf oeq, %210, %213 : vector<8x64xf32>
    %c64_i32_62 = arith.constant 64 : i32
    %215 = vector.broadcast %c64_i32_62 : i32 to vector<8x64xi32>
    %216 = arith.select %214, %21, %215 : vector<8x64xi1>, vector<8x64xi32>
    %cst_63 = arith.constant dense<2147483647> : vector<8xi32>
    %217 = vector.multi_reduction <minsi>, %216, %cst_63 [1] : vector<8x64xi32> to vector<8xi32>
    %218 = vector.shape_cast %217 : vector<8xi32> to vector<8x1xi32>
    %219 = vector.broadcast %c11_i32 : i32 to vector<8x32xi32>
    %220 = arith.cmpi eq, %22, %219 : vector<8x32xi32>
    %221 = vector.shape_cast %218 : vector<8x1xi32> to vector<8x1xi32>
    %222 = vector.broadcast %221 : vector<8x1xi32> to vector<8x32xi32>
    %223 = arith.select %220, %222, %206 : vector<8x32xi1>, vector<8x32xi32>
    %224 = vector.broadcast %218 : vector<8x1xi32> to vector<8x64xi32>
    %225 = arith.cmpi eq, %21, %224 : vector<8x64xi32>
    %cst_64 = arith.constant 0xFF800000 : f32
    %226 = vector.broadcast %cst_64 : f32 to vector<8x64xf32>
    %227 = arith.select %225, %226, %210 : vector<8x64xi1>, vector<8x64xf32>
    %c12_i32 = arith.constant 12 : i32
    %cst_65 = arith.constant dense<0xFF800000> : vector<8xf32>
    %228 = vector.multi_reduction <maximumf>, %227, %cst_65 [1] : vector<8x64xf32> to vector<8xf32>
    %229 = vector.shape_cast %228 : vector<8xf32> to vector<8x1xf32>
    %230 = vector.broadcast %229 : vector<8x1xf32> to vector<8x64xf32>
    %231 = arith.cmpf oeq, %227, %230 : vector<8x64xf32>
    %c64_i32_66 = arith.constant 64 : i32
    %232 = vector.broadcast %c64_i32_66 : i32 to vector<8x64xi32>
    %233 = arith.select %231, %21, %232 : vector<8x64xi1>, vector<8x64xi32>
    %cst_67 = arith.constant dense<2147483647> : vector<8xi32>
    %234 = vector.multi_reduction <minsi>, %233, %cst_67 [1] : vector<8x64xi32> to vector<8xi32>
    %235 = vector.shape_cast %234 : vector<8xi32> to vector<8x1xi32>
    %236 = vector.broadcast %c12_i32 : i32 to vector<8x32xi32>
    %237 = arith.cmpi eq, %22, %236 : vector<8x32xi32>
    %238 = vector.shape_cast %235 : vector<8x1xi32> to vector<8x1xi32>
    %239 = vector.broadcast %238 : vector<8x1xi32> to vector<8x32xi32>
    %240 = arith.select %237, %239, %223 : vector<8x32xi1>, vector<8x32xi32>
    %241 = vector.broadcast %235 : vector<8x1xi32> to vector<8x64xi32>
    %242 = arith.cmpi eq, %21, %241 : vector<8x64xi32>
    %cst_68 = arith.constant 0xFF800000 : f32
    %243 = vector.broadcast %cst_68 : f32 to vector<8x64xf32>
    %244 = arith.select %242, %243, %227 : vector<8x64xi1>, vector<8x64xf32>
    %c13_i32 = arith.constant 13 : i32
    %cst_69 = arith.constant dense<0xFF800000> : vector<8xf32>
    %245 = vector.multi_reduction <maximumf>, %244, %cst_69 [1] : vector<8x64xf32> to vector<8xf32>
    %246 = vector.shape_cast %245 : vector<8xf32> to vector<8x1xf32>
    %247 = vector.broadcast %246 : vector<8x1xf32> to vector<8x64xf32>
    %248 = arith.cmpf oeq, %244, %247 : vector<8x64xf32>
    %c64_i32_70 = arith.constant 64 : i32
    %249 = vector.broadcast %c64_i32_70 : i32 to vector<8x64xi32>
    %250 = arith.select %248, %21, %249 : vector<8x64xi1>, vector<8x64xi32>
    %cst_71 = arith.constant dense<2147483647> : vector<8xi32>
    %251 = vector.multi_reduction <minsi>, %250, %cst_71 [1] : vector<8x64xi32> to vector<8xi32>
    %252 = vector.shape_cast %251 : vector<8xi32> to vector<8x1xi32>
    %253 = vector.broadcast %c13_i32 : i32 to vector<8x32xi32>
    %254 = arith.cmpi eq, %22, %253 : vector<8x32xi32>
    %255 = vector.shape_cast %252 : vector<8x1xi32> to vector<8x1xi32>
    %256 = vector.broadcast %255 : vector<8x1xi32> to vector<8x32xi32>
    %257 = arith.select %254, %256, %240 : vector<8x32xi1>, vector<8x32xi32>
    %258 = vector.broadcast %252 : vector<8x1xi32> to vector<8x64xi32>
    %259 = arith.cmpi eq, %21, %258 : vector<8x64xi32>
    %cst_72 = arith.constant 0xFF800000 : f32
    %260 = vector.broadcast %cst_72 : f32 to vector<8x64xf32>
    %261 = arith.select %259, %260, %244 : vector<8x64xi1>, vector<8x64xf32>
    %c14_i32 = arith.constant 14 : i32
    %cst_73 = arith.constant dense<0xFF800000> : vector<8xf32>
    %262 = vector.multi_reduction <maximumf>, %261, %cst_73 [1] : vector<8x64xf32> to vector<8xf32>
    %263 = vector.shape_cast %262 : vector<8xf32> to vector<8x1xf32>
    %264 = vector.broadcast %263 : vector<8x1xf32> to vector<8x64xf32>
    %265 = arith.cmpf oeq, %261, %264 : vector<8x64xf32>
    %c64_i32_74 = arith.constant 64 : i32
    %266 = vector.broadcast %c64_i32_74 : i32 to vector<8x64xi32>
    %267 = arith.select %265, %21, %266 : vector<8x64xi1>, vector<8x64xi32>
    %cst_75 = arith.constant dense<2147483647> : vector<8xi32>
    %268 = vector.multi_reduction <minsi>, %267, %cst_75 [1] : vector<8x64xi32> to vector<8xi32>
    %269 = vector.shape_cast %268 : vector<8xi32> to vector<8x1xi32>
    %270 = vector.broadcast %c14_i32 : i32 to vector<8x32xi32>
    %271 = arith.cmpi eq, %22, %270 : vector<8x32xi32>
    %272 = vector.shape_cast %269 : vector<8x1xi32> to vector<8x1xi32>
    %273 = vector.broadcast %272 : vector<8x1xi32> to vector<8x32xi32>
    %274 = arith.select %271, %273, %257 : vector<8x32xi1>, vector<8x32xi32>
    %275 = vector.broadcast %269 : vector<8x1xi32> to vector<8x64xi32>
    %276 = arith.cmpi eq, %21, %275 : vector<8x64xi32>
    %cst_76 = arith.constant 0xFF800000 : f32
    %277 = vector.broadcast %cst_76 : f32 to vector<8x64xf32>
    %278 = arith.select %276, %277, %261 : vector<8x64xi1>, vector<8x64xf32>
    %c15_i32 = arith.constant 15 : i32
    %cst_77 = arith.constant dense<0xFF800000> : vector<8xf32>
    %279 = vector.multi_reduction <maximumf>, %278, %cst_77 [1] : vector<8x64xf32> to vector<8xf32>
    %280 = vector.shape_cast %279 : vector<8xf32> to vector<8x1xf32>
    %281 = vector.broadcast %280 : vector<8x1xf32> to vector<8x64xf32>
    %282 = arith.cmpf oeq, %278, %281 : vector<8x64xf32>
    %c64_i32_78 = arith.constant 64 : i32
    %283 = vector.broadcast %c64_i32_78 : i32 to vector<8x64xi32>
    %284 = arith.select %282, %21, %283 : vector<8x64xi1>, vector<8x64xi32>
    %cst_79 = arith.constant dense<2147483647> : vector<8xi32>
    %285 = vector.multi_reduction <minsi>, %284, %cst_79 [1] : vector<8x64xi32> to vector<8xi32>
    %286 = vector.shape_cast %285 : vector<8xi32> to vector<8x1xi32>
    %287 = vector.broadcast %c15_i32 : i32 to vector<8x32xi32>
    %288 = arith.cmpi eq, %22, %287 : vector<8x32xi32>
    %289 = vector.shape_cast %286 : vector<8x1xi32> to vector<8x1xi32>
    %290 = vector.broadcast %289 : vector<8x1xi32> to vector<8x32xi32>
    %291 = arith.select %288, %290, %274 : vector<8x32xi1>, vector<8x32xi32>
    %292 = vector.broadcast %286 : vector<8x1xi32> to vector<8x64xi32>
    %293 = arith.cmpi eq, %21, %292 : vector<8x64xi32>
    %cst_80 = arith.constant 0xFF800000 : f32
    %294 = vector.broadcast %cst_80 : f32 to vector<8x64xf32>
    %295 = arith.select %293, %294, %278 : vector<8x64xi1>, vector<8x64xf32>
    %c16_i32 = arith.constant 16 : i32
    %cst_81 = arith.constant dense<0xFF800000> : vector<8xf32>
    %296 = vector.multi_reduction <maximumf>, %295, %cst_81 [1] : vector<8x64xf32> to vector<8xf32>
    %297 = vector.shape_cast %296 : vector<8xf32> to vector<8x1xf32>
    %298 = vector.broadcast %297 : vector<8x1xf32> to vector<8x64xf32>
    %299 = arith.cmpf oeq, %295, %298 : vector<8x64xf32>
    %c64_i32_82 = arith.constant 64 : i32
    %300 = vector.broadcast %c64_i32_82 : i32 to vector<8x64xi32>
    %301 = arith.select %299, %21, %300 : vector<8x64xi1>, vector<8x64xi32>
    %cst_83 = arith.constant dense<2147483647> : vector<8xi32>
    %302 = vector.multi_reduction <minsi>, %301, %cst_83 [1] : vector<8x64xi32> to vector<8xi32>
    %303 = vector.shape_cast %302 : vector<8xi32> to vector<8x1xi32>
    %304 = vector.broadcast %c16_i32 : i32 to vector<8x32xi32>
    %305 = arith.cmpi eq, %22, %304 : vector<8x32xi32>
    %306 = vector.shape_cast %303 : vector<8x1xi32> to vector<8x1xi32>
    %307 = vector.broadcast %306 : vector<8x1xi32> to vector<8x32xi32>
    %308 = arith.select %305, %307, %291 : vector<8x32xi1>, vector<8x32xi32>
    %309 = vector.broadcast %303 : vector<8x1xi32> to vector<8x64xi32>
    %310 = arith.cmpi eq, %21, %309 : vector<8x64xi32>
    %cst_84 = arith.constant 0xFF800000 : f32
    %311 = vector.broadcast %cst_84 : f32 to vector<8x64xf32>
    %312 = arith.select %310, %311, %295 : vector<8x64xi1>, vector<8x64xf32>
    %c17_i32 = arith.constant 17 : i32
    %cst_85 = arith.constant dense<0xFF800000> : vector<8xf32>
    %313 = vector.multi_reduction <maximumf>, %312, %cst_85 [1] : vector<8x64xf32> to vector<8xf32>
    %314 = vector.shape_cast %313 : vector<8xf32> to vector<8x1xf32>
    %315 = vector.broadcast %314 : vector<8x1xf32> to vector<8x64xf32>
    %316 = arith.cmpf oeq, %312, %315 : vector<8x64xf32>
    %c64_i32_86 = arith.constant 64 : i32
    %317 = vector.broadcast %c64_i32_86 : i32 to vector<8x64xi32>
    %318 = arith.select %316, %21, %317 : vector<8x64xi1>, vector<8x64xi32>
    %cst_87 = arith.constant dense<2147483647> : vector<8xi32>
    %319 = vector.multi_reduction <minsi>, %318, %cst_87 [1] : vector<8x64xi32> to vector<8xi32>
    %320 = vector.shape_cast %319 : vector<8xi32> to vector<8x1xi32>
    %321 = vector.broadcast %c17_i32 : i32 to vector<8x32xi32>
    %322 = arith.cmpi eq, %22, %321 : vector<8x32xi32>
    %323 = vector.shape_cast %320 : vector<8x1xi32> to vector<8x1xi32>
    %324 = vector.broadcast %323 : vector<8x1xi32> to vector<8x32xi32>
    %325 = arith.select %322, %324, %308 : vector<8x32xi1>, vector<8x32xi32>
    %326 = vector.broadcast %320 : vector<8x1xi32> to vector<8x64xi32>
    %327 = arith.cmpi eq, %21, %326 : vector<8x64xi32>
    %cst_88 = arith.constant 0xFF800000 : f32
    %328 = vector.broadcast %cst_88 : f32 to vector<8x64xf32>
    %329 = arith.select %327, %328, %312 : vector<8x64xi1>, vector<8x64xf32>
    %c18_i32 = arith.constant 18 : i32
    %cst_89 = arith.constant dense<0xFF800000> : vector<8xf32>
    %330 = vector.multi_reduction <maximumf>, %329, %cst_89 [1] : vector<8x64xf32> to vector<8xf32>
    %331 = vector.shape_cast %330 : vector<8xf32> to vector<8x1xf32>
    %332 = vector.broadcast %331 : vector<8x1xf32> to vector<8x64xf32>
    %333 = arith.cmpf oeq, %329, %332 : vector<8x64xf32>
    %c64_i32_90 = arith.constant 64 : i32
    %334 = vector.broadcast %c64_i32_90 : i32 to vector<8x64xi32>
    %335 = arith.select %333, %21, %334 : vector<8x64xi1>, vector<8x64xi32>
    %cst_91 = arith.constant dense<2147483647> : vector<8xi32>
    %336 = vector.multi_reduction <minsi>, %335, %cst_91 [1] : vector<8x64xi32> to vector<8xi32>
    %337 = vector.shape_cast %336 : vector<8xi32> to vector<8x1xi32>
    %338 = vector.broadcast %c18_i32 : i32 to vector<8x32xi32>
    %339 = arith.cmpi eq, %22, %338 : vector<8x32xi32>
    %340 = vector.shape_cast %337 : vector<8x1xi32> to vector<8x1xi32>
    %341 = vector.broadcast %340 : vector<8x1xi32> to vector<8x32xi32>
    %342 = arith.select %339, %341, %325 : vector<8x32xi1>, vector<8x32xi32>
    %343 = vector.broadcast %337 : vector<8x1xi32> to vector<8x64xi32>
    %344 = arith.cmpi eq, %21, %343 : vector<8x64xi32>
    %cst_92 = arith.constant 0xFF800000 : f32
    %345 = vector.broadcast %cst_92 : f32 to vector<8x64xf32>
    %346 = arith.select %344, %345, %329 : vector<8x64xi1>, vector<8x64xf32>
    %c19_i32 = arith.constant 19 : i32
    %cst_93 = arith.constant dense<0xFF800000> : vector<8xf32>
    %347 = vector.multi_reduction <maximumf>, %346, %cst_93 [1] : vector<8x64xf32> to vector<8xf32>
    %348 = vector.shape_cast %347 : vector<8xf32> to vector<8x1xf32>
    %349 = vector.broadcast %348 : vector<8x1xf32> to vector<8x64xf32>
    %350 = arith.cmpf oeq, %346, %349 : vector<8x64xf32>
    %c64_i32_94 = arith.constant 64 : i32
    %351 = vector.broadcast %c64_i32_94 : i32 to vector<8x64xi32>
    %352 = arith.select %350, %21, %351 : vector<8x64xi1>, vector<8x64xi32>
    %cst_95 = arith.constant dense<2147483647> : vector<8xi32>
    %353 = vector.multi_reduction <minsi>, %352, %cst_95 [1] : vector<8x64xi32> to vector<8xi32>
    %354 = vector.shape_cast %353 : vector<8xi32> to vector<8x1xi32>
    %355 = vector.broadcast %c19_i32 : i32 to vector<8x32xi32>
    %356 = arith.cmpi eq, %22, %355 : vector<8x32xi32>
    %357 = vector.shape_cast %354 : vector<8x1xi32> to vector<8x1xi32>
    %358 = vector.broadcast %357 : vector<8x1xi32> to vector<8x32xi32>
    %359 = arith.select %356, %358, %342 : vector<8x32xi1>, vector<8x32xi32>
    %360 = vector.broadcast %354 : vector<8x1xi32> to vector<8x64xi32>
    %361 = arith.cmpi eq, %21, %360 : vector<8x64xi32>
    %cst_96 = arith.constant 0xFF800000 : f32
    %362 = vector.broadcast %cst_96 : f32 to vector<8x64xf32>
    %363 = arith.select %361, %362, %346 : vector<8x64xi1>, vector<8x64xf32>
    %c20_i32 = arith.constant 20 : i32
    %cst_97 = arith.constant dense<0xFF800000> : vector<8xf32>
    %364 = vector.multi_reduction <maximumf>, %363, %cst_97 [1] : vector<8x64xf32> to vector<8xf32>
    %365 = vector.shape_cast %364 : vector<8xf32> to vector<8x1xf32>
    %366 = vector.broadcast %365 : vector<8x1xf32> to vector<8x64xf32>
    %367 = arith.cmpf oeq, %363, %366 : vector<8x64xf32>
    %c64_i32_98 = arith.constant 64 : i32
    %368 = vector.broadcast %c64_i32_98 : i32 to vector<8x64xi32>
    %369 = arith.select %367, %21, %368 : vector<8x64xi1>, vector<8x64xi32>
    %cst_99 = arith.constant dense<2147483647> : vector<8xi32>
    %370 = vector.multi_reduction <minsi>, %369, %cst_99 [1] : vector<8x64xi32> to vector<8xi32>
    %371 = vector.shape_cast %370 : vector<8xi32> to vector<8x1xi32>
    %372 = vector.broadcast %c20_i32 : i32 to vector<8x32xi32>
    %373 = arith.cmpi eq, %22, %372 : vector<8x32xi32>
    %374 = vector.shape_cast %371 : vector<8x1xi32> to vector<8x1xi32>
    %375 = vector.broadcast %374 : vector<8x1xi32> to vector<8x32xi32>
    %376 = arith.select %373, %375, %359 : vector<8x32xi1>, vector<8x32xi32>
    %377 = vector.broadcast %371 : vector<8x1xi32> to vector<8x64xi32>
    %378 = arith.cmpi eq, %21, %377 : vector<8x64xi32>
    %cst_100 = arith.constant 0xFF800000 : f32
    %379 = vector.broadcast %cst_100 : f32 to vector<8x64xf32>
    %380 = arith.select %378, %379, %363 : vector<8x64xi1>, vector<8x64xf32>
    %c21_i32 = arith.constant 21 : i32
    %cst_101 = arith.constant dense<0xFF800000> : vector<8xf32>
    %381 = vector.multi_reduction <maximumf>, %380, %cst_101 [1] : vector<8x64xf32> to vector<8xf32>
    %382 = vector.shape_cast %381 : vector<8xf32> to vector<8x1xf32>
    %383 = vector.broadcast %382 : vector<8x1xf32> to vector<8x64xf32>
    %384 = arith.cmpf oeq, %380, %383 : vector<8x64xf32>
    %c64_i32_102 = arith.constant 64 : i32
    %385 = vector.broadcast %c64_i32_102 : i32 to vector<8x64xi32>
    %386 = arith.select %384, %21, %385 : vector<8x64xi1>, vector<8x64xi32>
    %cst_103 = arith.constant dense<2147483647> : vector<8xi32>
    %387 = vector.multi_reduction <minsi>, %386, %cst_103 [1] : vector<8x64xi32> to vector<8xi32>
    %388 = vector.shape_cast %387 : vector<8xi32> to vector<8x1xi32>
    %389 = vector.broadcast %c21_i32 : i32 to vector<8x32xi32>
    %390 = arith.cmpi eq, %22, %389 : vector<8x32xi32>
    %391 = vector.shape_cast %388 : vector<8x1xi32> to vector<8x1xi32>
    %392 = vector.broadcast %391 : vector<8x1xi32> to vector<8x32xi32>
    %393 = arith.select %390, %392, %376 : vector<8x32xi1>, vector<8x32xi32>
    %394 = vector.broadcast %388 : vector<8x1xi32> to vector<8x64xi32>
    %395 = arith.cmpi eq, %21, %394 : vector<8x64xi32>
    %cst_104 = arith.constant 0xFF800000 : f32
    %396 = vector.broadcast %cst_104 : f32 to vector<8x64xf32>
    %397 = arith.select %395, %396, %380 : vector<8x64xi1>, vector<8x64xf32>
    %c22_i32 = arith.constant 22 : i32
    %cst_105 = arith.constant dense<0xFF800000> : vector<8xf32>
    %398 = vector.multi_reduction <maximumf>, %397, %cst_105 [1] : vector<8x64xf32> to vector<8xf32>
    %399 = vector.shape_cast %398 : vector<8xf32> to vector<8x1xf32>
    %400 = vector.broadcast %399 : vector<8x1xf32> to vector<8x64xf32>
    %401 = arith.cmpf oeq, %397, %400 : vector<8x64xf32>
    %c64_i32_106 = arith.constant 64 : i32
    %402 = vector.broadcast %c64_i32_106 : i32 to vector<8x64xi32>
    %403 = arith.select %401, %21, %402 : vector<8x64xi1>, vector<8x64xi32>
    %cst_107 = arith.constant dense<2147483647> : vector<8xi32>
    %404 = vector.multi_reduction <minsi>, %403, %cst_107 [1] : vector<8x64xi32> to vector<8xi32>
    %405 = vector.shape_cast %404 : vector<8xi32> to vector<8x1xi32>
    %406 = vector.broadcast %c22_i32 : i32 to vector<8x32xi32>
    %407 = arith.cmpi eq, %22, %406 : vector<8x32xi32>
    %408 = vector.shape_cast %405 : vector<8x1xi32> to vector<8x1xi32>
    %409 = vector.broadcast %408 : vector<8x1xi32> to vector<8x32xi32>
    %410 = arith.select %407, %409, %393 : vector<8x32xi1>, vector<8x32xi32>
    %411 = vector.broadcast %405 : vector<8x1xi32> to vector<8x64xi32>
    %412 = arith.cmpi eq, %21, %411 : vector<8x64xi32>
    %cst_108 = arith.constant 0xFF800000 : f32
    %413 = vector.broadcast %cst_108 : f32 to vector<8x64xf32>
    %414 = arith.select %412, %413, %397 : vector<8x64xi1>, vector<8x64xf32>
    %c23_i32 = arith.constant 23 : i32
    %cst_109 = arith.constant dense<0xFF800000> : vector<8xf32>
    %415 = vector.multi_reduction <maximumf>, %414, %cst_109 [1] : vector<8x64xf32> to vector<8xf32>
    %416 = vector.shape_cast %415 : vector<8xf32> to vector<8x1xf32>
    %417 = vector.broadcast %416 : vector<8x1xf32> to vector<8x64xf32>
    %418 = arith.cmpf oeq, %414, %417 : vector<8x64xf32>
    %c64_i32_110 = arith.constant 64 : i32
    %419 = vector.broadcast %c64_i32_110 : i32 to vector<8x64xi32>
    %420 = arith.select %418, %21, %419 : vector<8x64xi1>, vector<8x64xi32>
    %cst_111 = arith.constant dense<2147483647> : vector<8xi32>
    %421 = vector.multi_reduction <minsi>, %420, %cst_111 [1] : vector<8x64xi32> to vector<8xi32>
    %422 = vector.shape_cast %421 : vector<8xi32> to vector<8x1xi32>
    %423 = vector.broadcast %c23_i32 : i32 to vector<8x32xi32>
    %424 = arith.cmpi eq, %22, %423 : vector<8x32xi32>
    %425 = vector.shape_cast %422 : vector<8x1xi32> to vector<8x1xi32>
    %426 = vector.broadcast %425 : vector<8x1xi32> to vector<8x32xi32>
    %427 = arith.select %424, %426, %410 : vector<8x32xi1>, vector<8x32xi32>
    %428 = vector.broadcast %422 : vector<8x1xi32> to vector<8x64xi32>
    %429 = arith.cmpi eq, %21, %428 : vector<8x64xi32>
    %cst_112 = arith.constant 0xFF800000 : f32
    %430 = vector.broadcast %cst_112 : f32 to vector<8x64xf32>
    %431 = arith.select %429, %430, %414 : vector<8x64xi1>, vector<8x64xf32>
    %c24_i32 = arith.constant 24 : i32
    %cst_113 = arith.constant dense<0xFF800000> : vector<8xf32>
    %432 = vector.multi_reduction <maximumf>, %431, %cst_113 [1] : vector<8x64xf32> to vector<8xf32>
    %433 = vector.shape_cast %432 : vector<8xf32> to vector<8x1xf32>
    %434 = vector.broadcast %433 : vector<8x1xf32> to vector<8x64xf32>
    %435 = arith.cmpf oeq, %431, %434 : vector<8x64xf32>
    %c64_i32_114 = arith.constant 64 : i32
    %436 = vector.broadcast %c64_i32_114 : i32 to vector<8x64xi32>
    %437 = arith.select %435, %21, %436 : vector<8x64xi1>, vector<8x64xi32>
    %cst_115 = arith.constant dense<2147483647> : vector<8xi32>
    %438 = vector.multi_reduction <minsi>, %437, %cst_115 [1] : vector<8x64xi32> to vector<8xi32>
    %439 = vector.shape_cast %438 : vector<8xi32> to vector<8x1xi32>
    %440 = vector.broadcast %c24_i32 : i32 to vector<8x32xi32>
    %441 = arith.cmpi eq, %22, %440 : vector<8x32xi32>
    %442 = vector.shape_cast %439 : vector<8x1xi32> to vector<8x1xi32>
    %443 = vector.broadcast %442 : vector<8x1xi32> to vector<8x32xi32>
    %444 = arith.select %441, %443, %427 : vector<8x32xi1>, vector<8x32xi32>
    %445 = vector.broadcast %439 : vector<8x1xi32> to vector<8x64xi32>
    %446 = arith.cmpi eq, %21, %445 : vector<8x64xi32>
    %cst_116 = arith.constant 0xFF800000 : f32
    %447 = vector.broadcast %cst_116 : f32 to vector<8x64xf32>
    %448 = arith.select %446, %447, %431 : vector<8x64xi1>, vector<8x64xf32>
    %c25_i32 = arith.constant 25 : i32
    %449 = tpu.iota {dimensions = array<i32: 2>} : vector<8x32x64xi32>
    %450 = vector.shape_cast %444 : vector<8x32xi32> to vector<8x32x1xi32>
    %451 = vector.broadcast %450 : vector<8x32x1xi32> to vector<8x32x64xi32>
    %452 = arith.cmpi eq, %449, %451 : vector<8x32x64xi32>
    %453 = arith.extui %452 : vector<8x32x64xi1> to vector<8x32x64xi32>
    %454 = arith.sitofp %453 : vector<8x32x64xi32> to vector<8x32x64xf32>
    "tpu.trace_start"() <{level = 10 : i32, message = "hul,hlk->huk"}> : () -> ()
    %cst_117 = arith.constant dense<0.000000e+00> : vector<8x32x64xf32>
    %455 = tpu.matmul %454, %6, %cst_117 {dimension_numbers = #tpu.dot_dimension_numbers<[2], [1], [1], [2], [0, 0, 0, 1, 1, 2], [0], [0]>} : vector<8x32x64xf32>, vector<8x64x64xf32>, vector<8x32x64xf32> -> vector<8x32x64xf32>
    "tpu.trace_stop"() : () -> ()
    %cst_118 = arith.constant 0.176776692 : f32
    %456 = vector.broadcast %cst_118 : f32 to vector<8x32x64xf32>
    %457 = arith.mulf %455, %456 : vector<8x32x64xf32>
    %458 = tpu.iota {dimensions = array<i32: 2>} : vector<8x32x64xi32>
    %459 = vector.shape_cast %444 : vector<8x32xi32> to vector<8x32x1xi32>
    %460 = vector.broadcast %459 : vector<8x32x1xi32> to vector<8x32x64xi32>
    %461 = arith.cmpi sgt, %458, %460 : vector<8x32x64xi32>
    %cst_119 = arith.constant 0xFF800000 : f32
    %462 = vector.broadcast %cst_119 : f32 to vector<8x32x64xf32>
    %463 = arith.select %461, %462, %457 : vector<8x32x64xi1>, vector<8x32x64xf32>
    %cst_120 = arith.constant dense<0xFF800000> : vector<8x32xf32>
    %464 = vector.multi_reduction <maximumf>, %463, %cst_120 [2] : vector<8x32x64xf32> to vector<8x32xf32>
    %465 = vector.shape_cast %464 : vector<8x32xf32> to vector<8x32x1xf32>
    %466 = vector.broadcast %465 : vector<8x32x1xf32> to vector<8x32x64xf32>
    %467 = arith.subf %463, %466 : vector<8x32x64xf32>
    %468 = math.exp %467 : vector<8x32x64xf32>
    %cst_121 = arith.constant dense<0.000000e+00> : vector<8x32xf32>
    %469 = vector.multi_reduction <add>, %468, %cst_121 [2] : vector<8x32x64xf32> to vector<8x32xf32>
    %470 = vector.shape_cast %469 : vector<8x32xf32> to vector<8x32x1xf32>
    %471 = tpu.reciprocal %470 {approx = true} : vector<8x32x1xf32> -> vector<8x32x1xf32>
    %472 = vector.broadcast %471 : vector<8x32x1xf32> to vector<8x32x64xf32>
    %473 = arith.mulf %468, %472 : vector<8x32x64xf32>
    %474 = vector.shape_cast %473 : vector<8x32x64xf32> to vector<256x64xf32>
    %475 = vector.shape_cast %454 : vector<8x32x64xf32> to vector<256x64xf32>
    %cst_122 = arith.constant dense<0.000000e+00> : vector<256x256xf32>
    %476 = tpu.matmul %474, %3, %cst_122 {dimension_numbers = #tpu.dot_dimension_numbers<[1], [0], [0], [1], [0, 0, 1, 1], [], []>} : vector<256x64xf32>, vector<64x256xf32>, vector<256x256xf32> -> vector<256x256xf32>
    %477 = arith.mulf %476, %5 : vector<256x256xf32>
    "tpu.trace_start"() <{level = 10 : i32, message = "ul,uc->lc"}> : () -> ()
    %cst_123 = arith.constant dense<0.000000e+00> : vector<64x256xf32>
    %478 = tpu.matmul %475, %477, %cst_123 {dimension_numbers = #tpu.dot_dimension_numbers<[0], [0], [1], [1], [0, 1, 1, 1], [], []>} : vector<256x64xf32>, vector<256x256xf32>, vector<64x256xf32> -> vector<64x256xf32>
    %cst_124 = arith.constant dense<0.000000e+00> : vector<64x256xf32>
    %479 = tpu.matmul %475, %5, %cst_124 {dimension_numbers = #tpu.dot_dimension_numbers<[0], [0], [1], [1], [0, 1, 1, 1], [], []>} : vector<256x64xf32>, vector<256x256xf32>, vector<64x256xf32> -> vector<64x256xf32>
    "tpu.trace_stop"() : () -> ()
    %480 = tpu.iota {dimensions = array<i32: 1>} : vector<64x64xi32>
    %481 = tpu.iota {dimensions = array<i32: 0>} : vector<64x64xi32>
    %482 = arith.cmpi sle, %480, %481 : vector<64x64xi32>
    %483 = arith.extui %482 : vector<64x64xi1> to vector<64x64xi32>
    %484 = arith.sitofp %483 : vector<64x64xi32> to vector<64x64xf32>
    %cst_125 = arith.constant dense<0.000000e+00> : vector<64x256xf32>
    %485 = tpu.matmul %484, %3, %cst_125 {dimension_numbers = #tpu.dot_dimension_numbers<[1], [0], [0], [1], [0, 0, 1, 1], [], []>} : vector<64x64xf32>, vector<64x256xf32>, vector<64x256xf32> -> vector<64x256xf32>
    %cst_126 = arith.constant 5.000000e-01 : f32
    %486 = vector.broadcast %cst_126 : f32 to vector<64x256xf32>
    %487 = arith.cmpf ogt, %479, %486 : vector<64x256xf32>
    %488 = arith.select %487, %478, %485 : vector<64x256xi1>, vector<64x256xf32>
    %c0_127 = arith.constant 0 : index
    %c0_128 = arith.constant 0 : index
    %c0_129 = arith.constant 0 : index
    %489 = vector.load %arg6[%c0_127, %c0_128, %c0_129] : memref<1x64x256xf32, #tpu.memory_space<vmem>>, vector<1x64x256xf32>
    %490 = vector.shape_cast %489 : vector<1x64x256xf32> to vector<64x256xf32>
    %491 = vector.shape_cast %488 : vector<64x256xf32> to vector<1x64x256xf32>
    tpu.vector_store %arg6[%c0_127, %c0_128, %c0_129], %491 {strides = array<i32>} : memref<1x64x256xf32, #tpu.memory_space<vmem>>, vector<1x64x256xf32>,
    return
  }
  func.func @transform_0(%arg0: i32) -> (i32, i32) {
    %c0_i32 = arith.constant 0 : i32
    %c0_i32_0 = arith.constant 0 : i32
    %c0_i32_1 = arith.constant 0 : i32
    return %c0_i32, %c0_i32_0 : i32, i32
  }
  func.func @transform_1(%arg0: i32) -> (i32, i32) {
    %c0_i32 = arith.constant 0 : i32
    %c0_i32_0 = arith.constant 0 : i32
    %c0_i32_1 = arith.constant 0 : i32
    return %c0_i32, %c0_i32_0 : i32, i32
  }
  func.func @transform_2(%arg0: i32) -> (i32, i32, i32) {
    %c0_i32 = arith.constant 0 : i32
    %c0_i32_0 = arith.constant 0 : i32
    %c0_i32_1 = arith.constant 0 : i32
    return %arg0, %c0_i32, %c0_i32_0 : i32, i32, i32
  }
  func.func @transform_3(%arg0: i32) -> (i32, i32, i32) {
    %c0_i32 = arith.constant 0 : i32
    %c0_i32_0 = arith.constant 0 : i32
    %c0_i32_1 = arith.constant 0 : i32
    return %arg0, %c0_i32, %c0_i32_0 : i32, i32, i32
  }
  func.func @transform_4(%arg0: i32) -> (i32, i32, i32) {
    %c0_i32 = arith.constant 0 : i32
    %c0_i32_0 = arith.constant 0 : i32
    %c0_i32_1 = arith.constant 0 : i32
    return %arg0, %c0_i32, %c0_i32_0 : i32, i32, i32
  }
  func.func @transform_5(%arg0: i32) -> (i32, i32, i32) {
    %c0_i32 = arith.constant 0 : i32
    %c0_i32_0 = arith.constant 0 : i32
    %c0_i32_1 = arith.constant 0 : i32
    return %arg0, %c0_i32, %c0_i32_0 : i32, i32, i32
  }
}

</mosaic_0001>

<bundles_post_ra>
// kernel: tpu_custom_call.1
= control target key start
LH: loop header
LB: loop body
LE: loop exit
PB: predicated region body
PF: predicated region fallthrough
CT: control target
= control target key end

     0   :  { %vm237_vm0 = vcmask 261120   ;;  %v11762_v3 = vlaneseq  ;;  %s11756_s0 = inlined_call_operand.vmem [shape: f32[64,64], index: 0, kind: input, shape index: {}]   ;;  %s11757_s1 = inlined_call_operand.vmem [shape: f32[256,256], index: 1, kind: input, shape index: {}]   ;;  %s11758_s2 = inlined_call_operand.vmem [shape: f32[8,64,32], index: 2, kind: input, shape index: {}]   ;;  %s11759_s3 = inlined_call_operand.vmem [shape: f32[8,64,32], index: 3, kind: input, shape index: {}]   ;;  %s11760_s4 = inlined_call_operand.vmem [shape: f32[1,64,256], index: 4, kind: input, shape index: {}]   ;;  %s11761_s5 = inlined_call_operand.hbm [shape: f32[1,64,256], index: 5, kind: output, shape index: {}]  }
   0x1   :  { %v92_v0 = vld [vmem:[%s11759_s3 + $0x38] sm:$0xff]  ;;  %v91_v2 = vld [vmem:[%s11759_s3 + $0x30] sm:$0xff]  ;;  %v90_v6 = vld [vmem:[%s11759_s3 + $0x28] sm:$0xff] }
   0x2   :  { %v100_v1 = vld [vmem:[%s11759_s3 + $0x78] sm:$0xff]  ;;  %6718 = vmatprep.subr.msk.mxu0 %vm237_vm0, %v92_v0  ;;  %v99_v4 = vld [vmem:[%s11759_s3 + $0x70] sm:$0xff]  ;;  %v7431_v5 = vand.u32 127, %v11762_v3  ;;  %v98_v7 = vld [vmem:[%s11759_s3 + $0x68] sm:$0xff] }
   0x3   :  { %6746 = vmatprep.subr.msk.mxu1 %vm237_vm0, %v100_v1  ;;  %6719 = vmatpush3.xpose.msk.msra.mxu0 %vm237_vm0, %v92_v0  ;;  %v21_v8 = vld [vmem:[%s11758_s2] sm:$0xff]  ;;  %v88_v12 = vld [vmem:[%s11759_s3 + $0x18] sm:$0xff]  ;;  %v87_v14 = vld [vmem:[%s11759_s3 + $0x10] sm:$0xff] }
   0x4   :  { %6747 = vmatpush3.xpose.msk.msra.mxu1 %vm237_vm0, %v100_v1  ;;  %11967 = vst [vmem:[#allocation5_spill] sm:$0xff] %v7431_v5  ;;  %6720 = vmatprep.subr.msk.mxu0 %vm237_vm0, %v91_v2  ;;  %v29_v9 = vld [vmem:[%s11758_s2 + $0x40] sm:$0xff]  ;;  %v96_v13 = vld [vmem:[%s11759_s3 + $0x58] sm:$0xff]  ;;  %v95_v15 = vld [vmem:[%s11759_s3 + $0x50] sm:$0xff] }
   0x5   :  { %6748 = vmatprep.subr.msk.mxu1 %vm237_vm0, %v99_v4  ;;  %2643 = vbcast.lane.b32.xlu1 %v7431_v5, 256  ;;  %v89_v10 = vld [vmem:[%s11759_s3 + $0x20] sm:$0xff]  ;;  %v86_v16 = vld [vmem:[%s11759_s3 + $0x8] sm:$0xff]  ;;  %v116_v20 = vld [vmem:[%s11759_s3 + $0xf8] sm:$0xff] }
   0x6   :  { %2647 = vbcast.lane.b32.xlu0 %v7431_v5, 264  ;;  %v97_v11 = vld [vmem:[%s11759_s3 + $0x60] sm:$0xff]  ;;  %6734 = vmatprep.mubr.msk.f32.mxu0 %vm237_vm0, %v21_v8  ;;  %v94_v17 = vld [vmem:[%s11759_s3 + $0x48] sm:$0xff]  ;;  %v108_v21 = vld [vmem:[%s11759_s3 + $0xb8] sm:$0xff] }
   0x7   :  { %6721 = vmatpush3.xpose.msk.msra.mxu0 %vm237_vm0, %v91_v2  ;;  %6762 = vmatprep.mubr.msk.f32.mxu1 %vm237_vm0, %v29_v9  ;;  %v85_v18 = vld [vmem:[%s11759_s3] sm:$0xff]  ;;  %v22_v22 = vld [vmem:[%s11758_s2 + $0x8] sm:$0xff]  ;;  %v23_v24 = vld [vmem:[%s11758_s2 + $0x10] sm:$0xff] }
   0x8   :  { %6749 = vmatpush3.xpose.msk.msra.mxu1 %vm237_vm0, %v99_v4  ;;  %6722 = vmatprep.subr.msk.mxu0 %vm237_vm0, %v90_v6  ;;  %v93_v19 = vld [vmem:[%s11759_s3 + $0x40] sm:$0xff]  ;;  %v30_v23 = vld [vmem:[%s11758_s2 + $0x48] sm:$0xff]  ;;  %v31_v25 = vld [vmem:[%s11758_s2 + $0x50] sm:$0xff] }
   0x9   :  { %6750 = vmatprep.subr.msk.mxu1 %vm237_vm0, %v98_v7  ;;  %2651 = vbcast.lane.b32.xlu1 %v7431_v5, 272  ;;  %v115_v26 = vld [vmem:[%s11759_s3 + $0xf0] sm:$0xff]  ;;  %v24_v28 = vld [vmem:[%s11758_s2 + $0x18] sm:$0xff]  ;;  %v25_v30 = vld [vmem:[%s11758_s2 + $0x20] sm:$0xff] }
   0xa   :  { %2663 = vbcast.lane.b32.xlu0 %v7431_v5, 296  ;;  %v107_v27 = vld [vmem:[%s11759_s3 + $0xb0] sm:$0xff]  ;;  %v32_v29 = vld [vmem:[%s11758_s2 + $0x58] sm:$0xff]  ;;  %v33_v31 = vld [vmem:[%s11758_s2 + $0x60] sm:$0xff] }
   0xb   :  { %6723 = vmatpush3.xpose.msk.msra.mxu0 %vm237_vm0, %v90_v6  ;;  %v114_v32 = vld [vmem:[%s11759_s3 + $0xe8] sm:$0xff] }
   0xc   :  { %6751 = vmatpush3.xpose.msk.msra.mxu1 %vm237_vm0, %v98_v7  ;;  %6724 = vmatprep.subr.msk.mxu0 %vm237_vm0, %v89_v10  ;;  %v106_v33 = vld [vmem:[%s11759_s3 + $0xa8] sm:$0xff] }
   0xd   :  { %6752 = vmatprep.subr.msk.mxu1 %vm237_vm0, %v97_v11  ;;  %2655 = vbcast.lane.b32.xlu1 %v7431_v5, 280  ;;  %v26_v34 = vld [vmem:[%s11758_s2 + $0x28] sm:$0xff] }
   0xe   :  { %v34_v35 = vld [vmem:[%s11758_s2 + $0x68] sm:$0xff] }
   0xf   :  { %6725 = vmatpush3.xpose.msk.msra.mxu0 %vm237_vm0, %v89_v10 }
  0x10   :  { %6753 = vmatpush3.xpose.msk.msra.mxu1 %vm237_vm0, %v97_v11  ;;  %6726 = vmatprep.subr.msk.mxu0 %vm237_vm0, %v88_v12 }
  0x11   :  { %6754 = vmatprep.subr.msk.mxu1 %vm237_vm0, %v96_v13  ;;  %2659 = vbcast.lane.b32.xlu1 %v7431_v5, 288 }
  0x13   :  { %6727 = vmatpush3.xpose.msk.msra.mxu0 %vm237_vm0, %v88_v12 }
  0x14   :  { %6755 = vmatpush3.xpose.msk.msra.mxu1 %vm237_vm0, %v96_v13  ;;  %6728 = vmatprep.subr.msk.mxu0 %vm237_vm0, %v87_v14 }
  0x15   :  { %6756 = vmatprep.subr.msk.mxu1 %vm237_vm0, %v95_v15 }
  0x17   :  { %6729 = vmatpush3.xpose.msk.msra.mxu0 %vm237_vm0, %v87_v14 }
  0x18   :  { %6757 = vmatpush3.xpose.msk.msra.mxu1 %vm237_vm0, %v95_v15  ;;  %6730 = vmatprep.subr.msk.mxu0 %vm237_vm0, %v86_v16 }
  0x19   :  { %6758 = vmatprep.subr.msk.mxu1 %vm237_vm0, %v94_v17 }
  0x1b   :  { %6731 = vmatpush3.xpose.msk.msra.mxu0 %vm237_vm0, %v86_v16 }
  0x1c   :  { %6759 = vmatpush3.xpose.msk.msra.mxu1 %vm237_vm0, %v94_v17  ;;  %6732 = vmatprep.subr.msk.mxu0 %vm237_vm0, %v85_v18 }
  0x1d   :  { %6760 = vmatprep.subr.msk.mxu1 %vm237_vm0, %v93_v19 }
  0x1f   :  { %6733 = vmatpush3.xpose.msk.msra.mxu0 %vm237_vm0, %v85_v18 }
  0x20   :  { %6761 = vmatpush3.xpose.msk.msra.mxu1 %vm237_vm0, %v93_v19  ;;  %6774 = vmatprep.subr.msk.mxu0 %vm237_vm0, %v108_v21 }
  0x21   :  { %6802 = vmatprep.subr.msk.mxu1 %vm237_vm0, %v116_v20 }
  0x22   :  { %6735 = vmatmul.mubr.msk.f32.vlgmr.msra.gmra.mxu0 %vm237_vm0, %v22_v22 }
  0x23   :  { %6763 = vmatmul.mubr.msk.f32.vlgmr.msra.gmra.mxu1 %vm237_vm0, %v30_v23  ;;  %6737 = vmatprep.mubr.msk.f32.mxu0 %vm237_vm0, %v23_v24 }
  0x24   :  { %6765 = vmatprep.mubr.msk.f32.mxu1 %vm237_vm0, %v31_v25  ;;  %6803 = vmatpush3.xpose.msk.msra.mxu1 %vm237_vm0, %v116_v20 }
  0x25   :  { %6775 = vmatpush3.xpose.msk.msra.mxu0 %vm237_vm0, %v108_v21  ;;  %6804 = vmatprep.subr.msk.mxu1 %vm237_vm0, %v115_v26 }
  0x26   :  { %6776 = vmatprep.subr.msk.mxu0 %vm237_vm0, %v107_v27  ;;  %6738 = vmatmul.mubr.msk.f32.gmra.mxu0 %vm237_vm0, %v24_v28 }
  0x27   :  { %6766 = vmatmul.mubr.msk.f32.gmra.mxu1 %vm237_vm0, %v32_v29  ;;  %6740 = vmatprep.mubr.msk.f32.mxu0 %vm237_vm0, %v25_v30 }
  0x28   :  { %6768 = vmatprep.mubr.msk.f32.mxu1 %vm237_vm0, %v33_v31 }
  0x29   :  { %10 = vsyncpa [#allocation3], 0  ;;  %v27_v36 = vld [vmem:[%s11758_s2 + $0x30] sm:$0xff]  ;;  %6805 = vmatpush3.xpose.msk.msra.mxu1 %vm237_vm0, %v115_v26  ;;  %6777 = vmatpush3.xpose.msk.msra.mxu0 %vm237_vm0, %v107_v27  ;;  %v113_v38 = vld [vmem:[%s11759_s3 + $0xe0] sm:$0xff]  ;;  %vm11900_vm2 = vcmask 523264   ;;  %vm2202_vm10 = vcmask 130112  }
  0x2a   :  { %v35_v37 = vld [vmem:[%s11758_s2 + $0x70] sm:$0xff]  ;;  %6806 = vmatprep.subr.msk.mxu1 %vm237_vm0, %v114_v32  ;;  %6778 = vmatprep.subr.msk.mxu0 %vm237_vm0, %v106_v33  ;;  %v105_v39 = vld [vmem:[%s11759_s3 + $0xa0] sm:$0xff]  ;;  %v28_v40 = vld [vmem:[%s11758_s2 + $0x38] sm:$0xff]  ;;  %vm2209_vm11 = vcmask 195712   ;;  %vm2216_vm12 = vcmask 261312   ;;  %vm2223_vm13 = vcmask 326912  }
  0x2b   :  { %6741 = vmatmul.mubr.msk.f32.gmra.mxu0 %vm237_vm0, %v26_v34  ;;  %6769 = vmatmul.mubr.msk.f32.gmra.mxu1 %vm237_vm0, %v34_v35  ;;  %v36_v41 = vld [vmem:[%s11758_s2 + $0x78] sm:$0xff]  ;;  %v45_v42 = vld [vmem:[%s11758_s2 + $0xc0] sm:$0xff]  ;;  %v111_v46 = vld [vmem:[%s11759_s3 + $0xd0] sm:$0xff]  ;;  %vm2230_vm14 = vcmask 392512   ;;  %vm2237_vm15 = vcmask 458112  }
  0x2c   :  { %6743 = vmatprep.mubr.msk.f32.mxu0 %vm237_vm0, %v27_v36  ;;  %6771 = vmatprep.mubr.msk.f32.mxu1 %vm237_vm0, %v35_v37  ;;  %v37_v43 = vld [vmem:[%s11758_s2 + $0x80] sm:$0xff]  ;;  %v112_v44 = vld [vmem:[%s11759_s3 + $0xd8] sm:$0xff]  ;;  %v103_v47 = vld [vmem:[%s11759_s3 + $0x90] sm:$0xff] }
  0x2d   :  { %6807 = vmatpush3.xpose.msk.msra.mxu1 %vm237_vm0, %v114_v32  ;;  %6779 = vmatpush3.xpose.msk.msra.mxu0 %vm237_vm0, %v106_v33  ;;  %v104_v45 = vld [vmem:[%s11759_s3 + $0x98] sm:$0xff]  ;;  %v110_v48 = vld [vmem:[%s11759_s3 + $0xc8] sm:$0xff]  ;;  %v109_v50 = vld [vmem:[%s11759_s3 + $0xc0] sm:$0xff] }
  0x2e   :  { %6808 = vmatprep.subr.msk.mxu1 %vm237_vm0, %v113_v38  ;;  %6780 = vmatprep.subr.msk.mxu0 %vm237_vm0, %v105_v39  ;;  %v102_v49 = vld [vmem:[%s11759_s3 + $0x88] sm:$0xff]  ;;  %v101_v51 = vld [vmem:[%s11759_s3 + $0x80] sm:$0xff]  ;;  %v132_v52 = vld [vmem:[%s11759_s3 + $0x178] sm:$0xff] }
  0x2f   :  { %6744 = vmatmul.mubr.msk.f32.gmra.mxu0 %vm237_vm0, %v28_v40  ;;  %6772 = vmatmul.mubr.msk.f32.gmra.mxu1 %vm237_vm0, %v36_v41  ;;  %v124_v53 = vld [vmem:[%s11759_s3 + $0x138] sm:$0xff]  ;;  %v46_v54 = vld [vmem:[%s11758_s2 + $0xc8] sm:$0xff]  ;;  %v39_v56 = vld [vmem:[%s11758_s2 + $0x90] sm:$0xff] }
  0x30   :  { %6818 = vmatprep.mubr.msk.f32.mxu1 %vm237_vm0, %v45_v42  ;;  %6790 = vmatprep.mubr.msk.f32.mxu0 %vm237_vm0, %v37_v43  ;;  %v38_v55 = vld [vmem:[%s11758_s2 + $0x88] sm:$0xff]  ;;  %v47_v57 = vld [vmem:[%s11758_s2 + $0xd0] sm:$0xff]  ;;  %v40_v60 = vld [vmem:[%s11758_s2 + $0x98] sm:$0xff] }
  0x31   :  { %6809 = vmatpush3.xpose.msk.msra.mxu1 %vm237_vm0, %v113_v38  ;;  %6781 = vmatpush3.xpose.msk.msra.mxu0 %vm237_vm0, %v105_v39  ;;  %v131_v58 = vld [vmem:[%s11759_s3 + $0x170] sm:$0xff]  ;;  %v48_v61 = vld [vmem:[%s11758_s2 + $0xd8] sm:$0xff]  ;;  %v41_v62 = vld [vmem:[%s11758_s2 + $0xa0] sm:$0xff] }
  0x32   :  { %6810 = vmatprep.subr.msk.mxu1 %vm237_vm0, %v112_v44  ;;  %6782 = vmatprep.subr.msk.mxu0 %vm237_vm0, %v104_v45  ;;  %v123_v59 = vld [vmem:[%s11759_s3 + $0x130] sm:$0xff]  ;;  %v49_v63 = vld [vmem:[%s11758_s2 + $0xe0] sm:$0xff]  ;;  %v130_v0 = vld [vmem:[%s11759_s3 + $0x168] sm:$0xff] }
  0x33   :  { %v122_v1 = vld [vmem:[%s11759_s3 + $0x128] sm:$0xff]  ;;  %v43_v6 = vld [vmem:[%s11758_s2 + $0xb0] sm:$0xff]  ;;  %v129_v8 = vld [vmem:[%s11759_s3 + $0x160] sm:$0xff] }
  0x34   :  { %v42_v2 = vld [vmem:[%s11758_s2 + $0xa8] sm:$0xff]  ;;  %v51_v7 = vld [vmem:[%s11758_s2 + $0xf0] sm:$0xff]  ;;  %v121_v9 = vld [vmem:[%s11759_s3 + $0x120] sm:$0xff] }
  0x35   :  { %6811 = vmatpush3.xpose.msk.msra.mxu1 %vm237_vm0, %v112_v44  ;;  %6783 = vmatpush3.xpose.msk.msra.mxu0 %vm237_vm0, %v104_v45  ;;  %v50_v4 = vld [vmem:[%s11758_s2 + $0xe8] sm:$0xff]  ;;  %v44_v10 = vld [vmem:[%s11758_s2 + $0xb8] sm:$0xff]  ;;  %v61_v12 = vld [vmem:[%s11758_s2 + $0x140] sm:$0xff] }
  0x36   :  { %6812 = vmatprep.subr.msk.mxu1 %vm237_vm0, %v111_v46  ;;  %6784 = vmatprep.subr.msk.mxu0 %vm237_vm0, %v103_v47  ;;  %v52_v11 = vld [vmem:[%s11758_s2 + $0xf8] sm:$0xff]  ;;  %v53_v13 = vld [vmem:[%s11758_s2 + $0x100] sm:$0xff]  ;;  %v127_v16 = vld [vmem:[%s11759_s3 + $0x150] sm:$0xff] }
  0x37   :  { %v128_v14 = vld [vmem:[%s11759_s3 + $0x158] sm:$0xff]  ;;  %v119_v17 = vld [vmem:[%s11759_s3 + $0x110] sm:$0xff]  ;;  %v126_v18 = vld [vmem:[%s11759_s3 + $0x148] sm:$0xff] }
  0x38   :  { %v120_v15 = vld [vmem:[%s11759_s3 + $0x118] sm:$0xff]  ;;  %v118_v19 = vld [vmem:[%s11759_s3 + $0x108] sm:$0xff]  ;;  %v125_v20 = vld [vmem:[%s11759_s3 + $0x140] sm:$0xff] }
  0x39   :  { %6813 = vmatpush3.xpose.msk.msra.mxu1 %vm237_vm0, %v111_v46  ;;  %6785 = vmatpush3.xpose.msk.msra.mxu0 %vm237_vm0, %v103_v47  ;;  %v117_v21 = vld [vmem:[%s11759_s3 + $0x100] sm:$0xff]  ;;  %v148_v22 = vld [vmem:[%s11759_s3 + $0x1f8] sm:$0xff]  ;;  %v62_v24 = vld [vmem:[%s11758_s2 + $0x148] sm:$0xff] }
  0x3a   :  { %6814 = vmatprep.subr.msk.mxu1 %vm237_vm0, %v110_v48  ;;  %6786 = vmatprep.subr.msk.mxu0 %vm237_vm0, %v102_v49  ;;  %v140_v23 = vld [vmem:[%s11759_s3 + $0x1b8] sm:$0xff]  ;;  %v54_v25 = vld [vmem:[%s11758_s2 + $0x108] sm:$0xff]  ;;  %v55_v26 = vld [vmem:[%s11758_s2 + $0x110] sm:$0xff] }
  0x3b   :  { %v63_v27 = vld [vmem:[%s11758_s2 + $0x150] sm:$0xff]  ;;  %v56_v30 = vld [vmem:[%s11758_s2 + $0x118] sm:$0xff]  ;;  %v57_v32 = vld [vmem:[%s11758_s2 + $0x120] sm:$0xff] }
  0x3c   :  { %v147_v28 = vld [vmem:[%s11759_s3 + $0x1f0] sm:$0xff]  ;;  %v64_v31 = vld [vmem:[%s11758_s2 + $0x158] sm:$0xff]  ;;  %v65_v33 = vld [vmem:[%s11758_s2 + $0x160] sm:$0xff] }
  0x3d   :  { %6815 = vmatpush3.xpose.msk.msra.mxu1 %vm237_vm0, %v110_v48  ;;  %6787 = vmatpush3.xpose.msk.msra.mxu0 %vm237_vm0, %v102_v49  ;;  %v139_v29 = vld [vmem:[%s11759_s3 + $0x1b0] sm:$0xff]  ;;  %v146_v34 = vld [vmem:[%s11759_s3 + $0x1e8] sm:$0xff]  ;;  %v145_v40 = vld [vmem:[%s11759_s3 + $0x1e0] sm:$0xff] }
  0x3e   :  { %6816 = vmatprep.subr.msk.mxu1 %vm237_vm0, %v109_v50  ;;  %6788 = vmatprep.subr.msk.mxu0 %vm237_vm0, %v101_v51  ;;  %v138_v35 = vld [vmem:[%s11759_s3 + $0x1a8] sm:$0xff]  ;;  %v59_v38 = vld [vmem:[%s11758_s2 + $0x130] sm:$0xff]  ;;  %v137_v41 = vld [vmem:[%s11759_s3 + $0x1a0] sm:$0xff] }
  0x3f   :  { %v58_v36 = vld [vmem:[%s11758_s2 + $0x128] sm:$0xff]  ;;  %v67_v39 = vld [vmem:[%s11758_s2 + $0x170] sm:$0xff]  ;;  %v60_v42 = vld [vmem:[%s11758_s2 + $0x138] sm:$0xff] }
  0x40   :  { %v66_v37 = vld [vmem:[%s11758_s2 + $0x168] sm:$0xff]  ;;  %v68_v43 = vld [vmem:[%s11758_s2 + $0x178] sm:$0xff]  ;;  %v77_v44 = vld [vmem:[%s11758_s2 + $0x1c0] sm:$0xff] }
  0x41   :  { %6817 = vmatpush3.xpose.msk.msra.mxu1 %vm237_vm0, %v109_v50  ;;  %6789 = vmatpush3.xpose.msk.msra.mxu0 %vm237_vm0, %v101_v51  ;;  %v69_v45 = vld [vmem:[%s11758_s2 + $0x180] sm:$0xff]  ;;  %v144_v46 = vld [vmem:[%s11759_s3 + $0x1d8] sm:$0xff]  ;;  %v143_v48 = vld [vmem:[%s11759_s3 + $0x1d0] sm:$0xff] }
  0x42   :  { %6858 = vmatprep.subr.msk.mxu1 %vm237_vm0, %v132_v52  ;;  %6830 = vmatprep.subr.msk.mxu0 %vm237_vm0, %v124_v53  ;;  %v136_v47 = vld [vmem:[%s11759_s3 + $0x198] sm:$0xff]  ;;  %v135_v49 = vld [vmem:[%s11759_s3 + $0x190] sm:$0xff]  ;;  %v142_v50 = vld [vmem:[%s11759_s3 + $0x1c8] sm:$0xff] }
  0x43   :  { %v134_v51 = vld [vmem:[%s11759_s3 + $0x188] sm:$0xff] }
  0x44   :  { %6819 = vmatmul.mubr.msk.f32.vlgmr.msra.gmra.mxu1 %vm237_vm0, %v46_v54  ;;  %6791 = vmatmul.mubr.msk.f32.vlgmr.msra.gmra.mxu0 %vm237_vm0, %v38_v55  ;;  %v78_v54 = vld [vmem:[%s11758_s2 + $0x1c8] sm:$0xff] }
  0x45   :  { %6793 = vmatprep.mubr.msk.f32.mxu0 %vm237_vm0, %v39_v56  ;;  %6821 = vmatprep.mubr.msk.f32.mxu1 %vm237_vm0, %v47_v57  ;;  %v70_v55 = vld [vmem:[%s11758_s2 + $0x188] sm:$0xff]  ;;  %v71_v56 = vld [vmem:[%s11758_s2 + $0x190] sm:$0xff] }
  0x46   :  { %6859 = vmatpush3.xpose.msk.msra.mxu1 %vm237_vm0, %v132_v52  ;;  %6831 = vmatpush3.xpose.msk.msra.mxu0 %vm237_vm0, %v124_v53  ;;  %v141_v52 = vld [vmem:[%s11759_s3 + $0x1c0] sm:$0xff]  ;;  %v79_v57 = vld [vmem:[%s11758_s2 + $0x1d0] sm:$0xff] }
  0x47   :  { %6860 = vmatprep.subr.msk.mxu1 %vm237_vm0, %v131_v58  ;;  %6832 = vmatprep.subr.msk.mxu0 %vm237_vm0, %v123_v59  ;;  %v133_v53 = vld [vmem:[%s11759_s3 + $0x180] sm:$0xff] }
  0x48   :  { %6794 = vmatmul.mubr.msk.f32.gmra.mxu0 %vm237_vm0, %v40_v60  ;;  %6822 = vmatmul.mubr.msk.f32.gmra.mxu1 %vm237_vm0, %v48_v61  ;;  %v73_v60 = vld [vmem:[%s11758_s2 + $0x1a0] sm:$0xff] }
  0x49   :  { %6796 = vmatprep.mubr.msk.f32.mxu0 %vm237_vm0, %v41_v62  ;;  %6824 = vmatprep.mubr.msk.f32.mxu1 %vm237_vm0, %v49_v63  ;;  %v81_v61 = vld [vmem:[%s11758_s2 + $0x1e0] sm:$0xff]  ;;  %v74_v62 = vld [vmem:[%s11758_s2 + $0x1a8] sm:$0xff] }
  0x4a   :  { %6861 = vmatpush3.xpose.msk.msra.mxu1 %vm237_vm0, %v131_v58  ;;  %6833 = vmatpush3.xpose.msk.msra.mxu0 %vm237_vm0, %v123_v59  ;;  %v72_v58 = vld [vmem:[%s11758_s2 + $0x198] sm:$0xff]  ;;  %v82_v63 = vld [vmem:[%s11758_s2 + $0x1e8] sm:$0xff] }
  0x4b   :  { %6862 = vmatprep.subr.msk.mxu1 %vm237_vm0, %v130_v0  ;;  %6834 = vmatprep.subr.msk.mxu0 %vm237_vm0, %v122_v1  ;;  %v80_v59 = vld [vmem:[%s11758_s2 + $0x1d8] sm:$0xff] }
  0x4c   :  { %6797 = vmatmul.mubr.msk.f32.gmra.mxu0 %vm237_vm0, %v42_v2  ;;  %6825 = vmatmul.mubr.msk.f32.gmra.mxu1 %vm237_vm0, %v50_v4  ;;  %v76_v2 = vld [vmem:[%s11758_s2 + $0x1b8] sm:$0xff] }
  0x4d   :  { %6799 = vmatprep.mubr.msk.f32.mxu0 %vm237_vm0, %v43_v6  ;;  %6827 = vmatprep.mubr.msk.f32.mxu1 %vm237_vm0, %v51_v7  ;;  %v84_v4 = vld [vmem:[%s11758_s2 + $0x1f8] sm:$0xff]  ;;  %v8002_v6 = vld [vmem:[%s11756_s0 + $0x8] sm:$0xff]  ;;  %v8008_v7 = vld [vmem:[%s11756_s0] sm:$0xff] }
  0x4e   :  { %6863 = vmatpush3.xpose.msk.msra.mxu1 %vm237_vm0, %v130_v0  ;;  %6835 = vmatpush3.xpose.msk.msra.mxu0 %vm237_vm0, %v122_v1  ;;  %v75_v0 = vld [vmem:[%s11758_s2 + $0x1b0] sm:$0xff]  ;;  %vm1463_vm1 = vcmp.gt.f32.partialorder %v8002_v6, 0.0  ;;  %vm1462_vm3 = vcmp.gt.f32.partialorder %v8008_v7, 0.0 }
  0x4f   :  { %6864 = vmatprep.subr.msk.mxu1 %vm237_vm0, %v129_v8  ;;  %6836 = vmatprep.subr.msk.mxu0 %vm237_vm0, %v121_v9  ;;  %v83_v1 = vld [vmem:[%s11758_s2 + $0x1f0] sm:$0xff] }
  0x50   :  { %6800 = vmatmul.mubr.msk.f32.gmra.mxu0 %vm237_vm0, %v44_v10  ;;  %6828 = vmatmul.mubr.msk.f32.gmra.mxu1 %vm237_vm0, %v52_v11 }
  0x51   :  { %6874 = vmatprep.mubr.msk.f32.mxu1 %vm237_vm0, %v61_v12  ;;  %6846 = vmatprep.mubr.msk.f32.mxu0 %vm237_vm0, %v53_v13 }
  0x52   :  { %6865 = vmatpush3.xpose.msk.msra.mxu1 %vm237_vm0, %v129_v8  ;;  %6837 = vmatpush3.xpose.msk.msra.mxu0 %vm237_vm0, %v121_v9 }
  0x53   :  { %6866 = vmatprep.subr.msk.mxu1 %vm237_vm0, %v128_v14  ;;  %6838 = vmatprep.subr.msk.mxu0 %vm237_vm0, %v120_v15 }
  0x56   :  { %6867 = vmatpush3.xpose.msk.msra.mxu1 %vm237_vm0, %v128_v14  ;;  %6839 = vmatpush3.xpose.msk.msra.mxu0 %vm237_vm0, %v120_v15 }
  0x57   :  { %6868 = vmatprep.subr.msk.mxu1 %vm237_vm0, %v127_v16  ;;  %6840 = vmatprep.subr.msk.mxu0 %vm237_vm0, %v119_v17 }
  0x5a   :  { %6869 = vmatpush3.xpose.msk.msra.mxu1 %vm237_vm0, %v127_v16  ;;  %6841 = vmatpush3.xpose.msk.msra.mxu0 %vm237_vm0, %v119_v17 }
  0x5b   :  { %6870 = vmatprep.subr.msk.mxu1 %vm237_vm0, %v126_v18  ;;  %6842 = vmatprep.subr.msk.mxu0 %vm237_vm0, %v118_v19 }
  0x5e   :  { %6871 = vmatpush3.xpose.msk.msra.mxu1 %vm237_vm0, %v126_v18  ;;  %6843 = vmatpush3.xpose.msk.msra.mxu0 %vm237_vm0, %v118_v19 }
  0x5f   :  { %6872 = vmatprep.subr.msk.mxu1 %vm237_vm0, %v125_v20  ;;  %6844 = vmatprep.subr.msk.mxu0 %vm237_vm0, %v117_v21 }
  0x62   :  { %6873 = vmatpush3.xpose.msk.msra.mxu1 %vm237_vm0, %v125_v20  ;;  %6845 = vmatpush3.xpose.msk.msra.mxu0 %vm237_vm0, %v117_v21 }
  0x63   :  { %6914 = vmatprep.subr.msk.mxu1 %vm237_vm0, %v148_v22  ;;  %6886 = vmatprep.subr.msk.mxu0 %vm237_vm0, %v140_v23 }
  0x65   :  { %6875 = vmatmul.mubr.msk.f32.vlgmr.msra.gmra.mxu1 %vm237_vm0, %v62_v24  ;;  %6847 = vmatmul.mubr.msk.f32.vlgmr.msra.gmra.mxu0 %vm237_vm0, %v54_v25 }
  0x66   :  { %6849 = vmatprep.mubr.msk.f32.mxu0 %vm237_vm0, %v55_v26  ;;  %6877 = vmatprep.mubr.msk.f32.mxu1 %vm237_vm0, %v63_v27 }
  0x67   :  { %6915 = vmatpush3.xpose.msk.msra.mxu1 %vm237_vm0, %v148_v22  ;;  %6887 = vmatpush3.xpose.msk.msra.mxu0 %vm237_vm0, %v140_v23 }
  0x68   :  { %6916 = vmatprep.subr.msk.mxu1 %vm237_vm0, %v147_v28  ;;  %6888 = vmatprep.subr.msk.mxu0 %vm237_vm0, %v139_v29 }
  0x69   :  { %6850 = vmatmul.mubr.msk.f32.gmra.mxu0 %vm237_vm0, %v56_v30  ;;  %6878 = vmatmul.mubr.msk.f32.gmra.mxu1 %vm237_vm0, %v64_v31 }
  0x6a   :  { %6852 = vmatprep.mubr.msk.f32.mxu0 %vm237_vm0, %v57_v32  ;;  %6880 = vmatprep.mubr.msk.f32.mxu1 %vm237_vm0, %v65_v33 }
  0x6b   :  { %6917 = vmatpush3.xpose.msk.msra.mxu1 %vm237_vm0, %v147_v28  ;;  %6889 = vmatpush3.xpose.msk.msra.mxu0 %vm237_vm0, %v139_v29  ;;  %v8050_v28 = vld [vmem:[%s11756_s0 + $0x18] sm:$0xff] }
  0x6c   :  { %6918 = vmatprep.subr.msk.mxu1 %vm237_vm0, %v146_v34  ;;  %6890 = vmatprep.subr.msk.mxu0 %vm237_vm0, %v138_v35  ;;  %vm1465_vm4 = vcmp.gt.f32.partialorder %v8050_v28, 0.0 }
  0x6d   :  { %6853 = vmatmul.mubr.msk.f32.gmra.mxu0 %vm237_vm0, %v58_v36  ;;  %6881 = vmatmul.mubr.msk.f32.gmra.mxu1 %vm237_vm0, %v66_v37 }
  0x6e   :  { %6855 = vmatprep.mubr.msk.f32.mxu0 %vm237_vm0, %v59_v38  ;;  %6883 = vmatprep.mubr.msk.f32.mxu1 %vm237_vm0, %v67_v39 }
  0x6f   :  { %6919 = vmatpush3.xpose.msk.msra.mxu1 %vm237_vm0, %v146_v34  ;;  %6891 = vmatpush3.xpose.msk.msra.mxu0 %vm237_vm0, %v138_v35 }
  0x70   :  { %6920 = vmatprep.subr.msk.mxu1 %vm237_vm0, %v145_v40  ;;  %6892 = vmatprep.subr.msk.mxu0 %vm237_vm0, %v137_v41 }
  0x71   :  { %6856 = vmatmul.mubr.msk.f32.gmra.mxu0 %vm237_vm0, %v60_v42  ;;  %6884 = vmatmul.mubr.msk.f32.gmra.mxu1 %vm237_vm0, %v68_v43 }
  0x72   :  { %6930 = vmatprep.mubr.msk.f32.mxu1 %vm237_vm0, %v77_v44  ;;  %6902 = vmatprep.mubr.msk.f32.mxu0 %vm237_vm0, %v69_v45 }
  0x73   :  { %6921 = vmatpush3.xpose.msk.msra.mxu1 %vm237_vm0, %v145_v40  ;;  %6893 = vmatpush3.xpose.msk.msra.mxu0 %vm237_vm0, %v137_v41 }
  0x74   :  { %6922 = vmatprep.subr.msk.mxu1 %vm237_vm0, %v144_v46  ;;  %6894 = vmatprep.subr.msk.mxu0 %vm237_vm0, %v136_v47 }
  0x77   :  { %6923 = vmatpush3.xpose.msk.msra.mxu1 %vm237_vm0, %v144_v46  ;;  %6895 = vmatpush3.xpose.msk.msra.mxu0 %vm237_vm0, %v136_v47  ;;  %v8096_v46 = vld [vmem:[%s11756_s0 + $0x10] sm:$0xff] }
  0x78   :  { %6924 = vmatprep.subr.msk.mxu1 %vm237_vm0, %v143_v48  ;;  %6896 = vmatprep.subr.msk.mxu0 %vm237_vm0, %v135_v49  ;;  %vm1464_vm5 = vcmp.gt.f32.partialorder %v8096_v46, 0.0 }
  0x7b   :  { %6925 = vmatpush3.xpose.msk.msra.mxu1 %vm237_vm0, %v143_v48  ;;  %6897 = vmatpush3.xpose.msk.msra.mxu0 %vm237_vm0, %v135_v49 }
  0x7c   :  { %6926 = vmatprep.subr.msk.mxu1 %vm237_vm0, %v142_v50  ;;  %6898 = vmatprep.subr.msk.mxu0 %vm237_vm0, %v134_v51 }
  0x7f   :  { %6927 = vmatpush3.xpose.msk.msra.mxu1 %vm237_vm0, %v142_v50  ;;  %6899 = vmatpush3.xpose.msk.msra.mxu0 %vm237_vm0, %v134_v51  ;;  %v8114_v51 = vld [vmem:[%s11756_s0 + $0x28] sm:$0xff] }
  0x80   :  { %6928 = vmatprep.subr.msk.mxu1 %vm237_vm0, %v141_v52  ;;  %6900 = vmatprep.subr.msk.mxu0 %vm237_vm0, %v133_v53  ;;  %vm1467_vm6 = vcmp.gt.f32.partialorder %v8114_v51, 0.0 }
  0x83   :  { %6929 = vmatpush3.xpose.msk.msra.mxu1 %vm237_vm0, %v141_v52  ;;  %6901 = vmatpush3.xpose.msk.msra.mxu0 %vm237_vm0, %v133_v53 }
  0x86   :  { %6931 = vmatmul.mubr.msk.f32.vlgmr.msra.gmra.mxu1 %vm237_vm0, %v78_v54  ;;  %6903 = vmatmul.mubr.msk.f32.vlgmr.msra.gmra.mxu0 %vm237_vm0, %v70_v55 }
  0x87   :  { %6905 = vmatprep.mubr.msk.f32.mxu0 %vm237_vm0, %v71_v56  ;;  %6933 = vmatprep.mubr.msk.f32.mxu1 %vm237_vm0, %v79_v57 }
  0x8a   :  { %6906 = vmatmul.mubr.msk.f32.gmra.mxu0 %vm237_vm0, %v72_v58  ;;  %6934 = vmatmul.mubr.msk.f32.gmra.mxu1 %vm237_vm0, %v80_v59 }
  0x8b   :  { %6908 = vmatprep.mubr.msk.f32.mxu0 %vm237_vm0, %v73_v60  ;;  %6936 = vmatprep.mubr.msk.f32.mxu1 %vm237_vm0, %v81_v61 }
  0x8e   :  { %6909 = vmatmul.mubr.msk.f32.gmra.mxu0 %vm237_vm0, %v74_v62  ;;  %6937 = vmatmul.mubr.msk.f32.gmra.mxu1 %vm237_vm0, %v82_v63 }
  0x8f   :  { %6911 = vmatprep.mubr.msk.f32.mxu0 %vm237_vm0, %v75_v0  ;;  %6939 = vmatprep.mubr.msk.f32.mxu1 %vm237_vm0, %v83_v1 }
  0x92   :  { %6912 = vmatmul.mubr.msk.f32.gmra.mxu0 %vm237_vm0, %v76_v2  ;;  %6940 = vmatmul.mubr.msk.f32.gmra.mxu1 %vm237_vm0, %v84_v4  ;;  %v8155_v2 = vld [vmem:[%s11756_s0 + $0x20] sm:$0xff]  ;;  %vm2244_vm0 = vcmask 523712  }
  0x93   :  { %vm1466_vm7 = vcmp.gt.f32.partialorder %v8155_v2, 0.0 }
  0xe2   :  { %v8010_v8 = vpop.f32.mrf.mxu0 }
  0xe3   :  { %v8012_v9 = vpop.f32.mrf.mxu1  ;;  %v1487_v10 = vsel %vm1463_vm1, %v8010_v8, -inf  ;;  %v1744_v11 = vmul.f32 %v8010_v8, %v8002_v6 }
  0xe4   :  { %v1495_v12 = vsel %vm1463_vm1, %v8012_v9, -inf  ;;  %v8023_v13 = vpop.f32.mrf.mxu0  ;;  %v1554_v15 = vsel %vm11900_vm2, %v1487_v10, -inf  ;;  %v1752_v23 = vmul.f32 %v8012_v9, %v8002_v6 }
  0xe5   :  { %v8025_v14 = vpop.f32.mrf.mxu1  ;;  %1555 = vmax.xlane.f32.xlu1 %v1554_v15  ;;  %v1810_v16 = vsel %vm11900_vm2, %v1744_v11, 0.0  ;;  %v1578_v19 = vsel %vm11900_vm2, %v1495_v12, -inf  ;;  %v1486_v20 = vsel %vm1462_vm3, %v8023_v13, -inf  ;;  %v1743_v36 = vmul.f32 %v8023_v13, %v8008_v7 }
  0xe6   :  { %1811 = vadd.xlane.f32.xlu0 %v1810_v16  ;;  %v6739_v18 = vpop.f32.mrf.mxu0  ;;  %v1551_v24 = vsel %vm11900_vm2, %v1486_v20, -inf  ;;  %v1494_v27 = vsel %vm1462_vm3, %v8025_v14, -inf  ;;  %v1834_v31 = vsel %vm11900_vm2, %v1752_v23, 0.0  ;;  %v1751_v32 = vmul.f32 %v8025_v14, %v8008_v7 }
  0xe7   :  { %v6767_v17 = vpop.f32.mrf.mxu1  ;;  %v1575_v33 = vsel %vm11900_vm2, %v1494_v27, -inf  ;;  %v1489_v40 = vsel %vm1465_vm4, %v6739_v18, -inf  ;;  %v1807_v41 = vsel %vm11900_vm2, %v1743_v36, 0.0  ;;  %v1746_v47 = vmul.f32 %v6739_v18, %v8050_v28 }
  0xe8   :  { %v8033_v21 = vpop.f32.mrf.mxu0  ;;  %v1831_v39 = vsel %vm11900_vm2, %v1751_v32, 0.0  ;;  %v1497_v42 = vsel %vm1465_vm4, %v6767_v17, -inf  ;;  %v1560_v43 = vsel %vm11900_vm2, %v1489_v40, -inf  ;;  %v1754_v45 = vmul.f32 %v6767_v17, %v8050_v28 }
  0xe9   :  { %v8035_v22 = vpop.f32.mrf.mxu1  ;;  %1579 = vmax.xlane.f32.xlu1 %v1578_v19  ;;  %v1584_v44 = vsel %vm11900_vm2, %v1497_v42, -inf  ;;  %v1816_v49 = vsel %vm11900_vm2, %v1746_v47, 0.0  ;;  %v1488_v50 = vsel %vm1464_vm5, %v8033_v21, -inf  ;;  %v1745_v56 = vmul.f32 %v8033_v21, %v8096_v46 }
  0xea   :  { %1552 = vmax.xlane.f32.xlu0 %v1551_v24  ;;  %v1840_v48 = vsel %vm11900_vm2, %v1754_v45, 0.0  ;;  %v1496_v52 = vsel %vm1464_vm5, %v8035_v22, -inf  ;;  %v1557_v53 = vsel %vm11900_vm2, %v1488_v50, -inf  ;;  %v1753_v54 = vmul.f32 %v8035_v22, %v8096_v46 }
  0xeb   :  { %v8040_v25 = vpop.f32.mrf.mxu1  ;;  %v8042_v26 = vpop.f32.mrf.mxu0  ;;  %v1581_v55 = vsel %vm11900_vm2, %v1496_v52, -inf  ;;  %v1813_v62 = vsel %vm11900_vm2, %v1745_v56, 0.0 }
  0xec   :  { %v1491_v57 = vsel %vm1467_vm6, %v8042_v26, -inf  ;;  %v1837_v58 = vsel %vm11900_vm2, %v1753_v54, 0.0  ;;  %v1499_v61 = vsel %vm1467_vm6, %v8040_v25, -inf  ;;  %v1748_v11 = vmul.f32 %v8042_v26, %v8114_v51 }
  0xed   :  { %v8052_v29 = vpop.f32.mrf.mxu0  ;;  %v8054_v30 = vpop.f32.mrf.mxu1  ;;  %1835 = vadd.xlane.f32.xlu1 %v1834_v31  ;;  %v1566_v63 = vsel %vm11900_vm2, %v1491_v57, -inf  ;;  %v1590_v4 = vsel %vm11900_vm2, %v1499_v61, -inf }
  0xee   :  { %1576 = vmax.xlane.f32.xlu0 %v1575_v33  ;;  %v1822_v19 = vsel %vm11900_vm2, %v1748_v11, 0.0  ;;  %v1747_v24 = vmul.f32 %v8052_v29, %v8155_v2  ;;  %v1755_v31 = vmul.f32 %v8054_v30, %v8155_v2 }
  0xef   :  { %v8061_v34 = vpop.f32.mrf.mxu1  ;;  %v8063_v35 = vpop.f32.mrf.mxu0 }
  0xf0   :  { %6942 = vmatprep.subr.mxu0 %v8063_v35  ;;  %6964 = vmatprep.subr.mxu1 %v8061_v34  ;;  %v1819_v32 = vsel %vm11900_vm2, %v1747_v24, 0.0  ;;  %v1843_v36 = vsel %vm11900_vm2, %v1755_v31, 0.0 }
  0xf1   :  { %v8069_v37 = vpop.f32.mrf.mxu0  ;;  %v8071_v38 = vpop.f32.mrf.mxu1  ;;  %6943 = vmatpush3.msra.mxu0 %v8063_v35  ;;  %6965 = vmatpush3.msra.mxu1 %v8061_v34 }
  0xf2   :  { %6966 = vmatprep.subr.mxu1 %v8071_v38  ;;  %1832 = vadd.xlane.f32.xlu1 %v1831_v39 }
  0xf3   :  { %6944 = vmatprep.subr.mxu0 %v8069_v37  ;;  %6967 = vmatpush3.msra.mxu1 %v8071_v38 }
  0xf4   :  { %1808 = vadd.xlane.f32.xlu0 %v1807_v41  ;;  %6945 = vmatpush3.msra.mxu0 %v8069_v37 }
  0xf5   :  { %6946 = vmatprep.subr.mxu0 %v8042_v26  ;;  %6968 = vmatprep.subr.mxu1 %v8040_v25 }
  0xf6   :  { %6947 = vmatpush3.msra.mxu0 %v8042_v26  ;;  %6969 = vmatpush3.msra.mxu1 %v8040_v25 }
  0xf7   :  { %6970 = vmatprep.subr.mxu1 %v8054_v30  ;;  %1561 = vmax.xlane.f32.xlu1 %v1560_v43 }
  0xf8   :  { %6948 = vmatprep.subr.mxu0 %v8052_v29  ;;  %6971 = vmatpush3.msra.mxu1 %v8054_v30 }
  0xf9   :  { %1585 = vmax.xlane.f32.xlu0 %v1584_v44  ;;  %6949 = vmatpush3.msra.mxu0 %v8052_v29 }
  0xfa   :  { %6950 = vmatprep.subr.mxu0 %v6739_v18  ;;  %6972 = vmatprep.subr.mxu1 %v6767_v17 }
  0xfb   :  { %6951 = vmatpush3.msra.mxu0 %v6739_v18  ;;  %6973 = vmatpush3.msra.mxu1 %v6767_v17  ;;  %v1490_v17 = vsel %vm1466_vm7, %v8052_v29, -inf  ;;  %v8182_v18 = vld [vmem:[%s11756_s0 + $0x38] sm:$0xff] }
  0xfc   :  { %6974 = vmatprep.subr.mxu1 %v8035_v22  ;;  %1841 = vadd.xlane.f32.xlu1 %v1840_v48  ;;  %v1563_v23 = vsel %vm11900_vm2, %v1490_v17, -inf  ;;  %vm1469_vm8 = vcmp.gt.f32.partialorder %v8182_v18, 0.0  ;;  %v1758_v41 = vmul.f32 %v8061_v34, %v8182_v18  ;;  %v1750_v42 = vmul.f32 %v8063_v35, %v8182_v18 }
  0xfd   :  { %6952 = vmatprep.subr.mxu0 %v8033_v21  ;;  %6975 = vmatpush3.msra.mxu1 %v8035_v22  ;;  %v1493_v29 = vsel %vm1469_vm8, %v8063_v35, -inf  ;;  %v1501_v33 = vsel %vm1469_vm8, %v8061_v34, -inf }
  0xfe   :  { %1817 = vadd.xlane.f32.xlu0 %v1816_v49  ;;  %6953 = vmatpush3.msra.mxu0 %v8033_v21  ;;  %v1498_v21 = vsel %vm1466_vm7, %v8054_v30, -inf  ;;  %v1572_v39 = vsel %vm11900_vm2, %v1493_v29, -inf  ;;  %v8217_v30 = vld [vmem:[%s11756_s0 + $0x30] sm:$0xff]  ;;  %v1596_v40 = vsel %vm11900_vm2, %v1501_v33, -inf  ;;  %v1852_v43 = vsel %vm11900_vm2, %v1758_v41, 0.0 }
  0xff   :  { %6954 = vmatprep.subr.mxu0 %v8010_v8  ;;  %6976 = vmatprep.subr.mxu1 %v8012_v9  ;;  %v1587_v27 = vsel %vm11900_vm2, %v1498_v21, -inf  ;;  %vm1468_vm9 = vcmp.gt.f32.partialorder %v8217_v30, 0.0  ;;  %v1828_v45 = vsel %vm11900_vm2, %v1750_v42, 0.0  ;;  %v1749_v35 = vmul.f32 %v8069_v37, %v8217_v30 }
 0x100   :  { %6955 = vmatpush3.msra.mxu0 %v8010_v8  ;;  %6977 = vmatpush3.msra.mxu1 %v8012_v9  ;;  %v1756_v8 = vmul.f32 %v8040_v25, %v8114_v51  ;;  %v1492_v44 = vsel %vm1468_vm9, %v8069_v37, -inf  ;;  %v1500_v34 = vsel %vm1468_vm9, %v8071_v38, -inf  ;;  %v1757_v49 = vmul.f32 %v8071_v38, %v8217_v30 }
 0x101   :  { %6978 = vmatprep.subr.mxu1 %v8025_v14  ;;  %1558 = vmax.xlane.f32.xlu1 %v1557_v53  ;;  %v1569_v47 = vsel %vm11900_vm2, %v1492_v44, -inf  ;;  %v1593_v48 = vsel %vm11900_vm2, %v1500_v34, -inf  ;;  %v1825_v52 = vsel %vm11900_vm2, %v1749_v35, 0.0 }
 0x102   :  { %6956 = vmatprep.subr.mxu0 %v8023_v13  ;;  %6979 = vmatpush3.msra.mxu1 %v8025_v14  ;;  %v1846_v14 = vsel %vm11900_vm2, %v1756_v8, 0.0  ;;  %v1849_v37 = vsel %vm11900_vm2, %v1757_v49, 0.0 }
 0x103   :  { %1582 = vmax.xlane.f32.xlu0 %v1581_v55  ;;  %6957 = vmatpush3.msra.mxu0 %v8023_v13 }
 0x104   :  { %v8139_v59 = vpop.f32.mrf.mxu1  ;;  %v8141_v60 = vpop.f32.mrf.mxu0 }
 0x105   :  { %11968 = vst [vmem:[#allocation6_spill] sm:$0xff] %v8139_v59  ;;  %11969 = vst [vmem:[#allocation7_spill] sm:$0xff] %v8141_v60  ;;  %1838 = vadd.xlane.f32.xlu1 %v1837_v58  ;;  %v1511_v50 = vsel %vm1463_vm1, %v8139_v59, -inf  ;;  %v1503_v53 = vsel %vm1463_vm1, %v8141_v60, -inf  ;;  %v1760_v38 = vmul.f32 %v8141_v60, %v8002_v6  ;;  %v1768_v56 = vmul.f32 %v8139_v59, %v8002_v6 }
 0x106   :  { %v8148_v0 = vpop.f32.mrf.mxu1  ;;  %v8150_v1 = vpop.f32.mrf.mxu0  ;;  %v1626_v54 = vsel %vm11900_vm2, %v1511_v50, -inf  ;;  %v1602_v55 = vsel %vm11900_vm2, %v1503_v53, -inf }
 0x107   :  { %11970 = vst [vmem:[#allocation8_spill] sm:$0xff] %v8148_v0  ;;  %11971 = vst [vmem:[#allocation9_spill] sm:$0xff] %v8150_v1  ;;  %1814 = vadd.xlane.f32.xlu0 %v1813_v62  ;;  %v1858_v57 = vsel %vm11900_vm2, %v1760_v38, 0.0  ;;  %v1502_v58 = vsel %vm1462_vm3, %v8150_v1, -inf  ;;  %v1882_v61 = vsel %vm11900_vm2, %v1768_v56, 0.0  ;;  %v1510_v62 = vsel %vm1462_vm3, %v8148_v0, -inf }
 0x108   :  { %v8160_v9 = vpop.f32.mrf.mxu0  ;;  %v8162_v10 = vpop.f32.mrf.mxu1  ;;  %v1623_v8 = vsel %vm11900_vm2, %v1510_v62, -inf  ;;  %v1759_v11 = vmul.f32 %v8150_v1, %v8008_v7 }
 0x109   :  { %11972 = vst [vmem:[#allocation10_spill] sm:$0xff] %v8160_v9  ;;  %11973 = vst [vmem:[#allocation11_spill] sm:$0xff] %v8162_v10  ;;  %1567 = vmax.xlane.f32.xlu1 %v1566_v63  ;;  %v1599_v63 = vsel %vm11900_vm2, %v1502_v58, -inf }
 0x10a   :  { %v8167_v12 = vpop.f32.mrf.mxu0  ;;  %v8169_v13 = vpop.f32.mrf.mxu1  ;;  %v1855_v21 = vsel %vm11900_vm2, %v1759_v11, 0.0 }
 0x10b   :  { %11974 = vst [vmem:[#allocation12_spill] sm:$0xff] %v8167_v12  ;;  %11975 = vst [vmem:[#allocation13_spill] sm:$0xff] %v8169_v13  ;;  %1591 = vmax.xlane.f32.xlu0 %v1590_v4  ;;  %v1767_v4 = vmul.f32 %v8148_v0, %v8008_v7  ;;  %v1512_v31 = vsel %vm1464_vm5, %v8169_v13, -inf  ;;  %v1769_v42 = vmul.f32 %v8169_v13, %v8096_v46  ;;  %v8334_v11 = vpop.permute.xlu1 %2643 }
 0x10c   :  { %v8172_v15 = vpop.f32.mrf.mxu0  ;;  %v8174_v16 = vpop.f32.mrf.mxu1  ;;  %v1629_v33 = vsel %vm11900_vm2, %v1512_v31, -inf  ;;  %11983 = vst [vmem:[#allocation21_spill] sm:$0xff] %v8334_v11 }
 0x10d   :  { %11976 = vst [vmem:[#allocation14_spill] sm:$0xff] %v8172_v15  ;;  %11977 = vst [vmem:[#allocation15_spill] sm:$0xff] %v8174_v16  ;;  %1847 = vadd.xlane.f32.xlu1 %v1846_v14  ;;  %v1505_v14 = vsel %vm1465_vm4, %v8160_v9, -inf  ;;  %v1879_v17 = vsel %vm11900_vm2, %v1767_v4, 0.0  ;;  %v1885_v34 = vsel %vm11900_vm2, %v1769_v42, 0.0 }
 0x10e   :  { %v8185_v20 = vpop.f32.mrf.mxu0  ;;  %v8190_v22 = vpop.f32.mrf.mxu1 }
 0x10f   :  { %11978 = vst [vmem:[#allocation16_spill] sm:$0xff] %v8185_v20  ;;  %1823 = vadd.xlane.f32.xlu0 %v1822_v19  ;;  %11979 = vst [vmem:[#allocation17_spill] sm:$0xff] %v8190_v22  ;;  %v1513_v19 = vsel %vm1465_vm4, %v8162_v10, -inf  ;;  %v1514_v49 = vsel %vm1466_vm7, %v8190_v22, -inf  ;;  %v1771_v56 = vmul.f32 %v8190_v22, %v8155_v2  ;;  %v8350_v31 = vpop.permute.xlu1 %2651 }
 0x110   :  { %v8196_v25 = vpop.f32.mrf.mxu0  ;;  %v8198_v26 = vpop.f32.mrf.mxu1  ;;  %v1632_v24 = vsel %vm11900_vm2, %v1513_v19, -inf  ;;  %v1635_v53 = vsel %vm11900_vm2, %v1514_v49, -inf  ;;  %11985 = vst [vmem:[#allocation23_spill] sm:$0xff] %v8350_v31 }
 0x111   :  { %11980 = vst [vmem:[#allocation18_spill] sm:$0xff] %v8196_v25  ;;  %1564 = vmax.xlane.f32.xlu1 %v1563_v23  ;;  %11981 = vst [vmem:[#allocation19_spill] sm:$0xff] %v8198_v26  ;;  %6986 = vmatprep.subr.mxu0 %v8196_v25  ;;  %v1608_v23 = vsel %vm11900_vm2, %v1505_v14, -inf  ;;  %v1891_v62 = vsel %vm11900_vm2, %v1771_v56, 0.0  ;;  %v1517_v14 = vsel %vm1469_vm8, %v8198_v26, -inf }
 0x112   :  { %7008 = vmatprep.subr.mxu1 %v8198_v26  ;;  %v8331_v4 = vpop.f32.mrf.mxu1 }
 0x113   :  { %1588 = vmax.xlane.f32.xlu0 %v1587_v27  ;;  %v1762_v27 = vmul.f32 %v8160_v9, %v8050_v28  ;;  %11982 = vst [vmem:[#allocation20_spill] sm:$0xff] %v8331_v4  ;;  %v1516_v19 = vsel %vm1468_vm9, %v8331_v4, -inf }
 0x115   :  { %1820 = vadd.xlane.f32.xlu1 %v1819_v32  ;;  %v1864_v29 = vsel %vm11900_vm2, %v1762_v27, 0.0  ;;  %v1770_v32 = vmul.f32 %v8162_v10, %v8050_v28 }
 0x117   :  { %1844 = vadd.xlane.f32.xlu0 %v1843_v36  ;;  %v1761_v36 = vmul.f32 %v8167_v12, %v8096_v46 }
 0x119   :  { %1573 = vmax.xlane.f32.xlu1 %v1572_v39  ;;  %v1888_v39 = vsel %vm11900_vm2, %v1770_v32, 0.0  ;;  %v1861_v41 = vsel %vm11900_vm2, %v1761_v36, 0.0 }
 0x11b   :  { %1597 = vmax.xlane.f32.xlu0 %v1596_v40  ;;  %v1504_v40 = vsel %vm1464_vm5, %v8167_v12, -inf }
 0x11c   :  { %v1605_v44 = vsel %vm11900_vm2, %v1504_v40, -inf  ;;  %v1773_v40 = vmul.f32 %v8331_v4, %v8217_v30 }
 0x11d   :  { %1853 = vadd.xlane.f32.xlu1 %v1852_v43  ;;  %v1507_v43 = vsel %vm1467_vm6, %v8172_v15, -inf }
 0x11f   :  { %1829 = vadd.xlane.f32.xlu0 %v1828_v45  ;;  %v1515_v45 = vsel %vm1467_vm6, %v8174_v16, -inf }
 0x120   :  { %v1638_v35 = vsel %vm11900_vm2, %v1515_v45, -inf  ;;  %v8372_v45 = vpop.permute.xlu0 %2647 }
 0x121   :  { %1570 = vmax.xlane.f32.xlu1 %v1569_v47  ;;  %v1614_v47 = vsel %vm11900_vm2, %v1507_v43, -inf  ;;  %v8367_v43 = vpop.permute.xlu1 %2655  ;;  %11989 = vst [vmem:[#allocation27_spill] sm:$0xff] %v8372_v45 }
 0x122   :  { %11988 = vst [vmem:[#allocation26_spill] sm:$0xff] %v8367_v43 }
 0x123   :  { %1594 = vmax.xlane.f32.xlu0 %v1593_v48  ;;  %v1764_v48 = vmul.f32 %v8172_v15, %v8114_v51 }
 0x125   :  { %1826 = vadd.xlane.f32.xlu1 %v1825_v52  ;;  %v1870_v50 = vsel %vm11900_vm2, %v1764_v48, 0.0  ;;  %v1772_v52 = vmul.f32 %v8174_v16, %v8114_v51  ;;  %v8357_v36 = vpop.f32.mrf.mxu1 }
 0x126   :  { %11986 = vst [vmem:[#allocation24_spill] sm:$0xff] %v8357_v36  ;;  %v1784_v56 = vmul.f32 %v8357_v36, %v8002_v6 }
 0x127   :  { %1850 = vadd.xlane.f32.xlu0 %v1849_v37  ;;  %v1763_v37 = vmul.f32 %v8185_v20, %v8155_v2 }
 0x129   :  { %1627 = vmax.xlane.f32.xlu1 %v1626_v54  ;;  %v1894_v54 = vsel %vm11900_vm2, %v1772_v52, 0.0  ;;  %v1867_v38 = vsel %vm11900_vm2, %v1763_v37, 0.0  ;;  %v8384_v52 = vpop.permute.xlu1 %2659 }
 0x12a   :  { %11991 = vst [vmem:[#allocation29_spill] sm:$0xff] %v8384_v52 }
 0x12b   :  { %1603 = vmax.xlane.f32.xlu0 %v1602_v55  ;;  %v1506_v55 = vsel %vm1466_vm7, %v8185_v20, -inf }
 0x12c   :  { %v1611_v58 = vsel %vm11900_vm2, %v1506_v55, -inf  ;;  %v8391_v55 = vpop.f32.mrf.mxu1 }
 0x12d   :  { %1859 = vadd.xlane.f32.xlu1 %v1858_v57  ;;  %v1509_v57 = vsel %vm1469_vm8, %v8196_v25, -inf  ;;  %11993 = vst [vmem:[#allocation31_spill] sm:$0xff] %v8391_v55 }
 0x12f   :  { %1883 = vadd.xlane.f32.xlu0 %v1882_v61  ;;  %v1774_v61 = vmul.f32 %v8198_v26, %v8182_v18 }
 0x131   :  { %1600 = vmax.xlane.f32.xlu1 %v1599_v63  ;;  %v1620_v63 = vsel %vm11900_vm2, %v1509_v57, -inf }
 0x133   :  { %1624 = vmax.xlane.f32.xlu0 %v1623_v8  ;;  %v1900_v8 = vsel %vm11900_vm2, %v1774_v61, 0.0 }
 0x135   :  { %1880 = vadd.xlane.f32.xlu1 %v1879_v17  ;;  %v8339_v17 = vpop.f32.mrf.mxu0 }
 0x136   :  { %11984 = vst [vmem:[#allocation22_spill] sm:$0xff] %v8339_v17  ;;  %v1765_v27 = vmul.f32 %v8339_v17, %v8217_v30  ;;  %v1508_v32 = vsel %vm1468_vm9, %v8339_v17, -inf }
 0x137   :  { %1856 = vadd.xlane.f32.xlu0 %v1855_v21  ;;  %v1644_v21 = vsel %vm11900_vm2, %v1517_v14, -inf  ;;  %v1617_v42 = vsel %vm11900_vm2, %v1508_v32, -inf }
 0x139   :  { %1609 = vmax.xlane.f32.xlu1 %v1608_v23  ;;  %v1766_v23 = vmul.f32 %v8196_v25, %v8182_v18 }
 0x13b   :  { %1633 = vmax.xlane.f32.xlu0 %v1632_v24  ;;  %v1641_v24 = vsel %vm11900_vm2, %v1516_v19, -inf }
 0x13d   :  { %1865 = vadd.xlane.f32.xlu1 %v1864_v29  ;;  %v1876_v29 = vsel %vm11900_vm2, %v1766_v23, 0.0  ;;  %v1526_v23 = vsel %vm1462_vm3, %v8391_v55, -inf }
 0x13f   :  { %1630 = vmax.xlane.f32.xlu0 %v1629_v33  ;;  %v1873_v33 = vsel %vm11900_vm2, %v1765_v27, 0.0  ;;  %v8410_v27 = vpop.f32.mrf.mxu1 }
 0x140   :  { %11996 = vst [vmem:[#allocation34_spill] sm:$0xff] %v8410_v27 }
 0x141   :  { %1889 = vadd.xlane.f32.xlu1 %v1888_v39  ;;  %v8359_v39 = vpop.f32.mrf.mxu0 }
 0x142   :  { %11987 = vst [vmem:[#allocation25_spill] sm:$0xff] %v8359_v39 }
 0x143   :  { %1862 = vadd.xlane.f32.xlu0 %v1861_v41  ;;  %v1527_v41 = vsel %vm1463_vm1, %v8357_v36, -inf }
 0x145   :  { %1606 = vmax.xlane.f32.xlu1 %v1605_v44  ;;  %v1519_v44 = vsel %vm1463_vm1, %v8359_v39, -inf }
 0x146   :  { %v1650_v48 = vsel %vm11900_vm2, %v1519_v44, -inf  ;;  %v8418_v44 = vpop.f32.mrf.mxu1 }
 0x147   :  { %1886 = vadd.xlane.f32.xlu0 %v1885_v34  ;;  %v1897_v34 = vsel %vm11900_vm2, %v1773_v40, 0.0  ;;  %v1671_v40 = vsel %vm11900_vm2, %v1526_v23, -inf  ;;  %11997 = vst [vmem:[#allocation35_spill] sm:$0xff] %v8418_v44 }
 0x149   :  { %1615 = vmax.xlane.f32.xlu1 %v1614_v47  ;;  %v8375_v47 = vpop.f32.mrf.mxu0 }
 0x14a   :  { %11990 = vst [vmem:[#allocation28_spill] sm:$0xff] %v8375_v47  ;;  %v1518_v49 = vsel %vm1462_vm3, %v8375_v47, -inf }
 0x14b   :  { %1639 = vmax.xlane.f32.xlu0 %v1638_v35  ;;  %v1674_v35 = vsel %vm11900_vm2, %v1527_v41, -inf  ;;  %v1647_v37 = vsel %vm11900_vm2, %v1518_v49, -inf  ;;  %v8400_v14 = vpop.f32.mrf.mxu0 }
 0x14c   :  { %11994 = vst [vmem:[#allocation32_spill] sm:$0xff] %v8400_v14  ;;  %v1778_v49 = vmul.f32 %v8400_v14, %v8050_v28 }
 0x14d   :  { %1871 = vadd.xlane.f32.xlu1 %v1870_v50  ;;  %v1776_v50 = vmul.f32 %v8359_v39, %v8002_v6 }
 0x14f   :  { %1636 = vmax.xlane.f32.xlu0 %v1635_v53  ;;  %v8386_v53 = vpop.permute.xlu0 %2663 }
 0x150   :  { %11992 = vst [vmem:[#allocation30_spill] sm:$0xff] %v8386_v53 }
 0x151   :  { %1895 = vadd.xlane.f32.xlu1 %v1894_v54  ;;  %v1775_v54 = vmul.f32 %v8375_v47, %v8008_v7 }
 0x153   :  { %1868 = vadd.xlane.f32.xlu0 %v1867_v38  ;;  %v1906_v38 = vsel %vm11900_vm2, %v1776_v50, 0.0 }
 0x155   :  { %1612 = vmax.xlane.f32.xlu1 %v1611_v58  ;;  %v1903_v58 = vsel %vm11900_vm2, %v1775_v54, 0.0 }
 0x157   :  { %1892 = vadd.xlane.f32.xlu0 %v1891_v62  ;;  %v1783_v62 = vmul.f32 %v8391_v55, %v8008_v7 }
 0x159   :  { %1621 = vmax.xlane.f32.xlu1 %v1620_v63 }
 0x15b   :  { %1901 = vadd.xlane.f32.xlu0 %v1900_v8  ;;  %v1930_v8 = vsel %vm11900_vm2, %v1784_v56, 0.0  ;;  %v1912_v56 = vsel %vm11900_vm2, %v1778_v49, 0.0 }
 0x15d   :  { %1645 = vmax.xlane.f32.xlu1 %v1644_v21 }
 0x15f   :  { %1642 = vmax.xlane.f32.xlu0 %v1641_v24  ;;  %v1521_v24 = vsel %vm1465_vm4, %v8400_v14, -inf }
 0x160   :  { %v1656_v41 = vsel %vm11900_vm2, %v1521_v24, -inf }
 0x161   :  { %1877 = vadd.xlane.f32.xlu1 %v1876_v29  ;;  %v1927_v29 = vsel %vm11900_vm2, %v1783_v62, 0.0 }
 0x163   :  { %1874 = vadd.xlane.f32.xlu0 %v1873_v33  ;;  %v1529_v33 = vsel %vm1465_vm4, %v8410_v27, -inf }
 0x165   :  { %1618 = vmax.xlane.f32.xlu1 %v1617_v42 }
 0x167   :  { %1898 = vadd.xlane.f32.xlu0 %v1897_v34 }
 0x169   :  { %1675 = vmax.xlane.f32.xlu1 %v1674_v35  ;;  %v1680_v35 = vsel %vm11900_vm2, %v1529_v33, -inf }
 0x16b   :  { %1651 = vmax.xlane.f32.xlu0 %v1650_v48 }
 0x16d   :  { %1648 = vmax.xlane.f32.xlu1 %v1647_v37  ;;  %v8425_v37 = vpop.f32.mrf.mxu0 }
 0x16e   :  { %v1556_v57 = vpop.xlane.xlu1 %1555  ;;  %11998 = vst [vmem:[#allocation36_spill] sm:$0xff] %v8425_v37  ;;  %v1520_v33 = vsel %vm1464_vm5, %v8425_v37, -inf }
 0x16f   :  { %1907 = vadd.xlane.f32.xlu0 %v1906_v38  ;;  %v1812_v61 = vpop.xlane.xlu0 %1811  ;;  %v1528_v38 = vsel %vm1464_vm5, %v8418_v44, -inf }
 0x170   :  { %v2000_v63 = vmul.f32 0.015625, %v1812_v61 }
 0x171   :  { %1904 = vadd.xlane.f32.xlu1 %v1903_v58  ;;  %v1786_v58 = vmul.f32 %v8410_v27, %v8050_v28 }
 0x172   :  { %v8402_v19 = vsub.f32 %v1556_v57, %v2000_v63  ;;  %v1580_v21 = vpop.xlane.xlu1 %1579  ;;  %v1677_v63 = vsel %vm11900_vm2, %v1528_v38, -inf }
 0x173   :  { %1931 = vadd.xlane.f32.xlu0 %v1930_v8  ;;  %v1553_v32 = vpop.xlane.xlu0 %1552  ;;  %v1936_v24 = vsel %vm11900_vm2, %v1786_v58, 0.0 }
 0x174   :  { %11995 = vst [vmem:[#allocation33_spill] sm:$0xff] %v8402_v19 }
 0x175   :  { %1928 = vadd.xlane.f32.xlu1 %v1927_v29 }
 0x176   :  { %v1836_v42 = vpop.xlane.xlu1 %1835 }
 0x177   :  { %1672 = vmax.xlane.f32.xlu0 %v1671_v40  ;;  %v2008_v34 = vmul.f32 0.015625, %v1836_v42  ;;  %v1577_v48 = vpop.xlane.xlu0 %1576  ;;  %v8445_v42 = vpop.f32.mrf.mxu0 }
 0x178   :  { %12001 = vst [vmem:[#allocation39_spill] sm:$0xff] %v8445_v42 }
 0x179   :  { %1657 = vmax.xlane.f32.xlu1 %v1656_v41  ;;  %v8423_v50 = vsub.f32 %v1580_v21, %v2008_v34  ;;  %v1777_v21 = vmul.f32 %v8425_v37, %v8096_v46  ;;  %v1785_v34 = vmul.f32 %v8418_v44, %v8096_v46 }
 0x17b   :  { %1681 = vmax.xlane.f32.xlu0 %v1680_v35  ;;  %v1833_v54 = vpop.xlane.xlu1 %1832  ;;  %v1909_v40 = vsel %vm11900_vm2, %v1777_v21, 0.0  ;;  %v8449_v35 = vpop.f32.mrf.mxu1 }
 0x17c   :  { %v2007_v57 = vmul.f32 0.015625, %v1833_v54  ;;  %12002 = vst [vmem:[#allocation40_spill] sm:$0xff] %v8449_v35  ;;  %v1788_v49 = vmul.f32 %v8449_v35, %v8114_v51 }
 0x17d   :  { %1913 = vadd.xlane.f32.xlu1 %v1912_v56  ;;  %v1809_v61 = vpop.xlane.xlu0 %1808  ;;  %v1933_v56 = vsel %vm11900_vm2, %v1785_v34, 0.0  ;;  %v8469_v34 = vpop.f32.mrf.mxu0 }
 0x17e   :  { %v8433_v62 = vsub.f32 %v1577_v48, %v2007_v57  ;;  %v1999_v8 = vmul.f32 0.015625, %v1809_v61  ;;  %v1653_v48 = vsel %vm11900_vm2, %v1520_v33, -inf  ;;  %v8459_v61 = vpop.f32.mrf.mxu1  ;;  %v1942_v21 = vsel %vm11900_vm2, %v1788_v49, 0.0  ;;  %12005 = vst [vmem:[#allocation43_spill] sm:$0xff] %v8469_v34 }
 0x17f   :  { %1678 = vmax.xlane.f32.xlu0 %v1677_v63  ;;  %12003 = vst [vmem:[#allocation41_spill] sm:$0xff] %v8459_v61  ;;  %v1780_v49 = vmul.f32 %v8445_v42, %v8114_v51 }
 0x180   :  { %11999 = vst [vmem:[#allocation37_spill] sm:$0xff] %v8433_v62  ;;  %v8438_v23 = vsub.f32 %v1553_v32, %v1999_v8  ;;  %v1562_v29 = vpop.xlane.xlu1 %1561  ;;  %v1523_v32 = vsel %vm1467_vm6, %v8445_v42, -inf }
 0x181   :  { %1937 = vadd.xlane.f32.xlu1 %v1936_v24  ;;  %v1662_v57 = vsel %vm11900_vm2, %v1523_v32, -inf  ;;  %v1531_v24 = vsel %vm1467_vm6, %v8449_v35, -inf  ;;  %v1530_v32 = vsel %vm1466_vm7, %v8459_v61, -inf }
 0x182   :  { %12000 = vst [vmem:[#allocation38_spill] sm:$0xff] %v8438_v23  ;;  %v1586_v41 = vpop.xlane.xlu0 %1585 }
 0x183   :  { %1910 = vadd.xlane.f32.xlu0 %v1909_v40 }
 0x185   :  { %1654 = vmax.xlane.f32.xlu1 %v1653_v48  ;;  %v1842_v54 = vpop.xlane.xlu1 %1841  ;;  %v1686_v48 = vsel %vm11900_vm2, %v1531_v24, -inf  ;;  %v1522_v24 = vsel %vm1466_vm7, %v8469_v34, -inf }
 0x186   :  { %v2010_v38 = vmul.f32 0.015625, %v1842_v54 }
 0x187   :  { %1934 = vadd.xlane.f32.xlu0 %v1933_v56  ;;  %v1818_v58 = vpop.xlane.xlu0 %1817 }
 0x188   :  { %v8461_v63 = vsub.f32 %v1586_v41, %v2010_v38  ;;  %v2002_v8 = vmul.f32 0.015625, %v1818_v58  ;;  %v1683_v38 = vsel %vm11900_vm2, %v1530_v32, -inf  ;;  %v1918_v58 = vsel %vm11900_vm2, %v1780_v49, 0.0  ;;  %v8487_v32 = vpop.f32.mrf.mxu0  ;;  %v8493_v49 = vpop.f32.mrf.mxu1 }
 0x189   :  { %1663 = vmax.xlane.f32.xlu1 %v1662_v57  ;;  %12007 = vst [vmem:[#allocation45_spill] sm:$0xff] %v8487_v32  ;;  %12009 = vst [vmem:[#allocation47_spill] sm:$0xff] %v8493_v49 }
 0x18a   :  { %v8467_v33 = vsub.f32 %v1562_v29, %v2002_v8  ;;  %v1559_v40 = vpop.xlane.xlu1 %1558  ;;  %v1779_v29 = vmul.f32 %v8469_v34, %v8155_v2 }
 0x18b   :  { %1943 = vadd.xlane.f32.xlu0 %v1942_v21 }
 0x18c   :  { %12004 = vst [vmem:[#allocation42_spill] sm:$0xff] %v8467_v33  ;;  %v1583_v41 = vpop.xlane.xlu0 %1582  ;;  %v1915_v3 = vsel %vm11900_vm2, %v1779_v29, 0.0  ;;  %v1790_v29 = vmul.f32 %v8493_v49, %v8182_v18 }
 0x18d   :  { %1687 = vmax.xlane.f32.xlu1 %v1686_v48 }
 0x18e   :  { %v1839_v54 = vpop.xlane.xlu1 %1838  ;;  %v1948_v44 = vsel %vm11900_vm2, %v1790_v29, 0.0 }
 0x18f   :  { %v2009_v56 = vmul.f32 0.015625, %v1839_v54  ;;  %1684 = vmax.xlane.f32.xlu0 %v1683_v38  ;;  %v1787_v54 = vmul.f32 %v8459_v61, %v8155_v2 }
 0x190   :  { %v1815_v57 = vpop.xlane.xlu0 %1814 }
 0x191   :  { %v8481_v8 = vsub.f32 %v1583_v41, %v2009_v56  ;;  %v2001_v21 = vmul.f32 0.015625, %v1815_v57  ;;  %1919 = vadd.xlane.f32.xlu1 %v1918_v58  ;;  %v1525_v41 = vsel %vm1469_vm8, %v8487_v32, -inf  ;;  %v1659_v57 = vsel %vm11900_vm2, %v1522_v24, -inf }
 0x192   :  { %v1568_v48 = vpop.xlane.xlu1 %1567  ;;  %v1939_v55 = vsel %vm11900_vm2, %v1787_v54, 0.0  ;;  %v1533_v24 = vsel %vm1469_vm8, %v8493_v49, -inf  ;;  %v8516_v54 = vpop.f32.mrf.mxu1 }
 0x193   :  { %12006 = vst [vmem:[#allocation44_spill] sm:$0xff] %v8481_v8  ;;  %v8491_v38 = vsub.f32 %v1559_v40, %v2001_v21  ;;  %1916 = vadd.xlane.f32.xlu0 %v1915_v3  ;;  %v1668_v40 = vsel %vm11900_vm2, %v1525_v41, -inf  ;;  %v8503_v3 = vpop.f32.mrf.mxu0  ;;  %12013 = vst [vmem:[#allocation51_spill] sm:$0xff] %v8516_v54 }
 0x194   :  { %v1592_v56 = vpop.xlane.xlu0 %1591  ;;  %12010 = vst [vmem:[#allocation48_spill] sm:$0xff] %v8503_v3 }
 0x195   :  { %12008 = vst [vmem:[#allocation46_spill] sm:$0xff] %v8491_v38  ;;  %1660 = vmax.xlane.f32.xlu1 %v1659_v57 }
 0x196   :  { %v1848_v58 = vpop.xlane.xlu1 %1847 }
 0x197   :  { %v2012_v21 = vmul.f32 0.015625, %v1848_v58  ;;  %1940 = vadd.xlane.f32.xlu0 %v1939_v55  ;;  %v1524_v55 = vsel %vm1468_vm9, %v8503_v3, -inf }
 0x198   :  { %v1824_v36 = vpop.xlane.xlu0 %1823  ;;  %v1665_v58 = vsel %vm11900_vm2, %v1524_v55, -inf }
 0x199   :  { %v8506_v27 = vsub.f32 %v1592_v56, %v2012_v21  ;;  %v2004_v61 = vmul.f32 0.015625, %v1824_v36  ;;  %1669 = vmax.xlane.f32.xlu1 %v1668_v40  ;;  %v1692_v56 = vsel %vm11900_vm2, %v1533_v24, -inf  ;;  %v1782_v36 = vmul.f32 %v8487_v32, %v8182_v18 }
 0x19a   :  { %v1565_v57 = vpop.xlane.xlu1 %1564  ;;  %v1781_v21 = vmul.f32 %v8503_v3, %v8217_v30 }
 0x19b   :  { %12011 = vst [vmem:[#allocation49_spill] sm:$0xff] %v8506_v27  ;;  %v8511_v47 = vsub.f32 %v1568_v48, %v2004_v61  ;;  %1949 = vadd.xlane.f32.xlu0 %v1948_v44  ;;  %v1532_v44 = vsel %vm1468_vm9, %v8516_v54, -inf  ;;  %v1924_v48 = vsel %vm11900_vm2, %v1782_v36, 0.0 }
 0x19c   :  { %v1589_v41 = vpop.xlane.xlu0 %1588  ;;  %v1689_v55 = vsel %vm11900_vm2, %v1532_v44, -inf }
 0x19d   :  { %12012 = vst [vmem:[#allocation50_spill] sm:$0xff] %v8511_v47  ;;  %1693 = vmax.xlane.f32.xlu1 %v1692_v56  ;;  %v8530_v56 = vpop.f32.mrf.mxu1 }
 0x19e   :  { %v1821_v29 = vpop.xlane.xlu1 %1820  ;;  %12015 = vst [vmem:[#allocation53_spill] sm:$0xff] %v8530_v56 }
 0x19f   :  { %v2003_v40 = vmul.f32 0.015625, %v1821_v29  ;;  %1666 = vmax.xlane.f32.xlu0 %v1665_v58  ;;  %v8533_v29 = vpop.f32.mrf.mxu0  ;;  %v1789_v58 = vmul.f32 %v8516_v54, %v8217_v30 }
 0x1a0   :  { %v1845_v61 = vpop.xlane.xlu0 %1844  ;;  %12016 = vst [vmem:[#allocation54_spill] sm:$0xff] %v8533_v29  ;;  %v1535_v44 = vsel %vm1463_vm1, %v8533_v29, -inf }
 0x1a1   :  { %v8528_v24 = vsub.f32 %v1565_v57, %v2003_v40  ;;  %v2011_v35 = vmul.f32 0.015625, %v1845_v61  ;;  %1925 = vadd.xlane.f32.xlu1 %v1924_v48  ;;  %v1543_v57 = vsel %vm1463_vm1, %v8530_v56, -inf  ;;  %v1921_v40 = vsel %vm11900_vm2, %v1781_v21, 0.0  ;;  %v8547_v14 = vpop.f32.mrf.mxu0 }
 0x1a2   :  { %v1574_v39 = vpop.xlane.xlu1 %1573  ;;  %v1945_v48 = vsel %vm11900_vm2, %v1789_v58, 0.0  ;;  %12017 = vst [vmem:[#allocation55_spill] sm:$0xff] %v8547_v14  ;;  %v1698_v54 = vsel %vm11900_vm2, %v1535_v44, -inf  ;;  %v1792_v58 = vmul.f32 %v8533_v29, %v8002_v6  ;;  %vm2519_vm1 = vcmask 1041409  }
 0x1a3   :  { %12014 = vst [vmem:[#allocation52_spill] sm:$0xff] %v8528_v24  ;;  %v8537_v37 = vsub.f32 %v1589_v41, %v2011_v35  ;;  %1690 = vmax.xlane.f32.xlu0 %v1689_v55  ;;  %v1722_v35 = vsel %vm11900_vm2, %v1543_v57, -inf }
 0x1a4   :  { %v1598_v36 = vpop.xlane.xlu0 %1597 }
 0x1a5   :  { %1922 = vadd.xlane.f32.xlu1 %v1921_v40  ;;  %v1534_v40 = vsel %vm1462_vm3, %v8547_v14, -inf }
 0x1a6   :  { %v1854_v61 = vpop.xlane.xlu1 %1853  ;;  %v1695_v44 = vsel %vm11900_vm2, %v1534_v40, -inf }
 0x1a7   :  { %v2014_v41 = vmul.f32 0.015625, %v1854_v61  ;;  %1946 = vadd.xlane.f32.xlu0 %v1945_v48  ;;  %v8567_v61 = vpop.f32.mrf.mxu1 }
 0x1a8   :  { %v1830_v55 = vpop.xlane.xlu0 %1829  ;;  %12020 = vst [vmem:[#allocation58_spill] sm:$0xff] %v8567_v61 }
 0x1a9   :  { %v8551_v49 = vsub.f32 %v1598_v36, %v2014_v41  ;;  %v2006_v21 = vmul.f32 0.015625, %v1830_v55  ;;  %1723 = vmax.xlane.f32.xlu1 %v1722_v35  ;;  %v1791_v36 = vmul.f32 %v8547_v14, %v8008_v7  ;;  %v1954_v35 = vsel %vm11900_vm2, %v1792_v58, 0.0  ;;  %v8584_v58 = vpop.f32.mrf.mxu1 }
 0x1aa   :  { %v8556_v34 = vpop.xlane.xlu1 %1570  ;;  %v1800_v41 = vmul.f32 %v8530_v56, %v8002_v6  ;;  %v1799_v55 = vmul.f32 %v8567_v61, %v8008_v7  ;;  %12022 = vst [vmem:[#allocation60_spill] sm:$0xff] %v8584_v58  ;;  %v1542_v6 = vsel %vm1462_vm3, %v8567_v61, -inf  ;;  %vm2521_vm3 = vcmask 1042434  }
 0x1ab   :  { %12018 = vst [vmem:[#allocation56_spill] sm:$0xff] %v8551_v49  ;;  %v8560_v0 = vsub.f32 %v1574_v39, %v2006_v21  ;;  %1699 = vmax.xlane.f32.xlu0 %v1698_v54  ;;  %v1951_v54 = vsel %vm11900_vm2, %v1791_v36, 0.0  ;;  %v8601_v7 = vpop.f32.mrf.mxu1 }
 0x1ac   :  { %v8562_v57 = vpop.xlane.xlu0 %1594  ;;  %v1978_v40 = vsel %vm11900_vm2, %v1800_v41, 0.0  ;;  %v1802_v41 = vmul.f32 %v8584_v58, %v8050_v28  ;;  %12023 = vst [vmem:[#allocation61_spill] sm:$0xff] %v8601_v7 }
 0x1ad   :  { %12019 = vst [vmem:[#allocation57_spill] sm:$0xff] %v8560_v0  ;;  %1696 = vmax.xlane.f32.xlu1 %v1695_v44  ;;  %v8582_v44 = vpop.f32.mrf.mxu0 }
 0x1ae   :  { %v8569_v48 = vpop.xlane.xlu1 %1826  ;;  %12021 = vst [vmem:[#allocation59_spill] sm:$0xff] %v8582_v44  ;;  %v1537_v36 = vsel %vm1465_vm4, %v8582_v44, -inf  ;;  %v1984_v29 = vsel %vm11900_vm2, %v1802_v41, 0.0 }
 0x1af   :  { %1955 = vadd.xlane.f32.xlu0 %v1954_v35  ;;  %v1704_v14 = vsel %vm11900_vm2, %v1537_v36, -inf }
 0x1b0   :  { %v8574_v39 = vpop.xlane.xlu0 %1850 }
 0x1b1   :  { %1952 = vadd.xlane.f32.xlu1 %v1951_v54  ;;  %v1975_v54 = vsel %vm11900_vm2, %v1799_v55, 0.0  ;;  %v1545_v55 = vsel %vm1465_vm4, %v8584_v58, -inf  ;;  %vm2523_vm4 = vcmask 1043459  }
 0x1b2   :  { %v8579_v21 = vpop.xlane.xlu1 %1627 }
 0x1b3   :  { %1979 = vadd.xlane.f32.xlu0 %v1978_v40  ;;  %v1719_v40 = vsel %vm11900_vm2, %v1542_v6, -inf  ;;  %v1544_v6 = vsel %vm1464_vm5, %v8601_v7, -inf }
 0x1b4   :  { %v8592_v35 = vpop.xlane.xlu0 %1603  ;;  %v1725_v58 = vsel %vm11900_vm2, %v1544_v6, -inf  ;;  %v1801_v6 = vmul.f32 %v8601_v7, %v8096_v46 }
 0x1b5   :  { %1976 = vadd.xlane.f32.xlu1 %v1975_v54  ;;  %v8611_v54 = vpop.f32.mrf.mxu0 }
 0x1b6   :  { %v8597_v56 = vpop.xlane.xlu1 %1859  ;;  %12024 = vst [vmem:[#allocation62_spill] sm:$0xff] %v8611_v54  ;;  %v1793_v59 = vmul.f32 %v8611_v54, %v8096_v46  ;;  %v1981_v10 = vsel %vm11900_vm2, %v1801_v6, 0.0 }
 0x1b7   :  { %1720 = vmax.xlane.f32.xlu0 %v1719_v40  ;;  %v1728_v40 = vsel %vm11900_vm2, %v1545_v55, -inf  ;;  %v1536_v55 = vsel %vm1464_vm5, %v8611_v54, -inf  ;;  %vm2525_vm5 = vcmask 1044484  }
 0x1b8   :  { %v8603_v61 = vpop.xlane.xlu0 %1883  ;;  %v1701_v54 = vsel %vm11900_vm2, %v1536_v55, -inf }
 0x1b9   :  { %1705 = vmax.xlane.f32.xlu1 %v1704_v14  ;;  %v1794_v14 = vmul.f32 %v8582_v44, %v8050_v28  ;;  %v1957_v28 = vsel %vm11900_vm2, %v1793_v59, 0.0 }
 0x1ba   :  { %v8609_v42 = vpop.xlane.xlu1 %1600 }
 0x1bb   :  { %1985 = vadd.xlane.f32.xlu0 %v1984_v29  ;;  %v1960_v3 = vsel %vm11900_vm2, %v1794_v14, 0.0 }
 0x1bc   :  { %v8616_v36 = vpop.xlane.xlu0 %1624 }
 0x1bd   :  { %1729 = vmax.xlane.f32.xlu1 %v1728_v40  ;;  %v8635_v40 = vpop.f32.mrf.mxu0 }
 0x1be   :  { %v8621_v41 = vpop.xlane.xlu1 %1880  ;;  %12025 = vst [vmem:[#allocation63_spill] sm:$0xff] %v8635_v40 }
 0x1bf   :  { %1726 = vmax.xlane.f32.xlu0 %v1725_v58  ;;  %v8639_v58 = vpop.f32.mrf.mxu1 }
 0x1c0   :  { %v8626_v29 = vpop.xlane.xlu0 %1856  ;;  %12026 = vst [vmem:[#allocation64_spill] sm:$0xff] %v8639_v58  ;;  %v1804_v44 = vmul.f32 %v8639_v58, %v8114_v51  ;;  %v1547_v55 = vsel %vm1467_vm6, %v8639_v58, -inf }
 0x1c1   :  { %1961 = vadd.xlane.f32.xlu1 %v1960_v3  ;;  %v1539_v3 = vsel %vm1467_vm6, %v8635_v40, -inf  ;;  %v8666_v6 = vpop.f32.mrf.mxu1  ;;  %vm11903_vm6 = vcmask 1045509  }
 0x1c2   :  { %v8632_v13 = vpop.xlane.xlu1 %1609  ;;  %v1710_v46 = vsel %vm11900_vm2, %v1539_v3, -inf  ;;  %v1990_v22 = vsel %vm11900_vm2, %v1804_v44, 0.0  ;;  %12028 = vst [vmem:[#allocation66_spill] sm:$0xff] %v8666_v6  ;;  %v1734_v3 = vsel %vm11900_vm2, %v1547_v55, -inf  ;;  %v1796_v44 = vmul.f32 %v8635_v40, %v8114_v51 }
 0x1c3   :  { %1958 = vadd.xlane.f32.xlu0 %v1957_v28  ;;  %v8653_v28 = vpop.f32.mrf.mxu0 }
 0x1c4   :  { %v8644_v14 = vpop.xlane.xlu0 %1633  ;;  %12027 = vst [vmem:[#allocation65_spill] sm:$0xff] %v8653_v28  ;;  %v1966_v1 = vsel %vm11900_vm2, %v1796_v44, 0.0  ;;  %v1795_v55 = vmul.f32 %v8653_v28, %v8155_v2 }
 0x1c5   :  { %1702 = vmax.xlane.f32.xlu1 %v1701_v54  ;;  %v1538_v54 = vsel %vm1466_vm7, %v8653_v28, -inf }
 0x1c6   :  { %v8649_v59 = vpop.xlane.xlu1 %1865  ;;  %v1707_v58 = vsel %vm11900_vm2, %v1538_v54, -inf  ;;  %v8691_v54 = vpop.f32.mrf.mxu1 }
 0x1c7   :  { %1982 = vadd.xlane.f32.xlu0 %v1981_v10  ;;  %12030 = vst [vmem:[#allocation68_spill] sm:$0xff] %v8691_v54  ;;  %v1806_v28 = vmul.f32 %v8691_v54, %v8182_v18 }
 0x1c8   :  { %v8655_v7 = vpop.xlane.xlu0 %1630 }
 0x1c9   :  { %1711 = vmax.xlane.f32.xlu1 %v1710_v46  ;;  %v1996_v60 = vsel %vm11900_vm2, %v1806_v28, 0.0 }
 0x1ca   :  { %v8661_v32 = vpop.xlane.xlu1 %1889 }
 0x1cb   :  { %1991 = vadd.xlane.f32.xlu0 %v1990_v22  ;;  %v1546_v22 = vsel %vm1466_vm7, %v8666_v6, -inf  ;;  %vm11902_vm7 = vcmask 1046534  }
 0x1cc   :  { %v8668_v10 = vpop.xlane.xlu0 %1862  ;;  %v1731_v51 = vsel %vm11900_vm2, %v1546_v22, -inf }
 0x1cd   :  { %1735 = vmax.xlane.f32.xlu1 %v1734_v3  ;;  %v8687_v3 = vpop.f32.mrf.mxu0 }
 0x1ce   :  { %v8673_v46 = vpop.xlane.xlu1 %1606  ;;  %12029 = vst [vmem:[#allocation67_spill] sm:$0xff] %v8687_v3  ;;  %v1541_v44 = vsel %vm1469_vm8, %v8687_v3, -inf  ;;  %v1798_v28 = vmul.f32 %v8687_v3, %v8182_v18 }
 0x1cf   :  { %1708 = vmax.xlane.f32.xlu0 %v1707_v58  ;;  %v1803_v58 = vmul.f32 %v8666_v6, %v8155_v2  ;;  %v1716_v2 = vsel %vm11900_vm2, %v1541_v44, -inf  ;;  %v8718_v44 = vpop.f32.mrf.mxu1 }
 0x1d0   :  { %v8679_v16 = vpop.xlane.xlu0 %1886  ;;  %12032 = vst [vmem:[#allocation70_spill] sm:$0xff] %v8718_v44  ;;  %v1972_v20 = vsel %vm11900_vm2, %v1798_v28, 0.0 }
 0x1d1   :  { %1967 = vadd.xlane.f32.xlu1 %v1966_v1  ;;  %v1963_v1 = vsel %vm11900_vm2, %v1795_v55, 0.0  ;;  %v1987_v26 = vsel %vm11900_vm2, %v1803_v58, 0.0  ;;  %v1549_v55 = vsel %vm1469_vm8, %v8691_v54, -inf  ;;  %vm11901_vm8 = vcmask 1047559  }
 0x1d2   :  { %v8684_v4 = vpop.xlane.xlu1 %1615 }
 0x1d3   :  { %1732 = vmax.xlane.f32.xlu0 %v1731_v51  ;;  %v8705_v51 = vpop.f32.mrf.mxu0 }
 0x1d4   :  { %v8696_v40 = vpop.xlane.xlu0 %1639  ;;  %12031 = vst [vmem:[#allocation69_spill] sm:$0xff] %v8705_v51  ;;  %v1540_v58 = vsel %vm1468_vm9, %v8705_v51, -inf }
 0x1d5   :  { %1964 = vadd.xlane.f32.xlu1 %v1963_v1  ;;  %v1740_v1 = vsel %vm11900_vm2, %v1549_v55, -inf  ;;  %v1713_v54 = vsel %vm11900_vm2, %v1540_v58, -inf  ;;  %v1797_v55 = vmul.f32 %v8705_v51, %v8217_v30  ;;  %v1805_v58 = vmul.f32 %v8718_v44, %v8217_v30 }
 0x1d6   :  { %v8701_v22 = vpop.xlane.xlu1 %1871 }
 0x1d7   :  { %1988 = vadd.xlane.f32.xlu0 %v1987_v26  ;;  %v1993_v28 = vsel %vm11900_vm2, %v1805_v58, 0.0 }
 0x1d8   :  { %v8707_v6 = vpop.xlane.xlu0 %1636 }
 0x1d9   :  { %1717 = vmax.xlane.f32.xlu1 %v1716_v2 }
 0x1da   :  { %v8713_v12 = vpop.xlane.xlu1 %1895 }
 0x1db   :  { %1997 = vadd.xlane.f32.xlu0 %v1996_v60  ;;  %v1548_v60 = vsel %vm1468_vm9, %v8718_v44, -inf }
 0x1dc   :  { %v8720_v26 = vpop.xlane.xlu0 %1868  ;;  %v1737_v18 = vsel %vm11900_vm2, %v1548_v60, -inf }
 0x1dd   :  { %1741 = vmax.xlane.f32.xlu1 %v1740_v1  ;;  %v1969_v1 = vsel %vm11900_vm2, %v1797_v55, 0.0 }
 0x1de   :  { %v8725_v2 = vpop.xlane.xlu1 %1612 }
 0x1df   :  { %1714 = vmax.xlane.f32.xlu0 %v1713_v54 }
 0x1e0   :  { %v8731_v9 = vpop.xlane.xlu0 %1892 }
 0x1e1   :  { %1973 = vadd.xlane.f32.xlu1 %v1972_v20 }
 0x1e2   :  { %v8736_v15 = vpop.xlane.xlu1 %1621 }
 0x1e3   :  { %12033 = vst [vmem:[#allocation71_spill] sm:$0xff] %v8736_v15  ;;  %1738 = vmax.xlane.f32.xlu0 %v1737_v18 }
 0x1e4   :  { %v8741_v54 = vpop.xlane.xlu0 %1901 }
 0x1e5   :  { %12034 = vst [vmem:[#allocation72_spill] sm:$0xff] %v8741_v54  ;;  %1970 = vadd.xlane.f32.xlu1 %v1969_v1 }
 0x1e6   :  { %v8744_v3 = vpop.xlane.xlu1 %1645 }
 0x1e7   :  { %12035 = vst [vmem:[#allocation73_spill] sm:$0xff] %v8744_v3  ;;  %1994 = vadd.xlane.f32.xlu0 %v1993_v28 }
 0x1e8   :  { %v8747_v51 = vpop.xlane.xlu0 %1642 }
 0x1e9   :  { %12036 = vst [vmem:[#allocation74_spill] sm:$0xff] %v8747_v51 }
 0x1ea   :  { %v8749_v20 = vpop.xlane.xlu1 %1877 }
 0x1ec   :  { %v8751_v17 = vpop.xlane.xlu0 %1874 }
 0x1ee   :  { %v8753_v60 = vpop.xlane.xlu1 %1618 }
 0x1f0   :  { %v8755_v30 = vpop.xlane.xlu0 %1898 }
 0x1f2   :  { %v8757_v18 = vpop.xlane.xlu1 %1675 }
 0x1f3   :  { %12037 = vst [vmem:[#allocation75_spill] sm:$0xff] %v8757_v18 }
 0x1f4   :  { %v8759_v44 = vpop.xlane.xlu0 %1651 }
 0x1f5   :  { %12038 = vst [vmem:[#allocation76_spill] sm:$0xff] %v8759_v44 }
 0x1f6   :  { %v8761_v55 = vpop.xlane.xlu1 %1648  ;;  %2667 = vbcast.lane.b32.xlu1 %v7431_v5, 304 }
 0x1f7   :  { %12039 = vst [vmem:[#allocation77_spill] sm:$0xff] %v8761_v55 }
 0x1f8   :  { %v8764_v58 = vpop.xlane.xlu0 %1907 }
 0x1f9   :  { %12040 = vst [vmem:[#allocation78_spill] sm:$0xff] %v8764_v58 }
 0x1fa   :  { %v8766_v1 = vpop.xlane.xlu1 %1904 }
 0x1fb   :  { %12041 = vst [vmem:[#allocation79_spill] sm:$0xff] %v8766_v1 }
 0x1fc   :  { %v8768_v28 = vpop.xlane.xlu0 %1931 }
 0x1fd   :  { %12042 = vst [vmem:[#allocation80_spill] sm:$0xff] %v8768_v28  ;;  %2671 = vbcast.lane.b32.xlu0 %v7431_v5, 312 }
 0x1fe   :  { %v8771_v25 = vpop.xlane.xlu1 %1928 }
 0x1ff   :  { %12043 = vst [vmem:[#allocation81_spill] sm:$0xff] %v8771_v25 }
 0x200   :  { %v8773_v53 = vpop.xlane.xlu0 %1672 }
 0x201   :  { %12044 = vst [vmem:[#allocation82_spill] sm:$0xff] %v8773_v53 }
 0x202   :  { %v8775_v52 = vpop.xlane.xlu1 %1657 }
 0x203   :  { %12045 = vst [vmem:[#allocation83_spill] sm:$0xff] %v8775_v52 }
 0x204   :  { %v8777_v43 = vpop.xlane.xlu0 %1681 }
 0x205   :  { %12046 = vst [vmem:[#allocation84_spill] sm:$0xff] %v8777_v43 }
 0x206   :  { %v8779_v31 = vpop.xlane.xlu1 %1913 }
 0x207   :  { %12047 = vst [vmem:[#allocation85_spill] sm:$0xff] %v8779_v31 }
 0x208   :  { %v8781_v11 = vpop.xlane.xlu0 %1678 }
 0x209   :  { %12048 = vst [vmem:[#allocation86_spill] sm:$0xff] %v8781_v11 }
 0x20a   :  { %v8783_v45 = vpop.xlane.xlu1 %1937 }
 0x20b   :  { %12049 = vst [vmem:[#allocation87_spill] sm:$0xff] %v8783_v45 }
 0x20c   :  { %v8785_v18 = vpop.xlane.xlu0 %1910 }
 0x20d   :  { %12050 = vst [vmem:[#allocation88_spill] sm:$0xff] %v8785_v18  ;;  %v2225_v18 = vadd.s32 4294967256, %v7431_v5 }
 0x20e   :  { %v8787_v44 = vpop.xlane.xlu1 %1654 }
 0x20f   :  { %12051 = vst [vmem:[#allocation89_spill] sm:$0xff] %v8787_v44 }
 0x210   :  { %v8789_v55 = vpop.xlane.xlu0 %1934 }
 0x211   :  { %12052 = vst [vmem:[#allocation90_spill] sm:$0xff] %v8789_v55 }
 0x212   :  { %v8791_v3 = vpop.xlane.xlu1 %1663 }
 0x213   :  { %12053 = vst [vmem:[#allocation91_spill] sm:$0xff] %v8791_v3 }
 0x214   :  { %v8793_v28 = vpop.xlane.xlu0 %1943 }
 0x215   :  { %12054 = vst [vmem:[#allocation92_spill] sm:$0xff] %v8793_v28 }
 0x216   :  { %v8795_v53 = vpop.xlane.xlu1 %1687 }
 0x217   :  { %12055 = vst [vmem:[#allocation93_spill] sm:$0xff] %v8795_v53 }
 0x218   :  { %v8797_v52 = vpop.xlane.xlu0 %1684 }
 0x219   :  { %12056 = vst [vmem:[#allocation94_spill] sm:$0xff] %v8797_v52 }
 0x21a   :  { %v8799_v43 = vpop.xlane.xlu1 %1919 }
 0x21b   :  { %12057 = vst [vmem:[#allocation95_spill] sm:$0xff] %v8799_v43 }
 0x21c   :  { %v8801_v31 = vpop.xlane.xlu0 %1916 }
 0x21d   :  { %12058 = vst [vmem:[#allocation96_spill] sm:$0xff] %v8801_v31 }
 0x21e   :  { %v8803_v11 = vpop.xlane.xlu1 %1660 }
 0x21f   :  { %12059 = vst [vmem:[#allocation97_spill] sm:$0xff] %v8803_v11  ;;  %v12070_v11 = vlaneseq }
 0x220   :  { %v8805_v45 = vpop.xlane.xlu0 %1940 }
 0x221   :  { %12060 = vst [vmem:[#allocation98_spill] sm:$0xff] %v8805_v45  ;;  %v2204_v45 = vadd.s32 4294967280, %v7431_v5 }
 0x222   :  { %v8807_v58 = vpop.xlane.xlu1 %1669 }
 0x223   :  { %12061 = vst [vmem:[#allocation99_spill] sm:$0xff] %v8807_v58  ;;  %v8827_v58 = vshrl.u32 %v12070_v11, 7  ;;  %v2211_v11 = vadd.s32 4294967272, %v7431_v5 }
 0x224   :  { %v8809_v44 = vpop.xlane.xlu0 %1949 }
 0x225   :  { %12062 = vst [vmem:[#allocation100_spill] sm:$0xff] %v8809_v44  ;;  %12071 = vst [vmem:[#allocation108_spill] sm:$0xff] %v8827_v58  ;;  %v2197_v44 = vadd.s32 4294967288, %v7431_v5  ;;  %v8863_v51 = vsub.s32 %v2211_v11, %v8827_v58  ;;  %v2015_v11 = vmul.f32 0.015625, %v8626_v29 }
 0x226   :  { %v8811_v55 = vpop.xlane.xlu1 %1693 }
 0x227   :  { %12063 = vst [vmem:[#allocation101_spill] sm:$0xff] %v8811_v55  ;;  %v2263_v29 = vrot.slane %v8461_v63, %v8863_v51 }
 0x228   :  { %v8813_v3 = vpop.xlane.xlu0 %1666 }
 0x229   :  { %12064 = vst [vmem:[#allocation102_spill] sm:$0xff] %v8813_v3  ;;  %v8834_v3 = vsub.s32 %v7431_v5, %v8827_v58 }
 0x22a   :  { %v8815_v28 = vpop.xlane.xlu1 %1925 }
 0x22b   :  { %12065 = vst [vmem:[#allocation103_spill] sm:$0xff] %v8815_v28  ;;  %v8839_v28 = vsub.s32 %v2204_v45, %v8827_v58 }
 0x22c   :  { %v8817_v53 = vpop.xlane.xlu0 %1690 }
 0x22d   :  { %12066 = vst [vmem:[#allocation104_spill] sm:$0xff] %v8817_v53  ;;  %12074 = vst [vmem:[#allocation111_spill] sm:$0xff] %v8839_v28  ;;  %v2208_v45 = vrot.slane %v8491_v38, %v8839_v28  ;;  %v2239_v38 = vadd.s32 4294967240, %v7431_v5 }
 0x22e   :  { %v8819_v52 = vpop.xlane.xlu1 %1922 }
 0x22f   :  { %12067 = vst [vmem:[#allocation105_spill] sm:$0xff] %v8819_v52 }
 0x230   :  { %v8821_v43 = vpop.xlane.xlu0 %1946 }
 0x231   :  { %12068 = vst [vmem:[#allocation106_spill] sm:$0xff] %v8821_v43  ;;  %v8843_v43 = vsub.s32 %v2197_v44, %v8827_v58 }
 0x232   :  { %v8823_v31 = vpop.xlane.xlu1 %1723 }
 0x233   :  { %12069 = vst [vmem:[#allocation107_spill] sm:$0xff] %v8823_v31  ;;  %v2218_v31 = vadd.s32 4294967264, %v7431_v5  ;;  %v2201_v44 = vrot.slane %v8402_v19, %v8843_v43  ;;  %v2253_v19 = vrot.slane %v8423_v50, %v8843_v43 }
 0x234   :  { %v8830_v55 = vpop.xlane.xlu0 %1699 }
 0x235   :  { %12072 = vst [vmem:[#allocation109_spill] sm:$0xff] %v8830_v55  ;;  %v2196_v55 = vrot.slane %v8438_v23, %v8834_v3 }
 0x236   :  { %v8836_v53 = vpop.xlane.xlu1 %1696 }
 0x237   :  { %12073 = vst [vmem:[#allocation110_spill] sm:$0xff] %v8836_v53  ;;  %v8856_v53 = vsub.s32 %v2218_v31, %v8827_v58  ;;  %v2232_v31 = vadd.s32 4294967248, %v7431_v5  ;;  %v2203_v1 = vsel %vm2202_vm10, %v2201_v44, %v2196_v55  ;;  %v2017_v5 = vmul.f32 0.015625, %v8668_v10 }
 0x238   :  { %v8846_v52 = vpop.xlane.xlu0 %1955  ;;  %v2215_v55 = vrot.slane %v8467_v33, %v8863_v51 }
 0x239   :  { %12075 = vst [vmem:[#allocation112_spill] sm:$0xff] %v8846_v52  ;;  %v2249_v52 = vrot.slane %v8433_v62, %v8834_v3  ;;  %v8875_v62 = vsub.s32 %v2225_v18, %v8827_v58  ;;  %v2016_v18 = vmul.f32 0.015625, %v8597_v56  ;;  %v8897_v10 = vsub.s32 %v2232_v31, %v8827_v58 }
 0x23a   :  { %v8851_v25 = vpop.xlane.xlu1 %1952  ;;  %v2005_v56 = vmul.f32 0.015625, %v8569_v48  ;;  %v8912_v31 = vsub.f32 %v8673_v46, %v2017_v5  ;;  %v2024_v5 = vmul.f32 0.015625, %v8603_v61  ;;  %v2026_v61 = vmul.f32 0.015625, %v8661_v32 }
 0x23b   :  { %12076 = vst [vmem:[#allocation113_spill] sm:$0xff] %v8851_v25  ;;  %v2258_v25 = vrot.slane %v8481_v8, %v8839_v28  ;;  %v2222_v8 = vrot.slane %v8528_v24, %v8856_v53  ;;  %v2254_v54 = vsel %vm2202_vm10, %v2253_v19, %v2249_v52  ;;  %v2268_v19 = vrot.slane %v8537_v37, %v8856_v53 }
 0x23c   :  { %v8865_v23 = vpop.xlane.xlu0 %1979  ;;  %v8904_v24 = vsub.f32 %v8609_v42, %v2015_v11  ;;  %v8917_v48 = vsub.f32 %v8592_v35, %v2016_v18  ;;  %v2025_v42 = vmul.f32 0.015625, %v8679_v16  ;;  %v2019_v11 = vmul.f32 0.015625, %v8720_v26 }
 0x23d   :  { %12077 = vst [vmem:[#allocation114_spill] sm:$0xff] %v8865_v23  ;;  %v2210_v23 = vsel %vm2209_vm11, %v2208_v45, %v2203_v1  ;;  %v2259_v1 = vsel %vm2209_vm11, %v2258_v25, %v2254_v54  ;;  %v8894_v45 = vsub.s32 %v2239_v38, %v8827_v58  ;;  %v2013_v38 = vmul.f32 0.015625, %v8574_v39 }
 0x23e   :  { %v8878_v15 = vpop.xlane.xlu1 %1976  ;;  %v2217_v52 = vsel %vm2216_vm12, %v2215_v55, %v2210_v23  ;;  %v2023_v54 = vmul.f32 0.015625, %v8621_v41  ;;  %v2229_v23 = vrot.slane %v8511_v47, %v8875_v62  ;;  %v2264_v39 = vsel %vm2216_vm12, %v2263_v29, %v2259_v1 }
 0x23f   :  { %v2224_v25 = vsel %vm2223_vm13, %v2222_v8, %v2217_v52  ;;  %v2273_v8 = vrot.slane %v8506_v27, %v8875_v62  ;;  %v2018_v41 = vmul.f32 0.015625, %v8649_v59  ;;  %v2269_v46 = vsel %vm2223_vm13, %v2268_v19, %v2264_v39  ;;  %v12137_v27 = vld [vmem:[#allocation99_spill] sm:$0xff] }
 0x240   :  { %v8888_v44 = vpop.xlane.xlu0 %1720  ;;  %v2231_v35 = vsel %vm2230_vm14, %v2229_v23, %v2224_v25  ;;  %v8931_v18 = vsub.f32 %v8556_v34, %v2005_v56  ;;  %v2288_v16 = vrot.slane %v8904_v24, %v8834_v3  ;;  %v8938_v52 = vsub.f32 %v8562_v57, %v2013_v38 }
 0x241   :  { %v8941_v29 = vsub.f32 %v8616_v36, %v2023_v54  ;;  %v2297_v59 = vrot.slane %v8912_v31, %v8839_v28  ;;  %v2292_v34 = vrot.slane %v8917_v48, %v8843_v43  ;;  %v8949_v1 = vsub.f32 %v8655_v7, %v2025_v42 }
 0x242   :  { %v8906_v33 = vpop.xlane.xlu1 %1705  ;;  %12078 = vst [vmem:[#allocation115_spill] sm:$0xff] %v8931_v18  ;;  %12079 = vst [vmem:[#allocation116_spill] sm:$0xff] %v8938_v52  ;;  %v2020_v19 = vmul.f32 0.015625, %v8701_v22  ;;  %v8953_v57 = vsub.f32 %v8725_v2, %v2019_v11  ;;  %v2274_v36 = vsel %vm2230_vm14, %v2273_v8, %v2269_v46  ;;  %v8959_v32 = vsub.f32 %v8579_v21, %v2024_v5 }
 0x243   :  { %v8962_v25 = vsub.f32 %v8632_v13, %v2018_v41  ;;  %v2027_v38 = vmul.f32 0.015625, %v8731_v9  ;;  %v2283_v7 = vrot.slane %v8551_v49, %v8894_v45  ;;  %v2236_v22 = vrot.slane %v8931_v18, %v8897_v10 }
 0x244   :  { %v8921_v55 = vpop.xlane.xlu0 %1985  ;;  %12080 = vst [vmem:[#allocation117_spill] sm:$0xff] %v8953_v57  ;;  %v2293_v2 = vsel %vm2202_vm10, %v2292_v34, %v2288_v16  ;;  %v2021_v54 = vmul.f32 0.015625, %v8751_v17  ;;  %v2278_v21 = vrot.slane %v8938_v52, %v8897_v10  ;;  %v2327_v13 = vrot.slane %v8941_v29, %v8834_v3  ;;  %v12095_v52 = vld [vmem:[#allocation90_spill] sm:$0xff] }
 0x245   :  { %v8978_v9 = vsub.f32 %v8644_v14, %v2026_v61  ;;  %v2298_v42 = vsel %vm2209_vm11, %v2297_v59, %v2293_v2  ;;  %v2336_v11 = vrot.slane %v8949_v1, %v8839_v28  ;;  %v8984_v8 = vsub.f32 %v8684_v4, %v2020_v19 }
 0x246   :  { %v8935_v26 = vpop.xlane.xlu1 %1729  ;;  %v2028_v17 = vmul.f32 0.015625, %v8713_v12  ;;  %v2307_v39 = vrot.slane %v8953_v57, %v8856_v53  ;;  %v2331_v14 = vrot.slane %v8959_v32, %v8843_v43  ;;  %v2302_v41 = vrot.slane %v8962_v25, %v8863_v51 }
 0x247   :  { %12081 = vst [vmem:[#allocation118_spill] sm:$0xff] %v8978_v9  ;;  %12082 = vst [vmem:[#allocation119_spill] sm:$0xff] %v8984_v8  ;;  %v8996_v46 = vsub.f32 %v8707_v6, %v2027_v38  ;;  %v2022_v4 = vmul.f32 0.015625, %v8749_v20  ;;  %v2243_v12 = vrot.slane %v8560_v0, %v8894_v45  ;;  %v2238_v16 = vsel %vm2237_vm15, %v2236_v22, %v2231_v35 }
 0x248   :  { %v8955_v56 = vpop.xlane.xlu0 %1726  ;;  %v9003_v61 = vsub.f32 %v8753_v60, %v2021_v54  ;;  %v2029_v59 = vmul.f32 0.015625, %v8755_v30  ;;  %v2279_v19 = vsel %vm2237_vm15, %v2278_v21, %v2274_v36  ;;  %v2332_v2 = vsel %vm2202_vm10, %v2331_v14, %v2327_v13  ;;  %v12086_v54 = vld [vmem:[#allocation72_spill] sm:$0xff]  ;;  %v12087_v13 = vld [vmem:[#allocation71_spill] sm:$0xff] }
 0x249   :  { %12083 = vst [vmem:[#allocation120_spill] sm:$0xff] %v8996_v46  ;;  %v2341_v6 = vrot.slane %v8978_v9, %v8863_v51  ;;  %v2303_v20 = vsel %vm2216_vm12, %v2302_v41, %v2298_v42  ;;  %v2337_v38 = vsel %vm2209_vm11, %v2336_v11, %v2332_v2  ;;  %v2312_v35 = vrot.slane %v8984_v8, %v8875_v62  ;;  %v12089_v42 = vld [vmem:[#allocation79_spill] sm:$0xff]  ;;  %v12090_v2 = vld [vmem:[#allocation74_spill] sm:$0xff] }
 0x24a   :  { %v8971_v23 = vpop.xlane.xlu1 %1961  ;;  %12084 = vst [vmem:[#allocation121_spill] sm:$0xff] %v9003_v61  ;;  %v9017_v60 = vsub.f32 %v8696_v40, %v2028_v17  ;;  %v2308_v30 = vsel %vm2223_vm13, %v2307_v39, %v2303_v20  ;;  %v2346_v36 = vrot.slane %v8996_v46, %v8856_v53  ;;  %v2030_v21 = vmul.f32 0.015625, %v12086_v54  ;;  %v12092_v17 = vld [vmem:[#allocation81_spill] sm:$0xff]  ;;  %v12093_v20 = vld [vmem:[#allocation88_spill] sm:$0xff] }
 0x24b   :  { %v9026_v14 = vsub.f32 %v12087_v13, %v2022_v4  ;;  %v2031_v11 = vmul.f32 0.015625, %v12089_v42  ;;  %v2317_v41 = vrot.slane %v9003_v61, %v8897_v10  ;;  %v9032_v40 = vsub.f32 %v12090_v2, %v2029_v59  ;;  %v12094_v4 = vld [vmem:[#allocation78_spill] sm:$0xff] }
 0x24c   :  { %v8989_v5 = vpop.xlane.xlu0 %1958  ;;  %12085 = vst [vmem:[#allocation122_spill] sm:$0xff] %v9017_v60  ;;  %v2039_v39 = vmul.f32 0.015625, %v12092_v17  ;;  %v2033_v49 = vmul.f32 0.015625, %v12093_v20  ;;  %v2245_v46 = vsel %vm2244_vm0, %v2243_v12, %v2238_v16  ;;  %v2284_v54 = vsel %vm2244_vm0, %v2283_v7, %v2279_v19  ;;  %v12096_v17 = vld [vmem:[#allocation80_spill] sm:$0xff]  ;;  %v12097_v12 = vld [vmem:[#allocation73_spill] sm:$0xff] }
 0x24d   :  { %12088 = vst [vmem:[#allocation72_spill] sm:$0xff] %v9026_v14  ;;  %12091 = vst [vmem:[#allocation71_spill] sm:$0xff] %v9032_v40  ;;  %v2032_v13 = vmul.f32 0.015625, %v12094_v4  ;;  %v2041_v42 = vmul.f32 0.015625, %v12095_v52  ;;  %v2351_v61 = vrot.slane %v9017_v60, %v8875_v62  ;;  %v2342_v59 = vsel %vm2216_vm12, %v2341_v6, %v2337_v38  ;;  %v12099_v52 = vld [vmem:[#allocation77_spill] sm:$0xff]  ;;  %v12101_v38 = vld [vmem:[#allocation82_spill] sm:$0xff] }
 0x24e   :  { %v9006_v34 = vpop.xlane.xlu1 %1702  ;;  %v2313_v2 = vsel %vm2230_vm14, %v2312_v35, %v2308_v30  ;;  %v2040_v8 = vmul.f32 0.015625, %v12096_v17  ;;  %v2347_v18 = vsel %vm2223_vm13, %v2346_v36, %v2342_v59  ;;  %v9051_v16 = vsub.f32 %v12097_v12, %v2030_v21  ;;  %v12103_v30 = vld [vmem:[#allocation89_spill] sm:$0xff]  ;;  %v12105_v21 = vld [vmem:[#allocation76_spill] sm:$0xff] }
 0x24f   :  { %v2322_v7 = vrot.slane %v9026_v14, %v8894_v45  ;;  %v9056_v19 = vsub.f32 %v12099_v52, %v2031_v11  ;;  %v2318_v4 = vsel %vm2237_vm15, %v2317_v41, %v2313_v2  ;;  %v2356_v6 = vrot.slane %v9032_v40, %v8897_v10  ;;  %v12106_v12 = vld [vmem:[#allocation85_spill] sm:$0xff]  ;;  %v12107_v11 = vld [vmem:[#allocation86_spill] sm:$0xff]  ;;  %v12109_v41 = vld [vmem:[#allocation96_spill] sm:$0xff] }
 0x250   :  { %v9020_v22 = vpop.xlane.xlu0 %1982  ;;  %12098 = vst [vmem:[#allocation79_spill] sm:$0xff] %v9051_v16  ;;  %v9062_v35 = vsub.f32 %v12101_v38, %v2039_v39  ;;  %v9065_v17 = vsub.f32 %v12103_v30, %v2033_v49  ;;  %v9070_v59 = vsub.f32 %v12105_v21, %v2032_v13  ;;  %v2034_v14 = vmul.f32 0.015625, %v12106_v12  ;;  %v12110_v39 = vld [vmem:[#allocation75_spill] sm:$0xff] }
 0x251   :  { %12100 = vst [vmem:[#allocation74_spill] sm:$0xff] %v9056_v19  ;;  %v9074_v52 = vsub.f32 %v12107_v11, %v2041_v42  ;;  %v2035_v2 = vmul.f32 0.015625, %v12109_v41  ;;  %v2520_v40 = vsel %vm2519_vm1, %v2284_v54, %v2245_v46  ;;  %v9079_v38 = vsub.f32 %v12110_v39, %v2040_v8  ;;  %v12112_v49 = vld [vmem:[#allocation87_spill] sm:$0xff]  ;;  %v12113_v11 = vld [vmem:[#allocation92_spill] sm:$0xff] }
 0x252   :  { %v9036_v0 = vpop.xlane.xlu1 %1711  ;;  %12102 = vst [vmem:[#allocation81_spill] sm:$0xff] %v9062_v35  ;;  %12104 = vst [vmem:[#allocation88_spill] sm:$0xff] %v9065_v17  ;;  %v2042_v30 = vmul.f32 0.015625, %v12112_v49  ;;  %v2361_v13 = vrot.slane %v9051_v16, %v8894_v45  ;;  %v2323_v21 = vsel %vm2244_vm0, %v2322_v7, %v2318_v4  ;;  %v2352_v42 = vsel %vm2230_vm14, %v2351_v61, %v2347_v18  ;;  %v12114_v4 = vld [vmem:[#allocation83_spill] sm:$0xff]  ;;  %v12118_v16 = vld [vmem:[#allocation84_spill] sm:$0xff] }
 0x253   :  { %12108 = vst [vmem:[#allocation78_spill] sm:$0xff] %v9074_v52  ;;  %12111 = vst [vmem:[#allocation90_spill] sm:$0xff] %v9079_v38  ;;  %v2366_v12 = vrot.slane %v9056_v19, %v8834_v3  ;;  %v2357_v46 = vsel %vm2237_vm15, %v2356_v6, %v2352_v42  ;;  %v2405_v8 = vrot.slane %v9062_v35, %v8834_v3  ;;  %v2044_v41 = vmul.f32 0.015625, %v12113_v11  ;;  %v12116_v6 = vld [vmem:[#allocation97_spill] sm:$0xff]  ;;  %v12120_v11 = vld [vmem:[#allocation95_spill] sm:$0xff] }
 0x254   :  { %v9047_v20 = vpop.xlane.xlu0 %1991  ;;  %v2375_v54 = vrot.slane %v9065_v17, %v8839_v28  ;;  %v2370_v7 = vrot.slane %v9070_v59, %v8843_v43  ;;  %v9101_v18 = vsub.f32 %v12114_v4, %v2034_v14  ;;  %v2414_v61 = vrot.slane %v9074_v52, %v8839_v28  ;;  %v12121_v35 = vld [vmem:[#allocation98_spill] sm:$0xff] }
 0x255   :  { %v9106_v49 = vsub.f32 %v12116_v6, %v2035_v2  ;;  %v2409_v42 = vrot.slane %v9079_v38, %v8843_v43  ;;  %v9111_v17 = vsub.f32 %v12118_v16, %v2042_v30  ;;  %v2036_v57 = vmul.f32 0.015625, %v12120_v11  ;;  %v12122_v38 = vld [vmem:[#allocation93_spill] sm:$0xff] }
 0x256   :  { %v9067_v36 = vpop.xlane.xlu1 %1735  ;;  %12115 = vst [vmem:[#allocation80_spill] sm:$0xff] %v9101_v18  ;;  %v2043_v47 = vmul.f32 0.015625, %v12121_v35  ;;  %v2522_v14 = vsel %vm2521_vm3, %v2323_v21, %v2520_v40  ;;  %v2362_v4 = vsel %vm2244_vm0, %v2361_v13, %v2357_v46  ;;  %v2371_v52 = vsel %vm2202_vm10, %v2370_v7, %v2366_v12  ;;  %v12124_v30 = vld [vmem:[#allocation105_spill] sm:$0xff] }
 0x257   :  { %12117 = vst [vmem:[#allocation73_spill] sm:$0xff] %v9106_v49  ;;  %12119 = vst [vmem:[#allocation77_spill] sm:$0xff] %v9111_v17  ;;  %v2410_v2 = vsel %vm2202_vm10, %v2409_v42, %v2405_v8  ;;  %v2376_v6 = vsel %vm2209_vm11, %v2375_v54, %v2371_v52  ;;  %v9123_v16 = vsub.f32 %v12122_v38, %v2044_v41  ;;  %v2037_v11 = vmul.f32 0.015625, %v12124_v30  ;;  %v12125_v21 = vld [vmem:[#allocation113_spill] sm:$0xff]  ;;  %v12126_v52 = vld [vmem:[#allocation91_spill] sm:$0xff] }
 0x258   :  { %v9082_v60 = vpop.xlane.xlu0 %1708  ;;  %v2380_v35 = vrot.slane %v9101_v18, %v8863_v51  ;;  %v2415_v40 = vsel %vm2209_vm11, %v2414_v61, %v2410_v2  ;;  %v2385_v13 = vrot.slane %v9106_v49, %v8856_v53  ;;  %v2047_v12 = vmul.f32 0.015625, %v12125_v21  ;;  %v12128_v38 = vld [vmem:[#allocation94_spill] sm:$0xff]  ;;  %v12130_v42 = vld [vmem:[#allocation103_spill] sm:$0xff]  ;;  %v12131_v30 = vld [vmem:[#allocation112_spill] sm:$0xff] }
 0x259   :  { %12123 = vst [vmem:[#allocation82_spill] sm:$0xff] %v9123_v16  ;;  %v2419_v46 = vrot.slane %v9111_v17, %v8863_v51  ;;  %v9135_v8 = vsub.f32 %v12126_v52, %v2036_v57  ;;  %v9138_v54 = vsub.f32 %v12128_v38, %v2043_v47  ;;  %v9141_v7 = vsel %vm2523_vm4, %v2362_v4, %v2522_v14  ;;  %v12132_v52 = vld [vmem:[#allocation102_spill] sm:$0xff] }
 0x25a   :  { %v9096_v39 = vpop.xlane.xlu1 %1967  ;;  %v2381_v61 = vsel %vm2216_vm12, %v2380_v35, %v2376_v6  ;;  %v2038_v2 = vmul.f32 0.015625, %v12130_v42  ;;  %v2048_v49 = vmul.f32 0.015625, %v12131_v30  ;;  %v2049_v21 = vmul.f32 0.015625, %v8989_v5  ;;  %v12133_v6 = vld [vmem:[#allocation106_spill] sm:$0xff] }
 0x25b   :  { %12127 = vst [vmem:[#allocation89_spill] sm:$0xff] %v9135_v8  ;;  %12129 = vst [vmem:[#allocation76_spill] sm:$0xff] %v9138_v54  ;;  %v2429_v17 = vrot.slane %v9123_v16, %v8875_v62  ;;  %v2420_v57 = vsel %vm2216_vm12, %v2419_v46, %v2415_v40  ;;  %v9151_v47 = vsub.f32 %v12132_v52, %v2037_v11  ;;  %v2055_v38 = vmul.f32 0.015625, %v8878_v15  ;;  %v12134_v42 = vld [vmem:[#allocation110_spill] sm:$0xff]  ;;  %v12135_v40 = vld [vmem:[#allocation100_spill] sm:$0xff] }
 0x25c   :  { %v9115_v9 = vpop.xlane.xlu0 %1732  ;;  %v2386_v4 = vsel %vm2223_vm13, %v2385_v13, %v2381_v61  ;;  %v2045_v35 = vmul.f32 0.015625, %v12133_v6  ;;  %v9159_v30 = vsub.f32 %v12134_v42, %v2047_v12  ;;  %v2057_v5 = vmul.f32 0.015625, %v9020_v22  ;;  %v12136_v15 = vld [vmem:[#allocation114_spill] sm:$0xff]  ;;  %v12138_v61 = vld [vmem:[#allocation109_spill] sm:$0xff] }
 0x25d   :  { %v2390_v16 = vrot.slane %v9135_v8, %v8875_v62  ;;  %v2424_v11 = vrot.slane %v9138_v54, %v8856_v53  ;;  %v2046_v46 = vmul.f32 0.015625, %v12135_v40  ;;  %v2056_v52 = vmul.f32 0.015625, %v12136_v15 }
 0x25e   :  { %v1965_v19 = vpop.xlane.xlu1 %1964  ;;  %v9169_v13 = vsub.f32 %v12137_v27, %v2038_v2  ;;  %v9172_v6 = vsub.f32 %v12138_v61, %v2048_v49  ;;  %v9175_v12 = vsub.f32 %v9006_v34, %v2049_v21  ;;  %v2395_v8 = vrot.slane %v9151_v47, %v8897_v10  ;;  %v12139_v27 = vld [vmem:[#allocation104_spill] sm:$0xff]  ;;  %v12140_v21 = vld [vmem:[#allocation101_spill] sm:$0xff] }
 0x25f   :  { %v2051_v22 = vmul.f32 0.015625, %v1965_v19  ;;  %v2391_v42 = vsel %vm2230_vm14, %v2390_v16, %v2386_v4  ;;  %v9181_v40 = vsub.f32 %v8888_v44, %v2055_v38  ;;  %v2050_v15 = vmul.f32 0.015625, %v8971_v23  ;;  %v12141_v44 = vld [vmem:[#allocation107_spill] sm:$0xff] }
 0x260   :  { %v1989_v41 = vpop.xlane.xlu0 %1988  ;;  %v9185_v2 = vsub.f32 %v12139_v27, %v2045_v35  ;;  %v2444_v49 = vrot.slane %v9159_v30, %v8834_v3  ;;  %v9190_v34 = vsub.f32 %v8955_v56, %v2057_v5  ;;  %v2425_v16 = vsel %vm2223_vm13, %v2424_v11, %v2420_v57 }
 0x261   :  { %v2059_v19 = vmul.f32 0.015625, %v1989_v41  ;;  %v9194_v4 = vsub.f32 %v12140_v21, %v2046_v46  ;;  %v9197_v38 = vsub.f32 %v12141_v44, %v2056_v52  ;;  %v2058_v23 = vmul.f32 0.015625, %v8921_v55 }
 0x262   :  { %v9154_v14 = vpop.xlane.xlu1 %1717  ;;  %v2400_v61 = vrot.slane %v9169_v13, %v8894_v45  ;;  %v2448_v56 = vrot.slane %v9172_v6, %v8843_v43  ;;  %v2453_v41 = vrot.slane %v9175_v12, %v8839_v28  ;;  %v9207_v57 = vsub.f32 %v9082_v60, %v2051_v22 }
 0x263   :  { %v2396_v5 = vsel %vm2237_vm15, %v2395_v8, %v2391_v42  ;;  %v2483_v11 = vrot.slane %v9181_v40, %v8834_v3  ;;  %v9213_v55 = vsub.f32 %v8906_v33, %v2050_v15  ;;  %v2052_v46 = vmul.f32 0.015625, %v9096_v39 }
 0x264   :  { %v1998_v18 = vpop.xlane.xlu0 %1997  ;;  %v2434_v27 = vrot.slane %v9185_v2, %v8897_v10  ;;  %v2449_v21 = vsel %vm2202_vm10, %v2448_v56, %v2444_v49  ;;  %v2492_v60 = vrot.slane %v9190_v34, %v8839_v28  ;;  %v9222_v22 = vsub.f32 %v9115_v9, %v2059_v19 }
 0x265   :  { %v2487_v8 = vrot.slane %v9197_v38, %v8843_v43  ;;  %v9227_v33 = vsub.f32 %v8935_v26, %v2058_v23  ;;  %v2060_v39 = vmul.f32 0.015625, %v9047_v20  ;;  %v2430_v44 = vsel %vm2230_vm14, %v2429_v17, %v2425_v16 }
 0x266   :  { %v1742_v54 = vpop.xlane.xlu1 %1741  ;;  %v2454_v49 = vsel %vm2209_vm11, %v2453_v41, %v2449_v21  ;;  %v2463_v56 = vrot.slane %v9207_v57, %v8856_v53  ;;  %v2401_v9 = vsel %vm2244_vm0, %v2400_v61, %v2396_v5  ;;  %v2458_v28 = vrot.slane %v9213_v55, %v8863_v51 }
 0x267   :  { %v2488_v19 = vsel %vm2202_vm10, %v2487_v8, %v2483_v11  ;;  %v9239_v26 = vsub.f32 %v9036_v0, %v2052_v46  ;;  %v2062_v20 = vmul.f32 0.015625, %v1998_v18  ;;  %v2502_v16 = vrot.slane %v9222_v22, %v8856_v53 }
 0x268   :  { %v1715_v35 = vpop.xlane.xlu0 %1714  ;;  %v2493_v17 = vsel %vm2209_vm11, %v2492_v60, %v2488_v19  ;;  %v2497_v61 = vrot.slane %v9227_v33, %v8863_v51  ;;  %v2459_v5 = vsel %vm2216_vm12, %v2458_v28, %v2454_v49  ;;  %v9249_v11 = vsub.f32 %v9067_v36, %v2060_v39 }
 0x269   :  { %v2439_v46 = vrot.slane %v9194_v4, %v8894_v45  ;;  %v2468_v8 = vrot.slane %v9239_v26, %v8875_v62  ;;  %v2526_v36 = vsel %vm2525_vm5, %v2401_v9, %v9141_v7 }
 0x26a   :  { %v1974_v52 = vpop.xlane.xlu1 %1973  ;;  %v2498_v28 = vsel %vm2216_vm12, %v2497_v61, %v2493_v17  ;;  %v2507_v49 = vrot.slane %v9249_v11, %v8875_v62 }
 0x26b   :  { %v2054_v42 = vmul.f32 0.015625, %v1974_v52  ;;  %v2435_v52 = vsel %vm2237_vm15, %v2434_v27, %v2430_v44  ;;  %v2464_v27 = vsel %vm2223_vm13, %v2463_v56, %v2459_v5  ;;  %v9262_v44 = vsub.f32 %v1742_v54, %v2062_v20 }
 0x26c   :  { %v1739_v15 = vpop.xlane.xlu0 %1738  ;;  %v2469_v54 = vsel %vm2230_vm14, %v2468_v8, %v2464_v27  ;;  %v7379_v5 = vmov 0   ;;  %v11910_v27 = vsub.s32 1, %v8827_v58  ;;  %v11909_v8 = vsub.s32 2, %v8827_v58 }
 0x26d   :  { %v9252_v0 = vsub.f32 %v9154_v14, %v2054_v42  ;;  %v2503_v14 = vsel %vm2223_vm13, %v2502_v16, %v2498_v28  ;;  %7140 = vset.pattern.permute.xlu0 %v7379_v5  ;;  %7139 = vset.pattern.permute.xlu1 %v7379_v5  ;;  %v12151_v5 = vld [vmem:[#allocation44_spill] sm:$0xff] }
 0x26e   :  { %v1971_v23 = vpop.xlane.xlu1 %1970  ;;  %v2508_v20 = vsel %vm2230_vm14, %v2507_v49, %v2503_v14  ;;  %v12143_v14 = vld [vmem:[#allocation33_spill] sm:$0xff] }
 0x26f   :  { %v2053_v41 = vmul.f32 0.015625, %v1971_v23  ;;  %v2478_v56 = vrot.slane %v9252_v0, %v8894_v45 }
 0x270   :  { %v1995_v18 = vpop.xlane.xlu0 %1994 }
 0x271   :  { %v9257_v21 = vsub.f32 %v1715_v35, %v2053_v41  ;;  %v2061_v60 = vmul.f32 0.015625, %v1995_v18  ;;  %v2440_v35 = vsel %vm2244_vm0, %v2439_v46, %v2435_v52  ;;  %v11911_v46 = vsub.s32 0, %v8827_v58 }
 0x272   :  { %v2528_v23 = vsel %vm11903_vm6, %v2440_v35, %v2526_v36  ;;  %v12145_v35 = vld [vmem:[#allocation27_spill] sm:$0xff] }
 0x273   :  { %v2473_v39 = vrot.slane %v9257_v21, %v8897_v10  ;;  %v9269_v42 = vsub.f32 %v1739_v15, %v2061_v60  ;;  %v2517_v15 = vrot.slane %v9262_v44, %v8894_v45 }
 0x274   :  { %v9293_v18 = vpop.permute.xlu0 %2671 }
 0x275   :  { %v2512_v7 = vrot.slane %v9269_v42, %v8897_v10  ;;  %v2474_v9 = vsel %vm2237_vm15, %v2473_v39, %v2469_v54  ;;  %v12144_v39 = vld [vmem:[#allocation38_spill] sm:$0xff] }
 0x276   :  { %v2479_v19 = vsel %vm2244_vm0, %v2478_v56, %v2474_v9  ;;  %v12146_v56 = vld [vmem:[#allocation21_spill] sm:$0xff]  ;;  %v12147_v9 = vld [vmem:[#allocation46_spill] sm:$0xff] }
 0x277   :  { %v2513_v52 = vsel %vm2237_vm15, %v2512_v7, %v2508_v20  ;;  %v2530_v17 = vsel %vm11902_vm7, %v2479_v19, %v2528_v23  ;;  %v12149_v19 = vld [vmem:[#allocation23_spill] sm:$0xff] }
 0x278   :  { %v2518_v16 = vsel %vm2244_vm0, %v2517_v15, %v2513_v52  ;;  %v12148_v15 = vld [vmem:[#allocation37_spill] sm:$0xff] }
 0x279   :  { %v9289_v41 = vsel %vm11901_vm8, %v2518_v16, %v2530_v17  ;;  %v11908_v16 = vsub.s32 3, %v8827_v58 }
 0x27a   :  { %12142 = vst [vmem:[#allocation85_spill] sm:$0xff] %v9289_v41  ;;  %v2534_v61 = vsel %vm11900_vm2, %v9289_v41, -inf }
 0x27b   :  { %2535 = vmax.xlane.f32.xlu0 %v2534_v61  ;;  %v12150_v61 = vld [vmem:[#allocation42_spill] sm:$0xff] }
 0x304   :  { %v9297_v60 = vpop.xlane.xlu0 %2535 }
 0x305   :  { %v9303_v28 = vrot.slane %v9297_v60, %v11911_v46  ;;  %v9308_v36 = vrot.slane %v9297_v60, %v11910_v27  ;;  %v9319_v7 = vrot.slane %v9297_v60, %v11909_v8  ;;  %v12185_v27 = vld [vmem:[#allocation111_spill] sm:$0xff] }
 0x307   :  { %vm2579_vm9 = vcmp.eq.f32.partialorder %v12143_v14, %v9303_v28  ;;  %vm2578_vm2 = vcmp.eq.f32.partialorder %v12144_v39, %v9303_v28  ;;  %vm2580_vm8 = vcmp.eq.f32.partialorder %v12147_v9, %v9303_v28  ;;  %vm2586_vm7 = vcmp.eq.f32.partialorder %v12148_v15, %v9308_v36  ;;  %v12152_v14 = vld [vmem:[#allocation26_spill] sm:$0xff] }
 0x308   :  { %v2674_v49 = vsel %vm2579_vm9, %v12145_v35, 64  ;;  %v2673_v54 = vsel %vm2578_vm2, %v12146_v56, 64  ;;  %v2675_v20 = vsel %vm2580_vm8, %v12149_v19, 64  ;;  %v2681_v23 = vsel %vm2586_vm7, %v12146_v56, 64 }
 0x309   :  { %2741 = vperm.xlu0 %7140, %v2674_v49   ;;  %2738 = vperm.xlu1 %7139, %v2673_v54   ;;  %vm2594_vm2 = vcmp.eq.f32.partialorder %v8904_v24, %v9319_v7  ;;  %vm2587_vm9 = vcmp.eq.f32.partialorder %v8423_v50, %v9308_v36  ;;  %vm2581_vm8 = vcmp.eq.f32.partialorder %v12150_v61, %v9303_v28  ;;  %v12155_v61 = vld [vmem:[#allocation49_spill] sm:$0xff] }
 0x30a   :  { %v2689_v52 = vsel %vm2594_vm2, %v12146_v56, 64  ;;  %v2682_v17 = vsel %vm2587_vm9, %v12145_v35, 64  ;;  %vm2588_vm7 = vcmp.eq.f32.partialorder %v12151_v5, %v9308_v36  ;;  %v2676_v39 = vsel %vm2581_vm8, %v12152_v14, 64  ;;  %v12156_v5 = vld [vmem:[#allocation74_spill] sm:$0xff] }
 0x30b   :  { %v2683_v24 = vsel %vm2588_vm7, %v12149_v19, 64  ;;  %v9343_v50 = vrot.slane %v9297_v60, %v11908_v16  ;;  %vm2596_vm2 = vcmp.eq.f32.partialorder %v8912_v31, %v9319_v7  ;;  %vm2595_vm9 = vcmp.eq.f32.partialorder %v8917_v48, %v9319_v7  ;;  %v12153_v48 = vld [vmem:[#allocation29_spill] sm:$0xff] }
 0x30c   :  { %v2691_v49 = vsel %vm2596_vm2, %v12149_v19, 64  ;;  %v2690_v54 = vsel %vm2595_vm9, %v12145_v35, 64  ;;  %vm2589_vm7 = vcmp.eq.f32.partialorder %v8461_v63, %v9308_v36  ;;  %v11907_v31 = vsub.s32 4, %v8827_v58 }
 0x30d   :  { %2744 = vperm.xlu0 %7140, %v2675_v20   ;;  %2762 = vperm.xlu1 %7139, %v2681_v23   ;;  %vm2603_vm8 = vcmp.eq.f32.partialorder %v8959_v32, %v9343_v50  ;;  %v2684_v15 = vsel %vm2589_vm7, %v12152_v14, 64  ;;  %vm2590_vm2 = vcmp.eq.f32.partialorder %v8537_v37, %v9308_v36  ;;  %vm2602_vm9 = vcmp.eq.f32.partialorder %v8941_v29, %v9343_v50  ;;  %v12154_v23 = vld [vmem:[#allocation52_spill] sm:$0xff] }
 0x30e   :  { %v2698_v9 = vsel %vm2603_vm8, %v12145_v35, 64  ;;  %v2685_v20 = vsel %vm2590_vm2, %v12153_v48, 64  ;;  %v2697_v32 = vsel %vm2602_vm9, %v12146_v56, 64  ;;  %v9367_v63 = vrot.slane %v9297_v60, %v11907_v31 }
 0x30f   :  { %vm2604_vm8 = vcmp.eq.f32.partialorder %v8949_v1, %v9343_v50  ;;  %vm2582_vm7 = vcmp.eq.f32.partialorder %v12154_v23, %v9303_v28  ;;  %vm2597_vm9 = vcmp.eq.f32.partialorder %v8962_v25, %v9319_v7  ;;  %v11906_v1 = vsub.s32 5, %v8827_v58 }
 0x310   :  { %v2699_v37 = vsel %vm2604_vm8, %v12149_v19, 64  ;;  %v2677_v29 = vsel %vm2582_vm7, %v12153_v48, 64  ;;  %vm2611_vm2 = vcmp.eq.f32.partialorder %v9070_v59, %v9367_v63  ;;  %vm2591_vm8 = vcmp.eq.f32.partialorder %v12155_v61, %v9308_v36 }
 0x311   :  { %2786 = vperm.xlu0 %7140, %v2689_v52   ;;  %2765 = vperm.xlu1 %7139, %v2682_v17   ;;  %v2706_v52 = vsel %vm2611_vm2, %v12145_v35, 64  ;;  %v2692_v17 = vsel %vm2597_vm9, %v12152_v14, 64  ;;  %vm2610_vm7 = vcmp.eq.f32.partialorder %v12156_v5, %v9367_v63  ;;  %v9391_v25 = vrot.slane %v9297_v60, %v11906_v1 }
 0x312   :  { %v2705_v59 = vsel %vm2610_vm7, %v12146_v56, 64 }
 0x315   :  { %2747 = vperm.xlu0 %7140, %v2676_v39   ;;  %2768 = vperm.xlu1 %7139, %v2683_v24   ;;  %v12157_v39 = vld [vmem:[#allocation30_spill] sm:$0xff] }
 0x316   :  { %v2686_v24 = vsel %vm2591_vm8, %v12157_v39, 64 }
 0x319   :  { %2792 = vperm.xlu0 %7140, %v2691_v49   ;;  %2789 = vperm.xlu1 %7139, %v2690_v54   ;;  %v12158_v49 = vld [vmem:[#allocation118_spill] sm:$0xff] }
 0x31a   :  { %vm2605_vm2 = vcmp.eq.f32.partialorder %v12158_v49, %v9343_v50  ;;  %v12159_v54 = vld [vmem:[#allocation50_spill] sm:$0xff] }
 0x31b   :  { %vm2583_vm9 = vcmp.eq.f32.partialorder %v12159_v54, %v9303_v28  ;;  %v12165_v49 = vld [vmem:[#allocation90_spill] sm:$0xff] }
 0x31d   :  { %2813 = vperm.xlu0 %7140, %v2698_v9   ;;  %2771 = vperm.xlu1 %7139, %v2684_v15   ;;  %v2700_v9 = vsel %vm2605_vm2, %v12152_v14, 64  ;;  %v2678_v15 = vsel %vm2583_vm9, %v12157_v39, 64 }
 0x321   :  { %2774 = vperm.xlu0 %7140, %v2685_v20   ;;  %2810 = vperm.xlu1 %7139, %v2697_v32   ;;  %v12160_v20 = vld [vmem:[#allocation81_spill] sm:$0xff] }
 0x322   :  { %vm2618_vm8 = vcmp.eq.f32.partialorder %v12160_v20, %v9391_v25  ;;  %v12161_v32 = vld [vmem:[#allocation117_spill] sm:$0xff]  ;;  %v12166_v20 = vld [vmem:[#allocation80_spill] sm:$0xff] }
 0x323   :  { %vm2598_vm7 = vcmp.eq.f32.partialorder %v12161_v32, %v9319_v7  ;;  %v2713_v23 = vsel %vm2618_vm8, %v12146_v56, 64  ;;  %v12167_v32 = vld [vmem:[#allocation116_spill] sm:$0xff] }
 0x325   :  { %2816 = vperm.xlu0 %7140, %v2699_v37   ;;  %2750 = vperm.xlu1 %7139, %v2677_v29   ;;  %v2693_v37 = vsel %vm2598_vm7, %v12153_v48, 64  ;;  %v9405_v29 = vpop.permute.xlu1 %2667  ;;  %vm2619_vm7 = vcmp.eq.f32.partialorder %v12165_v49, %v9391_v25 }
 0x329   :  { %2837 = vperm.xlu0 %7140, %v2706_v52   ;;  %2795 = vperm.xlu1 %7139, %v2692_v17   ;;  %v12162_v52 = vld [vmem:[#allocation115_spill] sm:$0xff]  ;;  %v12163_v17 = vld [vmem:[#allocation88_spill] sm:$0xff] }
 0x32a   :  { %vm2584_vm2 = vcmp.eq.f32.partialorder %v12162_v52, %v9303_v28  ;;  %vm2612_vm9 = vcmp.eq.f32.partialorder %v12163_v17, %v9367_v63  ;;  %v12168_v52 = vld [vmem:[#allocation120_spill] sm:$0xff] }
 0x32b   :  { %v2679_v61 = vsel %vm2584_vm2, %v9405_v29, 64  ;;  %v2707_v5 = vsel %vm2612_vm9, %v12149_v19, 64  ;;  %vm2613_vm2 = vcmp.eq.f32.partialorder %v12166_v20, %v9367_v63  ;;  %vm2592_vm9 = vcmp.eq.f32.partialorder %v12167_v32, %v9308_v36  ;;  %v12172_v32 = vld [vmem:[#allocation73_spill] sm:$0xff] }
 0x32d   :  { %2777 = vperm.xlu0 %7140, %v2686_v24   ;;  %2834 = vperm.xlu1 %7139, %v2705_v59   ;;  %v11905_v24 = vsub.s32 6, %v8827_v58  ;;  %v12164_v59 = vld [vmem:[#allocation119_spill] sm:$0xff] }
 0x32e   :  { %vm2599_vm8 = vcmp.eq.f32.partialorder %v12164_v59, %v9319_v7  ;;  %v12170_v59 = vld [vmem:[#allocation78_spill] sm:$0xff] }
 0x32f   :  { %v2694_v54 = vsel %vm2599_vm8, %v12157_v39, 64 }
 0x331   :  { %2819 = vperm.xlu0 %7140, %v2700_v9   ;;  %2753 = vperm.xlu1 %7139, %v2678_v15   ;;  %v2714_v9 = vsel %vm2619_vm7, %v12145_v35, 64  ;;  %v9423_v15 = vrot.slane %v9297_v60, %v11905_v24  ;;  %vm2606_vm7 = vcmp.eq.f32.partialorder %v12168_v52, %v9343_v50 }
 0x333   :  { %vm2626_vm8 = vcmp.eq.f32.partialorder %v9159_v30, %v9423_v15  ;;  %v12171_v30 = vld [vmem:[#allocation121_spill] sm:$0xff] }
 0x334   :  { %v2721_v17 = vsel %vm2626_vm8, %v12146_v56, 64  ;;  %vm2627_vm8 = vcmp.eq.f32.partialorder %v9172_v6, %v9423_v15 }
 0x335   :  { %2858 = vperm.xlu0 %7140, %v2713_v23   ;;  %2798 = vperm.xlu1 %7139, %v2693_v37   ;;  %v2708_v23 = vsel %vm2613_vm2, %v12152_v14, 64  ;;  %v2687_v37 = vsel %vm2592_vm9, %v9405_v29, 64  ;;  %vm2620_vm2 = vcmp.eq.f32.partialorder %v12170_v59, %v9391_v25  ;;  %vm2600_vm9 = vcmp.eq.f32.partialorder %v12171_v30, %v9319_v7 }
 0x336   :  { %v2722_v20 = vsel %vm2627_vm8, %v12145_v35, 64 }
 0x339   :  { %2756 = vperm.xlu0 %7140, %v2679_v61   ;;  %2840 = vperm.xlu1 %7139, %v2707_v5   ;;  %v2701_v61 = vsel %vm2606_vm7, %v12153_v48, 64  ;;  %v12169_v5 = vld [vmem:[#allocation57_spill] sm:$0xff] }
 0x33a   :  { %vm2585_vm6 = vcmp.eq.f32.partialorder %v12169_v5, %v9303_v28  ;;  %v11904_v28 = vsub.s32 7, %v8827_v58 }
 0x33b   :  { %v2680_v49 = vsel %vm2585_vm6, %v9293_v18, 64  ;;  %vm2614_vm6 = vcmp.eq.f32.partialorder %v12172_v32, %v9367_v63 }
 0x33c   :  { %v9459_v6 = vrot.slane %v9297_v60, %v11904_v28  ;;  %v12175_v60 = vld [vmem:[#allocation77_spill] sm:$0xff] }
 0x33d   :  { %2801 = vperm.xlu0 %7140, %v2694_v54   ;;  %2861 = vperm.xlu1 %7139, %v2714_v9   ;;  %v2715_v54 = vsel %vm2620_vm2, %v12149_v19, 64  ;;  %v2695_v9 = vsel %vm2600_vm9, %v9405_v29, 64  ;;  %vm2628_vm2 = vcmp.eq.f32.partialorder %v9175_v12, %v9423_v15  ;;  %v12176_v12 = vld [vmem:[#allocation71_spill] sm:$0xff] }
 0x33e   :  { %vm2635_vm8 = vcmp.eq.f32.partialorder %v9197_v38, %v9459_v6  ;;  %v12177_v38 = vld [vmem:[#allocation76_spill] sm:$0xff] }
 0x33f   :  { %v2730_v5 = vsel %vm2635_vm8, %v12145_v35, 64  ;;  %v12178_v35 = vld [vmem:[#allocation72_spill] sm:$0xff] }
 0x340   :  { %vm2601_vm8 = vcmp.eq.f32.partialorder %v12178_v35, %v9319_v7 }
 0x341   :  { %2843 = vperm.xlu0 %7140, %v2708_v23   ;;  %2780 = vperm.xlu1 %7139, %v2687_v37   ;;  %v12173_v23 = vld [vmem:[#allocation56_spill] sm:$0xff]  ;;  %v2709_v37 = vsel %vm2614_vm6, %v12153_v48, 64  ;;  %vm2621_vm6 = vcmp.eq.f32.partialorder %v12175_v60, %v9391_v25 }
 0x342   :  { %vm2593_vm7 = vcmp.eq.f32.partialorder %v12173_v23, %v9308_v36  ;;  %v2716_v59 = vsel %vm2621_vm6, %v12152_v14, 64  ;;  %vm2636_vm6 = vcmp.eq.f32.partialorder %v9190_v34, %v9459_v6  ;;  %v12180_v34 = vld [vmem:[#allocation79_spill] sm:$0xff] }
 0x343   :  { %v2688_v52 = vsel %vm2593_vm7, %v9293_v18, 64  ;;  %vm2608_vm7 = vcmp.eq.f32.partialorder %v12176_v12, %v9343_v50 }
 0x345   :  { %2882 = vperm.xlu0 %7140, %v2721_v17   ;;  %2822 = vperm.xlu1 %7139, %v2701_v61   ;;  %v12174_v17 = vld [vmem:[#allocation122_spill] sm:$0xff]  ;;  %v2723_v61 = vsel %vm2628_vm2, %v12149_v19, 64  ;;  %vm2634_vm2 = vcmp.eq.f32.partialorder %v9181_v40, %v9459_v6  ;;  %v12179_v40 = vld [vmem:[#allocation89_spill] sm:$0xff] }
 0x346   :  { %vm2607_vm9 = vcmp.eq.f32.partialorder %v12174_v17, %v9343_v50 }
 0x347   :  { %v2702_v36 = vsel %vm2607_vm9, %v12157_v39, 64  ;;  %vm2622_vm9 = vcmp.eq.f32.partialorder %v12177_v38, %v9391_v25 }
 0x348   :  { %v2717_v30 = vsel %vm2622_vm9, %v12153_v48, 64  ;;  %vm2629_vm9 = vcmp.eq.f32.partialorder %v9213_v55, %v9423_v15 }
 0x349   :  { %2759 = vperm.xlu0 %7140, %v2680_v49   ;;  %2864 = vperm.xlu1 %7139, %v2715_v54   ;;  %v2703_v49 = vsel %vm2608_vm7, %v9405_v29, 64  ;;  %v2729_v54 = vsel %vm2634_vm2, %v12146_v56, 64  ;;  %vm2615_vm7 = vcmp.eq.f32.partialorder %v12179_v40, %v9367_v63  ;;  %v2731_v56 = vsel %vm2636_vm6, %v12149_v19, 64 }
 0x34a   :  { %vm2616_vm2 = vcmp.eq.f32.partialorder %v9151_v47, %v9367_v63  ;;  %v2724_v32 = vsel %vm2629_vm9, %v12152_v14, 64  ;;  %vm2609_vm6 = vcmp.eq.f32.partialorder %v12180_v34, %v9343_v50  ;;  %v12181_v47 = vld [vmem:[#allocation82_spill] sm:$0xff]  ;;  %vm2631_vm9 = vcmp.eq.f32.partialorder %v9239_v26, %v9423_v15 }
 0x34b   :  { %v2711_v7 = vsel %vm2616_vm2, %v9405_v29, 64  ;;  %v2704_v23 = vsel %vm2609_vm6, %v9293_v18, 64  ;;  %vm2623_vm2 = vcmp.eq.f32.partialorder %v12181_v47, %v9391_v25  ;;  %vm2625_vm6 = vcmp.eq.f32.partialorder %v9194_v4, %v9391_v25 }
 0x34d   :  { %2804 = vperm.xlu0 %7140, %v2695_v9   ;;  %2885 = vperm.xlu1 %7139, %v2722_v20   ;;  %v2696_v9 = vsel %vm2601_vm8, %v9293_v18, 64  ;;  %v2710_v20 = vsel %vm2615_vm7, %v12157_v39, 64  ;;  %vm2630_vm8 = vcmp.eq.f32.partialorder %v9207_v57, %v9423_v15  ;;  %vm2617_vm7 = vcmp.eq.f32.partialorder %v9169_v13, %v9367_v63 }
 0x34e   :  { %v2725_v19 = vsel %vm2630_vm8, %v12153_v48, 64  ;;  %v2712_v55 = vsel %vm2617_vm7, %v9293_v18, 64  ;;  %vm2637_vm8 = vcmp.eq.f32.partialorder %v9227_v33, %v9459_v6  ;;  %v2726_v57 = vsel %vm2631_vm9, %v12157_v39, 64 }
 0x34f   :  { %v2732_v50 = vsel %vm2637_vm8, %v12152_v14, 64  ;;  %vm2624_vm7 = vcmp.eq.f32.partialorder %v9185_v2, %v9391_v25  ;;  %v2720_v13 = vsel %vm2625_vm6, %v9293_v18, 64  ;;  %vm2638_vm9 = vcmp.eq.f32.partialorder %v9222_v22, %v9459_v6 }
 0x350   :  { %v2719_v63 = vsel %vm2624_vm7, %v9405_v29, 64  ;;  %v2733_v26 = vsel %vm2638_vm9, %v12153_v48, 64  ;;  %vm2640_vm8 = vcmp.eq.f32.partialorder %v9269_v42, %v9459_v6  ;;  %vm2632_vm6 = vcmp.eq.f32.partialorder %v9257_v21, %v9423_v15 }
 0x351   :  { %2846 = vperm.xlu0 %7140, %v2709_v37   ;;  %2783 = vperm.xlu1 %7139, %v2688_v52   ;;  %v2718_v37 = vsel %vm2623_vm2, %v12157_v39, 64  ;;  %vm2639_vm2 = vcmp.eq.f32.partialorder %v9249_v11, %v9459_v6  ;;  %v2735_v2 = vsel %vm2640_vm8, %v9405_v29, 64  ;;  %v2727_v4 = vsel %vm2632_vm6, %v9405_v29, 64 }
 0x352   :  { %v2734_v33 = vsel %vm2639_vm2, %v12157_v39, 64  ;;  %vm2633_vm7 = vcmp.eq.f32.partialorder %v9252_v0, %v9423_v15  ;;  %vm2641_vm2 = vcmp.eq.f32.partialorder %v9262_v44, %v9459_v6 }
 0x353   :  { %v2728_v14 = vsel %vm2633_vm7, %v9293_v18, 64  ;;  %v2736_v48 = vsel %vm2641_vm2, %v9293_v18, 64 }
 0x355   :  { %2888 = vperm.xlu0 %7140, %v2723_v61   ;;  %2825 = vperm.xlu1 %7139, %v2702_v36  }
 0x359   :  { %2909 = vperm.xlu0 %7140, %v2730_v5   ;;  %2867 = vperm.xlu1 %7139, %v2716_v59  }
 0x35d   :  { %2828 = vperm.xlu0 %7140, %v2703_v49   ;;  %2906 = vperm.xlu1 %7139, %v2729_v54  }
 0x361   :  { %2870 = vperm.xlu0 %7140, %v2717_v30   ;;  %2807 = vperm.xlu1 %7139, %v2696_v9  }
 0x365   :  { %2912 = vperm.xlu0 %7140, %v2731_v56   ;;  %2849 = vperm.xlu1 %7139, %v2710_v20  }
 0x369   :  { %2852 = vperm.xlu0 %7140, %v2711_v7   ;;  %2891 = vperm.xlu1 %7139, %v2724_v32  }
 0x36d   :  { %2894 = vperm.xlu0 %7140, %v2725_v19   ;;  %2831 = vperm.xlu1 %7139, %v2704_v23  }
 0x371   :  { %2855 = vperm.xlu0 %7140, %v2712_v55   ;;  %2873 = vperm.xlu1 %7139, %v2718_v37  }
 0x375   :  { %2897 = vperm.xlu0 %7140, %v2726_v57   ;;  %2915 = vperm.xlu1 %7139, %v2732_v50  }
 0x379   :  { %2879 = vperm.xlu0 %7140, %v2720_v13   ;;  %2876 = vperm.xlu1 %7139, %v2719_v63  }
 0x37d   :  { %2921 = vperm.xlu0 %7140, %v2734_v33   ;;  %2918 = vperm.xlu1 %7139, %v2733_v26  }
 0x381   :  { %2924 = vperm.xlu0 %7140, %v2735_v2   ;;  %2900 = vperm.xlu1 %7139, %v2727_v4  }
 0x384   :  { %v9535_v22 = vpop.permute.xlu0 %2741  ;;  %v9537_v11 = vpop.permute.xlu1 %2738 }
 0x385   :  { %2903 = vperm.xlu1 %7139, %v2728_v14   ;;  %v2936_v24 = vrot.slane %v9535_v22, %v8843_v43  ;;  %v2932_v1 = vrot.slane %v9537_v11, %v8834_v3 }
 0x387   :  { %v2937_v11 = vsel %vm2202_vm10, %v2936_v24, %v2932_v1 }
 0x388   :  { %v9542_v21 = vpop.permute.xlu0 %2744  ;;  %v9544_v42 = vpop.permute.xlu1 %2762 }
 0x389   :  { %2927 = vperm.xlu1 %7139, %v2736_v48   ;;  %v2941_v46 = vrot.slane %v9542_v21, %v12185_v27 }
 0x38b   :  { %v2942_v1 = vsel %vm2209_vm11, %v2941_v46, %v2937_v11 }
 0x38c   :  { %v9547_v39 = vpop.permute.xlu0 %2786  ;;  %v2766_v0 = vpop.permute.xlu1 %2765 }
 0x38d   :  { %v2975_v8 = vrot.slane %v2766_v0, %v8843_v43 }
 0x390   :  { %v9549_v25 = vpop.permute.xlu0 %2747  ;;  %v2769_v29 = vpop.permute.xlu1 %2768 }
 0x391   :  { %v2980_v58 = vrot.slane %v2769_v29, %v12185_v27  ;;  %v2946_v29 = vrot.slane %v9549_v25, %v8863_v51 }
 0x394   :  { %v9551_v15 = vpop.permute.xlu0 %2792  ;;  %v2790_v52 = vpop.permute.xlu1 %2789 }
 0x395   :  { %v3014_v41 = vrot.slane %v2790_v52, %v8843_v43  ;;  %v3019_v52 = vrot.slane %v9551_v15, %v12185_v27 }
 0x398   :  { %v9553_v17 = vpop.permute.xlu0 %2813  ;;  %v2772_v61 = vpop.permute.xlu1 %2771 }
 0x399   :  { %v2985_v22 = vrot.slane %v2772_v61, %v8863_v51 }
 0x39c   :  { %v9555_v44 = vpop.permute.xlu0 %2774  ;;  %v9557_v6 = vpop.permute.xlu1 %2810 }
 0x39d   :  { %v3049_v61 = vrot.slane %v9557_v6, %v8834_v3 }
 0x3a0   :  { %v9559_v36 = vpop.permute.xlu0 %2816  ;;  %v9561_v18 = vpop.permute.xlu1 %2750 }
 0x3a1   :  { %v3058_v15 = vrot.slane %v9559_v36, %v12185_v27  ;;  %v2947_v36 = vsel %vm2216_vm12, %v2946_v29, %v2942_v1 }
 0x3a4   :  { %v9563_v60 = vpop.permute.xlu0 %2837  ;;  %v9565_v5 = vpop.permute.xlu1 %2795 }
 0x3a5   :  { %v3024_v46 = vrot.slane %v9565_v5, %v8863_v51 }
 0x3a8   :  { %v9567_v59 = vpop.permute.xlu0 %2777  ;;  %v9569_v12 = vpop.permute.xlu1 %2834 }
 0x3ac   :  { %v9571_v49 = vpop.permute.xlu0 %2819  ;;  %v9573_v54 = vpop.permute.xlu1 %2753 }
 0x3ad   :  { %v2956_v5 = vrot.slane %v9573_v54, %v8875_v62 }
 0x3b0   :  { %v9575_v38 = vpop.permute.xlu0 %2858  ;;  %v9577_v35 = vpop.permute.xlu1 %2798 }
 0x3b4   :  { %v9579_v30 = vpop.permute.xlu0 %2756  ;;  %v9581_v9 = vpop.permute.xlu1 %2840 }
 0x3b5   :  { %v3097_v29 = vrot.slane %v9581_v9, %v12185_v27 }
 0x3b8   :  { %v9583_v40 = vpop.permute.xlu0 %2801  ;;  %v9585_v56 = vpop.permute.xlu1 %2861 }
 0x3b9   :  { %v3034_v54 = vrot.slane %v9583_v40, %v8875_v62  ;;  %v3131_v9 = vrot.slane %v9585_v56, %v8843_v43 }
 0x3bc   :  { %v9587_v20 = vpop.permute.xlu0 %2843  ;;  %v9589_v7 = vpop.permute.xlu1 %2780 }
 0x3bd   :  { %v3102_v40 = vrot.slane %v9587_v20, %v8863_v51 }
 0x3c0   :  { %v9591_v32 = vpop.permute.xlu0 %2882  ;;  %v9593_v34 = vpop.permute.xlu1 %2822 }
 0x3c1   :  { %v3068_v20 = vrot.slane %v9593_v34, %v8856_v53 }
 0x3c4   :  { %v9595_v19 = vpop.permute.xlu0 %2759  ;;  %v9597_v23 = vpop.permute.xlu1 %2864 }
 0x3c8   :  { %v9599_v47 = vpop.permute.xlu0 %2804  ;;  %v9601_v55 = vpop.permute.xlu1 %2885 }
 0x3cc   :  { %v9603_v37 = vpop.permute.xlu0 %2846  ;;  %v9605_v57 = vpop.permute.xlu1 %2783 }
 0x3d0   :  { %v9607_v50 = vpop.permute.xlu0 %2888  ;;  %v9609_v13 = vpop.permute.xlu1 %2825 }
 0x3d4   :  { %v9611_v63 = vpop.permute.xlu0 %2909  ;;  %v9613_v33 = vpop.permute.xlu1 %2867 }
 0x3d8   :  { %v9615_v26 = vpop.permute.xlu0 %2828  ;;  %v9617_v2 = vpop.permute.xlu1 %2906 }
 0x3dc   :  { %v9619_v4 = vpop.permute.xlu0 %2870  ;;  %v9621_v14 = vpop.permute.xlu1 %2807 }
 0x3e0   :  { %v9623_v48 = vpop.permute.xlu0 %2912  ;;  %v9625_v28 = vpop.permute.xlu1 %2849 }
 0x3e1   :  { %12182 = vst [vmem:[#allocation86_spill] sm:$0xff] %v9623_v48  ;;  %v2971_v48 = vrot.slane %v9544_v42, %v8834_v3  ;;  %v2990_v42 = vrot.slane %v9555_v44, %v8856_v53  ;;  %v2951_v44 = vrot.slane %v9561_v18, %v8856_v53 }
 0x3e3   :  { %v2976_v21 = vsel %vm2202_vm10, %v2975_v8, %v2971_v48  ;;  %v3053_v8 = vrot.slane %v9553_v17, %v8843_v43 }
 0x3e4   :  { %v9631_v31 = vpop.permute.xlu0 %2852  ;;  %v9633_v16 = vpop.permute.xlu1 %2891  ;;  %v2981_v24 = vsel %vm2209_vm11, %v2980_v58, %v2976_v21  ;;  %v2995_v58 = vrot.slane %v9567_v59, %v8875_v62  ;;  %v2952_v21 = vsel %vm2223_vm13, %v2951_v44, %v2947_v36 }
 0x3e5   :  { %12183 = vst [vmem:[#allocation96_spill] sm:$0xff] %v9631_v31  ;;  %12184 = vst [vmem:[#allocation75_spill] sm:$0xff] %v9633_v16  ;;  %v3010_v31 = vrot.slane %v9547_v39, %v8834_v3  ;;  %v2986_v25 = vsel %vm2216_vm12, %v2985_v22, %v2981_v24  ;;  %v3054_v59 = vsel %vm2202_vm10, %v3053_v8, %v3049_v61 }
 0x3e6   :  { %v2991_v18 = vsel %vm2223_vm13, %v2990_v42, %v2986_v25  ;;  %v2961_v22 = vrot.slane %v9579_v30, %v8897_v10  ;;  %v3059_v11 = vsel %vm2209_vm11, %v3058_v15, %v3054_v59  ;;  %v2957_v24 = vsel %vm2230_vm14, %v2956_v5, %v2952_v21 }
 0x3e7   :  { %v3015_v39 = vsel %vm2202_vm10, %v3014_v41, %v3010_v31  ;;  %v3088_v41 = vrot.slane %v9569_v12, %v8834_v3  ;;  %v3063_v31 = vrot.slane %v9571_v49, %v8863_v51  ;;  %v3092_v12 = vrot.slane %v9563_v60, %v8843_v43 }
 0x3e8   :  { %v9646_v16 = vpop.permute.xlu0 %2894  ;;  %v9648_v0 = vpop.permute.xlu1 %2831  ;;  %v3020_v48 = vsel %vm2209_vm11, %v3019_v52, %v3015_v39  ;;  %v3029_v49 = vrot.slane %v9577_v35, %v8856_v53  ;;  %v2996_v60 = vsel %vm2230_vm14, %v2995_v58, %v2991_v18  ;;  %v3000_v39 = vrot.slane %v9589_v7, %v8897_v10 }
 0x3e9   :  { %v3025_v52 = vsel %vm2216_vm12, %v3024_v46, %v3020_v48  ;;  %v3093_v42 = vsel %vm2202_vm10, %v3092_v12, %v3088_v41  ;;  %v3064_v35 = vsel %vm2216_vm12, %v3063_v31, %v3059_v11  ;;  %v3127_v61 = vrot.slane %v9575_v38, %v8834_v3 }
 0x3ea   :  { %v3030_v8 = vsel %vm2223_vm13, %v3029_v49, %v3025_v52  ;;  %v2962_v25 = vsel %vm2237_vm15, %v2961_v22, %v2957_v24  ;;  %v3005_v15 = vrot.slane %v9605_v57, %v8894_v45  ;;  %v3098_v44 = vsel %vm2209_vm11, %v3097_v29, %v3093_v42  ;;  %v12187_v42 = vld [vmem:[#allocation86_spill] sm:$0xff] }
 0x3eb   :  { %v3035_v56 = vsel %vm2230_vm14, %v3034_v54, %v3030_v8  ;;  %v2966_v7 = vrot.slane %v9595_v19, %v8894_v45  ;;  %v3136_v38 = vrot.slane %v9597_v23, %v12185_v27  ;;  %v3039_v46 = vrot.slane %v9599_v47, %v8897_v10 }
 0x3ec   :  { %v9677_v17 = vpop.permute.xlu0 %2855  ;;  %v9679_v6 = vpop.permute.xlu1 %2873  ;;  %v3170_v58 = vrot.slane %v9601_v55, %v8843_v43  ;;  %v3107_v57 = vrot.slane %v9603_v37, %v8856_v53  ;;  %v3132_v34 = vsel %vm2202_vm10, %v3131_v9, %v3127_v61  ;;  %v3103_v36 = vsel %vm2216_vm12, %v3102_v40, %v3098_v44  ;;  %v12188_v24 = vld [vmem:[#allocation96_spill] sm:$0xff] }
 0x3ed   :  { %v3001_v19 = vsel %vm2237_vm15, %v3000_v39, %v2996_v60  ;;  %v3166_v23 = vrot.slane %v9591_v32, %v8834_v3  ;;  %v3175_v55 = vrot.slane %v9607_v50, %v12185_v27  ;;  %v3073_v37 = vrot.slane %v9609_v13, %v8875_v62 }
 0x3ee   :  { %v3006_v47 = vsel %vm2244_vm0, %v3005_v15, %v3001_v19  ;;  %v3141_v18 = vrot.slane %v9613_v33, %v8863_v51  ;;  %v3069_v48 = vsel %vm2223_vm13, %v3068_v20, %v3064_v35  ;;  %v2967_v5 = vsel %vm2244_vm0, %v2966_v7, %v2962_v25 }
 0x3ef   :  { %v3078_v59 = vrot.slane %v9615_v26, %v8897_v10  ;;  %v3205_v32 = vrot.slane %v9617_v2, %v8834_v3  ;;  %v3137_v12 = vsel %vm2209_vm11, %v3136_v38, %v3132_v34  ;;  %v3040_v50 = vsel %vm2237_vm15, %v3039_v46, %v3035_v56 }
 0x3f0   :  { %v9703_v1 = vpop.permute.xlu0 %2897  ;;  %v9705_v30 = vpop.permute.xlu1 %2915  ;;  %v3171_v49 = vsel %vm2202_vm10, %v3170_v58, %v3166_v23  ;;  %v3108_v13 = vsel %vm2223_vm13, %v3107_v57, %v3103_v36  ;;  %v3241_v33 = vsel %vm2519_vm1, %v3006_v47, %v2967_v5  ;;  %v3209_v11 = vrot.slane %v9611_v63, %v8843_v43  ;;  %v12186_v63 = vld [vmem:[#allocation75_spill] sm:$0xff] }
 0x3f1   :  { %v3146_v26 = vrot.slane %v9619_v4, %v8856_v53  ;;  %v3044_v3 = vrot.slane %v9621_v14, %v8894_v45  ;;  %v3176_v21 = vsel %vm2209_vm11, %v3175_v55, %v3171_v49  ;;  %v3074_v29 = vsel %vm2230_vm14, %v3073_v37, %v3069_v48 }
 0x3f2   :  { %v3142_v54 = vsel %vm2216_vm12, %v3141_v18, %v3137_v12  ;;  %v3112_v52 = vrot.slane %v9625_v28, %v8875_v62  ;;  %v3079_v60 = vsel %vm2237_vm15, %v3078_v59, %v3074_v29  ;;  %v3210_v43 = vsel %vm2202_vm10, %v3209_v11, %v3205_v32 }
 0x3f3   :  { %v3180_v4 = vrot.slane %v12186_v63, %v8863_v51  ;;  %v3151_v14 = vrot.slane %v9679_v6, %v8875_v62  ;;  %v3214_v35 = vrot.slane %v12187_v42, %v12185_v27  ;;  %v3117_v9 = vrot.slane %v12188_v24, %v8897_v10 }
 0x3f4   :  { %v9734_v41 = vpop.permute.xlu0 %2879  ;;  %v2877_v31 = vpop.permute.xlu1 %2876  ;;  %v3185_v40 = vrot.slane %v9646_v16, %v8856_v53  ;;  %v3147_v61 = vsel %vm2223_vm13, %v3146_v26, %v3142_v54  ;;  %v3045_v8 = vsel %vm2244_vm0, %v3044_v3, %v3040_v50  ;;  %v3083_v25 = vrot.slane %v9648_v0, %v8894_v45 }
 0x3f5   :  { %v3156_v28 = vrot.slane %v2877_v31, %v8897_v10  ;;  %v3219_v6 = vrot.slane %v9705_v30, %v8863_v51  ;;  %v3113_v27 = vsel %vm2230_vm14, %v3112_v52, %v3108_v13  ;;  %v3122_v15 = vrot.slane %v9677_v17, %v8894_v45 }
 0x3f6   :  { %v3190_v16 = vrot.slane %v9703_v1, %v8875_v62  ;;  %v3181_v56 = vsel %vm2216_vm12, %v3180_v4, %v3176_v21  ;;  %v3152_v20 = vsel %vm2230_vm14, %v3151_v14, %v3147_v61  ;;  %v3161_v0 = vrot.slane %v9734_v41, %v8894_v45 }
 0x3f7   :  { %v3215_v30 = vsel %vm2209_vm11, %v3214_v35, %v3210_v43  ;;  %v3118_v38 = vsel %vm2237_vm15, %v3117_v9, %v3113_v27  ;;  %v3186_v17 = vsel %vm2223_vm13, %v3185_v40, %v3181_v56  ;;  %v3157_v1 = vsel %vm2237_vm15, %v3156_v28, %v3152_v20  ;;  %v12194_v43 = vld [vmem:[#allocation85_spill] sm:$0xff] }
 0x3f8   :  { %v2919_v22 = vpop.permute.xlu1 %2918  ;;  %v2922_v2 = vpop.permute.xlu0 %2921  ;;  %v3220_v58 = vsel %vm2216_vm12, %v3219_v6, %v3215_v30  ;;  %v3123_v31 = vsel %vm2244_vm0, %v3122_v15, %v3118_v38  ;;  %v3191_v34 = vsel %vm2230_vm14, %v3190_v16, %v3186_v17  ;;  %v3242_v23 = vsel %vm2521_vm3, %v3045_v8, %v3241_v33 }
 0x3f9   :  { %v3224_v44 = vrot.slane %v2919_v22, %v8856_v53  ;;  %v3084_v53 = vsel %vm2244_vm0, %v3083_v25, %v3079_v60  ;;  %v3229_v57 = vrot.slane %v2922_v2, %v8875_v62  ;;  %v3162_v47 = vsel %vm2244_vm0, %v3161_v0, %v3157_v1  ;;  %v12193_v60 = vld [vmem:[#allocation5_spill] sm:$0xff] }
 0x3fa   :  { %v3243_v37 = vsel %vm2523_vm4, %v3084_v53, %v3242_v23  ;;  %vm12189_vm10 = vcmask 1045509   ;;  %vm12190_vm11 = vcmask 1046534   ;;  %vm12191_vm12 = vcmask 1047559  }
 0x3fb   :  { %v3225_v36 = vsel %vm2223_vm13, %v3224_v44, %v3220_v58  ;;  %v3244_v48 = vsel %vm2525_vm5, %v3123_v31, %v3243_v37  ;;  %vm12192_vm13 = vcmask 523264   ;;  %vm3263_vm5 = vcmp.eq.s32.totalorder %v12193_v60, 0 }
 0x3fc   :  { %v2901_v39 = vpop.permute.xlu1 %2900  ;;  %v2925_v7 = vpop.permute.xlu0 %2924  ;;  %v3230_v5 = vsel %vm2230_vm14, %v3229_v57, %v3225_v36  ;;  %vm3287_vm9 = vcmp.eq.s32.totalorder %v12193_v60, 1 }
 0x3fd   :  { %v3195_v51 = vrot.slane %v2901_v39, %v8897_v10  ;;  %v3234_v19 = vrot.slane %v2925_v7, %v8897_v10  ;;  %v3245_v10 = vsel %vm12189_vm10, %v3162_v47, %v3244_v48 }
 0x3ff   :  { %v3196_v55 = vsel %vm2237_vm15, %v3195_v51, %v3191_v34  ;;  %v3235_v32 = vsel %vm2237_vm15, %v3234_v19, %v3230_v5 }
 0x400   :  { %v2904_v46 = vpop.permute.xlu1 %2903 }
 0x401   :  { %v3200_v41 = vrot.slane %v2904_v46, %v8894_v45 }
 0x403   :  { %v3201_v62 = vsel %vm2244_vm0, %v3200_v41, %v3196_v55 }
 0x404   :  { %v2928_v18 = vpop.permute.xlu1 %2927  ;;  %v3246_v12 = vsel %vm12190_vm11, %v3201_v62, %v3245_v10  ;;  %vm3311_vm11 = vcmp.eq.s32.totalorder %v12193_v60, 2 }
 0x405   :  { %v3239_v59 = vrot.slane %v2928_v18, %v8894_v45 }
 0x407   :  { %v3240_v50 = vsel %vm2244_vm0, %v3239_v59, %v3235_v32  ;;  %vm12195_vm0 = vmmov %vm12192_vm13 }
 0x408   :  { %v3247_v49 = vsel %vm12191_vm12, %v3240_v50, %v3246_v12  ;;  %vm12196_vm3 = vmmov %vm12195_vm0 }
 0x409   :  { %v3248_v13 = vsel %vm12192_vm13, %v3247_v49, 2147483647  ;;  %vm12197_vm6 = vmmov %vm12195_vm0 }
 0x40a   :  { %v3250_v22 = vshra.s32 %v3248_v13, 16  ;;  %v3249_v11 = vand.u32 65535, %v3248_v13  ;;  %vm12198_vm2 = vmmov %vm12195_vm0 }
 0x40b   :  { %vm12199_vm13 = vmmov %vm12195_vm0 }
 0x40c   :  { %v3252_v33 = vcvt.s32.f32 %v3250_v22  ;;  %v3251_v3 = vcvt.s32.f32 %v3249_v11 }
 0x40e   :  { %3253 = vmin.xlane.f32.xlu0 %v3252_v33 }
 0x497   :  { %v3254_v26 = vpop.xlane.xlu0 %3253 }
 0x498   :  { %vm3255_vm14 = vcmp.eq.f32.partialorder %v3252_v33, %v3254_v26  ;;  %v3260_v2 = vcvt.f32.s32 %v3254_v26 }
 0x499   :  { %v3256_v45 = vsel %vm3255_vm14, %v3251_v3, inf }
 0x49a   :  { %3257 = vmin.xlane.f32.xlu1 %v3256_v45  ;;  %v3261_v29 = vshll.u32 %v3260_v2, 16 }
 0x523   :  { %v3258_v21 = vpop.xlane.xlu1 %3257 }
 0x524   :  { %v3259_v54 = vcvt.f32.s32 %v3258_v21 }
 0x526   :  { %v3262_v52 = vadd.s32 %v3261_v29, %v3259_v54 }
 0x528   :  { %vm3265_vm15 = vcmp.eq.s32.totalorder %v12193_v60, %v3262_v52  ;;  %v3264_v16 = vsel %vm3263_vm5, %v3262_v52, 64 }
 0x529   :  { %v3266_v63 = vsel %vm3265_vm15, -inf, %v12194_v43  ;;  %vm12200_vm15 = vmmov %vm12195_vm0 }
 0x52a   :  { %v3267_v4 = vsel %vm12195_vm0, %v3266_v63, -inf }
 0x52b   :  { %3268 = vmax.xlane.f32.xlu0 %v3267_v4 }
 0x5b4   :  { %v3269_v14 = vpop.xlane.xlu0 %3268 }
 0x5b5   :  { %vm3270_vm1 = vcmp.eq.f32.partialorder %v3266_v63, %v3269_v14 }
 0x5b6   :  { %v3271_v42 = vsel %vm3270_vm1, %v12193_v60, 64  ;;  %vm3335_vm1 = vcmp.eq.s32.totalorder %v12193_v60, 3 }
 0x5b7   :  { %v3272_v35 = vsel %vm12196_vm3, %v3271_v42, 2147483647 }
 0x5b8   :  { %v3274_v24 = vshra.s32 %v3272_v35, 16  ;;  %v3273_v40 = vand.u32 65535, %v3272_v35 }
 0x5ba   :  { %v3276_v9 = vcvt.s32.f32 %v3274_v24  ;;  %v3275_v39 = vcvt.s32.f32 %v3273_v40 }
 0x5bc   :  { %3277 = vmin.xlane.f32.xlu0 %v3276_v9 }
 0x645   :  { %v3278_v28 = vpop.xlane.xlu0 %3277 }
 0x646   :  { %vm3279_vm4 = vcmp.eq.f32.partialorder %v3276_v9, %v3278_v28  ;;  %v3284_v8 = vcvt.f32.s32 %v3278_v28 }
 0x647   :  { %v3280_v61 = vsel %vm3279_vm4, %v3275_v39, inf  ;;  %vm12201_vm4 = vmmov %vm12198_vm2 }
 0x648   :  { %3281 = vmin.xlane.f32.xlu0 %v3280_v61  ;;  %v3285_v6 = vshll.u32 %v3284_v8, 16 }
 0x6d1   :  { %v3282_v25 = vpop.xlane.xlu0 %3281 }
 0x6d2   :  { %v3283_v27 = vcvt.f32.s32 %v3282_v25 }
 0x6d4   :  { %v3286_v15 = vadd.s32 %v3285_v6, %v3283_v27 }
 0x6d6   :  { %v3288_v44 = vsel %vm3287_vm9, %v3286_v15, %v3264_v16  ;;  %vm3289_vm8 = vcmp.eq.s32.totalorder %v12193_v60, %v3286_v15  ;;  %vm12202_vm9 = vmmov %vm12198_vm2 }
 0x6d7   :  { %v3290_v56 = vsel %vm3289_vm8, -inf, %v3266_v63 }
 0x6d8   :  { %v3291_v20 = vsel %vm12197_vm6, %v3290_v56, -inf  ;;  %vm3359_vm6 = vcmp.eq.s32.totalorder %v12193_v60, 4 }
 0x6d9   :  { %3292 = vmax.xlane.f32.xlu1 %v3291_v20 }
 0x762   :  { %v3293_v0 = vpop.xlane.xlu1 %3292 }
 0x763   :  { %vm3294_vm7 = vcmp.eq.f32.partialorder %v3290_v56, %v3293_v0 }
 0x764   :  { %v3295_v7 = vsel %vm3294_vm7, %v12193_v60, 64 }
 0x765   :  { %v3296_v51 = vsel %vm12198_vm2, %v3295_v7, 2147483647 }
 0x766   :  { %v3298_v30 = vshra.s32 %v3296_v51, 16  ;;  %v3297_v17 = vand.u32 65535, %v3296_v51 }
 0x768   :  { %v3300_v38 = vcvt.s32.f32 %v3298_v30  ;;  %v3299_v46 = vcvt.s32.f32 %v3297_v17 }
 0x76a   :  { %3301 = vmin.xlane.f32.xlu0 %v3300_v38 }
 0x7f3   :  { %v3302_v1 = vpop.xlane.xlu0 %3301 }
 0x7f4   :  { %vm3303_vm10 = vcmp.eq.f32.partialorder %v3300_v38, %v3302_v1  ;;  %v3308_v58 = vcvt.f32.s32 %v3302_v1 }
 0x7f5   :  { %v3304_v53 = vsel %vm3303_vm10, %v3299_v46, inf }
 0x7f6   :  { %3305 = vmin.xlane.f32.xlu1 %v3304_v53  ;;  %v3309_v41 = vshll.u32 %v3308_v58, 16 }
 0x87f   :  { %v3306_v57 = vpop.xlane.xlu1 %3305 }
 0x880   :  { %v3307_v31 = vcvt.f32.s32 %v3306_v57 }
 0x882   :  { %v3310_v34 = vadd.s32 %v3309_v41, %v3307_v31 }
 0x884   :  { %v3312_v36 = vsel %vm3311_vm11, %v3310_v34, %v3288_v44  ;;  %vm3313_vm12 = vcmp.eq.s32.totalorder %v12193_v60, %v3310_v34  ;;  %vm12203_vm11 = vmmov %vm12198_vm2 }
 0x885   :  { %v3314_v19 = vsel %vm3313_vm12, -inf, %v3290_v56 }
 0x886   :  { %v3315_v23 = vsel %vm12199_vm13, %v3314_v19, -inf  ;;  %vm3383_vm13 = vcmp.eq.s32.totalorder %v12193_v60, 5 }
 0x887   :  { %3316 = vmax.xlane.f32.xlu0 %v3315_v23 }
 0x910   :  { %v3317_v47 = vpop.xlane.xlu0 %3316 }
 0x911   :  { %vm3318_vm14 = vcmp.eq.f32.partialorder %v3314_v19, %v3317_v47 }
 0x912   :  { %v3319_v55 = vsel %vm3318_vm14, %v12193_v60, 64 }
 0x913   :  { %v3320_v37 = vsel %vm12200_vm15, %v3319_v55, 2147483647  ;;  %vm12204_vm15 = vmmov %vm12198_vm2 }
 0x914   :  { %v3322_v62 = vshra.s32 %v3320_v37, 16  ;;  %v3321_v48 = vand.u32 65535, %v3320_v37 }
 0x916   :  { %v3324_v18 = vcvt.s32.f32 %v3322_v62  ;;  %v3323_v59 = vcvt.s32.f32 %v3321_v48 }
 0x918   :  { %3325 = vmin.xlane.f32.xlu1 %v3324_v18 }
 0x9a1   :  { %v3326_v5 = vpop.xlane.xlu1 %3325 }
 0x9a2   :  { %vm3327_vm0 = vcmp.eq.f32.partialorder %v3324_v18, %v3326_v5  ;;  %v3332_v10 = vcvt.f32.s32 %v3326_v5 }
 0x9a3   :  { %v3328_v32 = vsel %vm3327_vm0, %v3323_v59, inf }
 0x9a4   :  { %3329 = vmin.xlane.f32.xlu0 %v3328_v32  ;;  %v3333_v50 = vshll.u32 %v3332_v10, 16 }
 0xa2d   :  { %v3330_v12 = vpop.xlane.xlu0 %3329 }
 0xa2e   :  { %v3331_v49 = vcvt.f32.s32 %v3330_v12 }
 0xa30   :  { %v3334_v13 = vadd.s32 %v3333_v50, %v3331_v49 }
 0xa32   :  { %v3336_v22 = vsel %vm3335_vm1, %v3334_v13, %v3312_v36  ;;  %vm3337_vm3 = vcmp.eq.s32.totalorder %v12193_v60, %v3334_v13  ;;  %vm12205_vm1 = vmmov %vm12198_vm2 }
 0xa33   :  { %v3338_v33 = vsel %vm3337_vm3, -inf, %v3314_v19 }
 0xa34   :  { %v3339_v11 = vsel %vm12201_vm4, %v3338_v33, -inf  ;;  %vm3407_vm4 = vcmp.eq.s32.totalorder %v12193_v60, 6 }
 0xa35   :  { %3340 = vmax.xlane.f32.xlu1 %v3339_v11 }
 0xabe   :  { %v3341_v26 = vpop.xlane.xlu1 %3340 }
 0xabf   :  { %vm3342_vm5 = vcmp.eq.f32.partialorder %v3338_v33, %v3341_v26 }
 0xac0   :  { %v3343_v3 = vsel %vm3342_vm5, %v12193_v60, 64 }
 0xac1   :  { %v3344_v45 = vsel %vm12202_vm9, %v3343_v3, 2147483647  ;;  %vm12206_vm9 = vmmov %vm12205_vm1 }
 0xac2   :  { %v3346_v2 = vshra.s32 %v3344_v45, 16  ;;  %v3345_v29 = vand.u32 65535, %v3344_v45 }
 0xac4   :  { %v3348_v21 = vcvt.s32.f32 %v3346_v2  ;;  %v3347_v52 = vcvt.s32.f32 %v3345_v29 }
 0xac6   :  { %3349 = vmin.xlane.f32.xlu0 %v3348_v21 }
 0xb4f   :  { %v3350_v54 = vpop.xlane.xlu0 %3349 }
 0xb50   :  { %vm3351_vm8 = vcmp.eq.f32.partialorder %v3348_v21, %v3350_v54  ;;  %v3356_v63 = vcvt.f32.s32 %v3350_v54 }
 0xb51   :  { %v3352_v43 = vsel %vm3351_vm8, %v3347_v52, inf }
 0xb52   :  { %3353 = vmin.xlane.f32.xlu1 %v3352_v43  ;;  %v3357_v14 = vshll.u32 %v3356_v63, 16 }
 0xbdb   :  { %v3354_v4 = vpop.xlane.xlu1 %3353 }
 0xbdc   :  { %v3355_v42 = vcvt.f32.s32 %v3354_v4 }
 0xbde   :  { %v3358_v35 = vadd.s32 %v3357_v14, %v3355_v42 }
 0xbe0   :  { %v3360_v24 = vsel %vm3359_vm6, %v3358_v35, %v3336_v22  ;;  %vm3361_vm7 = vcmp.eq.s32.totalorder %v12193_v60, %v3358_v35  ;;  %vm12207_vm6 = vmmov %vm12205_vm1 }
 0xbe1   :  { %v3362_v9 = vsel %vm3361_vm7, -inf, %v3338_v33 }
 0xbe2   :  { %v3363_v40 = vsel %vm12198_vm2, %v3362_v9, -inf  ;;  %vm3431_vm2 = vcmp.eq.s32.totalorder %v12193_v60, 7 }
 0xbe3   :  { %3364 = vmax.xlane.f32.xlu0 %v3363_v40 }
 0xc6c   :  { %v3365_v28 = vpop.xlane.xlu0 %3364 }
 0xc6d   :  { %vm3366_vm10 = vcmp.eq.f32.partialorder %v3362_v9, %v3365_v28 }
 0xc6e   :  { %v3367_v39 = vsel %vm3366_vm10, %v12193_v60, 64 }
 0xc6f   :  { %v3368_v61 = vsel %vm12203_vm11, %v3367_v39, 2147483647  ;;  %vm12208_vm11 = vmmov %vm12205_vm1 }
 0xc70   :  { %v3370_v8 = vshra.s32 %v3368_v61, 16  ;;  %v3369_v6 = vand.u32 65535, %v3368_v61 }
 0xc72   :  { %v3372_v25 = vcvt.s32.f32 %v3370_v8  ;;  %v3371_v15 = vcvt.s32.f32 %v3369_v6 }
 0xc74   :  { %3373 = vmin.xlane.f32.xlu1 %v3372_v25 }
 0xcfd   :  { %v3374_v27 = vpop.xlane.xlu1 %3373 }
 0xcfe   :  { %vm3375_vm12 = vcmp.eq.f32.partialorder %v3372_v25, %v3374_v27  ;;  %v3380_v44 = vcvt.f32.s32 %v3374_v27 }
 0xcff   :  { %v3376_v16 = vsel %vm3375_vm12, %v3371_v15, inf }
 0xd00   :  { %3377 = vmin.xlane.f32.xlu0 %v3376_v16  ;;  %v3381_v20 = vshll.u32 %v3380_v44, 16 }
 0xd89   :  { %v3378_v56 = vpop.xlane.xlu0 %3377 }
 0xd8a   :  { %v3379_v0 = vcvt.f32.s32 %v3378_v56 }
 0xd8c   :  { %v3382_v7 = vadd.s32 %v3381_v20, %v3379_v0 }
 0xd8e   :  { %v3384_v51 = vsel %vm3383_vm13, %v3382_v7, %v3360_v24  ;;  %vm3385_vm14 = vcmp.eq.s32.totalorder %v12193_v60, %v3382_v7  ;;  %vm12209_vm13 = vmmov %vm12205_vm1 }
 0xd8f   :  { %v3386_v30 = vsel %vm3385_vm14, -inf, %v3362_v9 }
 0xd90   :  { %v3387_v38 = vsel %vm12204_vm15, %v3386_v30, -inf  ;;  %vm3455_vm15 = vcmp.eq.s32.totalorder %v12193_v60, 8 }
 0xd91   :  { %3388 = vmax.xlane.f32.xlu1 %v3387_v38 }
 0xe1a   :  { %v3389_v17 = vpop.xlane.xlu1 %3388 }
 0xe1b   :  { %vm3390_vm0 = vcmp.eq.f32.partialorder %v3386_v30, %v3389_v17 }
 0xe1c   :  { %v3391_v1 = vsel %vm3390_vm0, %v12193_v60, 64 }
 0xe1d   :  { %v3392_v46 = vsel %vm12205_vm1, %v3391_v1, 2147483647 }
 0xe1e   :  { %v3394_v53 = vshra.s32 %v3392_v46, 16  ;;  %v3393_v57 = vand.u32 65535, %v3392_v46 }
 0xe20   :  { %v3396_v58 = vcvt.s32.f32 %v3394_v53  ;;  %v3395_v31 = vcvt.s32.f32 %v3393_v57 }
 0xe22   :  { %3397 = vmin.xlane.f32.xlu0 %v3396_v58 }
 0xeab   :  { %v3398_v41 = vpop.xlane.xlu0 %3397 }
 0xeac   :  { %vm3399_vm3 = vcmp.eq.f32.partialorder %v3396_v58, %v3398_v41  ;;  %v3404_v36 = vcvt.f32.s32 %v3398_v41 }
 0xead   :  { %v3400_v34 = vsel %vm3399_vm3, %v3395_v31, inf }
 0xeae   :  { %3401 = vmin.xlane.f32.xlu1 %v3400_v34  ;;  %v3405_v23 = vshll.u32 %v3404_v36, 16 }
 0xf37   :  { %v3402_v19 = vpop.xlane.xlu1 %3401 }
 0xf38   :  { %v3403_v47 = vcvt.f32.s32 %v3402_v19 }
 0xf3a   :  { %v3406_v55 = vadd.s32 %v3405_v23, %v3403_v47 }
 0xf3c   :  { %v3408_v37 = vsel %vm3407_vm4, %v3406_v55, %v3384_v51  ;;  %vm3409_vm5 = vcmp.eq.s32.totalorder %v12193_v60, %v3406_v55  ;;  %vm12210_vm4 = vmmov %vm12205_vm1 }
 0xf3d   :  { %v3410_v62 = vsel %vm3409_vm5, -inf, %v3386_v30 }
 0xf3e   :  { %v3411_v18 = vsel %vm12206_vm9, %v3410_v62, -inf  ;;  %vm3479_vm9 = vcmp.eq.s32.totalorder %v12193_v60, 9 }
 0xf3f   :  { %3412 = vmax.xlane.f32.xlu0 %v3411_v18 }
 0xfc8   :  { %v3413_v48 = vpop.xlane.xlu0 %3412 }
 0xfc9   :  { %vm3414_vm8 = vcmp.eq.f32.partialorder %v3410_v62, %v3413_v48 }
 0xfca   :  { %v3415_v5 = vsel %vm3414_vm8, %v12193_v60, 64 }
 0xfcb   :  { %v3416_v59 = vsel %vm12207_vm6, %v3415_v5, 2147483647  ;;  %vm12211_vm6 = vmmov %vm12205_vm1 }
 0xfcc   :  { %v3418_v32 = vshra.s32 %v3416_v59, 16  ;;  %v3417_v12 = vand.u32 65535, %v3416_v59 }
 0xfce   :  { %v3420_v10 = vcvt.s32.f32 %v3418_v32  ;;  %v3419_v49 = vcvt.s32.f32 %v3417_v12 }
 0xfd0   :  { %3421 = vmin.xlane.f32.xlu1 %v3420_v10 }
0x1059   :  { %v3422_v50 = vpop.xlane.xlu1 %3421 }
0x105a   :  { %vm3423_vm7 = vcmp.eq.f32.partialorder %v3420_v10, %v3422_v50  ;;  %v3428_v22 = vcvt.f32.s32 %v3422_v50 }
0x105b   :  { %v3424_v13 = vsel %vm3423_vm7, %v3419_v49, inf }
0x105c   :  { %3425 = vmin.xlane.f32.xlu0 %v3424_v13  ;;  %v3429_v11 = vshll.u32 %v3428_v22, 16 }
0x10e5   :  { %v3426_v33 = vpop.xlane.xlu0 %3425 }
0x10e6   :  { %v3427_v26 = vcvt.f32.s32 %v3426_v33 }
0x10e8   :  { %v3430_v3 = vadd.s32 %v3429_v11, %v3427_v26 }
0x10ea   :  { %v3432_v45 = vsel %vm3431_vm2, %v3430_v3, %v3408_v37  ;;  %vm3433_vm10 = vcmp.eq.s32.totalorder %v12193_v60, %v3430_v3  ;;  %vm12212_vm2 = vmmov %vm12205_vm1 }
0x10eb   :  { %v3434_v2 = vsel %vm3433_vm10, -inf, %v3410_v62 }
0x10ec   :  { %v3435_v21 = vsel %vm12208_vm11, %v3434_v2, -inf  ;;  %vm3503_vm11 = vcmp.eq.s32.totalorder %v12193_v60, 10 }
0x10ed   :  { %3436 = vmax.xlane.f32.xlu1 %v3435_v21 }
0x1176   :  { %v3437_v29 = vpop.xlane.xlu1 %3436 }
0x1177   :  { %vm3438_vm12 = vcmp.eq.f32.partialorder %v3434_v2, %v3437_v29 }
0x1178   :  { %v3439_v54 = vsel %vm3438_vm12, %v12193_v60, 64 }
0x1179   :  { %v3440_v52 = vsel %vm12209_vm13, %v3439_v54, 2147483647  ;;  %vm12213_vm13 = vmmov %vm12205_vm1 }
0x117a   :  { %v3442_v43 = vshra.s32 %v3440_v52, 16  ;;  %v3441_v4 = vand.u32 65535, %v3440_v52 }
0x117c   :  { %v3444_v63 = vcvt.s32.f32 %v3442_v43  ;;  %v3443_v42 = vcvt.s32.f32 %v3441_v4 }
0x117e   :  { %3445 = vmin.xlane.f32.xlu0 %v3444_v63 }
0x1207   :  { %v3446_v14 = vpop.xlane.xlu0 %3445 }
0x1208   :  { %vm3447_vm14 = vcmp.eq.f32.partialorder %v3444_v63, %v3446_v14  ;;  %v3452_v24 = vcvt.f32.s32 %v3446_v14 }
0x1209   :  { %v3448_v35 = vsel %vm3447_vm14, %v3443_v42, inf }
0x120a   :  { %3449 = vmin.xlane.f32.xlu1 %v3448_v35  ;;  %v3453_v40 = vshll.u32 %v3452_v24, 16 }
0x1293   :  { %v3450_v9 = vpop.xlane.xlu1 %3449 }
0x1294   :  { %v3451_v28 = vcvt.f32.s32 %v3450_v9 }
0x1296   :  { %v3454_v39 = vadd.s32 %v3453_v40, %v3451_v28 }
0x1298   :  { %v3456_v61 = vsel %vm3455_vm15, %v3454_v39, %v3432_v45  ;;  %vm3457_vm0 = vcmp.eq.s32.totalorder %v12193_v60, %v3454_v39  ;;  %vm12214_vm15 = vmmov %vm12205_vm1 }
0x1299   :  { %v3458_v8 = vsel %vm3457_vm0, -inf, %v3434_v2 }
0x129a   :  { %v3459_v25 = vsel %vm12205_vm1, %v3458_v8, -inf  ;;  %vm3527_vm1 = vcmp.eq.s32.totalorder %v12193_v60, 11 }
0x129b   :  { %3460 = vmax.xlane.f32.xlu0 %v3459_v25 }
0x1324   :  { %v3461_v6 = vpop.xlane.xlu0 %3460 }
0x1325   :  { %vm3462_vm3 = vcmp.eq.f32.partialorder %v3458_v8, %v3461_v6 }
0x1326   :  { %v3463_v27 = vsel %vm3462_vm3, %v12193_v60, 64 }
0x1327   :  { %v3464_v15 = vsel %vm12210_vm4, %v3463_v27, 2147483647  ;;  %vm12215_vm4 = vmmov %vm12212_vm2 }
0x1328   :  { %v3466_v16 = vshra.s32 %v3464_v15, 16  ;;  %v3465_v56 = vand.u32 65535, %v3464_v15 }
0x132a   :  { %v3468_v44 = vcvt.s32.f32 %v3466_v16  ;;  %v3467_v0 = vcvt.s32.f32 %v3465_v56 }
0x132c   :  { %3469 = vmin.xlane.f32.xlu1 %v3468_v44 }
0x13b5   :  { %v3470_v20 = vpop.xlane.xlu1 %3469 }
0x13b6   :  { %vm3471_vm5 = vcmp.eq.f32.partialorder %v3468_v44, %v3470_v20  ;;  %v3476_v51 = vcvt.f32.s32 %v3470_v20 }
0x13b7   :  { %v3472_v7 = vsel %vm3471_vm5, %v3467_v0, inf }
0x13b8   :  { %3473 = vmin.xlane.f32.xlu0 %v3472_v7  ;;  %v3477_v38 = vshll.u32 %v3476_v51, 16 }
0x1441   :  { %v3474_v30 = vpop.xlane.xlu0 %3473 }
0x1442   :  { %v3475_v17 = vcvt.f32.s32 %v3474_v30 }
0x1444   :  { %v3478_v1 = vadd.s32 %v3477_v38, %v3475_v17 }
0x1446   :  { %v3480_v46 = vsel %vm3479_vm9, %v3478_v1, %v3456_v61  ;;  %vm3481_vm8 = vcmp.eq.s32.totalorder %v12193_v60, %v3478_v1  ;;  %vm12216_vm9 = vmmov %vm12212_vm2 }
0x1447   :  { %v3482_v53 = vsel %vm3481_vm8, -inf, %v3458_v8 }
0x1448   :  { %v3483_v58 = vsel %vm12211_vm6, %v3482_v53, -inf  ;;  %vm3551_vm6 = vcmp.eq.s32.totalorder %v12193_v60, 12 }
0x1449   :  { %3484 = vmax.xlane.f32.xlu1 %v3483_v58 }
0x14d2   :  { %v3485_v57 = vpop.xlane.xlu1 %3484 }
0x14d3   :  { %vm3486_vm7 = vcmp.eq.f32.partialorder %v3482_v53, %v3485_v57 }
0x14d4   :  { %v3487_v41 = vsel %vm3486_vm7, %v12193_v60, 64 }
0x14d5   :  { %v3488_v31 = vsel %vm12212_vm2, %v3487_v41, 2147483647 }
0x14d6   :  { %v3490_v34 = vshra.s32 %v3488_v31, 16  ;;  %v3489_v19 = vand.u32 65535, %v3488_v31 }
0x14d8   :  { %v3492_v36 = vcvt.s32.f32 %v3490_v34  ;;  %v3491_v47 = vcvt.s32.f32 %v3489_v19 }
0x14da   :  { %3493 = vmin.xlane.f32.xlu0 %v3492_v36 }
0x1563   :  { %v3494_v23 = vpop.xlane.xlu0 %3493 }
0x1564   :  { %vm3495_vm10 = vcmp.eq.f32.partialorder %v3492_v36, %v3494_v23  ;;  %v3500_v37 = vcvt.f32.s32 %v3494_v23 }
0x1565   :  { %v3496_v55 = vsel %vm3495_vm10, %v3491_v47, inf }
0x1566   :  { %3497 = vmin.xlane.f32.xlu1 %v3496_v55  ;;  %v3501_v18 = vshll.u32 %v3500_v37, 16 }
0x15ef   :  { %v3498_v62 = vpop.xlane.xlu1 %3497 }
0x15f0   :  { %v3499_v48 = vcvt.f32.s32 %v3498_v62 }
0x15f2   :  { %v3502_v5 = vadd.s32 %v3501_v18, %v3499_v48 }
0x15f4   :  { %v3504_v59 = vsel %vm3503_vm11, %v3502_v5, %v3480_v46  ;;  %vm3505_vm12 = vcmp.eq.s32.totalorder %v12193_v60, %v3502_v5  ;;  %vm12217_vm11 = vmmov %vm12212_vm2 }
0x15f5   :  { %v3506_v32 = vsel %vm3505_vm12, -inf, %v3482_v53 }
0x15f6   :  { %v3507_v10 = vsel %vm12213_vm13, %v3506_v32, -inf  ;;  %vm3575_vm13 = vcmp.eq.s32.totalorder %v12193_v60, 13 }
0x15f7   :  { %3508 = vmax.xlane.f32.xlu0 %v3507_v10 }
0x1680   :  { %v3509_v12 = vpop.xlane.xlu0 %3508 }
0x1681   :  { %vm3510_vm14 = vcmp.eq.f32.partialorder %v3506_v32, %v3509_v12 }
0x1682   :  { %v3511_v50 = vsel %vm3510_vm14, %v12193_v60, 64 }
0x1683   :  { %v3512_v49 = vsel %vm12214_vm15, %v3511_v50, 2147483647  ;;  %vm12218_vm15 = vmmov %vm12212_vm2 }
0x1684   :  { %v3514_v13 = vshra.s32 %v3512_v49, 16  ;;  %v3513_v33 = vand.u32 65535, %v3512_v49 }
0x1686   :  { %v3516_v22 = vcvt.s32.f32 %v3514_v13  ;;  %v3515_v26 = vcvt.s32.f32 %v3513_v33 }
0x1688   :  { %3517 = vmin.xlane.f32.xlu1 %v3516_v22 }
0x1711   :  { %v3518_v11 = vpop.xlane.xlu1 %3517 }
0x1712   :  { %vm3519_vm0 = vcmp.eq.f32.partialorder %v3516_v22, %v3518_v11  ;;  %v3524_v45 = vcvt.f32.s32 %v3518_v11 }
0x1713   :  { %v3520_v3 = vsel %vm3519_vm0, %v3515_v26, inf }
0x1714   :  { %3521 = vmin.xlane.f32.xlu0 %v3520_v3  ;;  %v3525_v21 = vshll.u32 %v3524_v45, 16 }
0x179d   :  { %v3522_v2 = vpop.xlane.xlu0 %3521 }
0x179e   :  { %v3523_v29 = vcvt.f32.s32 %v3522_v2 }
0x17a0   :  { %v3526_v54 = vadd.s32 %v3525_v21, %v3523_v29 }
0x17a2   :  { %v3528_v52 = vsel %vm3527_vm1, %v3526_v54, %v3504_v59  ;;  %vm3529_vm3 = vcmp.eq.s32.totalorder %v12193_v60, %v3526_v54  ;;  %vm12219_vm1 = vmmov %vm12212_vm2 }
0x17a3   :  { %v3530_v43 = vsel %vm3529_vm3, -inf, %v3506_v32 }
0x17a4   :  { %v3531_v63 = vsel %vm12215_vm4, %v3530_v43, -inf  ;;  %vm3599_vm4 = vcmp.eq.s32.totalorder %v12193_v60, 14 }
0x17a5   :  { %3532 = vmax.xlane.f32.xlu1 %v3531_v63 }
0x182e   :  { %v3533_v4 = vpop.xlane.xlu1 %3532 }
0x182f   :  { %vm3534_vm5 = vcmp.eq.f32.partialorder %v3530_v43, %v3533_v4 }
0x1830   :  { %v3535_v14 = vsel %vm3534_vm5, %v12193_v60, 64 }
0x1831   :  { %v3536_v42 = vsel %vm12216_vm9, %v3535_v14, 2147483647  ;;  %vm12220_vm9 = vmmov %vm12219_vm1 }
0x1832   :  { %v3538_v35 = vshra.s32 %v3536_v42, 16  ;;  %v3537_v9 = vand.u32 65535, %v3536_v42 }
0x1834   :  { %v3540_v24 = vcvt.s32.f32 %v3538_v35  ;;  %v3539_v28 = vcvt.s32.f32 %v3537_v9 }
0x1836   :  { %3541 = vmin.xlane.f32.xlu0 %v3540_v24 }
0x18bf   :  { %v3542_v40 = vpop.xlane.xlu0 %3541 }
0x18c0   :  { %vm3543_vm8 = vcmp.eq.f32.partialorder %v3540_v24, %v3542_v40  ;;  %v3548_v61 = vcvt.f32.s32 %v3542_v40 }
0x18c1   :  { %v3544_v39 = vsel %vm3543_vm8, %v3539_v28, inf }
0x18c2   :  { %3545 = vmin.xlane.f32.xlu1 %v3544_v39  ;;  %v3549_v25 = vshll.u32 %v3548_v61, 16 }
0x194b   :  { %v3546_v8 = vpop.xlane.xlu1 %3545 }
0x194c   :  { %v3547_v6 = vcvt.f32.s32 %v3546_v8 }
0x194e   :  { %v3550_v27 = vadd.s32 %v3549_v25, %v3547_v6 }
0x1950   :  { %v3552_v15 = vsel %vm3551_vm6, %v3550_v27, %v3528_v52  ;;  %vm3553_vm7 = vcmp.eq.s32.totalorder %v12193_v60, %v3550_v27  ;;  %vm12221_vm6 = vmmov %vm12219_vm1 }
0x1951   :  { %v3554_v16 = vsel %vm3553_vm7, -inf, %v3530_v43 }
0x1952   :  { %v3555_v44 = vsel %vm12212_vm2, %v3554_v16, -inf  ;;  %vm3623_vm2 = vcmp.eq.s32.totalorder %v12193_v60, 15 }
0x1953   :  { %3556 = vmax.xlane.f32.xlu0 %v3555_v44 }
0x19dc   :  { %v3557_v56 = vpop.xlane.xlu0 %3556 }
0x19dd   :  { %vm3558_vm10 = vcmp.eq.f32.partialorder %v3554_v16, %v3557_v56 }
0x19de   :  { %v3559_v20 = vsel %vm3558_vm10, %v12193_v60, 64 }
0x19df   :  { %v3560_v0 = vsel %vm12217_vm11, %v3559_v20, 2147483647  ;;  %vm12222_vm11 = vmmov %vm12219_vm1 }
0x19e0   :  { %v3562_v7 = vshra.s32 %v3560_v0, 16  ;;  %v3561_v30 = vand.u32 65535, %v3560_v0 }
0x19e2   :  { %v3564_v51 = vcvt.s32.f32 %v3562_v7  ;;  %v3563_v17 = vcvt.s32.f32 %v3561_v30 }
0x19e4   :  { %3565 = vmin.xlane.f32.xlu1 %v3564_v51 }
0x1a6d   :  { %v3566_v38 = vpop.xlane.xlu1 %3565 }
0x1a6e   :  { %vm3567_vm12 = vcmp.eq.f32.partialorder %v3564_v51, %v3566_v38  ;;  %v3572_v46 = vcvt.f32.s32 %v3566_v38 }
0x1a6f   :  { %v3568_v1 = vsel %vm3567_vm12, %v3563_v17, inf }
0x1a70   :  { %3569 = vmin.xlane.f32.xlu0 %v3568_v1  ;;  %v3573_v58 = vshll.u32 %v3572_v46, 16 }
0x1af9   :  { %v3570_v53 = vpop.xlane.xlu0 %3569 }
0x1afa   :  { %v3571_v57 = vcvt.f32.s32 %v3570_v53 }
0x1afc   :  { %v3574_v41 = vadd.s32 %v3573_v58, %v3571_v57 }
0x1afe   :  { %v3576_v31 = vsel %vm3575_vm13, %v3574_v41, %v3552_v15  ;;  %vm3577_vm14 = vcmp.eq.s32.totalorder %v12193_v60, %v3574_v41  ;;  %vm12223_vm13 = vmmov %vm12219_vm1 }
0x1aff   :  { %v3578_v34 = vsel %vm3577_vm14, -inf, %v3554_v16 }
0x1b00   :  { %v3579_v36 = vsel %vm12218_vm15, %v3578_v34, -inf  ;;  %vm3647_vm15 = vcmp.eq.s32.totalorder %v12193_v60, 16 }
0x1b01   :  { %3580 = vmax.xlane.f32.xlu1 %v3579_v36 }
0x1b8a   :  { %v3581_v19 = vpop.xlane.xlu1 %3580 }
0x1b8b   :  { %vm3582_vm0 = vcmp.eq.f32.partialorder %v3578_v34, %v3581_v19 }
0x1b8c   :  { %v3583_v23 = vsel %vm3582_vm0, %v12193_v60, 64 }
0x1b8d   :  { %v3584_v47 = vsel %vm12219_vm1, %v3583_v23, 2147483647 }
0x1b8e   :  { %v3586_v55 = vshra.s32 %v3584_v47, 16  ;;  %v3585_v62 = vand.u32 65535, %v3584_v47 }
0x1b90   :  { %v3588_v37 = vcvt.s32.f32 %v3586_v55  ;;  %v3587_v48 = vcvt.s32.f32 %v3585_v62 }
0x1b92   :  { %3589 = vmin.xlane.f32.xlu0 %v3588_v37 }
0x1c1b   :  { %v3590_v18 = vpop.xlane.xlu0 %3589 }
0x1c1c   :  { %vm3591_vm3 = vcmp.eq.f32.partialorder %v3588_v37, %v3590_v18  ;;  %v3596_v59 = vcvt.f32.s32 %v3590_v18 }
0x1c1d   :  { %v3592_v5 = vsel %vm3591_vm3, %v3587_v48, inf }
0x1c1e   :  { %3593 = vmin.xlane.f32.xlu1 %v3592_v5  ;;  %v3597_v10 = vshll.u32 %v3596_v59, 16 }
0x1ca7   :  { %v3594_v32 = vpop.xlane.xlu1 %3593 }
0x1ca8   :  { %v3595_v12 = vcvt.f32.s32 %v3594_v32 }
0x1caa   :  { %v3598_v50 = vadd.s32 %v3597_v10, %v3595_v12 }
0x1cac   :  { %v3600_v49 = vsel %vm3599_vm4, %v3598_v50, %v3576_v31  ;;  %vm3601_vm5 = vcmp.eq.s32.totalorder %v12193_v60, %v3598_v50  ;;  %vm12224_vm4 = vmmov %vm12219_vm1 }
0x1cad   :  { %v3602_v13 = vsel %vm3601_vm5, -inf, %v3578_v34 }
0x1cae   :  { %v3603_v22 = vsel %vm12220_vm9, %v3602_v13, -inf  ;;  %vm3671_vm9 = vcmp.eq.s32.totalorder %v12193_v60, 17 }
0x1caf   :  { %3604 = vmax.xlane.f32.xlu0 %v3603_v22 }
0x1d38   :  { %v3605_v33 = vpop.xlane.xlu0 %3604 }
0x1d39   :  { %vm3606_vm8 = vcmp.eq.f32.partialorder %v3602_v13, %v3605_v33 }
0x1d3a   :  { %v3607_v11 = vsel %vm3606_vm8, %v12193_v60, 64 }
0x1d3b   :  { %v3608_v26 = vsel %vm12221_vm6, %v3607_v11, 2147483647  ;;  %vm12225_vm6 = vmmov %vm12219_vm1 }
0x1d3c   :  { %v3610_v3 = vshra.s32 %v3608_v26, 16  ;;  %v3609_v2 = vand.u32 65535, %v3608_v26 }
0x1d3e   :  { %v3612_v45 = vcvt.s32.f32 %v3610_v3  ;;  %v3611_v29 = vcvt.s32.f32 %v3609_v2 }
0x1d40   :  { %3613 = vmin.xlane.f32.xlu1 %v3612_v45 }
0x1dc9   :  { %v3614_v21 = vpop.xlane.xlu1 %3613 }
0x1dca   :  { %vm3615_vm7 = vcmp.eq.f32.partialorder %v3612_v45, %v3614_v21  ;;  %v3620_v52 = vcvt.f32.s32 %v3614_v21 }
0x1dcb   :  { %v3616_v54 = vsel %vm3615_vm7, %v3611_v29, inf }
0x1dcc   :  { %3617 = vmin.xlane.f32.xlu0 %v3616_v54  ;;  %v3621_v63 = vshll.u32 %v3620_v52, 16 }
0x1e55   :  { %v3618_v43 = vpop.xlane.xlu0 %3617 }
0x1e56   :  { %v3619_v4 = vcvt.f32.s32 %v3618_v43 }
0x1e58   :  { %v3622_v14 = vadd.s32 %v3621_v63, %v3619_v4 }
0x1e5a   :  { %v3624_v42 = vsel %vm3623_vm2, %v3622_v14, %v3600_v49  ;;  %vm3625_vm10 = vcmp.eq.s32.totalorder %v12193_v60, %v3622_v14  ;;  %vm12226_vm2 = vmmov %vm12219_vm1 }
0x1e5b   :  { %v3626_v35 = vsel %vm3625_vm10, -inf, %v3602_v13 }
0x1e5c   :  { %v3627_v24 = vsel %vm12222_vm11, %v3626_v35, -inf  ;;  %vm3695_vm11 = vcmp.eq.s32.totalorder %v12193_v60, 18 }
0x1e5d   :  { %3628 = vmax.xlane.f32.xlu1 %v3627_v24 }
0x1ee6   :  { %v3629_v9 = vpop.xlane.xlu1 %3628 }
0x1ee7   :  { %vm3630_vm12 = vcmp.eq.f32.partialorder %v3626_v35, %v3629_v9 }
0x1ee8   :  { %v3631_v40 = vsel %vm3630_vm12, %v12193_v60, 64 }
0x1ee9   :  { %v3632_v28 = vsel %vm12223_vm13, %v3631_v40, 2147483647  ;;  %vm12227_vm13 = vmmov %vm12219_vm1 }
0x1eea   :  { %v3634_v39 = vshra.s32 %v3632_v28, 16  ;;  %v3633_v8 = vand.u32 65535, %v3632_v28 }
0x1eec   :  { %v3636_v61 = vcvt.s32.f32 %v3634_v39  ;;  %v3635_v6 = vcvt.s32.f32 %v3633_v8 }
0x1eee   :  { %3637 = vmin.xlane.f32.xlu0 %v3636_v61 }
0x1f77   :  { %v3638_v25 = vpop.xlane.xlu0 %3637 }
0x1f78   :  { %vm3639_vm14 = vcmp.eq.f32.partialorder %v3636_v61, %v3638_v25  ;;  %v3644_v15 = vcvt.f32.s32 %v3638_v25 }
0x1f79   :  { %v3640_v27 = vsel %vm3639_vm14, %v3635_v6, inf }
0x1f7a   :  { %3641 = vmin.xlane.f32.xlu1 %v3640_v27  ;;  %v3645_v44 = vshll.u32 %v3644_v15, 16 }
0x2003   :  { %v3642_v16 = vpop.xlane.xlu1 %3641 }
0x2004   :  { %v3643_v56 = vcvt.f32.s32 %v3642_v16 }
0x2006   :  { %v3646_v20 = vadd.s32 %v3645_v44, %v3643_v56 }
0x2008   :  { %v3648_v0 = vsel %vm3647_vm15, %v3646_v20, %v3624_v42  ;;  %vm3649_vm0 = vcmp.eq.s32.totalorder %v12193_v60, %v3646_v20  ;;  %vm12228_vm15 = vmmov %vm12219_vm1 }
0x2009   :  { %v3650_v7 = vsel %vm3649_vm0, -inf, %v3626_v35 }
0x200a   :  { %v3651_v51 = vsel %vm12219_vm1, %v3650_v7, -inf  ;;  %vm3719_vm1 = vcmp.eq.s32.totalorder %v12193_v60, 19 }
0x200b   :  { %3652 = vmax.xlane.f32.xlu0 %v3651_v51 }
0x2094   :  { %v3653_v30 = vpop.xlane.xlu0 %3652 }
0x2095   :  { %vm3654_vm3 = vcmp.eq.f32.partialorder %v3650_v7, %v3653_v30 }
0x2096   :  { %v3655_v38 = vsel %vm3654_vm3, %v12193_v60, 64 }
0x2097   :  { %v3656_v17 = vsel %vm12224_vm4, %v3655_v38, 2147483647  ;;  %vm12229_vm4 = vmmov %vm12226_vm2 }
0x2098   :  { %v3658_v1 = vshra.s32 %v3656_v17, 16  ;;  %v3657_v53 = vand.u32 65535, %v3656_v17 }
0x209a   :  { %v3660_v46 = vcvt.s32.f32 %v3658_v1  ;;  %v3659_v57 = vcvt.s32.f32 %v3657_v53 }
0x209c   :  { %3661 = vmin.xlane.f32.xlu1 %v3660_v46 }
0x2125   :  { %v3662_v58 = vpop.xlane.xlu1 %3661 }
0x2126   :  { %vm3663_vm5 = vcmp.eq.f32.partialorder %v3660_v46, %v3662_v58  ;;  %v3668_v31 = vcvt.f32.s32 %v3662_v58 }
0x2127   :  { %v3664_v41 = vsel %vm3663_vm5, %v3659_v57, inf }
0x2128   :  { %3665 = vmin.xlane.f32.xlu0 %v3664_v41  ;;  %v3669_v36 = vshll.u32 %v3668_v31, 16 }
0x21b1   :  { %v3666_v34 = vpop.xlane.xlu0 %3665 }
0x21b2   :  { %v3667_v19 = vcvt.f32.s32 %v3666_v34 }
0x21b4   :  { %v3670_v23 = vadd.s32 %v3669_v36, %v3667_v19 }
0x21b6   :  { %v3672_v47 = vsel %vm3671_vm9, %v3670_v23, %v3648_v0  ;;  %vm3673_vm8 = vcmp.eq.s32.totalorder %v12193_v60, %v3670_v23  ;;  %vm12230_vm9 = vmmov %vm12226_vm2 }
0x21b7   :  { %v3674_v55 = vsel %vm3673_vm8, -inf, %v3650_v7 }
0x21b8   :  { %v3675_v37 = vsel %vm12225_vm6, %v3674_v55, -inf  ;;  %vm3743_vm6 = vcmp.eq.s32.totalorder %v12193_v60, 20 }
0x21b9   :  { %3676 = vmax.xlane.f32.xlu1 %v3675_v37 }
0x2242   :  { %v3677_v62 = vpop.xlane.xlu1 %3676 }
0x2243   :  { %vm3678_vm7 = vcmp.eq.f32.partialorder %v3674_v55, %v3677_v62 }
0x2244   :  { %v3679_v18 = vsel %vm3678_vm7, %v12193_v60, 64 }
0x2245   :  { %v3680_v48 = vsel %vm12226_vm2, %v3679_v18, 2147483647 }
0x2246   :  { %v3682_v5 = vshra.s32 %v3680_v48, 16  ;;  %v3681_v32 = vand.u32 65535, %v3680_v48 }
0x2248   :  { %v3684_v59 = vcvt.s32.f32 %v3682_v5  ;;  %v3683_v12 = vcvt.s32.f32 %v3681_v32 }
0x224a   :  { %3685 = vmin.xlane.f32.xlu0 %v3684_v59 }
0x22d3   :  { %v3686_v10 = vpop.xlane.xlu0 %3685 }
0x22d4   :  { %vm3687_vm10 = vcmp.eq.f32.partialorder %v3684_v59, %v3686_v10  ;;  %v3692_v49 = vcvt.f32.s32 %v3686_v10 }
0x22d5   :  { %v3688_v50 = vsel %vm3687_vm10, %v3683_v12, inf }
0x22d6   :  { %3689 = vmin.xlane.f32.xlu1 %v3688_v50  ;;  %v3693_v22 = vshll.u32 %v3692_v49, 16 }
0x235f   :  { %v3690_v13 = vpop.xlane.xlu1 %3689 }
0x2360   :  { %v3691_v33 = vcvt.f32.s32 %v3690_v13 }
0x2362   :  { %v3694_v11 = vadd.s32 %v3693_v22, %v3691_v33 }
0x2364   :  { %v3696_v26 = vsel %vm3695_vm11, %v3694_v11, %v3672_v47  ;;  %vm3697_vm12 = vcmp.eq.s32.totalorder %v12193_v60, %v3694_v11  ;;  %vm12231_vm11 = vmmov %vm12226_vm2 }
0x2365   :  { %v3698_v3 = vsel %vm3697_vm12, -inf, %v3674_v55 }
0x2366   :  { %v3699_v45 = vsel %vm12227_vm13, %v3698_v3, -inf  ;;  %vm3767_vm13 = vcmp.eq.s32.totalorder %v12193_v60, 21 }
0x2367   :  { %3700 = vmax.xlane.f32.xlu0 %v3699_v45 }
0x23f0   :  { %v3701_v2 = vpop.xlane.xlu0 %3700 }
0x23f1   :  { %vm3702_vm14 = vcmp.eq.f32.partialorder %v3698_v3, %v3701_v2 }
0x23f2   :  { %v3703_v21 = vsel %vm3702_vm14, %v12193_v60, 64 }
0x23f3   :  { %v3704_v29 = vsel %vm12228_vm15, %v3703_v21, 2147483647  ;;  %vm12232_vm15 = vmmov %vm12226_vm2 }
0x23f4   :  { %v3706_v54 = vshra.s32 %v3704_v29, 16  ;;  %v3705_v43 = vand.u32 65535, %v3704_v29 }
0x23f6   :  { %v3708_v52 = vcvt.s32.f32 %v3706_v54  ;;  %v3707_v4 = vcvt.s32.f32 %v3705_v43 }
0x23f8   :  { %3709 = vmin.xlane.f32.xlu1 %v3708_v52 }
0x2481   :  { %v3710_v63 = vpop.xlane.xlu1 %3709 }
0x2482   :  { %vm3711_vm0 = vcmp.eq.f32.partialorder %v3708_v52, %v3710_v63  ;;  %v3716_v42 = vcvt.f32.s32 %v3710_v63 }
0x2483   :  { %v3712_v14 = vsel %vm3711_vm0, %v3707_v4, inf }
0x2484   :  { %3713 = vmin.xlane.f32.xlu0 %v3712_v14  ;;  %v3717_v24 = vshll.u32 %v3716_v42, 16 }
0x250d   :  { %v3714_v35 = vpop.xlane.xlu0 %3713 }
0x250e   :  { %v3715_v9 = vcvt.f32.s32 %v3714_v35 }
0x2510   :  { %v3718_v40 = vadd.s32 %v3717_v24, %v3715_v9 }
0x2512   :  { %v3720_v28 = vsel %vm3719_vm1, %v3718_v40, %v3696_v26  ;;  %vm3721_vm3 = vcmp.eq.s32.totalorder %v12193_v60, %v3718_v40  ;;  %vm12233_vm1 = vmmov %vm12226_vm2 }
0x2513   :  { %v3722_v39 = vsel %vm3721_vm3, -inf, %v3698_v3 }
0x2514   :  { %v3723_v61 = vsel %vm12229_vm4, %v3722_v39, -inf  ;;  %vm3791_vm4 = vcmp.eq.s32.totalorder %v12193_v60, 22 }
0x2515   :  { %3724 = vmax.xlane.f32.xlu1 %v3723_v61 }
0x259e   :  { %v3725_v8 = vpop.xlane.xlu1 %3724 }
0x259f   :  { %vm3726_vm5 = vcmp.eq.f32.partialorder %v3722_v39, %v3725_v8 }
0x25a0   :  { %v3727_v25 = vsel %vm3726_vm5, %v12193_v60, 64 }
0x25a1   :  { %v3728_v6 = vsel %vm12230_vm9, %v3727_v25, 2147483647  ;;  %vm12234_vm9 = vmmov %vm12233_vm1 }
0x25a2   :  { %v3730_v27 = vshra.s32 %v3728_v6, 16  ;;  %v3729_v16 = vand.u32 65535, %v3728_v6 }
0x25a4   :  { %v3732_v15 = vcvt.s32.f32 %v3730_v27  ;;  %v3731_v56 = vcvt.s32.f32 %v3729_v16 }
0x25a6   :  { %3733 = vmin.xlane.f32.xlu0 %v3732_v15 }
0x262f   :  { %v3734_v44 = vpop.xlane.xlu0 %3733 }
0x2630   :  { %vm3735_vm8 = vcmp.eq.f32.partialorder %v3732_v15, %v3734_v44  ;;  %v3740_v0 = vcvt.f32.s32 %v3734_v44 }
0x2631   :  { %v3736_v20 = vsel %vm3735_vm8, %v3731_v56, inf }
0x2632   :  { %3737 = vmin.xlane.f32.xlu1 %v3736_v20  ;;  %v3741_v51 = vshll.u32 %v3740_v0, 16 }
0x26bb   :  { %v3738_v7 = vpop.xlane.xlu1 %3737 }
0x26bc   :  { %v3739_v30 = vcvt.f32.s32 %v3738_v7 }
0x26be   :  { %v3742_v38 = vadd.s32 %v3741_v51, %v3739_v30 }
0x26c0   :  { %v3744_v17 = vsel %vm3743_vm6, %v3742_v38, %v3720_v28  ;;  %vm3745_vm7 = vcmp.eq.s32.totalorder %v12193_v60, %v3742_v38  ;;  %vm12235_vm6 = vmmov %vm12233_vm1 }
0x26c1   :  { %v3746_v1 = vsel %vm3745_vm7, -inf, %v3722_v39 }
0x26c2   :  { %v3747_v46 = vsel %vm12226_vm2, %v3746_v1, -inf  ;;  %vm3815_vm2 = vcmp.eq.s32.totalorder %v12193_v60, 23 }
0x26c3   :  { %3748 = vmax.xlane.f32.xlu0 %v3747_v46 }
0x274c   :  { %v3749_v53 = vpop.xlane.xlu0 %3748 }
0x274d   :  { %vm3750_vm10 = vcmp.eq.f32.partialorder %v3746_v1, %v3749_v53 }
0x274e   :  { %v3751_v58 = vsel %vm3750_vm10, %v12193_v60, 64 }
0x274f   :  { %v3752_v57 = vsel %vm12231_vm11, %v3751_v58, 2147483647  ;;  %vm12236_vm11 = vmmov %vm12233_vm1 }
0x2750   :  { %v3754_v41 = vshra.s32 %v3752_v57, 16  ;;  %v3753_v34 = vand.u32 65535, %v3752_v57 }
0x2752   :  { %v3756_v31 = vcvt.s32.f32 %v3754_v41  ;;  %v3755_v19 = vcvt.s32.f32 %v3753_v34  ;;  %v12238_v41 = vld [vmem:[#allocation108_spill] sm:$0xff] }
0x2754   :  { %3757 = vmin.xlane.f32.xlu1 %v3756_v31 }
0x27dd   :  { %v3758_v36 = vpop.xlane.xlu1 %3757 }
0x27de   :  { %vm3759_vm12 = vcmp.eq.f32.partialorder %v3756_v31, %v3758_v36  ;;  %v3764_v47 = vcvt.f32.s32 %v3758_v36  ;;  %v12239_v31 = vsub.s32 0, %v12238_v41  ;;  %v12240_v36 = vsub.s32 1, %v12238_v41 }
0x27df   :  { %v3760_v23 = vsel %vm3759_vm12, %v3755_v19, inf }
0x27e0   :  { %3761 = vmin.xlane.f32.xlu0 %v3760_v23  ;;  %v3765_v37 = vshll.u32 %v3764_v47, 16  ;;  %v12241_v23 = vsub.s32 2, %v12238_v41 }
0x2869   :  { %v3762_v55 = vpop.xlane.xlu0 %3761 }
0x286a   :  { %v3763_v62 = vcvt.f32.s32 %v3762_v55  ;;  %v12242_v55 = vsub.s32 3, %v12238_v41 }
0x286c   :  { %v3766_v18 = vadd.s32 %v3765_v37, %v3763_v62  ;;  %v12243_v62 = vsub.s32 4, %v12238_v41 }
0x286e   :  { %v3768_v48 = vsel %vm3767_vm13, %v3766_v18, %v3744_v17  ;;  %vm3769_vm14 = vcmp.eq.s32.totalorder %v12193_v60, %v3766_v18  ;;  %vm12237_vm13 = vmmov %vm12233_vm1 }
0x286f   :  { %v3770_v5 = vsel %vm3769_vm14, -inf, %v3746_v1 }
0x2870   :  { %v3771_v59 = vsel %vm12232_vm15, %v3770_v5, -inf  ;;  %vm3839_vm15 = vcmp.eq.s32.totalorder %v12193_v60, 24 }
0x2871   :  { %3772 = vmax.xlane.f32.xlu1 %v3771_v59  ;;  %v12245_v59 = vsub.s32 6, %v12238_v41 }
0x28fa   :  { %v3773_v32 = vpop.xlane.xlu1 %3772 }
0x28fb   :  { %vm3774_vm0 = vcmp.eq.f32.partialorder %v3770_v5, %v3773_v32 }
0x28fc   :  { %v3775_v10 = vsel %vm3774_vm0, %v12193_v60, 64 }
0x28fd   :  { %v3776_v12 = vsel %vm12233_vm1, %v3775_v10, 2147483647  ;;  %v12246_v10 = vsub.s32 7, %v12238_v41 }
0x28fe   :  { %v3778_v50 = vshra.s32 %v3776_v12, 16  ;;  %v3777_v13 = vand.u32 65535, %v3776_v12 }
0x2900   :  { %v3780_v49 = vcvt.s32.f32 %v3778_v50  ;;  %v3779_v33 = vcvt.s32.f32 %v3777_v13  ;;  %v11915_v13 = vmov 0.0  }
0x2902   :  { %3781 = vmin.xlane.f32.xlu0 %v3780_v49 }
0x298b   :  { %v3782_v22 = vpop.xlane.xlu0 %3781 }
0x298c   :  { %vm3783_vm3 = vcmp.eq.f32.partialorder %v3780_v49, %v3782_v22  ;;  %v3788_v26 = vcvt.f32.s32 %v3782_v22 }
0x298d   :  { %v3784_v11 = vsel %vm3783_vm3, %v3779_v33, inf  ;;  %vm12247_vm3 = vmmov %vm12235_vm6 }
0x298e   :  { %3785 = vmin.xlane.f32.xlu1 %v3784_v11  ;;  %v3789_v45 = vshll.u32 %v3788_v26, 16 }
0x2a17   :  { %v3786_v3 = vpop.xlane.xlu1 %3785 }
0x2a18   :  { %v3787_v2 = vcvt.f32.s32 %v3786_v3  ;;  %v12249_v3 = vld [vmem:[#allocation18_spill] sm:$0xff] }
0x2a1a   :  { %v3790_v21 = vadd.s32 %v3789_v45, %v3787_v2 }
0x2a1c   :  { %v3792_v29 = vsel %vm3791_vm4, %v3790_v21, %v3768_v48  ;;  %vm3793_vm5 = vcmp.eq.s32.totalorder %v12193_v60, %v3790_v21  ;;  %v12244_v48 = vsub.s32 5, %v12238_v41  ;;  %vm12248_vm4 = vmmov %vm12247_vm3  ;;  %v12250_v21 = vld [vmem:[#allocation22_spill] sm:$0xff] }
0x2a1d   :  { %v3794_v54 = vsel %vm3793_vm5, -inf, %v3770_v5  ;;  %v12318_v41 = vld [vmem:[#allocation62_spill] sm:$0xff] }
0x2a1e   :  { %v3795_v52 = vsel %vm12234_vm9, %v3794_v54, -inf }
0x2a1f   :  { %3796 = vmax.xlane.f32.xlu0 %v3795_v52 }
0x2aa8   :  { %v3797_v43 = vpop.xlane.xlu0 %3796 }
0x2aa9   :  { %vm3798_vm8 = vcmp.eq.f32.partialorder %v3794_v54, %v3797_v43 }
0x2aaa   :  { %v3799_v63 = vsel %vm3798_vm8, %v12193_v60, 64  ;;  %vm12251_vm8 = vmmov %vm12247_vm3 }
0x2aab   :  { %v3800_v4 = vsel %vm12235_vm6, %v3799_v63, 2147483647  ;;  %vm12252_vm6 = vmmov %vm12247_vm3  ;;  %v12254_v63 = vld [vmem:[#allocation16_spill] sm:$0xff] }
0x2aac   :  { %v3802_v14 = vshra.s32 %v3800_v4, 16  ;;  %v3801_v35 = vand.u32 65535, %v3800_v4  ;;  %v12256_v4 = vld [vmem:[#allocation10_spill] sm:$0xff] }
0x2aae   :  { %v3804_v42 = vcvt.s32.f32 %v3802_v14  ;;  %v3803_v9 = vcvt.s32.f32 %v3801_v35 }
0x2ab0   :  { %3805 = vmin.xlane.f32.xlu1 %v3804_v42 }
0x2b39   :  { %v3806_v24 = vpop.xlane.xlu1 %3805 }
0x2b3a   :  { %vm3807_vm7 = vcmp.eq.f32.partialorder %v3804_v42, %v3806_v24  ;;  %v3812_v28 = vcvt.f32.s32 %v3806_v24 }
0x2b3b   :  { %v3808_v40 = vsel %vm3807_vm7, %v3803_v9, inf  ;;  %v12258_v9 = vld [vmem:[#allocation12_spill] sm:$0xff] }
0x2b3c   :  { %3809 = vmin.xlane.f32.xlu0 %v3808_v40  ;;  %v3813_v61 = vshll.u32 %v3812_v28, 16  ;;  %v12260_v28 = vld [vmem:[#allocation7_spill] sm:$0xff] }
0x2bc5   :  { %v3810_v39 = vpop.xlane.xlu0 %3809 }
0x2bc6   :  { %v3811_v8 = vcvt.f32.s32 %v3810_v39 }
0x2bc8   :  { %v3814_v25 = vadd.s32 %v3813_v61, %v3811_v8  ;;  %v12262_v8 = vld [vmem:[#allocation19_spill] sm:$0xff] }
0x2bca   :  { %v3816_v6 = vsel %vm3815_vm2, %v3814_v25, %v3792_v29  ;;  %vm3817_vm10 = vcmp.eq.s32.totalorder %v12193_v60, %v3814_v25  ;;  %v12253_v29 = vld [vmem:[#allocation14_spill] sm:$0xff]  ;;  %vm12255_vm2 = vmmov %vm12247_vm3 }
0x2bcb   :  { %v3818_v27 = vsel %vm3817_vm10, -inf, %v3794_v54 }
0x2bcc   :  { %v3819_v15 = vsel %vm12236_vm11, %v3818_v27, -inf }
0x2bcd   :  { %3820 = vmax.xlane.f32.xlu1 %v3819_v15  ;;  %v12266_v15 = vld [vmem:[#allocation15_spill] sm:$0xff] }
0x2c56   :  { %v3821_v16 = vpop.xlane.xlu1 %3820 }
0x2c57   :  { %vm3822_vm12 = vcmp.eq.f32.partialorder %v3818_v27, %v3821_v16  ;;  %v12265_v27 = vld [vmem:[#allocation9_spill] sm:$0xff] }
0x2c58   :  { %v3823_v44 = vsel %vm3822_vm12, %v12193_v60, 64 }
0x2c59   :  { %v3824_v56 = vsel %vm12237_vm13, %v3823_v44, 2147483647  ;;  %vm12259_vm13 = vmmov %vm12255_vm2 }
0x2c5a   :  { %v3826_v20 = vshra.s32 %v3824_v56, 16  ;;  %v3825_v7 = vand.u32 65535, %v3824_v56  ;;  %v12268_v56 = vld [vmem:[#allocation45_spill] sm:$0xff] }
0x2c5c   :  { %v3828_v0 = vcvt.s32.f32 %v3826_v20  ;;  %v3827_v30 = vcvt.s32.f32 %v3825_v7  ;;  %v12271_v7 = vld [vmem:[#allocation17_spill] sm:$0xff] }
0x2c5e   :  { %3829 = vmin.xlane.f32.xlu0 %v3828_v0 }
0x2ce7   :  { %v3830_v51 = vpop.xlane.xlu0 %3829 }
0x2ce8   :  { %vm3831_vm14 = vcmp.eq.f32.partialorder %v3828_v0, %v3830_v51  ;;  %v3836_v17 = vcvt.f32.s32 %v3830_v51 }
0x2ce9   :  { %v3832_v38 = vsel %vm3831_vm14, %v3827_v30, inf  ;;  %vm12261_vm14 = vmmov %vm12255_vm2 }
0x2cea   :  { %3833 = vmin.xlane.f32.xlu1 %v3832_v38  ;;  %v3837_v46 = vshll.u32 %v3836_v17, 16  ;;  %v12275_v17 = vld [vmem:[#allocation11_spill] sm:$0xff] }
0x2d73   :  { %v3834_v1 = vpop.xlane.xlu1 %3833 }
0x2d74   :  { %v3835_v53 = vcvt.f32.s32 %v3834_v1 }
0x2d76   :  { %v3838_v58 = vadd.s32 %v3837_v46, %v3835_v53  ;;  %v12278_v46 = vld [vmem:[#allocation13_spill] sm:$0xff]  ;;  %v12279_v53 = vld [vmem:[#allocation48_spill] sm:$0xff] }
0x2d78   :  { %v3840_v57 = vsel %vm3839_vm15, %v3838_v58, %v3816_v6  ;;  %v12264_v6 = vld [vmem:[#allocation20_spill] sm:$0xff] }
0x2d79   :  { %v3844_v34 = vrot.slane %v3840_v57, %v12239_v31  ;;  %v3863_v19 = vrot.slane %v3840_v57, %v12240_v36  ;;  %v3882_v47 = vrot.slane %v3840_v57, %v12241_v23  ;;  %v3901_v37 = vrot.slane %v3840_v57, %v12242_v55  ;;  %v12280_v31 = vld [vmem:[#allocation6_spill] sm:$0xff]  ;;  %v12284_v23 = vld [vmem:[#allocation8_spill] sm:$0xff]  ;;  %v12285_v55 = vld [vmem:[#allocation43_spill] sm:$0xff] }
0x2d7a   :  { %v3920_v18 = vrot.slane %v3840_v57, %v12243_v62  ;;  %v3939_v5 = vrot.slane %v3840_v57, %v12244_v48  ;;  %v3958_v32 = vrot.slane %v3840_v57, %v12245_v59  ;;  %v3977_v12 = vrot.slane %v3840_v57, %v12246_v10  ;;  %v12287_v48 = vld [vmem:[#allocation32_spill] sm:$0xff] }
0x2d7b   :  { %3850 = vbcast.lane.b32.xlu1 %v3844_v34, 264  ;;  %3846 = vbcast.lane.b32.xlu0 %v3844_v34, 256 }
0x2d7f   :  { %3854 = vbcast.lane.b32.xlu1 %v3844_v34, 272  ;;  %3865 = vbcast.lane.b32.xlu0 %v3863_v19, 256 }
0x2d83   :  { %3858 = vbcast.lane.b32.xlu1 %v3844_v34, 280  ;;  %3873 = vbcast.lane.b32.xlu0 %v3863_v19, 272  ;;  %v12281_v34 = vld [vmem:[#allocation39_spill] sm:$0xff] }
0x2d87   :  { %3869 = vbcast.lane.b32.xlu1 %v3863_v19, 264  ;;  %3884 = vbcast.lane.b32.xlu0 %v3882_v47, 256 }
0x2d8b   :  { %3877 = vbcast.lane.b32.xlu1 %v3863_v19, 280  ;;  %3892 = vbcast.lane.b32.xlu0 %v3882_v47, 272 }
0x2d8f   :  { %3888 = vbcast.lane.b32.xlu1 %v3882_v47, 264  ;;  %3903 = vbcast.lane.b32.xlu0 %v3901_v37, 256 }
0x2d93   :  { %3896 = vbcast.lane.b32.xlu1 %v3882_v47, 280  ;;  %3911 = vbcast.lane.b32.xlu0 %v3901_v37, 272 }
0x2d97   :  { %3907 = vbcast.lane.b32.xlu1 %v3901_v37, 264  ;;  %3922 = vbcast.lane.b32.xlu0 %v3920_v18, 256 }
0x2d9b   :  { %3915 = vbcast.lane.b32.xlu1 %v3901_v37, 280  ;;  %3930 = vbcast.lane.b32.xlu0 %v3920_v18, 272 }
0x2d9f   :  { %3926 = vbcast.lane.b32.xlu1 %v3920_v18, 264  ;;  %3941 = vbcast.lane.b32.xlu0 %v3939_v5, 256 }
0x2da3   :  { %3934 = vbcast.lane.b32.xlu1 %v3920_v18, 280  ;;  %3949 = vbcast.lane.b32.xlu0 %v3939_v5, 272  ;;  %v12286_v18 = vld [vmem:[#allocation47_spill] sm:$0xff] }
0x2da7   :  { %3945 = vbcast.lane.b32.xlu1 %v3939_v5, 264  ;;  %3960 = vbcast.lane.b32.xlu0 %v3958_v32, 256 }
0x2dab   :  { %3953 = vbcast.lane.b32.xlu1 %v3939_v5, 280  ;;  %3968 = vbcast.lane.b32.xlu0 %v3958_v32, 272 }
0x2daf   :  { %3964 = vbcast.lane.b32.xlu1 %v3958_v32, 264  ;;  %3979 = vbcast.lane.b32.xlu0 %v3977_v12, 256 }
0x2db3   :  { %3972 = vbcast.lane.b32.xlu1 %v3958_v32, 280  ;;  %3987 = vbcast.lane.b32.xlu0 %v3977_v12, 272 }
0x2db7   :  { %3983 = vbcast.lane.b32.xlu1 %v3977_v12, 264 }
0x2dbb   :  { %3991 = vbcast.lane.b32.xlu1 %v3977_v12, 280 }
0x2ded   :  { %v9964_v50 = vpop.permute.xlu1 %3850  ;;  %v9966_v49 = vpop.permute.xlu0 %3846 }
0x2dee   :  { %vm3994_vm0 = vcmp.eq.s32.totalorder %v12193_v60, %v9964_v50  ;;  %vm3993_vm1 = vcmp.eq.s32.totalorder %v12193_v60, %v9966_v49 }
0x2def   :  { %v9973_v22 = vsel %vm3994_vm0, 1.0, %v11915_v13  ;;  %v9976_v33 = vsel %vm3993_vm1, 1.0, %v11915_v13  ;;  %vm12263_vm0 = vmmov %vm12255_vm2 }
0x2df0   :  { %6958 = vmatprep.mubr.msk.f32.mxu0 %vm12247_vm3, %v9976_v33  ;;  %vm12267_vm1 = vmmov %vm12263_vm0 }
0x2df1   :  { %v9980_v11 = vpop.permute.xlu1 %3854  ;;  %6959 = vmatmul.mubr.msk.f32.vlgmr.msra.gmra.mxu0 %vm12248_vm4, %v9973_v22  ;;  %v9984_v26 = vpop.permute.xlu0 %3865 }
0x2df2   :  { %vm3995_vm5 = vcmp.eq.s32.totalorder %v12193_v60, %v9980_v11  ;;  %6987 = vmatpush3.msra.mxu0 %v12249_v3  ;;  %vm3997_vm9 = vcmp.eq.s32.totalorder %v12193_v60, %v9984_v26 }
0x2df3   :  { %v9992_v45 = vsel %vm3995_vm5, 1.0, %v11915_v13  ;;  %v9995_v2 = vsel %vm3997_vm9, 1.0, %v11915_v13  ;;  %6988 = vmatprep.subr.mxu0 %v12250_v21  ;;  %vm12272_vm9 = vmmov %vm12263_vm0 }
0x2df4   :  { %6989 = vmatpush3.msra.mxu0 %v12250_v21  ;;  %6961 = vmatprep.mubr.msk.f32.mxu0 %vm12251_vm8, %v9992_v45  ;;  %vm12273_vm8 = vmmov %vm12263_vm0  ;;  %v12292_v21 = vld [vmem:[#allocation36_spill] sm:$0xff] }
0x2df5   :  { %6980 = vmatprep.mubr.msk.f32.mxu1 %vm12252_vm6, %v9995_v2  ;;  %6990 = vmatprep.subr.mxu0 %v12253_v29  ;;  %v10004_v54 = vpop.permute.xlu1 %3858  ;;  %v10006_v52 = vpop.permute.xlu0 %3873 }
0x2df6   :  { %vm3996_vm7 = vcmp.eq.s32.totalorder %v12193_v60, %v10004_v54  ;;  %6991 = vmatpush3.msra.mxu0 %v12253_v29  ;;  %vm3999_vm10 = vcmp.eq.s32.totalorder %v12193_v60, %v10006_v52  ;;  %v12293_v29 = vld [vmem:[#allocation51_spill] sm:$0xff] }
0x2df7   :  { %v10012_v43 = vsel %vm3996_vm7, 1.0, %v11915_v13  ;;  %6992 = vmatprep.subr.mxu0 %v12254_v63  ;;  %v10041_v40 = vsel %vm3999_vm10, 1.0, %v11915_v13  ;;  %vm12276_vm7 = vmmov %vm12263_vm0 }
0x2df8   :  { %6993 = vmatpush3.msra.mxu0 %v12254_v63 }
0x2df9   :  { %6962 = vmatmul.mubr.msk.f32.gmra.mxu0 %vm12255_vm2, %v10012_v43  ;;  %6994 = vmatprep.subr.mxu0 %v12256_v4  ;;  %v10019_v14 = vpop.permute.xlu1 %3869  ;;  %v10021_v42 = vpop.permute.xlu0 %3884 }
0x2dfa   :  { %vm3998_vm11 = vcmp.eq.s32.totalorder %v12193_v60, %v10019_v14  ;;  %6995 = vmatpush3.msra.mxu0 %v12256_v4  ;;  %vm4001_vm12 = vcmp.eq.s32.totalorder %v12193_v60, %v10021_v42 }
0x2dfb   :  { %v10031_v35 = vsel %vm3998_vm11, 1.0, %v11915_v13  ;;  %v10034_v24 = vsel %vm4001_vm12, 1.0, %v11915_v13  ;;  %6996 = vmatprep.subr.mxu0 %v12258_v9  ;;  %vm12282_vm11 = vmmov %vm12263_vm0 }
0x2dfc   :  { %12257 = vst [vmem:[#allocation87_spill] sm:$0xff] %v10034_v24  ;;  %6997 = vmatpush3.msra.mxu0 %v12258_v9  ;;  %6981 = vmatmul.mubr.msk.f32.vlgmr.msra.gmra.mxu1 %vm12259_vm13, %v10031_v35  ;;  %v12294_v9 = vld [vmem:[#allocation25_spill] sm:$0xff] }
0x2dfd   :  { %6998 = vmatprep.subr.mxu0 %v12260_v28  ;;  %7002 = vmatprep.mubr.msk.f32.mxu0 %vm12261_vm14, %v10034_v24  ;;  %v10046_v39 = vpop.permute.xlu1 %3877  ;;  %v10048_v61 = vpop.permute.xlu0 %3892  ;;  %vm12288_vm14 = vmmov %vm12263_vm0  ;;  %v12327_v24 = vld [vmem:[#allocation66_spill] sm:$0xff] }
0x2dfe   :  { %7009 = vmatpush3.msra.mxu1 %v12262_v8  ;;  %vm4000_vm15 = vcmp.eq.s32.totalorder %v12193_v60, %v10046_v39  ;;  %6983 = vmatprep.mubr.msk.f32.mxu1 %vm12263_vm0, %v10041_v40  ;;  %vm4003_vm5 = vcmp.eq.s32.totalorder %v12193_v60, %v10048_v61  ;;  %v12313_v8 = vld [vmem:[#allocation68_spill] sm:$0xff] }
0x2dff   :  { %v10056_v25 = vsel %vm4000_vm15, 1.0, %v11915_v13  ;;  %6999 = vmatpush3.msra.mxu0 %v12260_v28  ;;  %7010 = vmatprep.subr.mxu1 %v12264_v6  ;;  %v10095_v38 = vsel %vm4003_vm5, 1.0, %v11915_v13  ;;  %v12295_v28 = vld [vmem:[#allocation40_spill] sm:$0xff]  ;;  %vm12296_vm5 = vmmov %vm12263_vm0 }
0x2e00   :  { %7000 = vmatprep.subr.mxu0 %v12265_v27  ;;  %7011 = vmatpush3.msra.mxu1 %v12264_v6  ;;  %12274 = vst [vmem:[#allocation97_spill] sm:$0xff] %v10095_v38 }
0x2e01   :  { %7001 = vmatpush3.msra.mxu0 %v12265_v27  ;;  %7012 = vmatprep.subr.mxu1 %v12266_v15  ;;  %v10064_v16 = vpop.permute.xlu1 %3888  ;;  %v10066_v44 = vpop.permute.xlu0 %3903 }
0x2e02   :  { %6984 = vmatmul.mubr.msk.f32.gmra.mxu1 %vm12267_vm1, %v10056_v25  ;;  %7030 = vmatprep.subr.mxu0 %v12268_v56  ;;  %vm4002_vm3 = vcmp.eq.s32.totalorder %v12193_v60, %v10064_v16  ;;  %vm4005_vm4 = vcmp.eq.s32.totalorder %v12193_v60, %v10066_v44  ;;  %vm12290_vm1 = vmmov %vm12263_vm0 }
0x2e03   :  { %7013 = vmatpush3.msra.mxu1 %v12266_v15  ;;  %v10079_v20 = vsel %vm4002_vm3, 1.0, %v11915_v13  ;;  %v10082_v0 = vsel %vm4005_vm4, 1.0, %v11915_v13 }
0x2e04   :  { %12269 = vst [vmem:[#allocation92_spill] sm:$0xff] %v10079_v20  ;;  %12270 = vst [vmem:[#allocation83_spill] sm:$0xff] %v10082_v0  ;;  %7014 = vmatprep.subr.mxu1 %v12271_v7  ;;  %7003 = vmatmul.mubr.msk.f32.vlgmr.msra.gmra.mxu0 %vm12272_vm9, %v10079_v20 }
0x2e05   :  { %7015 = vmatpush3.msra.mxu1 %v12271_v7  ;;  %7024 = vmatprep.mubr.msk.f32.mxu1 %vm12273_vm8, %v10082_v0  ;;  %v10090_v51 = vpop.permute.xlu1 %3896  ;;  %v10092_v30 = vpop.permute.xlu0 %3911  ;;  %v12298_v7 = vld [vmem:[#allocation41_spill] sm:$0xff]  ;;  %v12323_v0 = vld [vmem:[#allocation54_spill] sm:$0xff] }
0x2e06   :  { %7016 = vmatprep.subr.mxu1 %v12275_v17  ;;  %7031 = vmatpush3.msra.mxu0 %v12268_v56  ;;  %vm4004_vm6 = vcmp.eq.s32.totalorder %v12193_v60, %v10090_v51  ;;  %vm4007_vm12 = vcmp.eq.s32.totalorder %v12193_v60, %v10092_v30  ;;  %v12297_v56 = vld [vmem:[#allocation28_spill] sm:$0xff] }
0x2e07   :  { %7017 = vmatpush3.msra.mxu1 %v12275_v17  ;;  %7005 = vmatprep.mubr.msk.f32.mxu0 %vm12276_vm7, %v10095_v38  ;;  %v10105_v1 = vsel %vm4004_vm6, 1.0, %v11915_v13  ;;  %v10158_v59 = vsel %vm4007_vm12, 1.0, %v11915_v13  ;;  %vm12301_vm6 = vmmov %vm12263_vm0  ;;  %v12324_v38 = vld [vmem:[#allocation64_spill] sm:$0xff] }
0x2e08   :  { %12277 = vst [vmem:[#allocation84_spill] sm:$0xff] %v10105_v1  ;;  %7018 = vmatprep.subr.mxu1 %v12278_v46  ;;  %7032 = vmatprep.subr.mxu0 %v12279_v53  ;;  %12289 = vst [vmem:[#allocation98_spill] sm:$0xff] %v10158_v59 }
0x2e09   :  { %7019 = vmatpush3.msra.mxu1 %v12278_v46  ;;  %7033 = vmatpush3.msra.mxu0 %v12279_v53  ;;  %v10111_v58 = vpop.permute.xlu1 %3907  ;;  %v10113_v57 = vpop.permute.xlu0 %3922  ;;  %v12299_v53 = vld [vmem:[#allocation67_spill] sm:$0xff]  ;;  %vm12302_vm7 = vmmov %vm12263_vm0 }
0x2e0a   :  { %7020 = vmatprep.subr.mxu1 %v12280_v31  ;;  %7034 = vmatprep.subr.mxu0 %v12281_v34  ;;  %vm4006_vm2 = vcmp.eq.s32.totalorder %v12193_v60, %v10111_v58  ;;  %vm4009_vm10 = vcmp.eq.s32.totalorder %v12193_v60, %v10113_v57 }
0x2e0b   :  { %7006 = vmatmul.mubr.msk.f32.gmra.mxu0 %vm12282_vm11, %v10105_v1  ;;  %7021 = vmatpush3.msra.mxu1 %v12280_v31  ;;  %v10125_v36 = vsel %vm4009_vm10, 1.0, %v11915_v13  ;;  %v10129_v19 = vsel %vm4006_vm2, 1.0, %v11915_v13  ;;  %vm12303_vm11 = vmmov %vm12263_vm0  ;;  %v12312_v31 = vld [vmem:[#allocation65_spill] sm:$0xff] }
0x2e0c   :  { %7035 = vmatpush3.msra.mxu0 %v12281_v34  ;;  %12283 = vst [vmem:[#allocation95_spill] sm:$0xff] %v10129_v19  ;;  %7022 = vmatprep.subr.mxu1 %v12284_v23  ;;  %v12308_v34 = vld [vmem:[#allocation63_spill] sm:$0xff] }
0x2e0d   :  { %7036 = vmatprep.subr.mxu0 %v12285_v55  ;;  %7023 = vmatpush3.msra.mxu1 %v12284_v23  ;;  %v10138_v37 = vpop.permute.xlu1 %3915  ;;  %v10140_v62 = vpop.permute.xlu0 %3930  ;;  %v12300_v23 = vld [vmem:[#allocation34_spill] sm:$0xff] }
0x2e0e   :  { %7037 = vmatpush3.msra.mxu0 %v12285_v55  ;;  %7052 = vmatprep.subr.mxu1 %v12286_v18  ;;  %vm4011_vm13 = vcmp.eq.s32.totalorder %v12193_v60, %v10140_v62  ;;  %vm4008_vm15 = vcmp.eq.s32.totalorder %v12193_v60, %v10138_v37 }
0x2e0f   :  { %7038 = vmatprep.subr.mxu0 %v12287_v48  ;;  %7025 = vmatmul.mubr.msk.f32.vlgmr.msra.gmra.mxu1 %vm12288_vm14, %v10129_v19  ;;  %v10152_v5 = vsel %vm4011_vm13, 1.0, %v11915_v13  ;;  %v10170_v3 = vsel %vm4008_vm15, 1.0, %v11915_v13  ;;  %vm12309_vm14 = vmmov %vm12263_vm0 }
0x2e10   :  { %7039 = vmatpush3.msra.mxu0 %v12287_v48  ;;  %7046 = vmatprep.mubr.msk.f32.mxu0 %vm12263_vm0, %v10125_v36  ;;  %12291 = vst [vmem:[#allocation93_spill] sm:$0xff] %v10170_v3 }
0x2e11   :  { %7053 = vmatpush3.msra.mxu1 %v12286_v18  ;;  %7027 = vmatprep.mubr.msk.f32.mxu1 %vm12290_vm1, %v10158_v59  ;;  %v10165_v10 = vpop.permute.xlu1 %3926  ;;  %v10167_v12 = vpop.permute.xlu0 %3941  ;;  %v12337_v59 = vld [vmem:[#allocation58_spill] sm:$0xff] }
0x2e12   :  { %7040 = vmatprep.subr.mxu0 %v12292_v21  ;;  %7054 = vmatprep.subr.mxu1 %v12293_v29  ;;  %vm4010_vm3 = vcmp.eq.s32.totalorder %v12193_v60, %v10165_v10  ;;  %vm4013_vm4 = vcmp.eq.s32.totalorder %v12193_v60, %v10167_v12 }
0x2e13   :  { %7041 = vmatpush3.msra.mxu0 %v12292_v21  ;;  %7055 = vmatpush3.msra.mxu1 %v12293_v29  ;;  %v10181_v63 = vsel %vm4010_vm3, 1.0, %v11915_v13  ;;  %v10184_v4 = vsel %vm4013_vm4, 1.0, %v11915_v13  ;;  %v12305_v29 = vld [vmem:[#allocation35_spill] sm:$0xff]  ;;  %vm12316_vm3 = vmmov %vm12290_vm1 }
0x2e14   :  { %7042 = vmatprep.subr.mxu0 %v12294_v9  ;;  %7056 = vmatprep.subr.mxu1 %v12295_v28  ;;  %vm12317_vm4 = vmmov %vm12290_vm1 }
0x2e15   :  { %7028 = vmatmul.mubr.msk.f32.gmra.mxu1 %vm12296_vm5, %v10170_v3  ;;  %7043 = vmatpush3.msra.mxu0 %v12294_v9  ;;  %v10195_v27 = vpop.permute.xlu1 %3934  ;;  %v10197_v15 = vpop.permute.xlu0 %3949  ;;  %v12306_v9 = vld [vmem:[#allocation69_spill] sm:$0xff] }
0x2e16   :  { %7057 = vmatpush3.msra.mxu1 %v12295_v28  ;;  %7044 = vmatprep.subr.mxu0 %v12297_v56  ;;  %vm4012_vm9 = vcmp.eq.s32.totalorder %v12193_v60, %v10195_v27  ;;  %vm4015_vm8 = vcmp.eq.s32.totalorder %v12193_v60, %v10197_v15 }
0x2e17   :  { %7058 = vmatprep.subr.mxu1 %v12298_v7  ;;  %7045 = vmatpush3.msra.mxu0 %v12297_v56  ;;  %v10208_v17 = vsel %vm4012_vm9, 1.0, %v11915_v13  ;;  %v10211_v46 = vsel %vm4015_vm8, 1.0, %v11915_v13  ;;  %v12311_v56 = vld [vmem:[#allocation31_spill] sm:$0xff]  ;;  %vm12325_vm8 = vmmov %vm12290_vm1 }
0x2e18   :  { %7059 = vmatpush3.msra.mxu1 %v12298_v7  ;;  %7074 = vmatprep.subr.mxu0 %v12299_v53 }
0x2e19   :  { %7060 = vmatprep.subr.mxu1 %v12300_v23  ;;  %7047 = vmatmul.mubr.msk.f32.vlgmr.msra.gmra.mxu0 %vm12301_vm6, %v10181_v63  ;;  %v10222_v55 = vpop.permute.xlu1 %3945  ;;  %v10224_v18 = vpop.permute.xlu0 %3960 }
0x2e1a   :  { %7061 = vmatpush3.msra.mxu1 %v12300_v23  ;;  %7068 = vmatprep.mubr.msk.f32.mxu1 %vm12302_vm7, %v10184_v4  ;;  %vm4014_vm2 = vcmp.eq.s32.totalorder %v12193_v60, %v10222_v55  ;;  %vm4017_vm10 = vcmp.eq.s32.totalorder %v12193_v60, %v10224_v18  ;;  %v12307_v23 = vld [vmem:[#allocation24_spill] sm:$0xff]  ;;  %vm12329_vm7 = vmmov %vm12290_vm1 }
0x2e1b   :  { %7075 = vmatpush3.msra.mxu0 %v12299_v53  ;;  %7049 = vmatprep.mubr.msk.f32.mxu0 %vm12303_vm11, %v10152_v5  ;;  %v10237_v48 = vsel %vm4014_vm2, 1.0, %v11915_v13  ;;  %v10240_v21 = vsel %vm4017_vm10, 1.0, %v11915_v13  ;;  %vm12331_vm2 = vmmov %vm12290_vm1 }
0x2e1c   :  { %12304 = vst [vmem:[#allocation105_spill] sm:$0xff] %v10240_v21  ;;  %7062 = vmatprep.subr.mxu1 %v12305_v29  ;;  %7076 = vmatprep.subr.mxu0 %v12306_v9  ;;  %vm12332_vm10 = vmmov %vm12290_vm1 }
0x2e1d   :  { %7063 = vmatpush3.msra.mxu1 %v12305_v29  ;;  %7077 = vmatpush3.msra.mxu0 %v12306_v9  ;;  %v10250_v7 = vpop.permute.xlu1 %3953  ;;  %v10252_v53 = vpop.permute.xlu0 %3968 }
0x2e1e   :  { %7064 = vmatprep.subr.mxu1 %v12307_v23  ;;  %7078 = vmatprep.subr.mxu0 %v12308_v34  ;;  %vm4016_vm12 = vcmp.eq.s32.totalorder %v12193_v60, %v10250_v7  ;;  %vm4019_vm13 = vcmp.eq.s32.totalorder %v12193_v60, %v10252_v53 }
0x2e1f   :  { %7050 = vmatmul.mubr.msk.f32.gmra.mxu0 %vm12309_vm14, %v10208_v17  ;;  %7065 = vmatpush3.msra.mxu1 %v12307_v23  ;;  %v10264_v29 = vsel %vm4016_vm12, 1.0, %v11915_v13  ;;  %v10267_v9 = vsel %vm4019_vm13, 1.0, %v11915_v13  ;;  %vm12335_vm12 = vmmov %vm12290_vm1 }
0x2e20   :  { %12310 = vst [vmem:[#allocation113_spill] sm:$0xff] %v10267_v9  ;;  %7079 = vmatpush3.msra.mxu0 %v12308_v34  ;;  %7066 = vmatprep.subr.mxu1 %v12311_v56  ;;  %v12314_v34 = vld [vmem:[#allocation59_spill] sm:$0xff]  ;;  %vm12338_vm13 = vmmov %vm12290_vm1 }
0x2e21   :  { %7080 = vmatprep.subr.mxu0 %v12312_v31  ;;  %7067 = vmatpush3.msra.mxu1 %v12311_v56  ;;  %v10277_v23 = vpop.permute.xlu1 %3964  ;;  %v10279_v32 = vpop.permute.xlu0 %3979  ;;  %vm12339_vm14 = vmmov %vm12290_vm1 }
0x2e22   :  { %7081 = vmatpush3.msra.mxu0 %v12312_v31  ;;  %7096 = vmatprep.subr.mxu1 %v12313_v8  ;;  %vm4018_vm15 = vcmp.eq.s32.totalorder %v12193_v60, %v10277_v23  ;;  %vm4021_vm0 = vcmp.eq.s32.totalorder %v12193_v60, %v10279_v32 }
0x2e23   :  { %7082 = vmatprep.subr.mxu0 %v12314_v34  ;;  %7069 = vmatmul.mubr.msk.f32.vlgmr.msra.gmra.mxu1 %vm12290_vm1, %v10237_v48  ;;  %v10291_v56 = vsel %vm4018_vm15, 1.0, %v11915_v13  ;;  %v10294_v6 = vsel %vm4021_vm0, 1.0, %v11915_v13  ;;  %vm12340_vm15 = vmmov %vm12290_vm1  ;;  %vm4898_vm0 = vcmp.gt.s32.totalorder %v12193_v60, %v9964_v50  ;;  %vm4897_vm1 = vcmp.gt.s32.totalorder %v12193_v60, %v9966_v49 }
0x2e24   :  { %12315 = vst [vmem:[#allocation91_spill] sm:$0xff] %v10294_v6  ;;  %7083 = vmatpush3.msra.mxu0 %v12314_v34  ;;  %7090 = vmatprep.mubr.msk.f32.mxu0 %vm12316_vm3, %v10240_v21  ;;  %v12319_v34 = vld [vmem:[#allocation70_spill] sm:$0xff]  ;;  %vm12341_vm3 = vmmov %vm12331_vm2 }
0x2e25   :  { %7097 = vmatpush3.msra.mxu1 %v12313_v8  ;;  %7071 = vmatprep.mubr.msk.f32.mxu1 %vm12317_vm4, %v10211_v46  ;;  %v10306_v47 = vpop.permute.xlu1 %3972  ;;  %v10308_v13 = vpop.permute.xlu0 %3987  ;;  %v12320_v8 = vmov 0.0   ;;  %vm12342_vm4 = vmmov %vm12331_vm2 }
0x2e26   :  { %7084 = vmatprep.subr.mxu0 %v12318_v41  ;;  %7098 = vmatprep.subr.mxu1 %v12319_v34  ;;  %vm4020_vm5 = vcmp.eq.s32.totalorder %v12193_v60, %v10306_v47  ;;  %vm4023_vm9 = vcmp.eq.s32.totalorder %v12193_v60, %v10308_v13 }
0x2e27   :  { %7085 = vmatpush3.msra.mxu0 %v12318_v41  ;;  %7099 = vmatpush3.msra.mxu1 %v12319_v34  ;;  %v10319_v28 = vsel %vm4020_vm5, 1.0, %v12320_v8  ;;  %v10322_v31 = vsel %vm4023_vm9, 1.0, %v12320_v8  ;;  %v12326_v34 = vld [vmem:[#allocation55_spill] sm:$0xff]  ;;  %vm4899_vm5 = vcmp.gt.s32.totalorder %v12193_v60, %v9980_v11  ;;  %vm4902_vm9 = vcmp.gt.s32.totalorder %v12193_v60, %v10019_v14 }
0x2e28   :  { %12321 = vst [vmem:[#allocation94_spill] sm:$0xff] %v10319_v28  ;;  %12322 = vst [vmem:[#allocation103_spill] sm:$0xff] %v10322_v31  ;;  %7086 = vmatprep.subr.mxu0 %v12323_v0  ;;  %7100 = vmatprep.subr.mxu1 %v12324_v38 }
0x2e29   :  { %7072 = vmatmul.mubr.msk.f32.gmra.mxu1 %vm12325_vm8, %v10264_v29  ;;  %7087 = vmatpush3.msra.mxu0 %v12323_v0  ;;  %v10333_v41 = vpop.permute.xlu1 %3983  ;;  %vm4900_vm8 = vcmp.gt.s32.totalorder %v12193_v60, %v10004_v54 }
0x2e2a   :  { %7101 = vmatpush3.msra.mxu1 %v12324_v38  ;;  %7088 = vmatprep.subr.mxu0 %v12326_v34  ;;  %vm4022_vm6 = vcmp.eq.s32.totalorder %v12193_v60, %v10333_v41  ;;  %v12330_v38 = vld [vmem:[#allocation60_spill] sm:$0xff] }
0x2e2b   :  { %7102 = vmatprep.subr.mxu1 %v12327_v24  ;;  %7089 = vmatpush3.msra.mxu0 %v12326_v34  ;;  %v10342_v21 = vsel %vm4022_vm6, 1.0, %v12320_v8  ;;  %vm12343_vm6 = vmmov %vm12331_vm2 }
0x2e2c   :  { %12328 = vst [vmem:[#allocation112_spill] sm:$0xff] %v10342_v21  ;;  %7103 = vmatpush3.msra.mxu1 %v12327_v24  ;;  %7091 = vmatmul.mubr.msk.f32.vlgmr.msra.gmra.mxu0 %vm12329_vm7, %v10291_v56  ;;  %v12333_v24 = vld [vmem:[#allocation61_spill] sm:$0xff]  ;;  %vm12344_vm7 = vmmov %vm12331_vm2 }
0x2e2d   :  { %7104 = vmatprep.subr.mxu1 %v12330_v38  ;;  %7112 = vmatprep.mubr.msk.f32.mxu1 %vm12331_vm2, %v10294_v6  ;;  %v10352_v20 = vpop.permute.xlu1 %3991  ;;  %vm4901_vm2 = vcmp.gt.s32.totalorder %v12193_v60, %v9984_v26 }
0x2e2e   :  { %7105 = vmatpush3.msra.mxu1 %v12330_v38  ;;  %7093 = vmatprep.mubr.msk.f32.mxu0 %vm12332_vm10, %v10267_v9  ;;  %vm4024_vm11 = vcmp.eq.s32.totalorder %v12193_v60, %v10352_v20  ;;  %v12336_v38 = vld [vmem:[#allocation53_spill] sm:$0xff]  ;;  %vm12345_vm10 = vmmov %vm12341_vm3 }
0x2e2f   :  { %7106 = vmatprep.subr.mxu1 %v12333_v24  ;;  %v10361_v34 = vsel %vm4024_vm11, 1.0, %v12320_v8  ;;  %vm4904_vm11 = vcmp.gt.s32.totalorder %v12193_v60, %v10046_v39 }
0x2e30   :  { %12334 = vst [vmem:[#allocation102_spill] sm:$0xff] %v10361_v34  ;;  %7107 = vmatpush3.msra.mxu1 %v12333_v24  ;;  %7094 = vmatmul.mubr.msk.f32.gmra.mxu0 %vm12335_vm12, %v10319_v28  ;;  %vm4906_vm12 = vcmp.gt.s32.totalorder %v12193_v60, %v10064_v16 }
0x2e31   :  { %7108 = vmatprep.subr.mxu1 %v12336_v38  ;;  %5473 = vmatprep.mubr.f32.mxu0 %v12320_v8 }
0x2e32   :  { %7109 = vmatpush3.msra.mxu1 %v12336_v38 }
0x2e33   :  { %7110 = vmatprep.subr.mxu1 %v12337_v59 }
0x2e34   :  { %7111 = vmatpush3.msra.mxu1 %v12337_v59 }
0x2e35   :  { %7113 = vmatmul.mubr.msk.f32.vlgmr.msra.gmra.mxu1 %vm12338_vm13, %v10342_v21  ;;  %vm12346_vm13 = vmmov %vm12341_vm3 }
0x2e36   :  { %7115 = vmatprep.mubr.msk.f32.mxu1 %vm12339_vm14, %v10322_v31  ;;  %vm4903_vm14 = vcmp.gt.s32.totalorder %v12193_v60, %v10006_v52 }
0x2e39   :  { %7116 = vmatmul.mubr.msk.f32.gmra.mxu1 %vm12340_vm15, %v10361_v34  ;;  %vm12347_vm15 = vmmov %vm12341_vm3 }
0x2eb1   :  { %v6960_v24 = vpop.f32.mrf.mxu0 }
0x2eb2   :  { %v4866_v0 = vmul.f32 0.17677669, %v6960_v24 }
0x2eb3   :  { %v4167_v3 = vpop.f32.mrf.mxu0 }
0x2eb4   :  { %v10381_v38 = vsel %vm4898_vm0, -inf, %v4866_v0  ;;  %v4865_v19 = vmul.f32 0.17677669, %v4167_v3  ;;  %vm12348_vm0 = vmmov %vm12341_vm3 }
0x2eb5   :  { %v4964_v59 = vsel %vm12341_vm3, %v10381_v38, -inf  ;;  %vm12349_vm3 = vmmov %vm12348_vm0 }
0x2eb6   :  { %v10387_v21 = vsel %vm4897_vm1, -inf, %v4865_v19  ;;  %4965 = vmax.xlane.f32.xlu1 %v4964_v59  ;;  %vm4905_vm1 = vcmp.gt.s32.totalorder %v12193_v60, %v10021_v42 }
0x2eb7   :  { %v4961_v34 = vsel %vm12342_vm4, %v10387_v21, -inf  ;;  %vm4908_vm4 = vcmp.gt.s32.totalorder %v12193_v60, %v10090_v51 }
0x2eb8   :  { %4962 = vmax.xlane.f32.xlu0 %v4961_v34 }
0x2eb9   :  { %v6963_v24 = vpop.f32.mrf.mxu0 }
0x2eba   :  { %v4868_v50 = vmul.f32 0.17677669, %v6963_v24 }
0x2ebb   :  { %v4177_v31 = vpop.f32.mrf.mxu0 }
0x2ebc   :  { %v4867_v6 = vmul.f32 0.17677669, %v4177_v31  ;;  %v6982_v0 = vpop.f32.mrf.mxu1  ;;  %v10403_v31 = vsel %vm4900_vm8, -inf, %v4868_v50  ;;  %vm12351_vm8 = vmmov %vm12348_vm0 }
0x2ebd   :  { %v4870_v3 = vmul.f32 0.17677669, %v6982_v0  ;;  %v4970_v54 = vsel %vm12345_vm10, %v10403_v31, -inf  ;;  %vm12353_vm10 = vmmov %vm12348_vm0 }
0x2ebe   :  { %v10395_v49 = vsel %vm4899_vm5, -inf, %v4867_v6  ;;  %v4264_v19 = vpop.f32.mrf.mxu1  ;;  %vm4907_vm5 = vcmp.gt.s32.totalorder %v12193_v60, %v10048_v61 }
0x2ebf   :  { %v10399_v59 = vsel %vm4902_vm9, -inf, %v4870_v3  ;;  %v4967_v34 = vsel %vm12343_vm6, %v10395_v49, -inf  ;;  %v4869_v24 = vmul.f32 0.17677669, %v4264_v19  ;;  %vm12350_vm9 = vmmov %vm12348_vm0  ;;  %vm4910_vm6 = vcmp.gt.s32.totalorder %v12193_v60, %v10111_v58 }
0x2ec0   :  { %4968 = vmax.xlane.f32.xlu0 %v4967_v34  ;;  %v4976_v11 = vsel %vm12344_vm7, %v10399_v59, -inf  ;;  %vm4909_vm7 = vcmp.gt.s32.totalorder %v12193_v60, %v10066_v44 }
0x2ec1   :  { %4977 = vmax.xlane.f32.xlu1 %v4976_v11  ;;  %v10413_v0 = vsel %vm4901_vm2, -inf, %v4869_v24  ;;  %vm12352_vm2 = vmmov %vm12348_vm0 }
0x2ec2   :  { %v6985_v14 = vpop.f32.mrf.mxu1  ;;  %v4973_v24 = vsel %vm12347_vm15, %v10413_v0, -inf  ;;  %vm4914_vm15 = vcmp.gt.s32.totalorder %v12193_v60, %v10165_v10 }
0x2ec3   :  { %v4872_v6 = vmul.f32 0.17677669, %v6985_v14 }
0x2ec4   :  { %v4274_v50 = vpop.f32.mrf.mxu1  ;;  %4971 = vmax.xlane.f32.xlu0 %v4970_v54  ;;  %v7004_v3 = vpop.f32.mrf.mxu0 }
0x2ec5   :  { %v10415_v19 = vsel %vm4904_vm11, -inf, %v4872_v6  ;;  %v4871_v34 = vmul.f32 0.17677669, %v4274_v50  ;;  %v4874_v11 = vmul.f32 0.17677669, %v7004_v3  ;;  %vm4912_vm11 = vcmp.gt.s32.totalorder %v12193_v60, %v10138_v37 }
0x2ec6   :  { %v4982_v26 = vsel %vm12346_vm13, %v10415_v19, -inf  ;;  %v4361_v14 = vpop.f32.mrf.mxu0  ;;  %vm4911_vm13 = vcmp.gt.s32.totalorder %v12193_v60, %v10092_v30 }
0x2ec7   :  { %v10423_v39 = vsel %vm4906_vm12, -inf, %v4874_v11  ;;  %4983 = vmax.xlane.f32.xlu1 %v4982_v26  ;;  %v10427_v6 = vsel %vm4903_vm14, -inf, %v4871_v34  ;;  %v4873_v54 = vmul.f32 0.17677669, %v4361_v14  ;;  %vm12354_vm12 = vmmov %vm12348_vm0 }
0x2ec8   :  { %4974 = vmax.xlane.f32.xlu0 %v4973_v24  ;;  %v4988_v16 = vsel %vm12348_vm0, %v10423_v39, -inf  ;;  %v4979_v52 = vsel %vm12349_vm3, %v10427_v6, -inf  ;;  %vm12355_vm14 = vmmov %vm12348_vm0 }
0x2ec9   :  { %v10435_v3 = vsel %vm4905_vm1, -inf, %v4873_v54  ;;  %vm4913_vm1 = vcmp.gt.s32.totalorder %v12193_v60, %v10113_v57  ;;  %vm12356_vm3 = vmmov %vm12348_vm0 }
0x2eca   :  { %v4985_v54 = vsel %vm12351_vm8, %v10435_v3, -inf  ;;  %vm12358_vm8 = vmmov %vm12348_vm0 }
0x2ecb   :  { %v7007_v50 = vpop.f32.mrf.mxu0  ;;  %4989 = vmax.xlane.f32.xlu1 %v4988_v16 }
0x2ecc   :  { %v4876_v11 = vmul.f32 0.17677669, %v7007_v50  ;;  %4980 = vmax.xlane.f32.xlu0 %v4979_v52 }
0x2ecd   :  { %v4371_v34 = vpop.f32.mrf.mxu0 }
0x2ece   :  { %v10439_v26 = vsel %vm4908_vm4, -inf, %v4876_v11  ;;  %v4875_v14 = vmul.f32 0.17677669, %v4371_v34  ;;  %vm12357_vm4 = vmmov %vm12348_vm0 }
0x2ecf   :  { %v7026_v42 = vpop.f32.mrf.mxu1  ;;  %v4994_v24 = vsel %vm12350_vm9, %v10439_v26, -inf  ;;  %vm4915_vm9 = vcmp.gt.s32.totalorder %v12193_v60, %v10140_v62 }
0x2ed0   :  { %v10447_v16 = vsel %vm4907_vm5, -inf, %v4875_v14  ;;  %v4878_v50 = vmul.f32 0.17677669, %v7026_v42  ;;  %4995 = vmax.xlane.f32.xlu1 %v4994_v24  ;;  %4986 = vmax.xlane.f32.xlu0 %v4985_v54  ;;  %vm4916_vm5 = vcmp.gt.s32.totalorder %v12193_v60, %v10195_v27 }
0x2ed1   :  { %v4458_v51 = vpop.f32.mrf.mxu1  ;;  %v4991_v34 = vsel %vm12353_vm10, %v10447_v16, -inf  ;;  %vm12360_vm10 = vmmov %vm12348_vm0 }
0x2ed2   :  { %v10451_v52 = vsel %vm4910_vm6, -inf, %v4878_v50  ;;  %v4877_v11 = vmul.f32 0.17677669, %v4458_v51  ;;  %vm4918_vm6 = vcmp.gt.s32.totalorder %v12193_v60, %v10222_v55 }
0x2ed3   :  { %v5000_v61 = vsel %vm12352_vm2, %v10451_v52, -inf  ;;  %vm4917_vm2 = vcmp.gt.s32.totalorder %v12193_v60, %v10167_v12 }
0x2ed4   :  { %v10459_v14 = vsel %vm4909_vm7, -inf, %v4877_v11  ;;  %5001 = vmax.xlane.f32.xlu1 %v5000_v61  ;;  %4992 = vmax.xlane.f32.xlu0 %v4991_v34  ;;  %vm12359_vm7 = vmmov %vm12348_vm0 }
0x2ed5   :  { %v7029_v42 = vpop.f32.mrf.mxu1  ;;  %v4997_v54 = vsel %vm12354_vm12, %v10459_v14, -inf  ;;  %vm4919_vm12 = vcmp.gt.s32.totalorder %v12193_v60, %v10197_v15 }
0x2ed6   :  { %v4880_v24 = vmul.f32 0.17677669, %v7029_v42 }
0x2ed7   :  { %v4468_v58 = vpop.f32.mrf.mxu1 }
0x2ed8   :  { %v10465_v44 = vsel %vm4912_vm11, -inf, %v4880_v24  ;;  %v4879_v50 = vmul.f32 0.17677669, %v4468_v58  ;;  %4998 = vmax.xlane.f32.xlu0 %v4997_v54  ;;  %vm12361_vm11 = vmmov %vm12348_vm0 }
0x2ed9   :  { %v7048_v51 = vpop.f32.mrf.mxu0  ;;  %v5006_v11 = vsel %vm12355_vm14, %v10465_v44, -inf  ;;  %vm12362_vm14 = vmmov %vm12348_vm0 }
0x2eda   :  { %v10471_v61 = vsel %vm4911_vm13, -inf, %v4879_v50  ;;  %v4882_v34 = vmul.f32 0.17677669, %v7048_v51  ;;  %5007 = vmax.xlane.f32.xlu1 %v5006_v11  ;;  %vm4920_vm13 = vcmp.gt.s32.totalorder %v12193_v60, %v10250_v7 }
0x2edb   :  { %v4555_v37 = vpop.f32.mrf.mxu0  ;;  %v5003_v42 = vsel %vm12348_vm0, %v10471_v61, -inf }
0x2edc   :  { %v10477_v24 = vsel %vm4914_vm15, -inf, %v4882_v34  ;;  %v4881_v58 = vmul.f32 0.17677669, %v4555_v37  ;;  %5004 = vmax.xlane.f32.xlu0 %v5003_v42  ;;  %vm4921_vm15 = vcmp.gt.s32.totalorder %v12193_v60, %v10224_v18 }
0x2edd   :  { %v5012_v30 = vsel %vm12356_vm3, %v10477_v24, -inf  ;;  %vm12363_vm3 = vmmov %vm12348_vm0 }
0x2ede   :  { %v10483_v54 = vsel %vm4913_vm1, -inf, %v4881_v58  ;;  %5013 = vmax.xlane.f32.xlu1 %v5012_v30  ;;  %vm4922_vm1 = vcmp.gt.s32.totalorder %v12193_v60, %v10277_v23 }
0x2edf   :  { %v7051_v50 = vpop.f32.mrf.mxu0  ;;  %v5009_v10 = vsel %vm12357_vm4, %v10483_v54, -inf  ;;  %vm4923_vm4 = vcmp.gt.s32.totalorder %v12193_v60, %v10252_v53 }
0x2ee0   :  { %v4884_v51 = vmul.f32 0.17677669, %v7051_v50  ;;  %5010 = vmax.xlane.f32.xlu0 %v5009_v10 }
0x2ee1   :  { %v4565_v11 = vpop.f32.mrf.mxu0 }
0x2ee2   :  { %v10489_v34 = vsel %vm4916_vm5, -inf, %v4884_v51  ;;  %v4883_v37 = vmul.f32 0.17677669, %v4565_v11  ;;  %vm12364_vm5 = vmmov %vm12348_vm0 }
0x2ee3   :  { %v7070_v57 = vpop.f32.mrf.mxu1  ;;  %v5018_v42 = vsel %vm12358_vm8, %v10489_v34, -inf  ;;  %vm12365_vm8 = vmmov %vm12348_vm0 }
0x2ee4   :  { %v10495_v58 = vsel %vm4915_vm9, -inf, %v4883_v37  ;;  %v4886_v30 = vmul.f32 0.17677669, %v7070_v57  ;;  %5019 = vmax.xlane.f32.xlu1 %v5018_v42  ;;  %vm4924_vm9 = vcmp.gt.s32.totalorder %v12193_v60, %v10306_v47 }
0x2ee5   :  { %v4652_v50 = vpop.f32.mrf.mxu1  ;;  %v5015_v27 = vsel %vm12359_vm7, %v10495_v58, -inf  ;;  %vm12366_vm7 = vmmov %vm12348_vm0 }
0x2ee6   :  { %v10501_v10 = vsel %vm4918_vm6, -inf, %v4886_v30  ;;  %v4885_v51 = vmul.f32 0.17677669, %v4652_v50  ;;  %5016 = vmax.xlane.f32.xlu0 %v5015_v27  ;;  %vm4925_vm6 = vcmp.gt.s32.totalorder %v12193_v60, %v10279_v32 }
0x2ee7   :  { %v5024_v62 = vsel %vm12360_vm10, %v10501_v10, -inf  ;;  %vm12367_vm10 = vmmov %vm12348_vm0 }
0x2ee8   :  { %v10507_v11 = vsel %vm4917_vm2, -inf, %v4885_v51  ;;  %5025 = vmax.xlane.f32.xlu1 %v5024_v62  ;;  %vm4926_vm2 = vcmp.gt.s32.totalorder %v12193_v60, %v10333_v41 }
0x2ee9   :  { %v7073_v37 = vpop.f32.mrf.mxu1  ;;  %v5021_v55 = vsel %vm12361_vm11, %v10507_v11, -inf  ;;  %vm4927_vm11 = vcmp.gt.s32.totalorder %v12193_v60, %v10308_v13 }
0x2eea   :  { %5022 = vmax.xlane.f32.xlu0 %v5021_v55  ;;  %v4888_v42 = vmul.f32 0.17677669, %v7073_v37 }
0x2eeb   :  { %v4662_v57 = vpop.f32.mrf.mxu1 }
0x2eec   :  { %v4887_v30 = vmul.f32 0.17677669, %v4662_v57  ;;  %v7092_v28 = vpop.f32.mrf.mxu0  ;;  %v10519_v51 = vsel %vm4920_vm13, -inf, %v4888_v42  ;;  %vm4928_vm13 = vcmp.gt.s32.totalorder %v12193_v60, %v10352_v20 }
0x2eed   :  { %v5030_v15 = vsel %vm12348_vm0, %v10519_v51, -inf  ;;  %v4890_v37 = vmul.f32 0.17677669, %v7092_v28 }
0x2eee   :  { %v10513_v50 = vsel %vm4919_vm12, -inf, %v4887_v30  ;;  %v4749_v12 = vpop.f32.mrf.mxu0  ;;  %vm12368_vm12 = vmmov %vm12348_vm0 }
0x2eef   :  { %v5027_v27 = vsel %vm12362_vm14, %v10513_v50, -inf  ;;  %v4889_v62 = vmul.f32 0.17677669, %v4749_v12  ;;  %v10531_v42 = vsel %vm4922_vm1, -inf, %v4890_v37  ;;  %vm12369_vm14 = vmmov %vm12348_vm0 }
0x2ef0   :  { %5028 = vmax.xlane.f32.xlu0 %v5027_v27  ;;  %v7095_v55 = vpop.f32.mrf.mxu0  ;;  %v5036_v18 = vsel %vm12364_vm5, %v10531_v42, -inf  ;;  %vm12371_vm1 = vmmov %vm12348_vm0 }
0x2ef1   :  { %v10525_v57 = vsel %vm4921_vm15, -inf, %v4889_v62  ;;  %v4892_v28 = vmul.f32 0.17677669, %v7095_v55  ;;  %vm12370_vm15 = vmmov %vm12348_vm0 }
0x2ef2   :  { %v4759_v30 = vpop.f32.mrf.mxu0  ;;  %v5033_v7 = vsel %vm12363_vm3, %v10525_v57, -inf  ;;  %vm12372_vm3 = vmmov %vm12348_vm0 }
0x2ef3   :  { %v4891_v12 = vmul.f32 0.17677669, %v4759_v30  ;;  %v10543_v37 = vsel %vm4924_vm9, -inf, %v4892_v28  ;;  %vm12374_vm5 = vmmov %vm12348_vm0 }
0x2ef4   :  { %5031 = vmax.xlane.f32.xlu0 %v5030_v15  ;;  %v5042_v53 = vsel %vm12366_vm7, %v10543_v37, -inf  ;;  %vm12375_vm9 = vmmov %vm12348_vm0 }
0x2ef5   :  { %v7114_v27 = vpop.f32.mrf.mxu1  ;;  %v10537_v62 = vsel %vm4923_vm4, -inf, %v4891_v12  ;;  %vm12373_vm4 = vmmov %vm12348_vm0 }
0x2ef6   :  { %v5039_v23 = vsel %vm12365_vm8, %v10537_v62, -inf  ;;  %v4894_v55 = vmul.f32 0.17677669, %v7114_v27  ;;  %vm12376_vm8 = vmmov %vm12348_vm0 }
0x2ef7   :  { %v4846_v15 = vpop.f32.mrf.mxu1  ;;  %vm12379_vm7 = vmmov %vm12348_vm0 }
0x2ef8   :  { %5034 = vmax.xlane.f32.xlu0 %v5033_v7  ;;  %v4893_v30 = vmul.f32 0.17677669, %v4846_v15  ;;  %v10555_v28 = vsel %vm4926_vm2, -inf, %v4894_v55  ;;  %vm12381_vm2 = vmmov %vm12348_vm0 }
0x2ef9   :  { %v7117_v7 = vpop.f32.mrf.mxu1  ;;  %v5048_v32 = vsel %vm12368_vm12, %v10555_v28, -inf  ;;  %vm12387_vm12 = vmmov %vm12348_vm0 }
0x2efa   :  { %v10549_v12 = vsel %vm4925_vm6, -inf, %v4893_v30  ;;  %v4896_v27 = vmul.f32 0.17677669, %v7117_v7  ;;  %vm12378_vm6 = vmmov %vm12348_vm0 }
0x2efb   :  { %v5045_v47 = vsel %vm12367_vm10, %v10549_v12, -inf  ;;  %vm12383_vm10 = vmmov %vm12348_vm0 }
0x2efc   :  { %5037 = vmax.xlane.f32.xlu0 %v5036_v18  ;;  %v4856_v18 = vpop.f32.mrf.mxu1  ;;  %v10567_v30 = vsel %vm4928_vm13, -inf, %v4896_v27  ;;  %vm12389_vm13 = vmmov %vm12348_vm0 }
0x2efd   :  { %v4895_v15 = vmul.f32 0.17677669, %v4856_v18 }
0x2f00   :  { %5040 = vmax.xlane.f32.xlu0 %v5039_v23  ;;  %v10561_v23 = vsel %vm4927_vm11, -inf, %v4895_v15  ;;  %vm12385_vm11 = vmmov %vm12348_vm0 }
0x2f01   :  { %v5051_v41 = vsel %vm12369_vm14, %v10561_v23, -inf  ;;  %vm12390_vm14 = vmmov %vm12348_vm0 }
0x2f04   :  { %5043 = vmax.xlane.f32.xlu0 %v5042_v53  ;;  %v5054_v53 = vsel %vm12370_vm15, %v10567_v30, -inf  ;;  %vm12391_vm15 = vmmov %vm12348_vm0 }
0x2f08   :  { %5046 = vmax.xlane.f32.xlu0 %v5045_v47 }
0x2f0c   :  { %5049 = vmax.xlane.f32.xlu0 %v5048_v32 }
0x2f10   :  { %5052 = vmax.xlane.f32.xlu0 %v5051_v41 }
0x2f14   :  { %5055 = vmax.xlane.f32.xlu0 %v5054_v53 }
0x2f3f   :  { %v4966_v13 = vpop.xlane.xlu1 %4965 }
0x2f40   :  { %v5058_v55 = vsub.f32 %v10381_v38, %v4966_v13 }
0x2f41   :  { %v4963_v7 = vpop.xlane.xlu0 %4962 }
0x2f42   :  { %v5057_v18 = vsub.f32 %v10387_v21, %v4963_v7  ;;  %v5091_v47 = vmul.f32 1.442695, %v5058_v55 }
0x2f44   :  { %v5089_v15 = vmul.f32 1.442695, %v5057_v18 }
0x2f46   :  { %7213 = vpow2.f32 %v5089_v15 }
0x2f47   :  { %7215 = vpow2.f32 %v5091_v47 }
0x2f49   :  { %v4969_v20 = vpop.xlane.xlu0 %4968 }
0x2f4a   :  { %v5059_v32 = vsub.f32 %v10395_v49, %v4969_v20  ;;  %v4978_v27 = vpop.xlane.xlu1 %4977 }
0x2f4b   :  { %v5062_v53 = vsub.f32 %v10399_v59, %v4978_v27 }
0x2f4c   :  { %v5093_v60 = vmul.f32 1.442695, %v5059_v32 }
0x2f4d   :  { %v4972_v41 = vpop.xlane.xlu0 %4971  ;;  %v5099_v7 = vmul.f32 1.442695, %v5062_v53 }
0x2f4e   :  { %7217 = vpow2.f32 %v5093_v60  ;;  %v5060_v1 = vsub.f32 %v10403_v31, %v4972_v41 }
0x2f50   :  { %v5095_v9 = vmul.f32 1.442695, %v5060_v1  ;;  %v4984_v38 = vpop.xlane.xlu1 %4983 }
0x2f51   :  { %v4975_v13 = vpop.xlane.xlu0 %4974 }
0x2f52   :  { %7219 = vpow2.f32 %v5095_v9  ;;  %v5061_v21 = vsub.f32 %v10413_v0, %v4975_v13  ;;  %v5064_v9 = vsub.f32 %v10415_v19, %v4984_v38 }
0x2f53   :  { %v10577_v55 = vpop.eup %7213 }
0x2f54   :  { %v5097_v18 = vmul.f32 1.442695, %v5061_v21  ;;  %v4990_v47 = vpop.xlane.xlu1 %4989  ;;  %v5153_v49 = vsel %vm12348_vm0, %v10577_v55, 0.0  ;;  %v10581_v15 = vpop.eup %7215  ;;  %v5103_v41 = vmul.f32 1.442695, %v5064_v9 }
0x2f55   :  { %v4981_v60 = vpop.xlane.xlu0 %4980  ;;  %5154 = vadd.xlane.f32.xlu1 %v5153_v49  ;;  %v5156_v31 = vsel %vm12371_vm1, %v10581_v15, 0.0  ;;  %vm12393_vm1 = vmmov %vm12348_vm0 }
0x2f56   :  { %7221 = vpow2.f32 %v5097_v18  ;;  %v5063_v1 = vsub.f32 %v10427_v6, %v4981_v60 }
0x2f57   :  { %7223 = vpow2.f32 %v5099_v7  ;;  %v5066_v7 = vsub.f32 %v10423_v39, %v4990_v47 }
0x2f58   :  { %v5101_v59 = vmul.f32 1.442695, %v5063_v1 }
0x2f59   :  { %v4996_v0 = vpop.xlane.xlu1 %4995  ;;  %v4987_v20 = vpop.xlane.xlu0 %4986  ;;  %5157 = vadd.xlane.f32.xlu1 %v5156_v31  ;;  %v5107_v9 = vmul.f32 1.442695, %v5066_v7 }
0x2f5a   :  { %v5065_v32 = vsub.f32 %v10435_v3, %v4987_v20  ;;  %7225 = vpow2.f32 %v5101_v59  ;;  %v5068_v59 = vsub.f32 %v10439_v26, %v4996_v0 }
0x2f5b   :  { %v10588_v27 = vpop.eup %7217  ;;  %7227 = vpow2.f32 %v5103_v41 }
0x2f5c   :  { %v5159_v53 = vsel %vm12372_vm3, %v10588_v27, 0.0  ;;  %v5105_v19 = vmul.f32 1.442695, %v5065_v32  ;;  %vm12395_vm3 = vmmov %vm12348_vm0 }
0x2f5d   :  { %v5002_v6 = vpop.xlane.xlu1 %5001  ;;  %v4993_v13 = vpop.xlane.xlu0 %4992  ;;  %5160 = vadd.xlane.f32.xlu1 %v5159_v53 }
0x2f5e   :  { %v5067_v38 = vsub.f32 %v10447_v16, %v4993_v13  ;;  %7229 = vpow2.f32 %v5105_v19  ;;  %v5070_v41 = vsub.f32 %v10451_v52, %v5002_v6 }
0x2f5f   :  { %v10593_v21 = vpop.eup %7219 }
0x2f60   :  { %v5109_v18 = vmul.f32 1.442695, %v5067_v38  ;;  %v5162_v3 = vsel %vm12373_vm4, %v10593_v21, 0.0  ;;  %vm12396_vm4 = vmmov %vm12348_vm0 }
0x2f61   :  { %v4999_v49 = vpop.xlane.xlu0 %4998  ;;  %5163 = vadd.xlane.f32.xlu1 %v5162_v3  ;;  %v10621_v3 = vld [vmem:[%s11760_s4 + $0x78] sm:$0xff] }
0x2f62   :  { %v5069_v60 = vsub.f32 %v10459_v14, %v4999_v49  ;;  %7231 = vpow2.f32 %v5109_v18  ;;  %v5111_v14 = vmul.f32 1.442695, %v5068_v59  ;;  %5425 = vmatprep.subr.mxu0 %v10621_v3  ;;  %v10637_v49 = vld [vmem:[%s11760_s4 + $0x60] sm:$0xff] }
0x2f63   :  { %v10599_v1 = vpop.eup %7221  ;;  %v5008_v16 = vpop.xlane.xlu1 %5007 }
0x2f64   :  { %v5113_v31 = vmul.f32 1.442695, %v5069_v60  ;;  %v5165_v39 = vsel %vm12374_vm5, %v10599_v1, 0.0  ;;  %v10604_v47 = vpop.eup %7223  ;;  %v5072_v7 = vsub.f32 %v10465_v44, %v5008_v16  ;;  %v10631_v44 = vld [vmem:[%s11760_s4 + $0x68] sm:$0xff]  ;;  %vm12398_vm5 = vmmov %vm12348_vm0 }
0x2f65   :  { %v5005_v20 = vpop.xlane.xlu0 %5004  ;;  %5166 = vadd.xlane.f32.xlu1 %v5165_v39  ;;  %v5168_v26 = vsel %vm12375_vm9, %v10604_v47, 0.0  ;;  %v10646_v39 = vld [vmem:[%s11760_s4 + $0x58] sm:$0xff]  ;;  %vm12399_vm9 = vmmov %vm12348_vm0 }
0x2f66   :  { %7233 = vpow2.f32 %v5113_v31  ;;  %v5071_v32 = vsub.f32 %v10471_v61, %v5005_v20  ;;  %v5115_v61 = vmul.f32 1.442695, %v5070_v41 }
0x2f67   :  { %7235 = vpow2.f32 %v5107_v9  ;;  %v10610_v0 = vpop.eup %7225  ;;  %v5014_v13 = vpop.xlane.xlu1 %5013  ;;  %v5119_v9 = vmul.f32 1.442695, %v5072_v7 }
0x2f68   :  { %v5117_v53 = vmul.f32 1.442695, %v5071_v32  ;;  %v5171_v52 = vsel %vm12376_vm8, %v10610_v0, 0.0  ;;  %v10616_v6 = vpop.eup %7227  ;;  %v5074_v59 = vsub.f32 %v10477_v24, %v5014_v13  ;;  %v10657_v24 = vld [vmem:[%s11760_s4 + $0x50] sm:$0xff]  ;;  %vm12400_vm8 = vmmov %vm12348_vm0 }
0x2f69   :  { %v5011_v19 = vpop.xlane.xlu0 %5010  ;;  %5169 = vadd.xlane.f32.xlu1 %v5168_v26  ;;  %v10671_v26 = vld [vmem:[%s11760_s4 + $0x40] sm:$0xff] }
0x2f6a   :  { %7237 = vpow2.f32 %v5117_v53  ;;  %v5073_v38 = vsub.f32 %v10483_v54, %v5011_v19  ;;  %v10626_v54 = vld [vmem:[%s11760_s4 + $0x70] sm:$0xff]  ;;  %v5123_v19 = vmul.f32 1.442695, %v5074_v59 }
0x2f6b   :  { %7239 = vpow2.f32 %v5111_v14  ;;  %v10639_v60 = vpop.eup %7229  ;;  %5426 = vmatpush1.msra.mxu0 %v10626_v54  ;;  %v5174_v14 = vsel %vm12378_vm6, %v10616_v6, 0.0  ;;  %v10693_v59 = vld [vmem:[%s11760_s4 + $0x30] sm:$0xff]  ;;  %vm12401_vm6 = vmmov %vm12348_vm0 }
0x2f6c   :  { %v5121_v18 = vmul.f32 1.442695, %v5073_v38  ;;  %5427 = vmatprep.subr.mxu0 %v10631_v44  ;;  %v5177_v7 = vsel %vm12381_vm2, %v10639_v60, 0.0  ;;  %vm12403_vm2 = vmmov %vm12348_vm0 }
0x2f6d   :  { %5172 = vadd.xlane.f32.xlu1 %v5171_v52  ;;  %v5020_v16 = vpop.xlane.xlu1 %5019  ;;  %5428 = vmatpush1.msra.mxu0 %v10637_v49 }
0x2f6e   :  { %7241 = vpow2.f32 %v5121_v18  ;;  %5429 = vmatprep.subr.mxu0 %v10646_v39  ;;  %v5076_v52 = vsub.f32 %v10489_v34, %v5020_v16  ;;  %v10699_v34 = vld [vmem:[%s11760_s4 + $0x28] sm:$0xff]  ;;  %v10705_v16 = vld [vmem:[%s11760_s4 + $0x20] sm:$0xff] }
0x2f6f   :  { %v5017_v31 = vpop.xlane.xlu0 %5016  ;;  %v10648_v20 = vpop.eup %7231  ;;  %7243 = vpow2.f32 %v5115_v61  ;;  %5430 = vmatpush1.msra.mxu0 %v10657_v24  ;;  %v10681_v61 = vld [vmem:[%s11760_s4 + $0x38] sm:$0xff] }
0x2f70   :  { %12377 = vst [vmem:[#allocation106_spill] sm:$0xff] %v10648_v20  ;;  %v5075_v32 = vsub.f32 %v10495_v58, %v5017_v31  ;;  %v5183_v41 = vsel %vm12379_vm7, %v10648_v20, 0.0  ;;  %v10665_v58 = vld [vmem:[%s11760_s4 + $0x48] sm:$0xff]  ;;  %7245 = vpow2.f32 %v5119_v9  ;;  %vm12402_vm7 = vmmov %vm12348_vm0 }
0x2f71   :  { %5175 = vadd.xlane.f32.xlu1 %v5174_v14  ;;  %5184 = vadd.xlane.f32.xlu0 %v5183_v41 }
0x2f72   :  { %v5125_v53 = vmul.f32 1.442695, %v5075_v32  ;;  %5431 = vmatprep.subr.mxu0 %v10665_v58  ;;  %v5026_v32 = vpop.xlane.xlu1 %5025 }
0x2f73   :  { %v10673_v13 = vpop.eup %7233  ;;  %v5023_v38 = vpop.xlane.xlu0 %5022  ;;  %5432 = vmatpush1.msra.mxu0 %v10671_v26 }
0x2f74   :  { %12380 = vst [vmem:[#allocation110_spill] sm:$0xff] %v10673_v13  ;;  %v10683_v18 = vpop.eup %7235  ;;  %7247 = vpow2.f32 %v5125_v53  ;;  %v5077_v31 = vsub.f32 %v10507_v11, %v5023_v38  ;;  %v5189_v9 = vsel %vm12383_vm10, %v10673_v13, 0.0  ;;  %5433 = vmatprep.subr.mxu0 %v10681_v61  ;;  %v10715_v53 = vld [vmem:[%s11760_s4 + $0x18] sm:$0xff]  ;;  %vm12404_vm10 = vmmov %vm12348_vm0 }
0x2f75   :  { %12382 = vst [vmem:[#allocation100_spill] sm:$0xff] %v10683_v18  ;;  %5178 = vadd.xlane.f32.xlu1 %v5177_v7  ;;  %5190 = vadd.xlane.f32.xlu0 %v5189_v9  ;;  %7249 = vpow2.f32 %v5123_v19  ;;  %v5180_v41 = vsel %vm12385_vm11, %v10683_v18, 0.0  ;;  %v5127_v7 = vmul.f32 1.442695, %v5076_v52  ;;  %v10726_v19 = vld [vmem:[%s11760_s4 + $0x10] sm:$0xff]  ;;  %v10732_v52 = vld [vmem:[%s11760_s4 + $0x8] sm:$0xff]  ;;  %vm12405_vm11 = vmmov %vm12348_vm0 }
0x2f76   :  { %v5129_v11 = vmul.f32 1.442695, %v5077_v31  ;;  %5434 = vmatpush1.msra.mxu0 %v10693_v59  ;;  %v5078_v31 = vsub.f32 %v10501_v10, %v5026_v32  ;;  %v10739_v32 = vld [vmem:[%s11760_s4] sm:$0xff] }
0x2f77   :  { %v10707_v14 = vpop.eup %7237  ;;  %5435 = vmatprep.subr.mxu0 %v10699_v34 }
0x2f78   :  { %12384 = vst [vmem:[#allocation114_spill] sm:$0xff] %v10707_v14  ;;  %v10717_v38 = vpop.eup %7239  ;;  %7251 = vpow2.f32 %v5129_v11  ;;  %v5195_v9 = vsel %vm12387_vm12, %v10707_v14, 0.0  ;;  %5436 = vmatpush1.msra.mxu0 %v10705_v16  ;;  %v5131_v14 = vmul.f32 1.442695, %v5078_v31  ;;  %vm12406_vm12 = vmmov %vm12348_vm0 }
0x2f79   :  { %12386 = vst [vmem:[#allocation99_spill] sm:$0xff] %v10717_v38  ;;  %v5029_v13 = vpop.xlane.xlu0 %5028  ;;  %5181 = vadd.xlane.f32.xlu1 %v5180_v41  ;;  %5196 = vadd.xlane.f32.xlu0 %v5195_v9  ;;  %v5186_v41 = vsel %vm12389_vm13, %v10717_v38, 0.0  ;;  %7253 = vpow2.f32 %v5127_v7  ;;  %vm12407_vm13 = vmmov %vm12348_vm0 }
0x2f7a   :  { %v5079_v10 = vsub.f32 %v10513_v50, %v5029_v13  ;;  %5437 = vmatprep.subr.mxu0 %v10715_v53 }
0x2f7b   :  { %v10741_v11 = vpop.eup %7241  ;;  %5438 = vmatpush1.msra.mxu0 %v10726_v19 }
0x2f7c   :  { %12388 = vst [vmem:[#allocation109_spill] sm:$0xff] %v10741_v11  ;;  %v5133_v20 = vmul.f32 1.442695, %v5079_v10  ;;  %v5201_v50 = vsel %vm12390_vm14, %v10741_v11, 0.0  ;;  %5439 = vmatprep.subr.mxu0 %v10732_v52  ;;  %v10749_v13 = vpop.eup %7243  ;;  %vm12408_vm14 = vmmov %vm12348_vm0 }
0x2f7d   :  { %v5032_v9 = vpop.xlane.xlu0 %5031  ;;  %5187 = vadd.xlane.f32.xlu1 %v5186_v41  ;;  %5440 = vmatpush1.msra.mxu0 %v10739_v32  ;;  %v10754_v7 = vpop.eup %7245  ;;  %v5192_v10 = vsel %vm12391_vm15, %v10749_v13, 0.0  ;;  %vm12409_vm15 = vmmov %vm12348_vm0 }
0x2f7e   :  { %7255 = vpow2.f32 %v5133_v20  ;;  %v5080_v18 = vsub.f32 %v10519_v51, %v5032_v9  ;;  %5202 = vadd.xlane.f32.xlu0 %v5201_v50  ;;  %6093 = vmatprep.subr.mxu0 %v10621_v3 }
0x2f7f   :  { %7257 = vpow2.f32 %v5131_v14 }
0x2f80   :  { %v5135_v31 = vmul.f32 1.442695, %v5080_v18  ;;  %v5198_v18 = vsel %vm12393_vm1, %v10754_v7, 0.0  ;;  %vm12417_vm1 = vmmov %vm12348_vm0 }
0x2f81   :  { %v10758_v11 = vpop.eup %7247  ;;  %v5035_v38 = vpop.xlane.xlu0 %5034  ;;  %5193 = vadd.xlane.f32.xlu1 %v5192_v10 }
0x2f82   :  { %12392 = vst [vmem:[#allocation104_spill] sm:$0xff] %v10758_v11  ;;  %v5081_v41 = vsub.f32 %v10525_v57, %v5035_v38  ;;  %v5207_v20 = vsel %vm12348_vm0, %v10758_v11, 0.0  ;;  %v10763_v51 = vpop.eup %7249  ;;  %7259 = vpow2.f32 %v5135_v31 }
0x2f83   :  { %5208 = vadd.xlane.f32.xlu0 %v5207_v20  ;;  %v5204_v10 = vsel %vm12396_vm4, %v10763_v51, 0.0  ;;  %vm12423_vm4 = vmmov %vm12348_vm0 }
0x2f84   :  { %v5137_v3 = vmul.f32 1.442695, %v5081_v41 }
0x2f85   :  { %v10767_v14 = vpop.eup %7251  ;;  %v5038_v50 = vpop.xlane.xlu0 %5037  ;;  %5199 = vadd.xlane.f32.xlu1 %v5198_v18 }
0x2f86   :  { %12394 = vst [vmem:[#allocation101_spill] sm:$0xff] %v10767_v14  ;;  %7261 = vpow2.f32 %v5137_v3  ;;  %v5082_v9 = vsub.f32 %v10531_v42, %v5038_v50  ;;  %v5213_v57 = vsel %vm12395_vm3, %v10767_v14, 0.0  ;;  %v10774_v31 = vpop.eup %7253  ;;  %vm12419_vm3 = vmmov %vm12348_vm0 }
0x2f87   :  { %5214 = vadd.xlane.f32.xlu0 %v5213_v57  ;;  %v5210_v18 = vsel %vm12399_vm9, %v10774_v31, 0.0  ;;  %vm12430_vm9 = vmmov %vm12348_vm0 }
0x2f88   :  { %v5139_v38 = vmul.f32 1.442695, %v5082_v9 }
0x2f89   :  { %v5041_v41 = vpop.xlane.xlu0 %5040  ;;  %5205 = vadd.xlane.f32.xlu1 %v5204_v10 }
0x2f8a   :  { %7263 = vpow2.f32 %v5139_v38  ;;  %v5083_v20 = vsub.f32 %v10537_v62, %v5041_v41 }
0x2f8b   :  { %v10777_v11 = vpop.eup %7255 }
0x2f8c   :  { %12397 = vst [vmem:[#allocation107_spill] sm:$0xff] %v10777_v11  ;;  %v5141_v3 = vmul.f32 1.442695, %v5083_v20  ;;  %v5219_v42 = vsel %vm12398_vm5, %v10777_v11, 0.0  ;;  %v10783_v50 = vpop.eup %7257  ;;  %vm12426_vm5 = vmmov %vm12348_vm0 }
0x2f8d   :  { %5220 = vadd.xlane.f32.xlu0 %v5219_v42  ;;  %v5044_v9 = vpop.xlane.xlu0 %5043  ;;  %5211 = vadd.xlane.f32.xlu1 %v5210_v18  ;;  %v5216_v62 = vsel %vm12400_vm8, %v10783_v50, 0.0  ;;  %vm12434_vm8 = vmmov %vm12348_vm0 }
0x2f8e   :  { %7265 = vpow2.f32 %v5141_v3  ;;  %v5084_v57 = vsub.f32 %v10543_v37, %v5044_v9 }
0x2f8f   :  { %v10788_v10 = vpop.eup %7259 }
0x2f90   :  { %v5143_v38 = vmul.f32 1.442695, %v5084_v57  ;;  %v5222_v37 = vsel %vm12402_vm7, %v10788_v10, 0.0  ;;  %vm12442_vm7 = vmmov %vm12348_vm0 }
0x2f91   :  { %v5047_v41 = vpop.xlane.xlu0 %5046  ;;  %5217 = vadd.xlane.f32.xlu1 %v5216_v62 }
0x2f92   :  { %7267 = vpow2.f32 %v5143_v38  ;;  %v5085_v20 = vsub.f32 %v10549_v12, %v5047_v41 }
0x2f93   :  { %v10791_v11 = vpop.eup %7261 }
0x2f94   :  { %v5145_v14 = vmul.f32 1.442695, %v5085_v20  ;;  %v5225_v42 = vsel %vm12401_vm6, %v10791_v11, 0.0  ;;  %vm12438_vm6 = vmmov %vm12348_vm0 }
0x2f95   :  { %5226 = vadd.xlane.f32.xlu0 %v5225_v42  ;;  %v5050_v3 = vpop.xlane.xlu0 %5049  ;;  %5223 = vadd.xlane.f32.xlu1 %v5222_v37 }
0x2f96   :  { %7269 = vpow2.f32 %v5145_v14  ;;  %v5086_v18 = vsub.f32 %v10555_v28, %v5050_v3 }
0x2f97   :  { %v10798_v9 = vpop.eup %7263 }
0x2f98   :  { %v5147_v57 = vmul.f32 1.442695, %v5086_v18  ;;  %v5228_v12 = vsel %vm12403_vm2, %v10798_v9, 0.0  ;;  %vm12447_vm2 = vmmov %vm12348_vm0 }
0x2f99   :  { %v5053_v38 = vpop.xlane.xlu0 %5052  ;;  %5229 = vadd.xlane.f32.xlu1 %v5228_v12 }
0x2f9a   :  { %7271 = vpow2.f32 %v5147_v57  ;;  %v5087_v62 = vsub.f32 %v10561_v23, %v5053_v38 }
0x2f9b   :  { %v10803_v41 = vpop.eup %7265 }
0x2f9c   :  { %v5149_v20 = vmul.f32 1.442695, %v5087_v62  ;;  %v5231_v42 = vsel %vm12404_vm10, %v10803_v41, 0.0  ;;  %vm12452_vm10 = vmmov %vm12348_vm0 }
0x2f9d   :  { %5232 = vadd.xlane.f32.xlu0 %v5231_v42  ;;  %v5056_v14 = vpop.xlane.xlu0 %5055 }
0x2f9e   :  { %7273 = vpow2.f32 %v5149_v20  ;;  %v5088_v28 = vsub.f32 %v10567_v30, %v5056_v14  ;;  %v12410_v14 = vpack.i.bf16 %v9976_v33, %v10125_v36  ;;  %v12414_v33 = vpack.i.bf16 %v9995_v2, %v10184_v4 }
0x2f9f   :  { %v10808_v37 = vpop.eup %7267  ;;  %v12416_v4 = vpack.i.bf16 %v10041_v40, %v10211_v46  ;;  %v12418_v40 = vpack.i.bf16 %v10056_v25, %v10264_v29  ;;  %v12421_v25 = vld [vmem:[#allocation105_spill] sm:$0xff] }
0x2fa0   :  { %v5151_v3 = vmul.f32 1.442695, %v5088_v28  ;;  %v5234_v18 = vsel %vm12405_vm11, %v10808_v37, 0.0  ;;  %v12411_v28 = vpack.i.bf16 %v9973_v22, %v10181_v63  ;;  %vm12454_vm11 = vmmov %vm12348_vm0 }
0x2fa1   :  { %5235 = vadd.xlane.f32.xlu1 %v5234_v18  ;;  %v12412_v18 = vpack.i.bf16 %v9992_v45, %v10152_v5  ;;  %v12415_v45 = vpack.i.bf16 %v10031_v35, %v10237_v48 }
0x2fa2   :  { %7275 = vpow2.f32 %v5151_v3 }
0x2fa3   :  { %v10812_v23 = vpop.eup %7269 }
0x2fa4   :  { %v5237_v57 = vsel %vm12406_vm12, %v10812_v23, 0.0  ;;  %vm12456_vm12 = vmmov %vm12348_vm0 }
0x2fa5   :  { %5238 = vadd.xlane.f32.xlu0 %v5237_v57 }
0x2fa7   :  { %v10816_v12 = vpop.eup %7271 }
0x2fa8   :  { %v5240_v38 = vsel %vm12407_vm13, %v10816_v12, 0.0  ;;  %vm12457_vm13 = vmmov %vm12348_vm0 }
0x2fa9   :  { %5241 = vadd.xlane.f32.xlu1 %v5240_v38  ;;  %v12413_v38 = vpack.i.bf16 %v10012_v43, %v10208_v17 }
0x2fab   :  { %v10820_v30 = vpop.eup %7273 }
0x2fac   :  { %v5243_v62 = vsel %vm12408_vm14, %v10820_v30, 0.0  ;;  %vm12459_vm14 = vmmov %vm12348_vm0 }
0x2fad   :  { %5244 = vadd.xlane.f32.xlu0 %v5243_v62 }
0x2faf   :  { %v10824_v20 = vpop.eup %7275 }
0x2fb0   :  { %v5246_v42 = vsel %vm12409_vm15, %v10824_v20, 0.0  ;;  %vm12460_vm15 = vmmov %vm12348_vm0 }
0x2fb1   :  { %5247 = vadd.xlane.f32.xlu1 %v5246_v42 }
0x2fda   :  { %7142 = vxpose.xlu0.b32.start [1/16] (narrow) %v12410_v14, 64 }
0x2fde   :  { %7144 = vxpose.xlu0.b32.cont [2/16] (narrow) %v12411_v28, 64  ;;  %v5155_v3 = vpop.xlane.xlu1 %5154 }
0x2fdf   :  { %7277 = vrcp.f32 %v5155_v3  ;;  %v12435_v3 = vld [vmem:[#allocation83_spill] sm:$0xff] }
0x2fe2   :  { %7146 = vxpose.xlu0.b32.cont [3/16] (narrow) %v12412_v18, 64  ;;  %v5158_v57 = vpop.xlane.xlu1 %5157  ;;  %v12436_v18 = vld [vmem:[#allocation91_spill] sm:$0xff] }
0x2fe3   :  { %7279 = vrcp.f32 %v5158_v57  ;;  %v12437_v57 = vpack.i.bf16 %v12435_v3, %v12436_v18 }
0x2fe6   :  { %7148 = vxpose.xlu0.b32.cont [4/16] (narrow) %v12413_v38, 64  ;;  %v5161_v62 = vpop.xlane.xlu1 %5160 }
0x2fe7   :  { %7281 = vrcp.f32 %v5161_v62  ;;  %v12439_v62 = vld [vmem:[#allocation95_spill] sm:$0xff] }
0x2fea   :  { %7150 = vxpose.xlu0.b32.cont [5/16] (narrow) %v12414_v33, 64  ;;  %v5164_v22 = vpop.xlane.xlu1 %5163  ;;  %v12440_v33 = vld [vmem:[#allocation112_spill] sm:$0xff] }
0x2feb   :  { %7283 = vrcp.f32 %v5164_v22  ;;  %v12441_v22 = vpack.i.bf16 %v12439_v62, %v12440_v33 }
0x2fec   :  { %v7278_v36 = vpop.eup %7277 }
0x2fed   :  { %v5281_v63 = vmul.f32 %v7278_v36, %v10577_v55 }
0x2fee   :  { %7152 = vxpose.xlu0.b32.cont [6/16] (narrow) %v12415_v45, 64  ;;  %v5167_v5 = vpop.xlane.xlu1 %5166 }
0x2fef   :  { %7285 = vrcp.f32 %v5167_v5  ;;  %6446 = vmatmul.mubr.msk.f32.vlgmr.msra.gmra.mxu0 %vm12348_vm0, %v5281_v63  ;;  %v12443_v63 = vld [vmem:[#allocation100_spill] sm:$0xff] }
0x2ff0   :  { %v7280_v43 = vpop.eup %7279  ;;  %5479 = vmatprep.mubr.f32.mxu0 %v12320_v8  ;;  %6094 = vmatpush1.msra.mxu0 %v10626_v54 }
0x2ff1   :  { %v5282_v2 = vmul.f32 %v7280_v43, %v10581_v15  ;;  %6095 = vmatprep.subr.mxu0 %v10631_v44 }
0x2ff2   :  { %7154 = vxpose.xlu0.b32.cont [7/16] (narrow) %v12416_v4, 64  ;;  %v5170_v17 = vpop.xlane.xlu1 %5169  ;;  %6096 = vmatpush1.msra.mxu0 %v10637_v49  ;;  %v12424_v49 = vld [vmem:[#allocation92_spill] sm:$0xff]  ;;  %v12445_v4 = vld [vmem:[#allocation103_spill] sm:$0xff] }
0x2ff3   :  { %7287 = vrcp.f32 %v5170_v17  ;;  %6447 = vmatmul.mubr.msk.f32.gmra.mxu0 %vm12417_vm1, %v5282_v2  ;;  %6097 = vmatprep.subr.mxu0 %v10646_v39  ;;  %v12425_v39 = vpack.i.bf16 %v12424_v49, %v10291_v56  ;;  %v12444_v2 = vld [vmem:[#allocation98_spill] sm:$0xff]  ;;  %vm12462_vm1 = vmmov %vm12348_vm0 }
0x2ff4   :  { %v7282_v35 = vpop.eup %7281  ;;  %5485 = vmatprep.mubr.f32.mxu0 %v12320_v8  ;;  %6098 = vmatpush1.msra.mxu0 %v10657_v24  ;;  %v12446_v17 = vpack.i.bf16 %v12444_v2, %v12445_v4 }
0x2ff5   :  { %v5283_v48 = vmul.f32 %v7282_v35, %v10588_v27  ;;  %6099 = vmatprep.subr.mxu0 %v10665_v58  ;;  %v12420_v27 = vld [vmem:[#allocation87_spill] sm:$0xff] }
0x2ff6   :  { %7156 = vxpose.xlu0.b32.cont [8/16] (narrow) %v12418_v40, 64  ;;  %v5173_v46 = vpop.xlane.xlu1 %5172  ;;  %6100 = vmatpush1.msra.mxu0 %v10671_v26  ;;  %v12422_v29 = vpack.i.bf16 %v12420_v27, %v12421_v25  ;;  %v12453_v27 = vld [vmem:[#allocation99_spill] sm:$0xff] }
0x2ff7   :  { %7289 = vrcp.f32 %v5173_v46  ;;  %6448 = vmatmul.mubr.msk.f32.gmra.mxu0 %vm12419_vm3, %v5283_v48  ;;  %6101 = vmatprep.subr.mxu0 %v10681_v61  ;;  %v12449_v46 = vld [vmem:[#allocation93_spill] sm:$0xff]  ;;  %vm12464_vm3 = vmmov %vm12348_vm0 }
0x2ff8   :  { %v7284_v55 = vpop.eup %7283  ;;  %5491 = vmatprep.mubr.f32.mxu0 %v12320_v8  ;;  %6102 = vmatpush1.msra.mxu0 %v10693_v59  ;;  %v12427_v59 = vld [vmem:[#allocation97_spill] sm:$0xff] }
0x2ff9   :  { %v5284_v15 = vmul.f32 %v7284_v55, %v10593_v21  ;;  %6103 = vmatprep.subr.mxu0 %v10699_v34  ;;  %v12450_v55 = vld [vmem:[#allocation102_spill] sm:$0xff] }
0x2ffa   :  { %7158 = vxpose.xlu0.b32.cont [9/16] (narrow) %v12422_v29, 64  ;;  %v5176_v54 = vpop.xlane.xlu1 %5175  ;;  %6104 = vmatpush1.msra.mxu0 %v10705_v16  ;;  %v5185_v61 = vpop.xlane.xlu0 %5184 }
0x2ffb   :  { %7291 = vrcp.f32 %v5176_v54  ;;  %6449 = vmatmul.mubr.msk.f32.gmra.mxu0 %vm12423_vm4, %v5284_v15  ;;  %6105 = vmatprep.subr.mxu0 %v10715_v53  ;;  %v12451_v15 = vpack.i.bf16 %v12449_v46, %v12450_v55  ;;  %vm12465_vm4 = vmmov %vm12348_vm0 }
0x2ffc   :  { %v7286_v44 = vpop.eup %7285  ;;  %5497 = vmatprep.mubr.f32.mxu0 %v12320_v8  ;;  %6106 = vmatpush1.msra.mxu0 %v10726_v19  ;;  %v12431_v19 = vld [vmem:[#allocation84_spill] sm:$0xff] }
0x2ffd   :  { %v5285_v21 = vmul.f32 %v7286_v44, %v10599_v1  ;;  %6107 = vmatprep.subr.mxu0 %v10732_v52  ;;  %v12428_v1 = vld [vmem:[#allocation113_spill] sm:$0xff]  ;;  %v12432_v52 = vld [vmem:[#allocation94_spill] sm:$0xff] }
0x2ffe   :  { %7160 = vxpose.xlu0.b32.cont [10/16] (narrow) %v12425_v39, 64  ;;  %v5179_v24 = vpop.xlane.xlu1 %5178  ;;  %6108 = vmatpush1.msra.mxu0 %v10739_v32  ;;  %v12429_v34 = vpack.i.bf16 %v12427_v59, %v12428_v1  ;;  %v12433_v32 = vpack.i.bf16 %v12431_v19, %v12432_v52  ;;  %v5191_v28 = vpop.xlane.xlu0 %5190  ;;  %v12455_v44 = vld [vmem:[#allocation110_spill] sm:$0xff] }
0x2fff   :  { %7293 = vrcp.f32 %v5179_v24  ;;  %6450 = vmatmul.mubr.msk.f32.gmra.mxu0 %vm12426_vm5, %v5285_v21  ;;  %vm12467_vm5 = vmmov %vm12348_vm0 }
0x3000   :  { %v7288_v58 = vpop.eup %7287  ;;  %5503 = vmatprep.mubr.f32.mxu0 %v12320_v8 }
0x3001   :  { %v5286_v26 = vmul.f32 %v7288_v58, %v10604_v47 }
0x3002   :  { %7162 = vxpose.xlu0.b32.cont [11/16] (narrow) %v12429_v34, 64  ;;  %v5182_v16 = vpop.xlane.xlu1 %5181  ;;  %v5197_v43 = vpop.xlane.xlu0 %5196 }
0x3003   :  { %7295 = vrcp.f32 %v5182_v16  ;;  %6451 = vmatmul.mubr.msk.f32.gmra.mxu0 %vm12430_vm9, %v5286_v26  ;;  %vm12468_vm9 = vmmov %vm12348_vm0 }
0x3004   :  { %v7290_v56 = vpop.eup %7289  ;;  %5509 = vmatprep.mubr.f32.mxu0 %v12320_v8  ;;  %7297 = vrcp.f32 %v5185_v61  ;;  %v12458_v61 = vld [vmem:[#allocation114_spill] sm:$0xff] }
0x3005   :  { %v5287_v53 = vmul.f32 %v7290_v56, %v10610_v0 }
0x3006   :  { %7164 = vxpose.xlu0.b32.cont [12/16] (narrow) %v12433_v32, 64  ;;  %v5188_v47 = vpop.xlane.xlu1 %5187 }
0x3007   :  { %6452 = vmatmul.mubr.msk.f32.gmra.mxu0 %vm12434_vm8, %v5287_v53  ;;  %7299 = vrcp.f32 %v5188_v47  ;;  %v5203_v54 = vpop.xlane.xlu0 %5202  ;;  %v12461_v53 = vld [vmem:[#allocation109_spill] sm:$0xff]  ;;  %vm12470_vm8 = vmmov %vm12348_vm0 }
0x3008   :  { %v7292_v42 = vpop.eup %7291  ;;  %5515 = vmatprep.mubr.f32.mxu0 %v12320_v8  ;;  %7301 = vrcp.f32 %v5191_v28 }
0x3009   :  { %v5288_v14 = vmul.f32 %v7292_v42, %v10616_v6 }
0x300a   :  { %7166 = vxpose.xlu0.b32.cont [13/16] (narrow) %v12437_v57, 64  ;;  %v5194_v36 = vpop.xlane.xlu1 %5193 }
0x300b   :  { %6453 = vmatmul.mubr.msk.f32.gmra.mxu0 %vm12438_vm6, %v5288_v14  ;;  %7303 = vrcp.f32 %v5194_v36  ;;  %v12463_v14 = vld [vmem:[#allocation104_spill] sm:$0xff]  ;;  %vm12471_vm6 = vmmov %vm12348_vm0 }
0x300c   :  { %v7294_v0 = vpop.eup %7293  ;;  %5521 = vmatprep.mubr.f32.mxu0 %v12320_v8  ;;  %7305 = vrcp.f32 %v5197_v43  ;;  %v5209_v26 = vpop.xlane.xlu0 %5208 }
0x300d   :  { %v5289_v38 = vmul.f32 %v7294_v0, %v10639_v60  ;;  %v12448_v60 = vld [vmem:[#allocation106_spill] sm:$0xff] }
0x300e   :  { %7168 = vxpose.xlu0.b32.cont [14/16] (narrow) %v12441_v22, 64  ;;  %v5200_v40 = vpop.xlane.xlu1 %5199 }
0x300f   :  { %6454 = vmatmul.mubr.msk.f32.gmra.mxu0 %vm12442_vm7, %v5289_v38  ;;  %7307 = vrcp.f32 %v5200_v40  ;;  %v12466_v38 = vld [vmem:[#allocation101_spill] sm:$0xff]  ;;  %vm12472_vm7 = vmmov %vm12348_vm0 }
0x3010   :  { %v7296_v6 = vpop.eup %7295  ;;  %5527 = vmatprep.mubr.f32.mxu0 %v12320_v8  ;;  %7309 = vrcp.f32 %v5203_v54 }
0x3011   :  { %v5290_v45 = vmul.f32 %v7296_v6, %v12443_v63  ;;  %v7298_v5 = vpop.eup %7297  ;;  %v12469_v63 = vld [vmem:[#allocation107_spill] sm:$0xff] }
0x3012   :  { %7170 = vxpose.xlu0.b32.cont [15/16] (narrow) %v12446_v17, 64  ;;  %v5291_v35 = vmul.f32 %v7298_v5, %v12448_v60  ;;  %v5206_v39 = vpop.xlane.xlu1 %5205 }
0x3013   :  { %6455 = vmatmul.mubr.msk.f32.gmra.mxu0 %vm12447_vm2, %v5290_v45  ;;  %7311 = vrcp.f32 %v5206_v39  ;;  %vm12473_vm2 = vmmov %vm12348_vm0 }
0x3014   :  { %5533 = vmatprep.mubr.f32.mxu0 %v12320_v8  ;;  %v7300_v48 = vpop.eup %7299  ;;  %7313 = vrcp.f32 %v5209_v26 }
0x3015   :  { %v5292_v25 = vmul.f32 %v7300_v48, %v12453_v27  ;;  %v7302_v29 = vpop.eup %7301 }
0x3016   :  { %7172 = vxpose.xlu0.b32.end [16/16] (narrow) %v12451_v15, 64  ;;  %v5293_v21 = vmul.f32 %v7302_v29, %v12455_v44  ;;  %v5212_v34 = vpop.xlane.xlu1 %5211 }
0x3017   :  { %6456 = vmatmul.mubr.msk.f32.gmra.mxu0 %vm12452_vm10, %v5291_v35  ;;  %7315 = vrcp.f32 %v5212_v34  ;;  %vm12474_vm10 = vmmov %vm12348_vm0 }
0x3018   :  { %5539 = vmatprep.mubr.f32.mxu0 %v12320_v8  ;;  %v7304_v49 = vpop.eup %7303 }
0x3019   :  { %v5294_v24 = vmul.f32 %v7304_v49, %v10749_v13  ;;  %v7306_v58 = vpop.eup %7305  ;;  %v5215_v13 = vpop.xlane.xlu0 %5214 }
0x301a   :  { %v5295_v59 = vmul.f32 %v7306_v58, %v12458_v61  ;;  %7317 = vrcp.f32 %v5215_v13  ;;  %v5218_v32 = vpop.xlane.xlu1 %5217 }
0x301b   :  { %6457 = vmatmul.mubr.msk.f32.gmra.mxu0 %vm12454_vm11, %v5292_v25  ;;  %7319 = vrcp.f32 %v5218_v32  ;;  %vm12475_vm11 = vmmov %vm12348_vm0 }
0x301c   :  { %5545 = vmatprep.mubr.f32.mxu0 %v12320_v8  ;;  %v7308_v1 = vpop.eup %7307 }
0x301d   :  { %v5296_v16 = vmul.f32 %v7308_v1, %v10754_v7  ;;  %v7310_v56 = vpop.eup %7309  ;;  %v5221_v7 = vpop.xlane.xlu0 %5220 }
0x301e   :  { %v5297_v19 = vmul.f32 %v7310_v56, %v12461_v53  ;;  %7321 = vrcp.f32 %v5221_v7  ;;  %v5224_v18 = vpop.xlane.xlu1 %5223 }
0x301f   :  { %6458 = vmatmul.mubr.msk.f32.gmra.mxu0 %vm12456_vm12, %v5293_v21  ;;  %7323 = vrcp.f32 %v5224_v18  ;;  %vm12476_vm12 = vmmov %vm12348_vm0 }
0x3020   :  { %5551 = vmatprep.mubr.f32.mxu0 %v12320_v8  ;;  %v7312_v52 = vpop.eup %7311 }
0x3021   :  { %v5298_v47 = vmul.f32 %v7312_v52, %v10763_v51  ;;  %v7314_v42 = vpop.eup %7313  ;;  %v5227_v51 = vpop.xlane.xlu0 %5226 }
0x3022   :  { %v5299_v28 = vmul.f32 %v7314_v42, %v12463_v14  ;;  %7325 = vrcp.f32 %v5227_v51  ;;  %v5230_v22 = vpop.xlane.xlu1 %5229 }
0x3023   :  { %6459 = vmatmul.mubr.msk.f32.gmra.mxu0 %vm12457_vm13, %v5294_v24  ;;  %7327 = vrcp.f32 %v5230_v22  ;;  %vm12477_vm13 = vmmov %vm12348_vm0 }
0x3024   :  { %5557 = vmatprep.mubr.f32.mxu0 %v12320_v8  ;;  %v7316_v3 = vpop.eup %7315 }
0x3025   :  { %v5300_v57 = vmul.f32 %v7316_v3, %v10774_v31 }
0x3026   :  { %v5233_v31 = vpop.xlane.xlu0 %5232 }
0x3027   :  { %6460 = vmatmul.mubr.msk.f32.gmra.mxu0 %vm12459_vm14, %v5295_v59  ;;  %v7318_v0 = vpop.eup %7317  ;;  %7329 = vrcp.f32 %v5233_v31  ;;  %vm12478_vm14 = vmmov %vm12348_vm0 }
0x3028   :  { %5563 = vmatprep.mubr.f32.mxu0 %v12320_v8  ;;  %v5301_v62 = vmul.f32 %v7318_v0, %v12466_v38  ;;  %v7320_v33 = vpop.eup %7319 }
0x3029   :  { %v5302_v36 = vmul.f32 %v7320_v33, %v10783_v50 }
0x302a   :  { %v5236_v43 = vpop.xlane.xlu1 %5235 }
0x302b   :  { %6461 = vmatmul.mubr.msk.f32.gmra.mxu0 %vm12460_vm15, %v5296_v16  ;;  %v7322_v6 = vpop.eup %7321  ;;  %7331 = vrcp.f32 %v5236_v43  ;;  %vm12479_vm15 = vmmov %vm12348_vm0  ;;  %v11052_v43 = vld [vmem:[%s11757_s1 + $0xf0] sm:$0xff] }
0x302c   :  { %5569 = vmatprep.mubr.f32.mxu0 %v12320_v8  ;;  %v5303_v45 = vmul.f32 %v7322_v6, %v12469_v63  ;;  %v7324_v5 = vpop.eup %7323 }
0x302d   :  { %v5304_v2 = vmul.f32 %v7324_v5, %v10788_v10  ;;  %v11047_v5 = vld [vmem:[%s11757_s1 + $0xf8] sm:$0xff] }
0x302e   :  { %v5239_v50 = vpop.xlane.xlu0 %5238 }
0x302f   :  { %6462 = vmatmul.mubr.msk.f32.gmra.mxu0 %vm12348_vm0, %v5297_v19  ;;  %v7326_v4 = vpop.eup %7325  ;;  %7333 = vrcp.f32 %v5239_v50  ;;  %v11062_v50 = vld [vmem:[%s11757_s1 + $0xe0] sm:$0xff] }
0x3030   :  { %5575 = vmatprep.mubr.f32.mxu0 %v12320_v8  ;;  %v5305_v17 = vmul.f32 %v7326_v4, %v10791_v11  ;;  %v7328_v60 = vpop.eup %7327 }
0x3031   :  { %v5306_v48 = vmul.f32 %v7328_v60, %v10798_v9  ;;  %v11068_v60 = vld [vmem:[%s11757_s1 + $0xd8] sm:$0xff] }
0x3032   :  { %v5242_v35 = vpop.xlane.xlu1 %5241 }
0x3033   :  { %6463 = vmatmul.mubr.msk.f32.gmra.mxu0 %vm12462_vm1, %v5298_v47  ;;  %7335 = vrcp.f32 %v5242_v35 }
0x3034   :  { %5581 = vmatprep.mubr.f32.mxu0 %v12320_v8  ;;  %v7330_v40 = vpop.eup %7329 }
0x3035   :  { %v5307_v46 = vmul.f32 %v7330_v40, %v10803_v41  ;;  %v11076_v40 = vld [vmem:[%s11757_s1 + $0xd0] sm:$0xff] }
0x3036   :  { %v5245_v10 = vpop.xlane.xlu0 %5244 }
0x3037   :  { %6464 = vmatmul.mubr.msk.f32.gmra.mxu0 %vm12464_vm3, %v5299_v28  ;;  %7337 = vrcp.f32 %v5245_v10 }
0x3038   :  { %5587 = vmatprep.mubr.f32.mxu0 %v12320_v8  ;;  %v7332_v55 = vpop.eup %7331 }
0x3039   :  { %v5308_v15 = vmul.f32 %v7332_v55, %v10808_v37 }
0x303a   :  { %v5248_v11 = vpop.xlane.xlu1 %5247 }
0x303b   :  { %6465 = vmatmul.mubr.msk.f32.gmra.mxu0 %vm12465_vm4, %v5300_v57  ;;  %7339 = vrcp.f32 %v5248_v11  ;;  %vm12500_vm4 = vmmov %vm12462_vm1 }
0x303c   :  { %5593 = vmatprep.mubr.f32.mxu0 %v12320_v8  ;;  %v7334_v27 = vpop.eup %7333 }
0x303d   :  { %v5309_v9 = vmul.f32 %v7334_v27, %v10812_v23 }
0x303f   :  { %6466 = vmatmul.mubr.msk.f32.gmra.mxu0 %vm12467_vm5, %v5301_v62 }
0x3040   :  { %5599 = vmatprep.mubr.f32.mxu0 %v12320_v8  ;;  %v7336_v25 = vpop.eup %7335 }
0x3041   :  { %v5310_v41 = vmul.f32 %v7336_v25, %v10816_v12 }
0x3043   :  { %6467 = vmatmul.mubr.msk.f32.gmra.mxu0 %vm12468_vm9, %v5302_v36  ;;  %vm12501_vm9 = vmmov %vm12462_vm1 }
0x3044   :  { %5605 = vmatprep.mubr.f32.mxu0 %v12320_v8  ;;  %v7338_v29 = vpop.eup %7337 }
0x3045   :  { %v5311_v37 = vmul.f32 %v7338_v29, %v10820_v30  ;;  %v11104_v29 = vld [vmem:[%s11757_s1 + $0xb0] sm:$0xff] }
0x3047   :  { %6468 = vmatmul.mubr.msk.f32.gmra.mxu0 %vm12470_vm8, %v5303_v45 }
0x3048   :  { %5611 = vmatprep.mubr.f32.mxu0 %v12320_v8  ;;  %v7340_v54 = vpop.eup %7339 }
0x3049   :  { %v5312_v23 = vmul.f32 %v7340_v54, %v10824_v20  ;;  %v11110_v54 = vld [vmem:[%s11757_s1 + $0xa8] sm:$0xff] }
0x304b   :  { %6469 = vmatmul.mubr.msk.f32.gmra.mxu0 %vm12471_vm6, %v5304_v2  ;;  %v11057_v2 = vld [vmem:[%s11757_s1 + $0xe8] sm:$0xff]  ;;  %vm12502_vm6 = vmmov %vm12462_vm1 }
0x304c   :  { %5617 = vmatprep.mubr.f32.mxu0 %v12320_v8 }
0x304f   :  { %6470 = vmatmul.mubr.msk.f32.gmra.mxu0 %vm12472_vm7, %v5305_v17 }
0x3050   :  { %5623 = vmatprep.mubr.f32.mxu0 %v12320_v8 }
0x3053   :  { %6471 = vmatmul.mubr.msk.f32.gmra.mxu0 %vm12473_vm2, %v5306_v48  ;;  %vm12503_vm2 = vmmov %vm12462_vm1 }
0x3054   :  { %5629 = vmatprep.mubr.f32.mxu0 %v12320_v8 }
0x3056   :  { %v11017_v56 = vpop.trf.xlu0 }
0x3057   :  { %6472 = vmatmul.mubr.msk.f32.gmra.mxu0 %vm12474_vm10, %v5307_v46  ;;  %v11943_v19 = vunpack.i.l.bf16 %v11017_v56  ;;  %v11082_v46 = vld [vmem:[%s11757_s1 + $0xc8] sm:$0xff] }
0x3058   :  { %5635 = vmatprep.mubr.f32.mxu0 %v12320_v8 }
0x3059   :  { %5858 = vmatprep.mubr.f32.mxu1 %v11943_v19 }
0x305a   :  { %v11024_v52 = vpop.trf.xlu0 }
0x305b   :  { %6473 = vmatmul.mubr.msk.f32.gmra.mxu0 %vm12475_vm11, %v5308_v15  ;;  %v11090_v15 = vld [vmem:[%s11757_s1 + $0xc0] sm:$0xff]  ;;  %vm12504_vm11 = vmmov %vm12462_vm1 }
0x305c   :  { %5641 = vmatprep.mubr.f32.mxu0 %v12320_v8 }
0x305e   :  { %v11032_v42 = vpop.trf.xlu0 }
0x305f   :  { %6474 = vmatmul.mubr.msk.f32.gmra.mxu0 %vm12476_vm12, %v5309_v9  ;;  %v11096_v9 = vld [vmem:[%s11757_s1 + $0xb8] sm:$0xff] }
0x3060   :  { %5647 = vmatprep.mubr.f32.mxu0 %v12320_v8 }
0x3062   :  { %v11034_v28 = vpop.trf.xlu0 }
0x3063   :  { %6475 = vmatmul.mubr.msk.f32.gmra.mxu0 %vm12477_vm13, %v5310_v41 }
0x3064   :  { %5653 = vmatprep.mubr.f32.mxu0 %v12320_v8 }
0x3066   :  { %v11036_v57 = vpop.trf.xlu0 }
0x3067   :  { %6476 = vmatmul.mubr.msk.f32.gmra.mxu0 %vm12478_vm14, %v5311_v37  ;;  %vm12531_vm14 = vmmov %vm12462_vm1 }
0x3068   :  { %5659 = vmatprep.mubr.f32.mxu0 %v12320_v8 }
0x306a   :  { %v11038_v38 = vpop.trf.xlu0 }
0x306b   :  { %6477 = vmatmul.mubr.msk.f32.gmra.mxu0 %vm12479_vm15, %v5312_v23  ;;  %vm12532_vm15 = vmmov %vm12462_vm1 }
0x306c   :  { %6141 = vmatprep.mubr.f32.mxu0 %v12320_v8 }
0x306e   :  { %v11040_v22 = vpop.trf.xlu0 }
0x306f   :  { %12480 = vst [vmem:[#allocation33_spill] sm:$0xff] %v11040_v22  ;;  %v11358_v22 = vld [vmem:[%s11757_s1 + $0x1d0] sm:$0xff] }
0x3072   :  { %v11042_v31 = vpop.trf.xlu0 }
0x3073   :  { %12481 = vst [vmem:[#allocation38_spill] sm:$0xff] %v11042_v31 }
0x30af   :  { %v10987_v44 = vpop.f32.mrf.mxu0 }
0x30b1   :  { %v10989_v12 = vpop.f32.mrf.mxu0 }
0x30b3   :  { %v10991_v21 = vpop.f32.mrf.mxu0 }
0x30b5   :  { %v10993_v49 = vpop.f32.mrf.mxu0 }
0x30b7   :  { %v10995_v30 = vpop.f32.mrf.mxu0 }
0x30b9   :  { %v10997_v39 = vpop.f32.mrf.mxu0 }
0x30bb   :  { %v10999_v24 = vpop.f32.mrf.mxu0 }
0x30bd   :  { %v11001_v58 = vpop.f32.mrf.mxu0 }
0x30bf   :  { %v11003_v20 = vpop.f32.mrf.mxu0 }
0x30c1   :  { %v11005_v26 = vpop.f32.mrf.mxu0 }
0x30c3   :  { %v11007_v61 = vpop.f32.mrf.mxu0 }
0x30c5   :  { %v11009_v59 = vpop.f32.mrf.mxu0 }
0x30c7   :  { %v11011_v1 = vpop.f32.mrf.mxu0 }
0x30c9   :  { %v11013_v34 = vpop.f32.mrf.mxu0 }
0x30cb   :  { %v11015_v16 = vpop.f32.mrf.mxu0 }
0x30cd   :  { %v11019_v13 = vpop.f32.mrf.mxu0 }
0x30cf   :  { %v11021_v53 = vpop.f32.mrf.mxu0 }
0x30d1   :  { %v11026_v32 = vpop.f32.mrf.mxu0 }
0x30d3   :  { %v11030_v47 = vpop.f32.mrf.mxu0 }
0x30d5   :  { %v5531_v7 = vpop.f32.mrf.mxu0 }
0x30d7   :  { %v5535_v14 = vpop.f32.mrf.mxu0 }
0x30d9   :  { %v5537_v3 = vpop.f32.mrf.mxu0 }
0x30db   :  { %v5541_v18 = vpop.f32.mrf.mxu0 }
0x30dd   :  { %v5543_v0 = vpop.f32.mrf.mxu0 }
0x30df   :  { %v5547_v51 = vpop.f32.mrf.mxu0 }
0x30e0   :  { %v5690_v23 = vmul.f32 %v5547_v51, %v11090_v15  ;;  %v11132_v51 = vld [vmem:[%s11757_s1 + $0x90] sm:$0xff] }
0x30e1   :  { %v5549_v62 = vpop.f32.mrf.mxu0 }
0x30e2   :  { %v5691_v37 = vmul.f32 %v5549_v62, %v11082_v46  ;;  %v11124_v62 = vld [vmem:[%s11757_s1 + $0x98] sm:$0xff] }
0x30e3   :  { %v5553_v33 = vpop.f32.mrf.mxu0 }
0x30e4   :  { %v5692_v25 = vmul.f32 %v5553_v33, %v11076_v40  ;;  %v11118_v33 = vld [vmem:[%s11757_s1 + $0xa0] sm:$0xff] }
0x30e5   :  { %v5555_v36 = vpop.f32.mrf.mxu0 }
0x30e6   :  { %v5693_v27 = vmul.f32 %v5555_v36, %v11068_v60 }
0x30e7   :  { %v5559_v6 = vpop.f32.mrf.mxu0 }
0x30e8   :  { %v5694_v55 = vmul.f32 %v5559_v6, %v11062_v50  ;;  %v5689_v6 = vmul.f32 %v5543_v0, %v11096_v9  ;;  %v11138_v0 = vld [vmem:[%s11757_s1 + $0x88] sm:$0xff] }
0x30e9   :  { %v5561_v63 = vpop.f32.mrf.mxu0 }
0x30ea   :  { %v5695_v10 = vmul.f32 %v5561_v63, %v11057_v2  ;;  %v5688_v63 = vmul.f32 %v5541_v18, %v11104_v29  ;;  %v11146_v18 = vld [vmem:[%s11757_s1 + $0x80] sm:$0xff] }
0x30eb   :  { %v5565_v45 = vpop.f32.mrf.mxu0 }
0x30ec   :  { %v5696_v35 = vmul.f32 %v5565_v45, %v11052_v43 }
0x30ed   :  { %v5567_v4 = vpop.f32.mrf.mxu0 }
0x30ee   :  { %v5697_v17 = vmul.f32 %v5567_v4, %v11047_v5  ;;  %v5687_v4 = vmul.f32 %v5537_v3, %v11110_v54  ;;  %v11152_v3 = vld [vmem:[%s11757_s1 + $0x78] sm:$0xff] }
0x30ef   :  { %v11071_v48 = vpop.f32.mrf.mxu0  ;;  %12482 = vst [vmem:[#allocation27_spill] sm:$0xff] %v11152_v3 }
0x30f0   :  { %5794 = vmatprep.subr.mxu1 %v5697_v17  ;;  %v5686_v17 = vmul.f32 %v5535_v14, %v11118_v33 }
0x30f1   :  { %v11085_v11 = vpop.f32.mrf.mxu0  ;;  %5795 = vmatpush1.msra.mxu1 %v5696_v35 }
0x30f2   :  { %5796 = vmatprep.subr.mxu1 %v5695_v10  ;;  %v5685_v10 = vmul.f32 %v5531_v7, %v11124_v62  ;;  %v5683_v7 = vmul.f32 %v11026_v32, %v11138_v0  ;;  %v5681_v32 = vmul.f32 %v11019_v13, %v11152_v3  ;;  %v11364_v3 = vld [vmem:[%s11757_s1 + $0x1c8] sm:$0xff] }
0x30f3   :  { %v11099_v41 = vpop.f32.mrf.mxu0  ;;  %5797 = vmatpush1.msra.mxu1 %v5694_v55  ;;  %v5684_v55 = vmul.f32 %v11030_v47, %v11132_v51  ;;  %v5682_v47 = vmul.f32 %v11021_v53, %v11146_v18 }
0x30f4   :  { %5798 = vmatprep.subr.mxu1 %v5693_v27  ;;  %v11161_v27 = vld [vmem:[%s11757_s1 + $0x70] sm:$0xff] }
0x30f5   :  { %v11113_v36 = vpop.f32.mrf.mxu0  ;;  %5799 = vmatpush1.msra.mxu1 %v5692_v25  ;;  %12483 = vst [vmem:[#allocation21_spill] sm:$0xff] %v11161_v27  ;;  %v11168_v25 = vld [vmem:[%s11757_s1 + $0x68] sm:$0xff]  ;;  %v5680_v53 = vmul.f32 %v11015_v16, %v11161_v27 }
0x30f6   :  { %5800 = vmatprep.subr.mxu1 %v5691_v37  ;;  %12484 = vst [vmem:[#allocation46_spill] sm:$0xff] %v11168_v25  ;;  %v5679_v13 = vmul.f32 %v11013_v34, %v11168_v25 }
0x30f7   :  { %v11127_v45 = vpop.f32.mrf.mxu0  ;;  %5801 = vmatpush1.msra.mxu1 %v5690_v23  ;;  %v11177_v23 = vld [vmem:[%s11757_s1 + $0x60] sm:$0xff] }
0x30f8   :  { %5802 = vmatprep.subr.mxu1 %v5689_v6  ;;  %12485 = vst [vmem:[#allocation37_spill] sm:$0xff] %v11177_v23  ;;  %v11184_v6 = vld [vmem:[%s11757_s1 + $0x58] sm:$0xff]  ;;  %v5678_v16 = vmul.f32 %v11011_v1, %v11177_v23 }
0x30f9   :  { %v11141_v35 = vpop.f32.mrf.mxu0  ;;  %5803 = vmatpush1.msra.mxu1 %v5688_v63  ;;  %12486 = vst [vmem:[#allocation23_spill] sm:$0xff] %v11184_v6  ;;  %v5677_v34 = vmul.f32 %v11009_v59, %v11184_v6 }
0x30fa   :  { %5804 = vmatprep.subr.mxu1 %v5687_v4  ;;  %v11193_v4 = vld [vmem:[%s11757_s1 + $0x50] sm:$0xff] }
0x30fb   :  { %v11156_v14 = vpop.f32.mrf.mxu0  ;;  %5805 = vmatpush1.msra.mxu1 %v5686_v17  ;;  %12487 = vst [vmem:[#allocation42_spill] sm:$0xff] %v11193_v4  ;;  %v11200_v17 = vld [vmem:[%s11757_s1 + $0x48] sm:$0xff]  ;;  %v5676_v1 = vmul.f32 %v11007_v61, %v11193_v4 }
0x30fc   :  { %5806 = vmatprep.subr.mxu1 %v5685_v10  ;;  %12488 = vst [vmem:[#allocation44_spill] sm:$0xff] %v11200_v17  ;;  %v5675_v59 = vmul.f32 %v11005_v26, %v11200_v17 }
0x30fd   :  { %v11172_v37 = vpop.f32.mrf.mxu0  ;;  %5807 = vmatpush1.msra.mxu1 %v5684_v55  ;;  %v11209_v55 = vld [vmem:[%s11757_s1 + $0x40] sm:$0xff] }
0x30fe   :  { %5808 = vmatprep.subr.mxu1 %v5683_v7  ;;  %12489 = vst [vmem:[#allocation26_spill] sm:$0xff] %v11209_v55  ;;  %v11216_v7 = vld [vmem:[%s11757_s1 + $0x38] sm:$0xff]  ;;  %v5674_v61 = vmul.f32 %v11003_v20, %v11209_v55 }
0x30ff   :  { %v11188_v63 = vpop.f32.mrf.mxu0  ;;  %5809 = vmatpush1.msra.mxu1 %v5682_v47  ;;  %12490 = vst [vmem:[#allocation29_spill] sm:$0xff] %v11216_v7  ;;  %v5673_v26 = vmul.f32 %v11001_v58, %v11216_v7 }
0x3100   :  { %5810 = vmatprep.subr.mxu1 %v5681_v32  ;;  %v11225_v32 = vld [vmem:[%s11757_s1 + $0x30] sm:$0xff] }
0x3101   :  { %v11204_v10 = vpop.f32.mrf.mxu0  ;;  %5811 = vmatpush1.msra.mxu1 %v5680_v53  ;;  %12491 = vst [vmem:[#allocation52_spill] sm:$0xff] %v11225_v32  ;;  %v11232_v53 = vld [vmem:[%s11757_s1 + $0x28] sm:$0xff]  ;;  %v5672_v20 = vmul.f32 %v10999_v24, %v11225_v32 }
0x3102   :  { %5812 = vmatprep.subr.mxu1 %v5679_v13  ;;  %12492 = vst [vmem:[#allocation49_spill] sm:$0xff] %v11232_v53  ;;  %v5671_v58 = vmul.f32 %v10997_v39, %v11232_v53 }
0x3103   :  { %v11220_v47 = vpop.f32.mrf.mxu0  ;;  %5813 = vmatpush1.msra.mxu1 %v5678_v16  ;;  %v11241_v16 = vld [vmem:[%s11757_s1 + $0x20] sm:$0xff] }
0x3104   :  { %5814 = vmatprep.subr.mxu1 %v5677_v34  ;;  %12493 = vst [vmem:[#allocation74_spill] sm:$0xff] %v11241_v16  ;;  %v11248_v34 = vld [vmem:[%s11757_s1 + $0x18] sm:$0xff]  ;;  %v5670_v24 = vmul.f32 %v10995_v30, %v11241_v16 }
0x3105   :  { %v11236_v13 = vpop.f32.mrf.mxu0  ;;  %5815 = vmatpush1.msra.mxu1 %v5676_v1  ;;  %12494 = vst [vmem:[#allocation30_spill] sm:$0xff] %v11248_v34  ;;  %v11257_v1 = vld [vmem:[%s11757_s1 + $0x10] sm:$0xff]  ;;  %v5669_v39 = vmul.f32 %v10993_v49, %v11248_v34 }
0x3106   :  { %5816 = vmatprep.subr.mxu1 %v5675_v59  ;;  %12495 = vst [vmem:[#allocation118_spill] sm:$0xff] %v11257_v1  ;;  %v11264_v59 = vld [vmem:[%s11757_s1 + $0x8] sm:$0xff] }
0x3107   :  { %v11252_v19 = vpop.f32.mrf.mxu0  ;;  %5817 = vmatpush1.msra.mxu1 %v5674_v61  ;;  %12496 = vst [vmem:[#allocation50_spill] sm:$0xff] %v11264_v59  ;;  %v11273_v61 = vld [vmem:[%s11757_s1] sm:$0xff]  ;;  %v5667_v30 = vmul.f32 %v10989_v12, %v11264_v59 }
0x3108   :  { %5818 = vmatprep.subr.mxu1 %v5673_v26  ;;  %12497 = vst [vmem:[#allocation81_spill] sm:$0xff] %v11273_v61  ;;  %v5668_v26 = vmul.f32 %v10991_v21, %v11257_v1  ;;  %v12498_v21 = vld [vmem:[#allocation108_spill] sm:$0xff] }
0x3109   :  { %v11268_v32 = vpop.f32.mrf.mxu0  ;;  %5819 = vmatpush1.msra.mxu1 %v5672_v20  ;;  %v5666_v20 = vmul.f32 %v10987_v44, %v11273_v61  ;;  %v6022_v12 = vadd.s32 8, %v12498_v21  ;;  %v6025_v17 = vadd.s32 32, %v12498_v21  ;;  %v6026_v4 = vadd.s32 40, %v12498_v21 }
0x310a   :  { %5820 = vmatprep.subr.mxu1 %v5671_v58  ;;  %v12499_v58 = vld [vmem:[#allocation5_spill] sm:$0xff] }
0x310b   :  { %v11279_v53 = vpop.f32.mrf.mxu0  ;;  %5821 = vmatpush1.msra.mxu1 %v5670_v24  ;;  %vm6029_vm0 = vcmp.le.s32.totalorder %v12499_v58, %v12498_v21  ;;  %vm6030_vm3 = vcmp.le.s32.totalorder %v12499_v58, %v6022_v12  ;;  %v6024_v12 = vadd.s32 24, %v12498_v21  ;;  %vm6033_vm7 = vcmp.le.s32.totalorder %v12499_v58, %v6025_v17  ;;  %v11331_v17 = vld [vmem:[%s11757_s1 + $0x1f8] sm:$0xff] }
0x310c   :  { %5822 = vmatprep.subr.mxu1 %v5669_v39  ;;  %v6478_v24 = vsel %vm6029_vm0, 1.0, %v12320_v8  ;;  %vm6034_vm10 = vcmp.le.s32.totalorder %v12499_v58, %v6026_v4  ;;  %v11341_v4 = vld [vmem:[%s11757_s1 + $0x1e8] sm:$0xff] }
0x310d   :  { %v11285_v16 = vpop.f32.mrf.mxu0  ;;  %5823 = vmatpush1.msra.mxu1 %v5668_v26  ;;  %6486 = vmatmul.mubr.msk.f32.vlgmr.msra.gmra.mxu0 %vm12462_vm1, %v6478_v24  ;;  %v6479_v26 = vsel %vm6030_vm3, 1.0, %v12320_v8  ;;  %vm6032_vm8 = vcmp.le.s32.totalorder %v12499_v58, %v6024_v12 }
0x310e   :  { %5824 = vmatprep.subr.mxu1 %v5667_v30  ;;  %6147 = vmatprep.mubr.f32.mxu0 %v12320_v8 }
0x310f   :  { %v11287_v7 = vpop.f32.mrf.mxu0  ;;  %5825 = vmatpush1.msra.mxu1 %v5666_v20  ;;  %v6023_v20 = vadd.s32 16, %v12498_v21  ;;  %v11352_v21 = vld [vmem:[%s11757_s1 + $0x1d8] sm:$0xff] }
0x3111   :  { %v11289_v49 = vpop.f32.mrf.mxu0  ;;  %6487 = vmatmul.mubr.msk.f32.gmra.mxu0 %vm12500_vm4, %v6479_v26  ;;  %vm6031_vm5 = vcmp.le.s32.totalorder %v12499_v58, %v6023_v20  ;;  %v6481_v26 = vsel %vm6032_vm8, 1.0, %v12320_v8 }
0x3112   :  { %6153 = vmatprep.mubr.f32.mxu0 %v12320_v8  ;;  %v6480_v61 = vsel %vm6031_vm5, 1.0, %v12320_v8 }
0x3113   :  { %v11294_v1 = vpop.f32.mrf.mxu0 }
0x3115   :  { %v11298_v44 = vpop.f32.mrf.mxu0  ;;  %6488 = vmatmul.mubr.msk.f32.gmra.mxu0 %vm12501_vm9, %v6480_v61  ;;  %v6482_v61 = vsel %vm6033_vm7, 1.0, %v12320_v8 }
0x3116   :  { %6159 = vmatprep.mubr.f32.mxu0 %v12320_v8 }
0x3117   :  { %v11301_v39 = vpop.f32.mrf.mxu0 }
0x3119   :  { %v11305_v30 = vpop.f32.mrf.mxu0  ;;  %6489 = vmatmul.mubr.msk.f32.gmra.mxu0 %vm12502_vm6, %v6481_v26  ;;  %v6483_v26 = vsel %vm6034_vm10, 1.0, %v12320_v8 }
0x311a   :  { %6165 = vmatprep.mubr.f32.mxu0 %v12320_v8 }
0x311b   :  { %v5637_v24 = vpop.f32.mrf.mxu0 }
0x311d   :  { %v5639_v59 = vpop.f32.mrf.mxu0  ;;  %6490 = vmatmul.mubr.msk.f32.gmra.mxu0 %vm12503_vm2, %v6482_v61  ;;  %v11336_v61 = vld [vmem:[%s11757_s1 + $0x1f0] sm:$0xff] }
0x311e   :  { %6171 = vmatprep.mubr.f32.mxu0 %v12320_v8  ;;  %12505 = vst [vmem:[#allocation117_spill] sm:$0xff] %v11336_v61 }
0x311f   :  { %v5643_v34 = vpop.f32.mrf.mxu0 }
0x3121   :  { %v5645_v55 = vpop.f32.mrf.mxu0  ;;  %6491 = vmatmul.mubr.msk.f32.gmra.mxu0 %vm12504_vm11, %v6483_v26  ;;  %v11346_v26 = vld [vmem:[%s11757_s1 + $0x1e0] sm:$0xff] }
0x3123   :  { %v5649_v20 = vpop.f32.mrf.mxu0 }
0x3125   :  { %v5651_v31 = vpop.f32.mrf.mxu0 }
0x3127   :  { %v5655_v12 = vpop.f32.mrf.mxu0 }
0x3129   :  { %v5657_v6 = vpop.f32.mrf.mxu0 }
0x312a   :  { %v5727_v27 = vmul.f32 %v5657_v6, %v11341_v4  ;;  %v11376_v6 = vld [vmem:[%s11757_s1 + $0x1b8] sm:$0xff] }
0x312b   :  { %v5661_v23 = vpop.f32.mrf.mxu0 }
0x312c   :  { %v5728_v25 = vmul.f32 %v5661_v23, %v11336_v61  ;;  %v11370_v23 = vld [vmem:[%s11757_s1 + $0x1c0] sm:$0xff]  ;;  %v5725_v61 = vmul.f32 %v5651_v31, %v11352_v21  ;;  %v11388_v31 = vld [vmem:[%s11757_s1 + $0x1a8] sm:$0xff] }
0x312d   :  { %v5663_v8 = vpop.f32.mrf.mxu0 }
0x312e   :  { %v5729_v58 = vmul.f32 %v5663_v8, %v11331_v17  ;;  %v5726_v8 = vmul.f32 %v5655_v12, %v11346_v26  ;;  %v5723_v12 = vmul.f32 %v5645_v55, %v11364_v3  ;;  %v11400_v55 = vld [vmem:[%s11757_s1 + $0x198] sm:$0xff] }
0x3130   :  { %5826 = vmatprep.subr.mxu1 %v5729_v58  ;;  %v5724_v58 = vmul.f32 %v5649_v20, %v11358_v22  ;;  %v11394_v20 = vld [vmem:[%s11757_s1 + $0x1a0] sm:$0xff] }
0x3131   :  { %5827 = vmatpush2.msra.mxu1 %v5728_v25  ;;  %v11382_v25 = vld [vmem:[%s11757_s1 + $0x1b0] sm:$0xff] }
0x3132   :  { %5828 = vmatprep.subr.mxu1 %v5727_v27  ;;  %v5722_v27 = vmul.f32 %v5643_v34, %v11370_v23  ;;  %v11406_v34 = vld [vmem:[%s11757_s1 + $0x190] sm:$0xff] }
0x3133   :  { %5829 = vmatpush2.msra.mxu1 %v5726_v8  ;;  %v5721_v8 = vmul.f32 %v5639_v59, %v11376_v6  ;;  %v11413_v59 = vld [vmem:[%s11757_s1 + $0x188] sm:$0xff] }
0x3134   :  { %5830 = vmatprep.subr.mxu1 %v5725_v61  ;;  %v5720_v61 = vmul.f32 %v5637_v24, %v11382_v25  ;;  %v11420_v24 = vld [vmem:[%s11757_s1 + $0x180] sm:$0xff] }
0x3135   :  { %5831 = vmatpush2.msra.mxu1 %v5724_v58  ;;  %v5719_v58 = vmul.f32 %v11305_v30, %v11388_v31  ;;  %v11427_v30 = vld [vmem:[%s11757_s1 + $0x178] sm:$0xff] }
0x3136   :  { %5832 = vmatprep.subr.mxu1 %v5723_v12  ;;  %v5718_v12 = vmul.f32 %v11301_v39, %v11394_v20  ;;  %v11434_v39 = vld [vmem:[%s11757_s1 + $0x170] sm:$0xff] }
0x3137   :  { %5833 = vmatpush2.msra.mxu1 %v5722_v27  ;;  %v5717_v27 = vmul.f32 %v11298_v44, %v11400_v55  ;;  %v11441_v44 = vld [vmem:[%s11757_s1 + $0x168] sm:$0xff] }
0x3138   :  { %5834 = vmatprep.subr.mxu1 %v5721_v8  ;;  %v5716_v8 = vmul.f32 %v11294_v1, %v11406_v34  ;;  %v11448_v1 = vld [vmem:[%s11757_s1 + $0x160] sm:$0xff] }
0x3139   :  { %5835 = vmatpush2.msra.mxu1 %v5720_v61  ;;  %v5715_v61 = vmul.f32 %v11289_v49, %v11413_v59  ;;  %v11455_v49 = vld [vmem:[%s11757_s1 + $0x158] sm:$0xff] }
0x313a   :  { %5836 = vmatprep.subr.mxu1 %v5719_v58  ;;  %v5714_v58 = vmul.f32 %v11287_v7, %v11420_v24  ;;  %v11462_v7 = vld [vmem:[%s11757_s1 + $0x150] sm:$0xff] }
0x313b   :  { %5837 = vmatpush2.msra.mxu1 %v5718_v12  ;;  %v5713_v12 = vmul.f32 %v11285_v16, %v11427_v30  ;;  %v11469_v16 = vld [vmem:[%s11757_s1 + $0x148] sm:$0xff] }
0x313c   :  { %5838 = vmatprep.subr.mxu1 %v5717_v27  ;;  %v5712_v27 = vmul.f32 %v11279_v53, %v11434_v39  ;;  %v11476_v53 = vld [vmem:[%s11757_s1 + $0x140] sm:$0xff] }
0x313d   :  { %5839 = vmatpush2.msra.mxu1 %v5716_v8  ;;  %v5711_v8 = vmul.f32 %v11268_v32, %v11441_v44  ;;  %v11483_v32 = vld [vmem:[%s11757_s1 + $0x138] sm:$0xff] }
0x313e   :  { %5840 = vmatprep.subr.mxu1 %v5715_v61  ;;  %v5710_v61 = vmul.f32 %v11252_v19, %v11448_v1  ;;  %v11490_v19 = vld [vmem:[%s11757_s1 + $0x130] sm:$0xff] }
0x313f   :  { %5841 = vmatpush2.msra.mxu1 %v5714_v58  ;;  %v5709_v58 = vmul.f32 %v11236_v13, %v11455_v49  ;;  %v11497_v13 = vld [vmem:[%s11757_s1 + $0x128] sm:$0xff] }
0x3140   :  { %5842 = vmatprep.subr.mxu1 %v5713_v12  ;;  %v5708_v12 = vmul.f32 %v11220_v47, %v11462_v7  ;;  %v11504_v47 = vld [vmem:[%s11757_s1 + $0x120] sm:$0xff] }
0x3141   :  { %5843 = vmatpush2.msra.mxu1 %v5712_v27  ;;  %v5707_v27 = vmul.f32 %v11204_v10, %v11469_v16  ;;  %12506 = vst [vmem:[#allocation115_spill] sm:$0xff] %v11504_v47  ;;  %v11511_v10 = vld [vmem:[%s11757_s1 + $0x118] sm:$0xff] }
0x3142   :  { %5844 = vmatprep.subr.mxu1 %v5711_v8  ;;  %v5706_v8 = vmul.f32 %v11188_v63, %v11476_v53  ;;  %v11518_v63 = vld [vmem:[%s11757_s1 + $0x110] sm:$0xff] }
0x3143   :  { %5845 = vmatpush2.msra.mxu1 %v5710_v61  ;;  %v5705_v61 = vmul.f32 %v11172_v37, %v11483_v32  ;;  %v11525_v37 = vld [vmem:[%s11757_s1 + $0x108] sm:$0xff] }
0x3144   :  { %5846 = vmatprep.subr.mxu1 %v5709_v58  ;;  %v5704_v58 = vmul.f32 %v11156_v14, %v11490_v19  ;;  %v11532_v14 = vld [vmem:[%s11757_s1 + $0x100] sm:$0xff] }
0x3145   :  { %5847 = vmatpush2.msra.mxu1 %v5708_v12  ;;  %v5703_v12 = vmul.f32 %v11141_v35, %v11497_v13  ;;  %v5700_v35 = vmul.f32 %v11099_v41, %v11518_v63  ;;  %v7182_v41 = vunpack.i.h.bf16 %v11024_v52 }
0x3146   :  { %5848 = vmatprep.subr.mxu1 %v5707_v27  ;;  %v5702_v27 = vmul.f32 %v11127_v45, %v11504_v47  ;;  %v7177_v45 = vunpack.i.h.bf16 %v11017_v56  ;;  %v7179_v47 = vunpack.i.l.bf16 %v11024_v52  ;;  %v7348_v52 = vld [vmem:[%s11760_s4 + $0x40] sm:$0xff] }
0x3147   :  { %5849 = vmatpush2.msra.mxu1 %v5706_v8  ;;  %v5701_v8 = vmul.f32 %v11113_v36, %v11511_v10  ;;  %v12511_v36 = vld [vmem:[#allocation37_spill] sm:$0xff] }
0x3148   :  { %5850 = vmatprep.subr.mxu1 %v5705_v61  ;;  %v5699_v61 = vmul.f32 %v11085_v11, %v11525_v37  ;;  %v7184_v11 = vunpack.i.l.bf16 %v11032_v42 }
0x3149   :  { %5851 = vmatpush2.msra.mxu1 %v5704_v58  ;;  %v5698_v58 = vmul.f32 %v11071_v48, %v11532_v14  ;;  %v7199_v48 = vunpack.i.l.bf16 %v11038_v38 }
0x314a   :  { %5852 = vmatprep.subr.mxu1 %v5703_v12  ;;  %v12515_v12 = vld [vmem:[#allocation44_spill] sm:$0xff] }
0x314b   :  { %5853 = vmatpush2.msra.mxu1 %v5702_v27  ;;  %v12516_v27 = vld [vmem:[#allocation26_spill] sm:$0xff] }
0x314c   :  { %5854 = vmatprep.subr.mxu1 %v5701_v8 }
0x314d   :  { %5855 = vmatpush2.msra.mxu1 %v5700_v35  ;;  %v12517_v35 = vld [vmem:[#allocation29_spill] sm:$0xff] }
0x314e   :  { %5856 = vmatprep.subr.mxu1 %v5699_v61  ;;  %v12518_v61 = vld [vmem:[#allocation52_spill] sm:$0xff] }
0x314f   :  { %5857 = vmatpush2.msra.mxu1 %v5698_v58  ;;  %v12519_v58 = vld [vmem:[#allocation49_spill] sm:$0xff] }
0x3150   :  { %5907 = vmatprep.subr.mxu1 %v11047_v5  ;;  %5859 = vmatmul.mubr.f32.vlgmr.msra.gmra.mxu1 %v7177_v45  ;;  %v7187_v5 = vunpack.i.h.bf16 %v11032_v42  ;;  %v7352_v42 = vld [vmem:[%s11760_s4 + $0x20] sm:$0xff] }
0x3151   :  { %5908 = vmatpush1.msra.mxu1 %v11052_v43  ;;  %5864 = vmatprep.mubr.f32.mxu1 %v7179_v47  ;;  %v7189_v43 = vunpack.i.l.bf16 %v11034_v28 }
0x3152   :  { %5909 = vmatprep.subr.mxu1 %v11057_v2  ;;  %v7192_v2 = vunpack.i.h.bf16 %v11034_v28  ;;  %v7356_v28 = vld [vmem:[%s11760_s4] sm:$0xff] }
0x3153   :  { %5910 = vmatpush1.msra.mxu1 %v11062_v50  ;;  %v7194_v50 = vunpack.i.l.bf16 %v11036_v57 }
0x3154   :  { %5865 = vmatmul.mubr.f32.gmra.mxu1 %v7182_v41  ;;  %5911 = vmatprep.subr.mxu1 %v11068_v60  ;;  %v7197_v60 = vunpack.i.h.bf16 %v11036_v57 }
0x3155   :  { %5912 = vmatpush1.msra.mxu1 %v11076_v40  ;;  %5870 = vmatprep.mubr.f32.mxu1 %v7184_v11  ;;  %v12507_v40 = vld [vmem:[#allocation27_spill] sm:$0xff] }
0x3156   :  { %5913 = vmatprep.subr.mxu1 %v11082_v46  ;;  %v7202_v46 = vunpack.i.h.bf16 %v11038_v38  ;;  %v12530_v38 = vmov 0.0  }
0x3157   :  { %5914 = vmatpush1.msra.mxu1 %v11090_v15  ;;  %v12508_v15 = vld [vmem:[#allocation21_spill] sm:$0xff] }
0x3158   :  { %5871 = vmatmul.mubr.f32.gmra.mxu1 %v7187_v5  ;;  %5915 = vmatprep.subr.mxu1 %v11096_v9  ;;  %v12509_v9 = vld [vmem:[#allocation33_spill] sm:$0xff] }
0x3159   :  { %5916 = vmatpush1.msra.mxu1 %v11104_v29  ;;  %5876 = vmatprep.mubr.f32.mxu1 %v7189_v43  ;;  %v7204_v29 = vunpack.i.l.bf16 %v12509_v9 }
0x315a   :  { %5917 = vmatprep.subr.mxu1 %v11110_v54  ;;  %v12510_v54 = vld [vmem:[#allocation46_spill] sm:$0xff] }
0x315b   :  { %5918 = vmatpush1.msra.mxu1 %v11118_v33  ;;  %v12512_v33 = vld [vmem:[#allocation23_spill] sm:$0xff] }
0x315c   :  { %5877 = vmatmul.mubr.f32.gmra.mxu1 %v7192_v2  ;;  %5919 = vmatprep.subr.mxu1 %v11124_v62  ;;  %v7207_v62 = vunpack.i.h.bf16 %v12509_v9 }
0x315d   :  { %5920 = vmatpush1.msra.mxu1 %v11132_v51  ;;  %5882 = vmatprep.mubr.f32.mxu1 %v7194_v50  ;;  %v12513_v51 = vld [vmem:[#allocation42_spill] sm:$0xff] }
0x315e   :  { %5921 = vmatprep.subr.mxu1 %v11138_v0  ;;  %v12514_v0 = vld [vmem:[#allocation38_spill] sm:$0xff] }
0x315f   :  { %5922 = vmatpush1.msra.mxu1 %v11146_v18  ;;  %v7209_v18 = vunpack.i.l.bf16 %v12514_v0  ;;  %v7212_v8 = vunpack.i.h.bf16 %v12514_v0 }
0x3160   :  { %5883 = vmatmul.mubr.f32.gmra.mxu1 %v7197_v60  ;;  %5923 = vmatprep.subr.mxu1 %v12507_v40  ;;  %v12520_v40 = vld [vmem:[#allocation74_spill] sm:$0xff] }
0x3161   :  { %5924 = vmatpush1.msra.mxu1 %v12508_v15  ;;  %5888 = vmatprep.mubr.f32.mxu1 %v7199_v48  ;;  %v12521_v15 = vld [vmem:[#allocation30_spill] sm:$0xff] }
0x3162   :  { %5925 = vmatprep.subr.mxu1 %v12510_v54  ;;  %v12522_v54 = vld [vmem:[#allocation118_spill] sm:$0xff] }
0x3163   :  { %5926 = vmatpush1.msra.mxu1 %v12511_v36  ;;  %v12523_v36 = vunpack.i.l.bf16 %v11017_v56  ;;  %v7344_v56 = vld [vmem:[%s11760_s4 + $0x60] sm:$0xff] }
0x3164   :  { %5889 = vmatmul.mubr.f32.gmra.mxu1 %v7202_v46  ;;  %5927 = vmatprep.subr.mxu1 %v12512_v33  ;;  %v12524_v33 = vld [vmem:[#allocation50_spill] sm:$0xff] }
0x3165   :  { %5928 = vmatpush1.msra.mxu1 %v12513_v51  ;;  %5894 = vmatprep.mubr.f32.mxu1 %v7204_v29  ;;  %v12525_v51 = vld [vmem:[#allocation81_spill] sm:$0xff] }
0x3166   :  { %5929 = vmatprep.subr.mxu1 %v12515_v12  ;;  %v12526_v12 = vld [vmem:[#allocation117_spill] sm:$0xff] }
0x3167   :  { %5930 = vmatpush1.msra.mxu1 %v12516_v27 }
0x3168   :  { %5895 = vmatmul.mubr.f32.gmra.mxu1 %v7207_v62  ;;  %5931 = vmatprep.subr.mxu1 %v12517_v35 }
0x3169   :  { %5932 = vmatpush1.msra.mxu1 %v12518_v61  ;;  %5900 = vmatprep.mubr.f32.mxu1 %v7209_v18 }
0x316a   :  { %5933 = vmatprep.subr.mxu1 %v12519_v58 }
0x316b   :  { %5934 = vmatpush1.msra.mxu1 %v12520_v40 }
0x316c   :  { %5901 = vmatmul.mubr.f32.gmra.mxu1 %v7212_v8  ;;  %5935 = vmatprep.subr.mxu1 %v12521_v15 }
0x316d   :  { %5936 = vmatpush1.msra.mxu1 %v12522_v54  ;;  %5971 = vmatprep.mubr.f32.mxu1 %v12523_v36 }
0x316e   :  { %5937 = vmatprep.subr.mxu1 %v12524_v33 }
0x316f   :  { %5938 = vmatpush1.msra.mxu1 %v12525_v51 }
0x3170   :  { %5939 = vmatprep.subr.mxu1 %v11331_v17  ;;  %v7343_v17 = vld [vmem:[%s11760_s4 + $0x68] sm:$0xff] }
0x3171   :  { %5940 = vmatpush2.msra.mxu1 %v12526_v12 }
0x3172   :  { %5941 = vmatprep.subr.mxu1 %v11341_v4  ;;  %v7345_v4 = vld [vmem:[%s11760_s4 + $0x58] sm:$0xff] }
0x3173   :  { %5942 = vmatpush2.msra.mxu1 %v11346_v26  ;;  %v7346_v26 = vld [vmem:[%s11760_s4 + $0x50] sm:$0xff] }
0x3174   :  { %5943 = vmatprep.subr.mxu1 %v11352_v21  ;;  %v7342_v21 = vld [vmem:[%s11760_s4 + $0x70] sm:$0xff] }
0x3175   :  { %5944 = vmatpush2.msra.mxu1 %v11358_v22  ;;  %v12527_v22 = vld [vmem:[#allocation115_spill] sm:$0xff] }
0x3176   :  { %5945 = vmatprep.subr.mxu1 %v11364_v3  ;;  %v7341_v3 = vld [vmem:[%s11760_s4 + $0x78] sm:$0xff] }
0x3177   :  { %5946 = vmatpush2.msra.mxu1 %v11370_v23  ;;  %v7347_v23 = vld [vmem:[%s11760_s4 + $0x48] sm:$0xff] }
0x3178   :  { %5947 = vmatprep.subr.mxu1 %v11376_v6  ;;  %v7349_v6 = vld [vmem:[%s11760_s4 + $0x38] sm:$0xff] }
0x3179   :  { %5948 = vmatpush2.msra.mxu1 %v11382_v25  ;;  %v7350_v25 = vld [vmem:[%s11760_s4 + $0x30] sm:$0xff] }
0x317a   :  { %5949 = vmatprep.subr.mxu1 %v11388_v31  ;;  %v7351_v31 = vld [vmem:[%s11760_s4 + $0x28] sm:$0xff] }
0x317b   :  { %5950 = vmatpush2.msra.mxu1 %v11394_v20  ;;  %v7353_v20 = vld [vmem:[%s11760_s4 + $0x18] sm:$0xff] }
0x317c   :  { %5951 = vmatprep.subr.mxu1 %v11400_v55  ;;  %v7354_v55 = vld [vmem:[%s11760_s4 + $0x10] sm:$0xff] }
0x317d   :  { %5952 = vmatpush2.msra.mxu1 %v11406_v34  ;;  %v7355_v34 = vld [vmem:[%s11760_s4 + $0x8] sm:$0xff]  ;;  %s7381_s4 = smov [#allocation2]  }
0x317e   :  { %5953 = vmatprep.subr.mxu1 %v11413_v59  ;;  %v12528_v59 = vld [vmem:[#allocation108_spill] sm:$0xff]  ;;  %s6243_s6 = sshll.u32 %s7381_s4, 4  ;;  %s6244_s6 = int_to_ptr.vmem [resolvable:$true] %s6243_s6 }
0x317f   :  { %5954 = vmatpush2.msra.mxu1 %v11420_v24  ;;  %v6027_v24 = vadd.s32 48, %v12528_v59  ;;  %v6028_v57 = vadd.s32 56, %v12528_v59  ;;  %s7357_s7 = scalar_lea.vmem %s6244_s6, 2048  ;;  %p7362_p1 = scmp.lt.s32.totalorder %s6244_s6, %s6244_s6 }
0x3180   :  { %5955 = vmatprep.subr.mxu1 %v11427_v30  ;;  %v12529_v30 = vld [vmem:[#allocation5_spill] sm:$0xff]  ;;  %p7358_p0 = scmp.ne.s32.totalorder %s6244_s6, %s7357_s7  ;;  %p7363_p2 = scmp.lt.s32.totalorder %s7357_s7, %s7357_s7 }
0x3181   :  { %5956 = vmatpush2.msra.mxu1 %v11434_v39  ;;  %vm6035_vm12 = vcmp.le.s32.totalorder %v12529_v30, %v6027_v24  ;;  %vm6036_vm13 = vcmp.le.s32.totalorder %v12529_v30, %v6028_v57 }
0x3182   :  { %5957 = vmatprep.subr.mxu1 %v11441_v44  ;;  %v6484_v39 = vsel %vm6035_vm12, 1.0, %v12530_v38  ;;  %v6485_v44 = vsel %vm6036_vm13, 1.0, %v12530_v38  ;;  %p7364_p3 = por %p7363_p2, %p7362_p1 }
0x3183   :  { %5958 = vmatpush2.msra.mxu1 %v11448_v1 }
0x3184   :  { %5959 = vmatprep.subr.mxu1 %v11455_v49  ;;  %p7365_p4 = pnand %p7364_p3, %p7358_p0 }
0x3185   :  { %5960 = vmatpush2.msra.mxu1 %v11462_v7 }
0x3186   :  { %5961 = vmatprep.subr.mxu1 %v11469_v16 }
0x3187   :  { %5962 = vmatpush2.msra.mxu1 %v11476_v53 }
0x3188   :  { %5963 = vmatprep.subr.mxu1 %v11483_v32 }
0x3189   :  { %5964 = vmatpush2.msra.mxu1 %v11490_v19 }
0x318a   :  { %5965 = vmatprep.subr.mxu1 %v11497_v13 }
0x318b   :  { %5966 = vmatpush2.msra.mxu1 %v12527_v22 }
0x318c   :  { %5967 = vmatprep.subr.mxu1 %v11511_v10 }
0x318d   :  { %5968 = vmatpush2.msra.mxu1 %v11518_v63 }
0x318e   :  { %5969 = vmatprep.subr.mxu1 %v11525_v37 }
0x318f   :  { %5970 = vmatpush2.msra.mxu1 %v11532_v14 }
0x3190   :  { %5972 = vmatmul.mubr.f32.vlgmr.msra.gmra.mxu1 %v7177_v45  ;;  %7118 = vmatprep.subr.mxu1 %v7341_v3 }
0x3191   :  { %5977 = vmatprep.mubr.f32.mxu1 %v7179_v47  ;;  %7126 = vmatpush1.msra.mxu1 %v7342_v21 }
0x3192   :  { %7119 = vmatprep.subr.mxu1 %v7343_v17 }
0x3193   :  { %7127 = vmatpush1.msra.mxu1 %v7344_v56 }
0x3194   :  { %5978 = vmatmul.mubr.f32.gmra.mxu1 %v7182_v41  ;;  %7120 = vmatprep.subr.mxu1 %v7345_v4 }
0x3195   :  { %5983 = vmatprep.mubr.f32.mxu1 %v7184_v11  ;;  %7128 = vmatpush1.msra.mxu1 %v7346_v26 }
0x3196   :  { %7121 = vmatprep.subr.mxu1 %v7347_v23 }
0x3197   :  { %7129 = vmatpush1.msra.mxu1 %v7348_v52 }
0x3198   :  { %5984 = vmatmul.mubr.f32.gmra.mxu1 %v7187_v5  ;;  %7122 = vmatprep.subr.mxu1 %v7349_v6 }
0x3199   :  { %5989 = vmatprep.mubr.f32.mxu1 %v7189_v43  ;;  %7130 = vmatpush1.msra.mxu1 %v7350_v25 }
0x319a   :  { %7123 = vmatprep.subr.mxu1 %v7351_v31 }
0x319b   :  { %7131 = vmatpush1.msra.mxu1 %v7352_v42 }
0x319c   :  { %5990 = vmatmul.mubr.f32.gmra.mxu1 %v7192_v2  ;;  %7124 = vmatprep.subr.mxu1 %v7353_v20 }
0x319d   :  { %5995 = vmatprep.mubr.f32.mxu1 %v7194_v50  ;;  %7132 = vmatpush1.msra.mxu1 %v7354_v55 }
0x319e   :  { %7125 = vmatprep.subr.mxu1 %v7355_v34 }
0x319f   :  { %7133 = vmatpush1.msra.mxu1 %v7356_v28 }
0x31a0   :  { %5996 = vmatmul.mubr.f32.gmra.mxu1 %v7197_v60 }
0x31a1   :  { %6001 = vmatprep.mubr.f32.mxu1 %v7199_v48 }
0x31a4   :  { %6002 = vmatmul.mubr.f32.gmra.mxu1 %v7202_v46 }
0x31a5   :  { %6007 = vmatprep.mubr.f32.mxu1 %v7204_v29 }
0x31a8   :  { %6008 = vmatmul.mubr.f32.gmra.mxu1 %v7207_v62 }
0x31a9   :  { %6013 = vmatprep.mubr.f32.mxu1 %v7209_v18 }
0x31ac   :  { %6014 = vmatmul.mubr.f32.gmra.mxu1 %v7212_v8 }
0x31ad   :  { %6177 = vmatprep.mubr.f32.mxu1 %v12530_v38 }
0x31b0   :  { %6492 = vmatmul.mubr.msk.f32.vlgmr.msra.gmra.mxu1 %vm12531_vm14, %v6484_v39 }
0x31b1   :  { %6183 = vmatprep.mubr.f32.mxu1 %v12530_v38 }
0x31b4   :  { %6493 = vmatmul.mubr.msk.f32.gmra.mxu1 %vm12532_vm15, %v6485_v44 }
0x31cd   :  { %v6143_v63 = vpop.f32.mrf.mxu0 }
0x31cf   :  { %v6145_v14 = vpop.f32.mrf.mxu0 }
0x31d1   :  { %v6149_v41 = vpop.f32.mrf.mxu0 }
0x31d3   :  { %v6151_v5 = vpop.f32.mrf.mxu0 }
0x31d5   :  { %v6155_v2 = vpop.f32.mrf.mxu0 }
0x31d7   :  { %v6157_v60 = vpop.f32.mrf.mxu0 }
0x31d9   :  { %v6161_v9 = vpop.f32.mrf.mxu0 }
0x31db   :  { %v6163_v27 = vpop.f32.mrf.mxu0 }
0x31dd   :  { %v6167_v40 = vpop.f32.mrf.mxu0 }
0x31df   :  { %v6169_v51 = vpop.f32.mrf.mxu0 }
0x31e1   :  { %v6173_v17 = vpop.f32.mrf.mxu0 }
0x31e3   :  { %v6175_v52 = vpop.f32.mrf.mxu0 }
0x3210   :  { %v5860_v1 = vpop.f32.mrf.mxu1 }
0x3212   :  { %v5862_v49 = vpop.f32.mrf.mxu1 }
0x3214   :  { %v5866_v7 = vpop.f32.mrf.mxu1 }
0x3216   :  { %v5868_v16 = vpop.f32.mrf.mxu1 }
0x3218   :  { %v5872_v53 = vpop.f32.mrf.mxu1 }
0x321a   :  { %v5874_v32 = vpop.f32.mrf.mxu1 }
0x321c   :  { %v5878_v19 = vpop.f32.mrf.mxu1 }
0x321e   :  { %v5880_v13 = vpop.f32.mrf.mxu1 }
0x3220   :  { %v5884_v47 = vpop.f32.mrf.mxu1 }
0x3222   :  { %v5886_v10 = vpop.f32.mrf.mxu1 }
0x3224   :  { %v5890_v37 = vpop.f32.mrf.mxu1 }
0x3226   :  { %v5892_v45 = vpop.f32.mrf.mxu1 }
0x3228   :  { %v11741_v11 = vpop.f32.mrf.mxu1 }
0x322a   :  { %v11743_v43 = vpop.f32.mrf.mxu1 }
0x322c   :  { %v11745_v50 = vpop.f32.mrf.mxu1 }
0x322e   :  { %v11747_v48 = vpop.f32.mrf.mxu1 }
0x3250   :  { %v5973_v46 = vpop.f32.mrf.mxu1 }
0x3251   :  { %vm6190_vm0 = vcmp.gt.f32.partialorder %v5973_v46, 0.5 }
0x3252   :  { %v6206_v29 = vsel %vm6190_vm0, %v5860_v1, %v6143_v63  ;;  %v5975_v62 = vpop.f32.mrf.mxu1 }
0x3253   :  { %6222 = vst [vmem:[#allocation2] sm:$0xff] %v6206_v29  ;;  %vm6191_vm1 = vcmp.gt.f32.partialorder %v5975_v62, 0.5 }
0x3254   :  { %v6207_v0 = vsel %vm6191_vm1, %v5862_v49, %v6145_v14  ;;  %v5979_v18 = vpop.f32.mrf.mxu1 }
0x3255   :  { %6223 = vst [vmem:[#allocation2 + $0x8] sm:$0xff] %v6207_v0  ;;  %vm6192_vm3 = vcmp.gt.f32.partialorder %v5979_v18, 0.5 }
0x3256   :  { %v6208_v8 = vsel %vm6192_vm3, %v5866_v7, %v6149_v41  ;;  %v5981_v35 = vpop.f32.mrf.mxu1 }
0x3257   :  { %6224 = vst [vmem:[#allocation2 + $0x10] sm:$0xff] %v6208_v8  ;;  %vm6193_vm4 = vcmp.gt.f32.partialorder %v5981_v35, 0.5 }
0x3258   :  { %v6209_v61 = vsel %vm6193_vm4, %v5868_v16, %v6151_v5  ;;  %v5985_v58 = vpop.f32.mrf.mxu1 }
0x3259   :  { %6225 = vst [vmem:[#allocation2 + $0x18] sm:$0xff] %v6209_v61  ;;  %vm6194_vm5 = vcmp.gt.f32.partialorder %v5985_v58, 0.5 }
0x325a   :  { %v6210_v15 = vsel %vm6194_vm5, %v5872_v53, %v6155_v2  ;;  %v5987_v54 = vpop.f32.mrf.mxu1 }
0x325b   :  { %6226 = vst [vmem:[#allocation2 + $0x20] sm:$0xff] %v6210_v15  ;;  %vm6195_vm9 = vcmp.gt.f32.partialorder %v5987_v54, 0.5 }
0x325c   :  { %v6211_v36 = vsel %vm6195_vm9, %v5874_v32, %v6157_v60  ;;  %v5991_v33 = vpop.f32.mrf.mxu1 }
0x325d   :  { %6227 = vst [vmem:[#allocation2 + $0x28] sm:$0xff] %v6211_v36  ;;  %vm6196_vm8 = vcmp.gt.f32.partialorder %v5991_v33, 0.5 }
0x325e   :  { %v6212_v12 = vsel %vm6196_vm8, %v5878_v19, %v6161_v9  ;;  %v5993_v22 = vpop.f32.mrf.mxu1 }
0x325f   :  { %6228 = vst [vmem:[#allocation2 + $0x30] sm:$0xff] %v6212_v12  ;;  %vm6197_vm6 = vcmp.gt.f32.partialorder %v5993_v22, 0.5 }
0x3260   :  { %v6213_v3 = vsel %vm6197_vm6, %v5880_v13, %v6163_v27  ;;  %v5997_v21 = vpop.f32.mrf.mxu1 }
0x3261   :  { %6229 = vst [vmem:[#allocation2 + $0x38] sm:$0xff] %v6213_v3  ;;  %vm6198_vm7 = vcmp.gt.f32.partialorder %v5997_v21, 0.5 }
0x3262   :  { %v6214_v56 = vsel %vm6198_vm7, %v5884_v47, %v6167_v40  ;;  %v5999_v4 = vpop.f32.mrf.mxu1 }
0x3263   :  { %6230 = vst [vmem:[#allocation2 + $0x40] sm:$0xff] %v6214_v56  ;;  %vm6199_vm2 = vcmp.gt.f32.partialorder %v5999_v4, 0.5 }
0x3264   :  { %v6215_v26 = vsel %vm6199_vm2, %v5886_v10, %v6169_v51  ;;  %v6003_v23 = vpop.f32.mrf.mxu1 }
0x3265   :  { %6231 = vst [vmem:[#allocation2 + $0x48] sm:$0xff] %v6215_v26  ;;  %vm6200_vm10 = vcmp.gt.f32.partialorder %v6003_v23, 0.5 }
0x3266   :  { %v6216_v6 = vsel %vm6200_vm10, %v5890_v37, %v6173_v17  ;;  %v6005_v25 = vpop.f32.mrf.mxu1 }
0x3267   :  { %6232 = vst [vmem:[#allocation2 + $0x50] sm:$0xff] %v6216_v6  ;;  %vm6201_vm11 = vcmp.gt.f32.partialorder %v6005_v25, 0.5 }
0x3268   :  { %v6217_v31 = vsel %vm6201_vm11, %v5892_v45, %v6175_v52  ;;  %v6009_v42 = vpop.f32.mrf.mxu1 }
0x3269   :  { %6233 = vst [vmem:[#allocation2 + $0x58] sm:$0xff] %v6217_v31  ;;  %vm6202_vm12 = vcmp.gt.f32.partialorder %v6009_v42, 0.5 }
0x326a   :  { %v6011_v20 = vpop.f32.mrf.mxu1 }
0x326b   :  { %vm6203_vm13 = vcmp.gt.f32.partialorder %v6011_v20, 0.5 }
0x326c   :  { %v6015_v55 = vpop.f32.mrf.mxu1 }
0x326d   :  { %vm6204_vm14 = vcmp.gt.f32.partialorder %v6015_v55, 0.5 }
0x326e   :  { %v6017_v34 = vpop.f32.mrf.mxu1 }
0x326f   :  { %vm6205_vm15 = vcmp.gt.f32.partialorder %v6017_v34, 0.5 }
0x3270   :  { %v6179_v28 = vpop.f32.mrf.mxu1 }
0x3271   :  { %v6218_v59 = vsel %vm6202_vm12, %v11741_v11, %v6179_v28 }
0x3272   :  { %6234 = vst [vmem:[#allocation2 + $0x60] sm:$0xff] %v6218_v59  ;;  %v6181_v24 = vpop.f32.mrf.mxu1 }
0x3273   :  { %v6219_v30 = vsel %vm6203_vm13, %v11743_v43, %v6181_v24 }
0x3274   :  { %6235 = vst [vmem:[#allocation2 + $0x68] sm:$0xff] %v6219_v30  ;;  %v6185_v57 = vpop.f32.mrf.mxu1 }
0x3275   :  { %v6220_v38 = vsel %vm6204_vm14, %v11745_v50, %v6185_v57 }
0x3276   :  { %6236 = vst [vmem:[#allocation2 + $0x70] sm:$0xff] %v6220_v38  ;;  %v6187_v39 = vpop.f32.mrf.mxu1 }
0x3277   :  { %v6221_v44 = vsel %vm6205_vm15, %v11747_v48, %v6187_v39 }
0x3278   :  { %6237 = vst [vmem:[#allocation2 + $0x78] sm:$0xff] %v6221_v44 }
0x3279   :  { %7368 = shalt.err (!%p7365_p4)
}
0x327a   :  { %s7382_s8 = smov 256   ;;  %s7383_s9 = smov 16  }
0x327b   :  { %6249 = dma.vmem_to_hbm [thread:$0]  %s6244_s6, 2048, %s11761_s5, [#allocation3], %s7382_s8, %s7382_s8, %s7383_s9  }
0x327c   :  { %7377 = dma.done.wait [#allocation3], 2048  }
0x327d   :  { %7378 = vsyncadd [#allocation3], 4294965248 }
0x327e   :  { %6253 = vsyncpa [#allocation3], 1 }

</bundles_post_ra>
